<compile_context>
chip_gen: v7x
topology: tpu7x:2x2x1
jax: 0.10.0
libtpu: 0.0.40
codegen_flags: <defaults>
</compile_context>

<pallas_src>
import jax
import jax.numpy as jnp
from jax.experimental import pallas as pl

GIN_EPS = 0.0      # MaskedGINConv eps (default, not trained)
BN_EPS = 1e-5
LN_EPS = 1e-5


# ----------------------------------------------------------------------------
# In-kernel helpers
# ----------------------------------------------------------------------------
def _masked_bn_relu(h, m, inv_cnt, g, b):
    """mask -> masked batch-norm (stats over rows where m==1) -> ReLU."""
    h = h * m
    mean = jnp.sum(h * m, axis=0, keepdims=True) * inv_cnt
    var = jnp.sum(((h - mean) ** 2) * m, axis=0, keepdims=True) * inv_cnt
    normed = (h - mean) * jax.lax.rsqrt(var + BN_EPS) * g + b
    return jnp.maximum(jnp.where(m > 0, normed, h), 0.0)


# ----------------------------------------------------------------------------
# Pallas kernels (each is a single fused pallas_call; grid=() -> whole arrays
# live in VMEM, working set is well under 1 MiB)
# ----------------------------------------------------------------------------
def _make_phi_kernel(nl_phi):
    """Fused GNN3d(MaskedGINConv) stack; both +/- sign branches computed and summed.

    refs: x [NK,1] f32, akron=kron(A,I_K) [NK,NK] bf16, mask [NK,1] f32,
          per layer (W1, b1, W2, b2, bn_g, bn_b), output [NK, n_hid] f32.
    """
    def kernel(x_ref, ak_ref, m_ref, *rest):
        o_ref = rest[-1]
        lrefs = rest[:-1]
        m = m_ref[...]
        inv_cnt = 1.0 / jnp.maximum(jnp.sum(m), 1.0)
        ak = ak_ref[...]
        x0 = x_ref[...]
        branch_out = []
        for sign in (1.0, -1.0):                      # phi(x) and phi(-x)
            xb = x0 * sign
            prev = 0.0
            for l in range(nl_phi):
                w1, b1, w2, b2, g, beta = lrefs[6 * l:6 * l + 6]
                if l == 0:
                    # Linear(1, H) folded into a VPU broadcast; the (linear)
                    # neighbour aggregation is lifted to H lanes first so the
                    # A-matmul runs with 32 output lanes instead of 1.
                    u = xb * w1[...]
                    h1 = ((1.0 + GIN_EPS) * u + b1[...]
                          + jnp.dot(ak, u.astype(jnp.bfloat16),
                                    preferred_element_type=jnp.float32))
                else:
                    aggr = jnp.dot(ak, xb.astype(jnp.bfloat16),
                                   preferred_element_type=jnp.float32)
                    h = (1.0 + GIN_EPS) * xb + aggr
                    h1 = jnp.dot(h.astype(jnp.bfloat16), w1[...],
                                 preferred_element_type=jnp.float32) + b1[...]
                h1 = jnp.maximum(h1, 0.0)
                h2 = jnp.dot(h1.astype(jnp.bfloat16), w2[...],
                             preferred_element_type=jnp.float32) + b2[...]
                xb = _masked_bn_relu(h2, m, inv_cnt, g[...], beta[...]) + prev
                prev = xb
            branch_out.append(xb)
        o_ref[...] = branch_out[0] + branch_out[1]
    return kernel


def _make_masked_mlp_kernel(nlayer):
    """Fused MaskedMLP: nlayer x (Linear -> mask -> MaskedBN -> ReLU)."""
    def kernel(s_ref, m_ref, *rest):
        o_ref = rest[-1]
        lrefs = rest[:-1]
        m = m_ref[...]
        inv_cnt = 1.0 / jnp.maximum(jnp.sum(m), 1.0)
        h = s_ref[...]
        for l in range(nlayer):
            w, b, g, beta = lrefs[4 * l:4 * l + 4]
            if l == 0:
                h = h * w[...] + b[...]               # Linear(1, H) on the VPU
            else:
                h = jnp.dot(h.astype(jnp.bfloat16), w[...],
                            preferred_element_type=jnp.float32) + b[...]
            h = _masked_bn_relu(h, m, inv_cnt, g[...], beta[...])
        o_ref[...] = h
    return kernel


def _transformer_layer_kernel(x_ref, am_ref, mr_ref,
                              wqkv_ref, bqkv_ref, wo_ref, bo_ref,
                              ln1g_ref, ln1b_ref, wf1_ref, bf1_ref,
                              wf2_ref, bf2_ref, ln2g_ref, ln2b_ref, o_ref):
    """One fused SetTransformer encoder layer on flat [N*K, C] activations.

    am = block-diagonal attention mask (same-node AND key-unmasked), [NK, NK].
    mr = per-row (node, eig-slot) mask, [NK, 1].
    """
    NK, C = x_ref.shape
    H, Dh = wqkv_ref.shape[1], wqkv_ref.shape[3]
    xf = x_ref[...]
    xb = xf.astype(jnp.bfloat16)
    am = am_ref[...]
    scale = 1.0 / float(Dh) ** 0.5

    def ln(v, g, b):
        mu = jnp.mean(v, axis=-1, keepdims=True)
        var = jnp.mean((v - mu) ** 2, axis=-1, keepdims=True)
        return (v - mu) * jax.lax.rsqrt(var + LN_EPS) * g + b

    # Multi-head attention: per-head weights are leading-indexed (no in-kernel
    # head transpose), per-node structure comes from the block-diagonal mask,
    # and the head-concat + out-projection is fused as a sum of per-head dots.
    attn = jnp.zeros((NK, C), jnp.float32)
    for h in range(H):
        q = jnp.dot(xb, wqkv_ref[0, h].astype(jnp.bfloat16),
                    preferred_element_type=jnp.float32) + bqkv_ref[0, h]
        k = jnp.dot(xb, wqkv_ref[1, h].astype(jnp.bfloat16),
                    preferred_element_type=jnp.float32) + bqkv_ref[1, h]
        v = jnp.dot(xb, wqkv_ref[2, h].astype(jnp.bfloat16),
                    preferred_element_type=jnp.float32) + bqkv_ref[2, h]
        s = jnp.einsum('qd,kd->qk', q.astype(jnp.bfloat16), k.astype(jnp.bfloat16),
                       preferred_element_type=jnp.float32) * scale
        s = jnp.where(am > 0, s, -1e9)
        s = s - jnp.max(s, axis=-1, keepdims=True)
        p = jnp.exp(s)
        p = p * pl.reciprocal(jnp.sum(p, axis=-1, keepdims=True), approx=True)
        oh = jnp.dot(p.astype(jnp.bfloat16), v.astype(jnp.bfloat16),
                     preferred_element_type=jnp.float32)            # [NK, Dh]
        attn = attn + jnp.dot(oh, wo_ref[h], preferred_element_type=jnp.float32)
    attn = attn + bo_ref[...]

    h1 = ln(xf + attn, ln1g_ref[...], ln1b_ref[...])
    ff = jnp.maximum(
        jnp.dot(h1.astype(jnp.bfloat16), wf1_ref[...],
                preferred_element_type=jnp.float32) + bf1_ref[...], 0.0)
    ff = jnp.dot(ff.astype(jnp.bfloat16), wf2_ref[...],
                 preferred_element_type=jnp.float32) + bf2_ref[...]
    h2 = ln(h1 + ff, ln2g_ref[...], ln2b_ref[...])
    o_ref[...] = h2 * mr_ref[...]                     # keep padded slots at 0


def _rho_out_kernel(x_ref, ssum_ref, w_ref, g_ref, b_ref, o_ref):
    """sum over eig slots (via matmul) -> Linear(bias=False) -> BatchNorm1d."""
    xs = jnp.dot(ssum_ref[...], x_ref[...], preferred_element_type=jnp.float32)
    y = jnp.dot(xs.astype(jnp.bfloat16), w_ref[...],
                preferred_element_type=jnp.float32)
    mean = jnp.mean(y, axis=0, keepdims=True)
    var = jnp.mean((y - mean) ** 2, axis=0, keepdims=True)
    o_ref[...] = (y - mean) * jax.lax.rsqrt(var + BN_EPS) * g_ref[...] + b_ref[...]


# ----------------------------------------------------------------------------
# Forward pass (5 pallas_calls total; only trivial flatten/add glue in XLA)
# ----------------------------------------------------------------------------
@jax.jit
def signnet_forward(params, eigV_dense, eigS_dense, A, mf):
    f32 = jnp.float32
    N, K = eigV_dense.shape
    n_hid = params['rho']['W_out'].shape[0]
    NK = N * K

    mflat = mf.astype(f32).reshape(NK, 1)
    x_flat = eigV_dense.astype(f32).reshape(NK, 1)
    s_flat = eigS_dense.astype(f32).reshape(NK, 1)

    # Graph-structure operands shared by all layers (tiny, computed once/call).
    akron = jnp.kron(A.astype(f32), jnp.eye(K, dtype=f32)).astype(jnp.bfloat16)
    amask = jnp.kron(jnp.eye(N, dtype=f32), jnp.ones((K, K), f32)) * mflat.reshape(1, NK)
    ssum = jnp.kron(jnp.eye(N, dtype=f32), jnp.ones((1, K), f32))

    # eigen encoder (MaskedMLP) -- one fused kernel
    eig_args = []
    for lp in params['eig']:
        eig_args += [lp['W'], lp['b'], lp['bn_g'], lp['bn_b']]
    pos = pl.pallas_call(
        _make_masked_mlp_kernel(len(params['eig'])),
        out_shape=jax.ShapeDtypeStruct((NK, n_hid), f32),
    )(s_flat, mflat, *eig_args)

    # phi: full GIN stack, both sign branches, summed -- one fused kernel
    phi_args = []
    for lp in params['phi']:
        phi_args += [lp['W1'], lp['b1'], lp['W2'], lp['b2'], lp['bn_g'], lp['bn_b']]
    h = pl.pallas_call(
        _make_phi_kernel(len(params['phi'])),
        out_shape=jax.ShapeDtypeStruct((NK, n_hid), f32),
    )(x_flat, akron, mflat, *phi_args)

    # rho: SetTransformer, one fused kernel per encoder layer
    x = h + pos
    for lp in params['rho']['layers']:
        x = pl.pallas_call(
            _transformer_layer_kernel,
            out_shape=jax.ShapeDtypeStruct((NK, n_hid), f32),
        )(x, amask, mflat, lp['Wqkv'], lp['bqkv'], lp['Wo'], lp['bo'],
          lp['ln1_g'], lp['ln1_b'], lp['Wf1'], lp['bf1'],
          lp['Wf2'], lp['bf2'], lp['ln2_g'], lp['ln2_b'])

    # set-sum + Linear(no bias) + BatchNorm1d -- one fused kernel
    return pl.pallas_call(
        _rho_out_kernel,
        out_shape=jax.ShapeDtypeStruct((N, n_hid), f32),
    )(x, ssum, params['rho']['W_out'], params['rho']['bn_g'], params['rho']['bn_b'])


# ----------------------------------------------------------------------------
# Deterministic parameter init + one-time kernel-layout preparation
# ----------------------------------------------------------------------------
def init_params(key, n_hid, nl_phi, nl_rho, ffn_mult=2):
    ks = jax.random.split(key, 256)
    it = iter(range(256))

    def W(shape):
        return 0.1 * jax.random.normal(ks[next(it)], shape, jnp.float32)

    zeros = lambda s: jnp.zeros(s, jnp.float32)
    ones = lambda s: jnp.ones(s, jnp.float32)

    phi = []
    for i in range(nl_phi):
        d_in = 1 if i == 0 else n_hid
        phi.append(dict(W1=W((d_in, n_hid)), b1=zeros((n_hid,)),
                        W2=W((n_hid, n_hid)), b2=zeros((n_hid,)),
                        bn_g=ones((n_hid,)), bn_b=zeros((n_hid,))))

    eig = []
    d_in = 1
    for _ in range(2):                                  # MaskedMLP(1, n_hid, nlayer=2)
        eig.append(dict(W=W((d_in, n_hid)), b=zeros((n_hid,)),
                        bn_g=ones((n_hid,)), bn_b=zeros((n_hid,))))
        d_in = n_hid

    layers = []
    for _ in range(nl_rho):
        layers.append(dict(
            Wq=W((n_hid, n_hid)), bq=zeros((n_hid,)),
            Wk=W((n_hid, n_hid)), bk=zeros((n_hid,)),
            Wv=W((n_hid, n_hid)), bv=zeros((n_hid,)),
            Wo=W((n_hid, n_hid)), bo=zeros((n_hid,)),
            ln1_g=ones((n_hid,)), ln1_b=zeros((n_hid,)),
            Wf1=W((n_hid, ffn_mult * n_hid)), bf1=zeros((ffn_mult * n_hid,)),
            Wf2=W((ffn_mult * n_hid, n_hid)), bf2=zeros((n_hid,)),
            ln2_g=ones((n_hid,)), ln2_b=zeros((n_hid,))))
    rho = dict(layers=layers, W_out=W((n_hid, n_hid)),
               bn_g=ones((n_hid,)), bn_b=zeros((n_hid,)))
    return dict(phi=phi, eig=eig, rho=rho)


def prepare_params(params, n_head=4):
    """One-time dtype/layout prep: bf16 matmul weights, [1,D] biases, per-head splits."""
    f32, bf16 = jnp.float32, jnp.bfloat16
    row = lambda v: v.reshape(1, -1).astype(f32)

    phi = []
    for i, lp in enumerate(params['phi']):
        phi.append(dict(
            W1=lp['W1'].astype(f32) if i == 0 else lp['W1'].astype(bf16),
            b1=row(lp['b1']), W2=lp['W2'].astype(bf16), b2=row(lp['b2']),
            bn_g=row(lp['bn_g']), bn_b=row(lp['bn_b'])))

    eig = []
    for i, lp in enumerate(params['eig']):
        eig.append(dict(
            W=lp['W'].astype(f32) if i == 0 else lp['W'].astype(bf16),
            b=row(lp['b']), bn_g=row(lp['bn_g']), bn_b=row(lp['bn_b'])))

    layers = []
    for lp in params['rho']['layers']:
        C = lp['Wq'].shape[0]
        Dh = C // n_head
        wqkv = jnp.stack([lp['Wq'], lp['Wk'], lp['Wv']], 0)            # [3, C, C]
        wqkv = wqkv.reshape(3, C, n_head, Dh).transpose(0, 2, 1, 3)    # [3, H, C, Dh]
        bqkv = jnp.stack([lp['bq'], lp['bk'], lp['bv']], 0).reshape(3, n_head, 1, Dh)
        layers.append(dict(
            Wqkv=wqkv.astype(f32), bqkv=bqkv.astype(f32),
            Wo=lp['Wo'].reshape(n_head, Dh, C).astype(f32), bo=row(lp['bo']),
            ln1_g=row(lp['ln1_g']), ln1_b=row(lp['ln1_b']),
            Wf1=lp['Wf1'].astype(bf16), bf1=row(lp['bf1']),
            Wf2=lp['Wf2'].astype(bf16), bf2=row(lp['bf2']),
            ln2_g=row(lp['ln2_g']), ln2_b=row(lp['ln2_b'])))
    rho = dict(layers=layers, W_out=params['rho']['W_out'].astype(bf16),
               bn_g=row(params['rho']['bn_g']), bn_b=row(params['rho']['bn_b']))
    return dict(phi=phi, eig=eig, rho=rho)


# ----------------------------------------------------------------------------
# Main
# ----------------------------------------------------------------------------
if __name__ == "__main__":
    key = jax.random.PRNGKey(0)
    n_hid, nl_phi, nl_rho = 32, 2, 2
    K = 8                                               # eigenvectors per graph
    sizes = [10, 6]                                     # nodes per graph
    N, B = sum(sizes), len(sizes)

    batch = jnp.concatenate(
        [jnp.full((s,), g, jnp.int32) for g, s in enumerate(sizes)])

    # ring graphs, directed edges both ways
    src, dst, off = [], [], 0
    for s in sizes:
        for i in range(s):
            j = (i + 1) % s
            src += [off + i, off + j]
            dst += [off + j, off + i]
        off += s
    edge_index = jnp.array([src, dst], jnp.int32)
    A = jnp.zeros((N, N), jnp.float32).at[edge_index[1], edge_index[0]].add(1.0)

    # mask (scatter of ones over batch, then arange comparison -- same as module)
    size = jnp.zeros((B,), jnp.int32).at[batch].add(1)
    mask = jnp.arange(K)[None, :] < size[:, None]
    mask_full = mask[batch]                             # [N, K]
    mf = mask_full.astype(jnp.float32)

    kv, ks_, kp = jax.random.split(key, 3)
    eigV_dense = jax.random.normal(kv, (N, K), jnp.float32) * mf
    eigS_graph = jnp.abs(jax.random.normal(ks_, (B, K), jnp.float32))
    eigS_dense = eigS_graph[batch] * mf

    params = prepare_params(init_params(kp, n_hid, nl_phi, nl_rho))

    out = signnet_forward(params, eigV_dense, eigS_dense, A, mf)
    out = jax.block_until_ready(out)
    assert out.shape == (N, n_hid) and bool(jnp.all(jnp.isfinite(out)))
    print("KERNEL_OK")
</pallas_src>

<mosaic_0001>
module attributes {stable_mosaic.version = 11 : i64} {
  func.func @kernel(%arg0: memref<128x1xf32, #tpu.memory_space<vmem>>, %arg1: memref<128x1xf32, #tpu.memory_space<vmem>>, %arg2: memref<1x32xf32, #tpu.memory_space<vmem>>, %arg3: memref<1x32xf32, #tpu.memory_space<vmem>>, %arg4: memref<1x32xf32, #tpu.memory_space<vmem>>, %arg5: memref<1x32xf32, #tpu.memory_space<vmem>>, %arg6: memref<32x32xbf16, #tpu.memory_space<vmem>>, %arg7: memref<1x32xf32, #tpu.memory_space<vmem>>, %arg8: memref<1x32xf32, #tpu.memory_space<vmem>>, %arg9: memref<1x32xf32, #tpu.memory_space<vmem>>, %arg10: memref<128x32xf32, #tpu.memory_space<vmem>>) attributes {dimension_semantics = [], scalar_prefetch = 0 : i64, scratch_operands = 0 : i64, tpu.core_type = #tpu.core_type<tc>} {
    %c0 = arith.constant 0 : index
    %c0_0 = arith.constant 0 : index
    %0 = vector.load %arg1[%c0, %c0_0] : memref<128x1xf32, #tpu.memory_space<vmem>>, vector<128x1xf32>
    %1 = vector.shape_cast %0 : vector<128x1xf32> to vector<1x128x1xf32>
    %cst = arith.constant dense<0.000000e+00> : vector<1xf32>
    %2 = vector.multi_reduction <add>, %1, %cst [1, 2] : vector<1x128x1xf32> to vector<1xf32>
    %3 = vector.shape_cast %2 : vector<1xf32> to vector<1x1x1xf32>
    %4 = vector.extract %3[0, 0, 0] : f32 from vector<1x1x1xf32>
    %cst_1 = arith.constant 1.000000e+00 : f32
    %5 = arith.maximumf %4, %cst_1 : f32
    %cst_2 = arith.constant 1.000000e+00 : f32
    %6 = arith.divf %cst_2, %5 : f32
    %c0_3 = arith.constant 0 : index
    %c0_4 = arith.constant 0 : index
    %7 = vector.load %arg0[%c0_3, %c0_4] : memref<128x1xf32, #tpu.memory_space<vmem>>, vector<128x1xf32>
    %c0_5 = arith.constant 0 : index
    %c0_6 = arith.constant 0 : index
    %8 = vector.load %arg2[%c0_5, %c0_6] : memref<1x32xf32, #tpu.memory_space<vmem>>, vector<1x32xf32>
    %9 = vector.broadcast %7 : vector<128x1xf32> to vector<128x32xf32>
    %10 = vector.broadcast %8 : vector<1x32xf32> to vector<128x32xf32>
    %11 = arith.mulf %9, %10 : vector<128x32xf32>
    %c0_7 = arith.constant 0 : index
    %c0_8 = arith.constant 0 : index
    %12 = vector.load %arg3[%c0_7, %c0_8] : memref<1x32xf32, #tpu.memory_space<vmem>>, vector<1x32xf32>
    %13 = vector.broadcast %12 : vector<1x32xf32> to vector<128x32xf32>
    %14 = arith.addf %11, %13 : vector<128x32xf32>
    %c0_9 = arith.constant 0 : index
    %c0_10 = arith.constant 0 : index
    %15 = vector.load %arg4[%c0_9, %c0_10] : memref<1x32xf32, #tpu.memory_space<vmem>>, vector<1x32xf32>
    %c0_11 = arith.constant 0 : index
    %c0_12 = arith.constant 0 : index
    %16 = vector.load %arg5[%c0_11, %c0_12] : memref<1x32xf32, #tpu.memory_space<vmem>>, vector<1x32xf32>
    %17 = vector.broadcast %0 : vector<128x1xf32> to vector<128x32xf32>
    %18 = arith.mulf %14, %17 : vector<128x32xf32>
    %19 = vector.broadcast %0 : vector<128x1xf32> to vector<128x32xf32>
    %20 = arith.mulf %18, %19 : vector<128x32xf32>
    %cst_13 = arith.constant dense<0.000000e+00> : vector<32xf32>
    %21 = vector.multi_reduction <add>, %20, %cst_13 [0] : vector<128x32xf32> to vector<32xf32>
    %22 = vector.shape_cast %21 : vector<32xf32> to vector<1x32xf32>
    %23 = vector.broadcast %6 : f32 to vector<1x32xf32>
    %24 = arith.mulf %22, %23 : vector<1x32xf32>
    %25 = vector.broadcast %24 : vector<1x32xf32> to vector<128x32xf32>
    %26 = arith.subf %18, %25 : vector<128x32xf32>
    %27 = arith.mulf %26, %26 : vector<128x32xf32>
    %28 = vector.broadcast %0 : vector<128x1xf32> to vector<128x32xf32>
    %29 = arith.mulf %27, %28 : vector<128x32xf32>
    %cst_14 = arith.constant dense<0.000000e+00> : vector<32xf32>
    %30 = vector.multi_reduction <add>, %29, %cst_14 [0] : vector<128x32xf32> to vector<32xf32>
    %31 = vector.shape_cast %30 : vector<32xf32> to vector<1x32xf32>
    %32 = vector.broadcast %6 : f32 to vector<1x32xf32>
    %33 = arith.mulf %31, %32 : vector<1x32xf32>
    %34 = vector.broadcast %24 : vector<1x32xf32> to vector<128x32xf32>
    %35 = arith.subf %18, %34 : vector<128x32xf32>
    %cst_15 = arith.constant 9.99999974E-6 : f32
    %36 = vector.broadcast %cst_15 : f32 to vector<1x32xf32>
    %37 = arith.addf %33, %36 : vector<1x32xf32>
    %38 = math.rsqrt %37 : vector<1x32xf32>
    %39 = vector.broadcast %38 : vector<1x32xf32> to vector<128x32xf32>
    %40 = arith.mulf %35, %39 : vector<128x32xf32>
    %41 = vector.broadcast %15 : vector<1x32xf32> to vector<128x32xf32>
    %42 = arith.mulf %40, %41 : vector<128x32xf32>
    %43 = vector.broadcast %16 : vector<1x32xf32> to vector<128x32xf32>
    %44 = arith.addf %42, %43 : vector<128x32xf32>
    %cst_16 = arith.constant 0.000000e+00 : f32
    %45 = vector.broadcast %cst_16 : f32 to vector<128x1xf32>
    %46 = arith.cmpf ogt, %0, %45 : vector<128x1xf32>
    %47 = vector.shape_cast %46 : vector<128x1xi1> to vector<128x1xi1>
    %48 = vector.broadcast %47 : vector<128x1xi1> to vector<128x32xi1>
    %49 = arith.select %48, %44, %18 : vector<128x32xi1>, vector<128x32xf32>
    %cst_17 = arith.constant 0.000000e+00 : f32
    %50 = vector.broadcast %cst_17 : f32 to vector<128x32xf32>
    %51 = arith.maximumf %49, %50 : vector<128x32xf32>
    %52 = arith.truncf %51 : vector<128x32xf32> to vector<128x32xbf16>
    %c0_18 = arith.constant 0 : index
    %c0_19 = arith.constant 0 : index
    %53 = vector.load %arg6[%c0_18, %c0_19] : memref<32x32xbf16, #tpu.memory_space<vmem>>, vector<32x32xbf16>
    %cst_20 = arith.constant dense<0.000000e+00> : vector<128x32xf32>
    %54 = tpu.matmul %52, %53, %cst_20 {dimension_numbers = #tpu.dot_dimension_numbers<[1], [0], [0], [1], [0, 0, 1, 1], [], []>} : vector<128x32xbf16>, vector<32x32xbf16>, vector<128x32xf32> -> vector<128x32xf32>
    %c0_21 = arith.constant 0 : index
    %c0_22 = arith.constant 0 : index
    %55 = vector.load %arg7[%c0_21, %c0_22] : memref<1x32xf32, #tpu.memory_space<vmem>>, vector<1x32xf32>
    %56 = vector.broadcast %55 : vector<1x32xf32> to vector<128x32xf32>
    %57 = arith.addf %54, %56 : vector<128x32xf32>
    %c0_23 = arith.constant 0 : index
    %c0_24 = arith.constant 0 : index
    %58 = vector.load %arg8[%c0_23, %c0_24] : memref<1x32xf32, #tpu.memory_space<vmem>>, vector<1x32xf32>
    %c0_25 = arith.constant 0 : index
    %c0_26 = arith.constant 0 : index
    %59 = vector.load %arg9[%c0_25, %c0_26] : memref<1x32xf32, #tpu.memory_space<vmem>>, vector<1x32xf32>
    %60 = vector.broadcast %0 : vector<128x1xf32> to vector<128x32xf32>
    %61 = arith.mulf %57, %60 : vector<128x32xf32>
    %62 = vector.broadcast %0 : vector<128x1xf32> to vector<128x32xf32>
    %63 = arith.mulf %61, %62 : vector<128x32xf32>
    %cst_27 = arith.constant dense<0.000000e+00> : vector<32xf32>
    %64 = vector.multi_reduction <add>, %63, %cst_27 [0] : vector<128x32xf32> to vector<32xf32>
    %65 = vector.shape_cast %64 : vector<32xf32> to vector<1x32xf32>
    %66 = vector.broadcast %6 : f32 to vector<1x32xf32>
    %67 = arith.mulf %65, %66 : vector<1x32xf32>
    %68 = vector.broadcast %67 : vector<1x32xf32> to vector<128x32xf32>
    %69 = arith.subf %61, %68 : vector<128x32xf32>
    %70 = arith.mulf %69, %69 : vector<128x32xf32>
    %71 = vector.broadcast %0 : vector<128x1xf32> to vector<128x32xf32>
    %72 = arith.mulf %70, %71 : vector<128x32xf32>
    %cst_28 = arith.constant dense<0.000000e+00> : vector<32xf32>
    %73 = vector.multi_reduction <add>, %72, %cst_28 [0] : vector<128x32xf32> to vector<32xf32>
    %74 = vector.shape_cast %73 : vector<32xf32> to vector<1x32xf32>
    %75 = vector.broadcast %6 : f32 to vector<1x32xf32>
    %76 = arith.mulf %74, %75 : vector<1x32xf32>
    %77 = vector.broadcast %67 : vector<1x32xf32> to vector<128x32xf32>
    %78 = arith.subf %61, %77 : vector<128x32xf32>
    %cst_29 = arith.constant 9.99999974E-6 : f32
    %79 = vector.broadcast %cst_29 : f32 to vector<1x32xf32>
    %80 = arith.addf %76, %79 : vector<1x32xf32>
    %81 = math.rsqrt %80 : vector<1x32xf32>
    %82 = vector.broadcast %81 : vector<1x32xf32> to vector<128x32xf32>
    %83 = arith.mulf %78, %82 : vector<128x32xf32>
    %84 = vector.broadcast %58 : vector<1x32xf32> to vector<128x32xf32>
    %85 = arith.mulf %83, %84 : vector<128x32xf32>
    %86 = vector.broadcast %59 : vector<1x32xf32> to vector<128x32xf32>
    %87 = arith.addf %85, %86 : vector<128x32xf32>
    %cst_30 = arith.constant 0.000000e+00 : f32
    %88 = vector.broadcast %cst_30 : f32 to vector<128x1xf32>
    %89 = arith.cmpf ogt, %0, %88 : vector<128x1xf32>
    %90 = vector.shape_cast %89 : vector<128x1xi1> to vector<128x1xi1>
    %91 = vector.broadcast %90 : vector<128x1xi1> to vector<128x32xi1>
    %92 = arith.select %91, %87, %61 : vector<128x32xi1>, vector<128x32xf32>
    %cst_31 = arith.constant 0.000000e+00 : f32
    %93 = vector.broadcast %cst_31 : f32 to vector<128x32xf32>
    %94 = arith.maximumf %92, %93 : vector<128x32xf32>
    %c0_32 = arith.constant 0 : index
    %c0_33 = arith.constant 0 : index
    %95 = vector.load %arg10[%c0_32, %c0_33] : memref<128x32xf32, #tpu.memory_space<vmem>>, vector<128x32xf32>
    tpu.vector_store %arg10[%c0_32, %c0_33], %94 {strides = array<i32>} : memref<128x32xf32, #tpu.memory_space<vmem>>, vector<128x32xf32>,
    return
  }
}

module attributes {stable_mosaic.version = 11 : i64} {
  func.func @kernel(%arg0: memref<128x1xf32, #tpu.memory_space<vmem>>, %arg1: memref<128x128xbf16, #tpu.memory_space<vmem>>, %arg2: memref<128x1xf32, #tpu.memory_space<vmem>>, %arg3: memref<1x32xf32, #tpu.memory_space<vmem>>, %arg4: memref<1x32xf32, #tpu.memory_space<vmem>>, %arg5: memref<32x32xbf16, #tpu.memory_space<vmem>>, %arg6: memref<1x32xf32, #tpu.memory_space<vmem>>, %arg7: memref<1x32xf32, #tpu.memory_space<vmem>>, %arg8: memref<1x32xf32, #tpu.memory_space<vmem>>, %arg9: memref<32x32xbf16, #tpu.memory_space<vmem>>, %arg10: memref<1x32xf32, #tpu.memory_space<vmem>>, %arg11: memref<32x32xbf16, #tpu.memory_space<vmem>>, %arg12: memref<1x32xf32, #tpu.memory_space<vmem>>, %arg13: memref<1x32xf32, #tpu.memory_space<vmem>>, %arg14: memref<1x32xf32, #tpu.memory_space<vmem>>, %arg15: memref<128x32xf32, #tpu.memory_space<vmem>>) attributes {dimension_semantics = [], scalar_prefetch = 0 : i64, scratch_operands = 0 : i64, tpu.core_type = #tpu.core_type<tc>} {
    %c0 = arith.constant 0 : index
    %c0_0 = arith.constant 0 : index
    %0 = vector.load %arg2[%c0, %c0_0] : memref<128x1xf32, #tpu.memory_space<vmem>>, vector<128x1xf32>
    %1 = vector.shape_cast %0 : vector<128x1xf32> to vector<1x128x1xf32>
    %cst = arith.constant dense<0.000000e+00> : vector<1xf32>
    %2 = vector.multi_reduction <add>, %1, %cst [1, 2] : vector<1x128x1xf32> to vector<1xf32>
    %3 = vector.shape_cast %2 : vector<1xf32> to vector<1x1x1xf32>
    %4 = vector.extract %3[0, 0, 0] : f32 from vector<1x1x1xf32>
    %cst_1 = arith.constant 1.000000e+00 : f32
    %5 = arith.maximumf %4, %cst_1 : f32
    %cst_2 = arith.constant 1.000000e+00 : f32
    %6 = arith.divf %cst_2, %5 : f32
    %c0_3 = arith.constant 0 : index
    %c0_4 = arith.constant 0 : index
    %7 = vector.load %arg1[%c0_3, %c0_4] : memref<128x128xbf16, #tpu.memory_space<vmem>>, vector<128x128xbf16>
    %c0_5 = arith.constant 0 : index
    %c0_6 = arith.constant 0 : index
    %8 = vector.load %arg0[%c0_5, %c0_6] : memref<128x1xf32, #tpu.memory_space<vmem>>, vector<128x1xf32>
    %cst_7 = arith.constant 1.000000e+00 : f32
    %9 = vector.broadcast %cst_7 : f32 to vector<128x1xf32>
    %10 = arith.mulf %8, %9 : vector<128x1xf32>
    %c0_8 = arith.constant 0 : index
    %c0_9 = arith.constant 0 : index
    %11 = vector.load %arg3[%c0_8, %c0_9] : memref<1x32xf32, #tpu.memory_space<vmem>>, vector<1x32xf32>
    %12 = vector.broadcast %10 : vector<128x1xf32> to vector<128x32xf32>
    %13 = vector.broadcast %11 : vector<1x32xf32> to vector<128x32xf32>
    %14 = arith.mulf %12, %13 : vector<128x32xf32>
    %cst_10 = arith.constant 1.000000e+00 : f32
    %15 = vector.broadcast %cst_10 : f32 to vector<128x32xf32>
    %16 = arith.mulf %15, %14 : vector<128x32xf32>
    %c0_11 = arith.constant 0 : index
    %c0_12 = arith.constant 0 : index
    %17 = vector.load %arg4[%c0_11, %c0_12] : memref<1x32xf32, #tpu.memory_space<vmem>>, vector<1x32xf32>
    %18 = vector.broadcast %17 : vector<1x32xf32> to vector<128x32xf32>
    %19 = arith.addf %16, %18 : vector<128x32xf32>
    %20 = arith.truncf %14 : vector<128x32xf32> to vector<128x32xbf16>
    %cst_13 = arith.constant dense<0.000000e+00> : vector<128x32xf32>
    %21 = tpu.matmul %7, %20, %cst_13 {dimension_numbers = #tpu.dot_dimension_numbers<[1], [0], [0], [1], [0, 0, 1, 1], [], []>} : vector<128x128xbf16>, vector<128x32xbf16>, vector<128x32xf32> -> vector<128x32xf32>
    %22 = arith.addf %19, %21 : vector<128x32xf32>
    %cst_14 = arith.constant 0.000000e+00 : f32
    %23 = vector.broadcast %cst_14 : f32 to vector<128x32xf32>
    %24 = arith.maximumf %22, %23 : vector<128x32xf32>
    %25 = arith.truncf %24 : vector<128x32xf32> to vector<128x32xbf16>
    %c0_15 = arith.constant 0 : index
    %c0_16 = arith.constant 0 : index
    %26 = vector.load %arg5[%c0_15, %c0_16] : memref<32x32xbf16, #tpu.memory_space<vmem>>, vector<32x32xbf16>
    %cst_17 = arith.constant dense<0.000000e+00> : vector<128x32xf32>
    %27 = tpu.matmul %25, %26, %cst_17 {dimension_numbers = #tpu.dot_dimension_numbers<[1], [0], [0], [1], [0, 0, 1, 1], [], []>} : vector<128x32xbf16>, vector<32x32xbf16>, vector<128x32xf32> -> vector<128x32xf32>
    %c0_18 = arith.constant 0 : index
    %c0_19 = arith.constant 0 : index
    %28 = vector.load %arg6[%c0_18, %c0_19] : memref<1x32xf32, #tpu.memory_space<vmem>>, vector<1x32xf32>
    %29 = vector.broadcast %28 : vector<1x32xf32> to vector<128x32xf32>
    %30 = arith.addf %27, %29 : vector<128x32xf32>
    %c0_20 = arith.constant 0 : index
    %c0_21 = arith.constant 0 : index
    %31 = vector.load %arg7[%c0_20, %c0_21] : memref<1x32xf32, #tpu.memory_space<vmem>>, vector<1x32xf32>
    %c0_22 = arith.constant 0 : index
    %c0_23 = arith.constant 0 : index
    %32 = vector.load %arg8[%c0_22, %c0_23] : memref<1x32xf32, #tpu.memory_space<vmem>>, vector<1x32xf32>
    %33 = vector.broadcast %0 : vector<128x1xf32> to vector<128x32xf32>
    %34 = arith.mulf %30, %33 : vector<128x32xf32>
    %35 = vector.broadcast %0 : vector<128x1xf32> to vector<128x32xf32>
    %36 = arith.mulf %34, %35 : vector<128x32xf32>
    %cst_24 = arith.constant dense<0.000000e+00> : vector<32xf32>
    %37 = vector.multi_reduction <add>, %36, %cst_24 [0] : vector<128x32xf32> to vector<32xf32>
    %38 = vector.shape_cast %37 : vector<32xf32> to vector<1x32xf32>
    %39 = vector.broadcast %6 : f32 to vector<1x32xf32>
    %40 = arith.mulf %38, %39 : vector<1x32xf32>
    %41 = vector.broadcast %40 : vector<1x32xf32> to vector<128x32xf32>
    %42 = arith.subf %34, %41 : vector<128x32xf32>
    %43 = arith.mulf %42, %42 : vector<128x32xf32>
    %44 = vector.broadcast %0 : vector<128x1xf32> to vector<128x32xf32>
    %45 = arith.mulf %43, %44 : vector<128x32xf32>
    %cst_25 = arith.constant dense<0.000000e+00> : vector<32xf32>
    %46 = vector.multi_reduction <add>, %45, %cst_25 [0] : vector<128x32xf32> to vector<32xf32>
    %47 = vector.shape_cast %46 : vector<32xf32> to vector<1x32xf32>
    %48 = vector.broadcast %6 : f32 to vector<1x32xf32>
    %49 = arith.mulf %47, %48 : vector<1x32xf32>
    %50 = vector.broadcast %40 : vector<1x32xf32> to vector<128x32xf32>
    %51 = arith.subf %34, %50 : vector<128x32xf32>
    %cst_26 = arith.constant 9.99999974E-6 : f32
    %52 = vector.broadcast %cst_26 : f32 to vector<1x32xf32>
    %53 = arith.addf %49, %52 : vector<1x32xf32>
    %54 = math.rsqrt %53 : vector<1x32xf32>
    %55 = vector.broadcast %54 : vector<1x32xf32> to vector<128x32xf32>
    %56 = arith.mulf %51, %55 : vector<128x32xf32>
    %57 = vector.broadcast %31 : vector<1x32xf32> to vector<128x32xf32>
    %58 = arith.mulf %56, %57 : vector<128x32xf32>
    %59 = vector.broadcast %32 : vector<1x32xf32> to vector<128x32xf32>
    %60 = arith.addf %58, %59 : vector<128x32xf32>
    %cst_27 = arith.constant 0.000000e+00 : f32
    %61 = vector.broadcast %cst_27 : f32 to vector<128x1xf32>
    %62 = arith.cmpf ogt, %0, %61 : vector<128x1xf32>
    %63 = vector.shape_cast %62 : vector<128x1xi1> to vector<128x1xi1>
    %64 = vector.broadcast %63 : vector<128x1xi1> to vector<128x32xi1>
    %65 = arith.select %64, %60, %34 : vector<128x32xi1>, vector<128x32xf32>
    %cst_28 = arith.constant 0.000000e+00 : f32
    %66 = vector.broadcast %cst_28 : f32 to vector<128x32xf32>
    %67 = arith.maximumf %65, %66 : vector<128x32xf32>
    %cst_29 = arith.constant 0.000000e+00 : f32
    %68 = vector.broadcast %cst_29 : f32 to vector<128x32xf32>
    %69 = arith.addf %67, %68 : vector<128x32xf32>
    %70 = arith.truncf %69 : vector<128x32xf32> to vector<128x32xbf16>
    %cst_30 = arith.constant dense<0.000000e+00> : vector<128x32xf32>
    %71 = tpu.matmul %7, %70, %cst_30 {dimension_numbers = #tpu.dot_dimension_numbers<[1], [0], [0], [1], [0, 0, 1, 1], [], []>} : vector<128x128xbf16>, vector<128x32xbf16>, vector<128x32xf32> -> vector<128x32xf32>
    %cst_31 = arith.constant 1.000000e+00 : f32
    %72 = vector.broadcast %cst_31 : f32 to vector<128x32xf32>
    %73 = arith.mulf %72, %69 : vector<128x32xf32>
    %74 = arith.addf %73, %71 : vector<128x32xf32>
    %75 = arith.truncf %74 : vector<128x32xf32> to vector<128x32xbf16>
    %c0_32 = arith.constant 0 : index
    %c0_33 = arith.constant 0 : index
    %76 = vector.load %arg9[%c0_32, %c0_33] : memref<32x32xbf16, #tpu.memory_space<vmem>>, vector<32x32xbf16>
    %cst_34 = arith.constant dense<0.000000e+00> : vector<128x32xf32>
    %77 = tpu.matmul %75, %76, %cst_34 {dimension_numbers = #tpu.dot_dimension_numbers<[1], [0], [0], [1], [0, 0, 1, 1], [], []>} : vector<128x32xbf16>, vector<32x32xbf16>, vector<128x32xf32> -> vector<128x32xf32>
    %c0_35 = arith.constant 0 : index
    %c0_36 = arith.constant 0 : index
    %78 = vector.load %arg10[%c0_35, %c0_36] : memref<1x32xf32, #tpu.memory_space<vmem>>, vector<1x32xf32>
    %79 = vector.broadcast %78 : vector<1x32xf32> to vector<128x32xf32>
    %80 = arith.addf %77, %79 : vector<128x32xf32>
    %cst_37 = arith.constant 0.000000e+00 : f32
    %81 = vector.broadcast %cst_37 : f32 to vector<128x32xf32>
    %82 = arith.maximumf %80, %81 : vector<128x32xf32>
    %83 = arith.truncf %82 : vector<128x32xf32> to vector<128x32xbf16>
    %c0_38 = arith.constant 0 : index
    %c0_39 = arith.constant 0 : index
    %84 = vector.load %arg11[%c0_38, %c0_39] : memref<32x32xbf16, #tpu.memory_space<vmem>>, vector<32x32xbf16>
    %cst_40 = arith.constant dense<0.000000e+00> : vector<128x32xf32>
    %85 = tpu.matmul %83, %84, %cst_40 {dimension_numbers = #tpu.dot_dimension_numbers<[1], [0], [0], [1], [0, 0, 1, 1], [], []>} : vector<128x32xbf16>, vector<32x32xbf16>, vector<128x32xf32> -> vector<128x32xf32>
    %c0_41 = arith.constant 0 : index
    %c0_42 = arith.constant 0 : index
    %86 = vector.load %arg12[%c0_41, %c0_42] : memref<1x32xf32, #tpu.memory_space<vmem>>, vector<1x32xf32>
    %87 = vector.broadcast %86 : vector<1x32xf32> to vector<128x32xf32>
    %88 = arith.addf %85, %87 : vector<128x32xf32>
    %c0_43 = arith.constant 0 : index
    %c0_44 = arith.constant 0 : index
    %89 = vector.load %arg13[%c0_43, %c0_44] : memref<1x32xf32, #tpu.memory_space<vmem>>, vector<1x32xf32>
    %c0_45 = arith.constant 0 : index
    %c0_46 = arith.constant 0 : index
    %90 = vector.load %arg14[%c0_45, %c0_46] : memref<1x32xf32, #tpu.memory_space<vmem>>, vector<1x32xf32>
    %91 = vector.broadcast %0 : vector<128x1xf32> to vector<128x32xf32>
    %92 = arith.mulf %88, %91 : vector<128x32xf32>
    %93 = vector.broadcast %0 : vector<128x1xf32> to vector<128x32xf32>
    %94 = arith.mulf %92, %93 : vector<128x32xf32>
    %cst_47 = arith.constant dense<0.000000e+00> : vector<32xf32>
    %95 = vector.multi_reduction <add>, %94, %cst_47 [0] : vector<128x32xf32> to vector<32xf32>
    %96 = vector.shape_cast %95 : vector<32xf32> to vector<1x32xf32>
    %97 = vector.broadcast %6 : f32 to vector<1x32xf32>
    %98 = arith.mulf %96, %97 : vector<1x32xf32>
    %99 = vector.broadcast %98 : vector<1x32xf32> to vector<128x32xf32>
    %100 = arith.subf %92, %99 : vector<128x32xf32>
    %101 = arith.mulf %100, %100 : vector<128x32xf32>
    %102 = vector.broadcast %0 : vector<128x1xf32> to vector<128x32xf32>
    %103 = arith.mulf %101, %102 : vector<128x32xf32>
    %cst_48 = arith.constant dense<0.000000e+00> : vector<32xf32>
    %104 = vector.multi_reduction <add>, %103, %cst_48 [0] : vector<128x32xf32> to vector<32xf32>
    %105 = vector.shape_cast %104 : vector<32xf32> to vector<1x32xf32>
    %106 = vector.broadcast %6 : f32 to vector<1x32xf32>
    %107 = arith.mulf %105, %106 : vector<1x32xf32>
    %108 = vector.broadcast %98 : vector<1x32xf32> to vector<128x32xf32>
    %109 = arith.subf %92, %108 : vector<128x32xf32>
    %cst_49 = arith.constant 9.99999974E-6 : f32
    %110 = vector.broadcast %cst_49 : f32 to vector<1x32xf32>
    %111 = arith.addf %107, %110 : vector<1x32xf32>
    %112 = math.rsqrt %111 : vector<1x32xf32>
    %113 = vector.broadcast %112 : vector<1x32xf32> to vector<128x32xf32>
    %114 = arith.mulf %109, %113 : vector<128x32xf32>
    %115 = vector.broadcast %89 : vector<1x32xf32> to vector<128x32xf32>
    %116 = arith.mulf %114, %115 : vector<128x32xf32>
    %117 = vector.broadcast %90 : vector<1x32xf32> to vector<128x32xf32>
    %118 = arith.addf %116, %117 : vector<128x32xf32>
    %cst_50 = arith.constant 0.000000e+00 : f32
    %119 = vector.broadcast %cst_50 : f32 to vector<128x1xf32>
    %120 = arith.cmpf ogt, %0, %119 : vector<128x1xf32>
    %121 = vector.shape_cast %120 : vector<128x1xi1> to vector<128x1xi1>
    %122 = vector.broadcast %121 : vector<128x1xi1> to vector<128x32xi1>
    %123 = arith.select %122, %118, %92 : vector<128x32xi1>, vector<128x32xf32>
    %cst_51 = arith.constant 0.000000e+00 : f32
    %124 = vector.broadcast %cst_51 : f32 to vector<128x32xf32>
    %125 = arith.maximumf %123, %124 : vector<128x32xf32>
    %126 = arith.addf %125, %69 : vector<128x32xf32>
    %cst_52 = arith.constant -1.000000e+00 : f32
    %127 = vector.broadcast %cst_52 : f32 to vector<128x1xf32>
    %128 = arith.mulf %8, %127 : vector<128x1xf32>
    %c0_53 = arith.constant 0 : index
    %c0_54 = arith.constant 0 : index
    %129 = vector.load %arg3[%c0_53, %c0_54] : memref<1x32xf32, #tpu.memory_space<vmem>>, vector<1x32xf32>
    %130 = vector.broadcast %128 : vector<128x1xf32> to vector<128x32xf32>
    %131 = vector.broadcast %129 : vector<1x32xf32> to vector<128x32xf32>
    %132 = arith.mulf %130, %131 : vector<128x32xf32>
    %cst_55 = arith.constant 1.000000e+00 : f32
    %133 = vector.broadcast %cst_55 : f32 to vector<128x32xf32>
    %134 = arith.mulf %133, %132 : vector<128x32xf32>
    %c0_56 = arith.constant 0 : index
    %c0_57 = arith.constant 0 : index
    %135 = vector.load %arg4[%c0_56, %c0_57] : memref<1x32xf32, #tpu.memory_space<vmem>>, vector<1x32xf32>
    %136 = vector.broadcast %135 : vector<1x32xf32> to vector<128x32xf32>
    %137 = arith.addf %134, %136 : vector<128x32xf32>
    %138 = arith.truncf %132 : vector<128x32xf32> to vector<128x32xbf16>
    %cst_58 = arith.constant dense<0.000000e+00> : vector<128x32xf32>
    %139 = tpu.matmul %7, %138, %cst_58 {dimension_numbers = #tpu.dot_dimension_numbers<[1], [0], [0], [1], [0, 0, 1, 1], [], []>} : vector<128x128xbf16>, vector<128x32xbf16>, vector<128x32xf32> -> vector<128x32xf32>
    %140 = arith.addf %137, %139 : vector<128x32xf32>
    %cst_59 = arith.constant 0.000000e+00 : f32
    %141 = vector.broadcast %cst_59 : f32 to vector<128x32xf32>
    %142 = arith.maximumf %140, %141 : vector<128x32xf32>
    %143 = arith.truncf %142 : vector<128x32xf32> to vector<128x32xbf16>
    %c0_60 = arith.constant 0 : index
    %c0_61 = arith.constant 0 : index
    %144 = vector.load %arg5[%c0_60, %c0_61] : memref<32x32xbf16, #tpu.memory_space<vmem>>, vector<32x32xbf16>
    %cst_62 = arith.constant dense<0.000000e+00> : vector<128x32xf32>
    %145 = tpu.matmul %143, %144, %cst_62 {dimension_numbers = #tpu.dot_dimension_numbers<[1], [0], [0], [1], [0, 0, 1, 1], [], []>} : vector<128x32xbf16>, vector<32x32xbf16>, vector<128x32xf32> -> vector<128x32xf32>
    %c0_63 = arith.constant 0 : index
    %c0_64 = arith.constant 0 : index
    %146 = vector.load %arg6[%c0_63, %c0_64] : memref<1x32xf32, #tpu.memory_space<vmem>>, vector<1x32xf32>
    %147 = vector.broadcast %146 : vector<1x32xf32> to vector<128x32xf32>
    %148 = arith.addf %145, %147 : vector<128x32xf32>
    %c0_65 = arith.constant 0 : index
    %c0_66 = arith.constant 0 : index
    %149 = vector.load %arg7[%c0_65, %c0_66] : memref<1x32xf32, #tpu.memory_space<vmem>>, vector<1x32xf32>
    %c0_67 = arith.constant 0 : index
    %c0_68 = arith.constant 0 : index
    %150 = vector.load %arg8[%c0_67, %c0_68] : memref<1x32xf32, #tpu.memory_space<vmem>>, vector<1x32xf32>
    %151 = vector.broadcast %0 : vector<128x1xf32> to vector<128x32xf32>
    %152 = arith.mulf %148, %151 : vector<128x32xf32>
    %153 = vector.broadcast %0 : vector<128x1xf32> to vector<128x32xf32>
    %154 = arith.mulf %152, %153 : vector<128x32xf32>
    %cst_69 = arith.constant dense<0.000000e+00> : vector<32xf32>
    %155 = vector.multi_reduction <add>, %154, %cst_69 [0] : vector<128x32xf32> to vector<32xf32>
    %156 = vector.shape_cast %155 : vector<32xf32> to vector<1x32xf32>
    %157 = vector.broadcast %6 : f32 to vector<1x32xf32>
    %158 = arith.mulf %156, %157 : vector<1x32xf32>
    %159 = vector.broadcast %158 : vector<1x32xf32> to vector<128x32xf32>
    %160 = arith.subf %152, %159 : vector<128x32xf32>
    %161 = arith.mulf %160, %160 : vector<128x32xf32>
    %162 = vector.broadcast %0 : vector<128x1xf32> to vector<128x32xf32>
    %163 = arith.mulf %161, %162 : vector<128x32xf32>
    %cst_70 = arith.constant dense<0.000000e+00> : vector<32xf32>
    %164 = vector.multi_reduction <add>, %163, %cst_70 [0] : vector<128x32xf32> to vector<32xf32>
    %165 = vector.shape_cast %164 : vector<32xf32> to vector<1x32xf32>
    %166 = vector.broadcast %6 : f32 to vector<1x32xf32>
    %167 = arith.mulf %165, %166 : vector<1x32xf32>
    %168 = vector.broadcast %158 : vector<1x32xf32> to vector<128x32xf32>
    %169 = arith.subf %152, %168 : vector<128x32xf32>
    %cst_71 = arith.constant 9.99999974E-6 : f32
    %170 = vector.broadcast %cst_71 : f32 to vector<1x32xf32>
    %171 = arith.addf %167, %170 : vector<1x32xf32>
    %172 = math.rsqrt %171 : vector<1x32xf32>
    %173 = vector.broadcast %172 : vector<1x32xf32> to vector<128x32xf32>
    %174 = arith.mulf %169, %173 : vector<128x32xf32>
    %175 = vector.broadcast %149 : vector<1x32xf32> to vector<128x32xf32>
    %176 = arith.mulf %174, %175 : vector<128x32xf32>
    %177 = vector.broadcast %150 : vector<1x32xf32> to vector<128x32xf32>
    %178 = arith.addf %176, %177 : vector<128x32xf32>
    %cst_72 = arith.constant 0.000000e+00 : f32
    %179 = vector.broadcast %cst_72 : f32 to vector<128x1xf32>
    %180 = arith.cmpf ogt, %0, %179 : vector<128x1xf32>
    %181 = vector.shape_cast %180 : vector<128x1xi1> to vector<128x1xi1>
    %182 = vector.broadcast %181 : vector<128x1xi1> to vector<128x32xi1>
    %183 = arith.select %182, %178, %152 : vector<128x32xi1>, vector<128x32xf32>
    %cst_73 = arith.constant 0.000000e+00 : f32
    %184 = vector.broadcast %cst_73 : f32 to vector<128x32xf32>
    %185 = arith.maximumf %183, %184 : vector<128x32xf32>
    %cst_74 = arith.constant 0.000000e+00 : f32
    %186 = vector.broadcast %cst_74 : f32 to vector<128x32xf32>
    %187 = arith.addf %185, %186 : vector<128x32xf32>
    %188 = arith.truncf %187 : vector<128x32xf32> to vector<128x32xbf16>
    %cst_75 = arith.constant dense<0.000000e+00> : vector<128x32xf32>
    %189 = tpu.matmul %7, %188, %cst_75 {dimension_numbers = #tpu.dot_dimension_numbers<[1], [0], [0], [1], [0, 0, 1, 1], [], []>} : vector<128x128xbf16>, vector<128x32xbf16>, vector<128x32xf32> -> vector<128x32xf32>
    %cst_76 = arith.constant 1.000000e+00 : f32
    %190 = vector.broadcast %cst_76 : f32 to vector<128x32xf32>
    %191 = arith.mulf %190, %187 : vector<128x32xf32>
    %192 = arith.addf %191, %189 : vector<128x32xf32>
    %193 = arith.truncf %192 : vector<128x32xf32> to vector<128x32xbf16>
    %c0_77 = arith.constant 0 : index
    %c0_78 = arith.constant 0 : index
    %194 = vector.load %arg9[%c0_77, %c0_78] : memref<32x32xbf16, #tpu.memory_space<vmem>>, vector<32x32xbf16>
    %cst_79 = arith.constant dense<0.000000e+00> : vector<128x32xf32>
    %195 = tpu.matmul %193, %194, %cst_79 {dimension_numbers = #tpu.dot_dimension_numbers<[1], [0], [0], [1], [0, 0, 1, 1], [], []>} : vector<128x32xbf16>, vector<32x32xbf16>, vector<128x32xf32> -> vector<128x32xf32>
    %c0_80 = arith.constant 0 : index
    %c0_81 = arith.constant 0 : index
    %196 = vector.load %arg10[%c0_80, %c0_81] : memref<1x32xf32, #tpu.memory_space<vmem>>, vector<1x32xf32>
    %197 = vector.broadcast %196 : vector<1x32xf32> to vector<128x32xf32>
    %198 = arith.addf %195, %197 : vector<128x32xf32>
    %cst_82 = arith.constant 0.000000e+00 : f32
    %199 = vector.broadcast %cst_82 : f32 to vector<128x32xf32>
    %200 = arith.maximumf %198, %199 : vector<128x32xf32>
    %201 = arith.truncf %200 : vector<128x32xf32> to vector<128x32xbf16>
    %c0_83 = arith.constant 0 : index
    %c0_84 = arith.constant 0 : index
    %202 = vector.load %arg11[%c0_83, %c0_84] : memref<32x32xbf16, #tpu.memory_space<vmem>>, vector<32x32xbf16>
    %cst_85 = arith.constant dense<0.000000e+00> : vector<128x32xf32>
    %203 = tpu.matmul %201, %202, %cst_85 {dimension_numbers = #tpu.dot_dimension_numbers<[1], [0], [0], [1], [0, 0, 1, 1], [], []>} : vector<128x32xbf16>, vector<32x32xbf16>, vector<128x32xf32> -> vector<128x32xf32>
    %c0_86 = arith.constant 0 : index
    %c0_87 = arith.constant 0 : index
    %204 = vector.load %arg12[%c0_86, %c0_87] : memref<1x32xf32, #tpu.memory_space<vmem>>, vector<1x32xf32>
    %205 = vector.broadcast %204 : vector<1x32xf32> to vector<128x32xf32>
    %206 = arith.addf %203, %205 : vector<128x32xf32>
    %c0_88 = arith.constant 0 : index
    %c0_89 = arith.constant 0 : index
    %207 = vector.load %arg13[%c0_88, %c0_89] : memref<1x32xf32, #tpu.memory_space<vmem>>, vector<1x32xf32>
    %c0_90 = arith.constant 0 : index
    %c0_91 = arith.constant 0 : index
    %208 = vector.load %arg14[%c0_90, %c0_91] : memref<1x32xf32, #tpu.memory_space<vmem>>, vector<1x32xf32>
    %209 = vector.broadcast %0 : vector<128x1xf32> to vector<128x32xf32>
    %210 = arith.mulf %206, %209 : vector<128x32xf32>
    %211 = vector.broadcast %0 : vector<128x1xf32> to vector<128x32xf32>
    %212 = arith.mulf %210, %211 : vector<128x32xf32>
    %cst_92 = arith.constant dense<0.000000e+00> : vector<32xf32>
    %213 = vector.multi_reduction <add>, %212, %cst_92 [0] : vector<128x32xf32> to vector<32xf32>
    %214 = vector.shape_cast %213 : vector<32xf32> to vector<1x32xf32>
    %215 = vector.broadcast %6 : f32 to vector<1x32xf32>
    %216 = arith.mulf %214, %215 : vector<1x32xf32>
    %217 = vector.broadcast %216 : vector<1x32xf32> to vector<128x32xf32>
    %218 = arith.subf %210, %217 : vector<128x32xf32>
    %219 = arith.mulf %218, %218 : vector<128x32xf32>
    %220 = vector.broadcast %0 : vector<128x1xf32> to vector<128x32xf32>
    %221 = arith.mulf %219, %220 : vector<128x32xf32>
    %cst_93 = arith.constant dense<0.000000e+00> : vector<32xf32>
    %222 = vector.multi_reduction <add>, %221, %cst_93 [0] : vector<128x32xf32> to vector<32xf32>
    %223 = vector.shape_cast %222 : vector<32xf32> to vector<1x32xf32>
    %224 = vector.broadcast %6 : f32 to vector<1x32xf32>
    %225 = arith.mulf %223, %224 : vector<1x32xf32>
    %226 = vector.broadcast %216 : vector<1x32xf32> to vector<128x32xf32>
    %227 = arith.subf %210, %226 : vector<128x32xf32>
    %cst_94 = arith.constant 9.99999974E-6 : f32
    %228 = vector.broadcast %cst_94 : f32 to vector<1x32xf32>
    %229 = arith.addf %225, %228 : vector<1x32xf32>
    %230 = math.rsqrt %229 : vector<1x32xf32>
    %231 = vector.broadcast %230 : vector<1x32xf32> to vector<128x32xf32>
    %232 = arith.mulf %227, %231 : vector<128x32xf32>
    %233 = vector.broadcast %207 : vector<1x32xf32> to vector<128x32xf32>
    %234 = arith.mulf %232, %233 : vector<128x32xf32>
    %235 = vector.broadcast %208 : vector<1x32xf32> to vector<128x32xf32>
    %236 = arith.addf %234, %235 : vector<128x32xf32>
    %cst_95 = arith.constant 0.000000e+00 : f32
    %237 = vector.broadcast %cst_95 : f32 to vector<128x1xf32>
    %238 = arith.cmpf ogt, %0, %237 : vector<128x1xf32>
    %239 = vector.shape_cast %238 : vector<128x1xi1> to vector<128x1xi1>
    %240 = vector.broadcast %239 : vector<128x1xi1> to vector<128x32xi1>
    %241 = arith.select %240, %236, %210 : vector<128x32xi1>, vector<128x32xf32>
    %cst_96 = arith.constant 0.000000e+00 : f32
    %242 = vector.broadcast %cst_96 : f32 to vector<128x32xf32>
    %243 = arith.maximumf %241, %242 : vector<128x32xf32>
    %244 = arith.addf %243, %187 : vector<128x32xf32>
    %245 = arith.addf %126, %244 : vector<128x32xf32>
    %c0_97 = arith.constant 0 : index
    %c0_98 = arith.constant 0 : index
    %246 = vector.load %arg15[%c0_97, %c0_98] : memref<128x32xf32, #tpu.memory_space<vmem>>, vector<128x32xf32>
    tpu.vector_store %arg15[%c0_97, %c0_98], %245 {strides = array<i32>} : memref<128x32xf32, #tpu.memory_space<vmem>>, vector<128x32xf32>,
    return
  }
}

module attributes {stable_mosaic.version = 11 : i64} {
  func.func @_transformer_layer_kernel(%arg0: memref<128x32xf32, #tpu.memory_space<vmem>>, %arg1: memref<128x128xf32, #tpu.memory_space<vmem>>, %arg2: memref<128x1xf32, #tpu.memory_space<vmem>>, %arg3: memref<3x4x32x8xf32, #tpu.memory_space<vmem>>, %arg4: memref<3x4x1x8xf32, #tpu.memory_space<vmem>>, %arg5: memref<4x8x32xf32, #tpu.memory_space<vmem>>, %arg6: memref<1x32xf32, #tpu.memory_space<vmem>>, %arg7: memref<1x32xf32, #tpu.memory_space<vmem>>, %arg8: memref<1x32xf32, #tpu.memory_space<vmem>>, %arg9: memref<32x64xbf16, #tpu.memory_space<vmem>>, %arg10: memref<1x64xf32, #tpu.memory_space<vmem>>, %arg11: memref<64x32xbf16, #tpu.memory_space<vmem>>, %arg12: memref<1x32xf32, #tpu.memory_space<vmem>>, %arg13: memref<1x32xf32, #tpu.memory_space<vmem>>, %arg14: memref<1x32xf32, #tpu.memory_space<vmem>>, %arg15: memref<128x32xf32, #tpu.memory_space<vmem>>) attributes {dimension_semantics = [], scalar_prefetch = 0 : i64, scratch_operands = 0 : i64, tpu.core_type = #tpu.core_type<tc>} {
    %c0 = arith.constant 0 : index
    %c0_0 = arith.constant 0 : index
    %0 = vector.load %arg0[%c0, %c0_0] : memref<128x32xf32, #tpu.memory_space<vmem>>, vector<128x32xf32>
    %1 = arith.truncf %0 : vector<128x32xf32> to vector<128x32xbf16>
    %c0_1 = arith.constant 0 : index
    %c0_2 = arith.constant 0 : index
    %2 = vector.load %arg1[%c0_1, %c0_2] : memref<128x128xf32, #tpu.memory_space<vmem>>, vector<128x128xf32>
    %cst = arith.constant 0.000000e+00 : f32
    %3 = vector.broadcast %cst : f32 to vector<128x32xf32>
    %c0_3 = arith.constant 0 : index
    %c0_4 = arith.constant 0 : index
    %c0_5 = arith.constant 0 : index
    %c0_6 = arith.constant 0 : index
    %4 = vector.load %arg3[%c0_3, %c0_4, %c0_5, %c0_6] : memref<3x4x32x8xf32, #tpu.memory_space<vmem>>, vector<1x1x32x8xf32>
    %5 = vector.shape_cast %4 : vector<1x1x32x8xf32> to vector<32x8xf32>
    %6 = arith.truncf %5 : vector<32x8xf32> to vector<32x8xbf16>
    %cst_7 = arith.constant dense<0.000000e+00> : vector<128x8xf32>
    %7 = tpu.matmul %1, %6, %cst_7 {dimension_numbers = #tpu.dot_dimension_numbers<[1], [0], [0], [1], [0, 0, 1, 1], [], []>} : vector<128x32xbf16>, vector<32x8xbf16>, vector<128x8xf32> -> vector<128x8xf32>
    %c0_8 = arith.constant 0 : index
    %c0_9 = arith.constant 0 : index
    %c0_10 = arith.constant 0 : index
    %c0_11 = arith.constant 0 : index
    %8 = vector.load %arg4[%c0_8, %c0_9, %c0_10, %c0_11] : memref<3x4x1x8xf32, #tpu.memory_space<vmem>>, vector<1x1x1x8xf32>
    %9 = vector.shape_cast %8 : vector<1x1x1x8xf32> to vector<1x8xf32>
    %10 = vector.broadcast %9 : vector<1x8xf32> to vector<128x8xf32>
    %11 = arith.addf %7, %10 : vector<128x8xf32>
    %c1 = arith.constant 1 : index
    %c0_12 = arith.constant 0 : index
    %c0_13 = arith.constant 0 : index
    %c0_14 = arith.constant 0 : index
    %12 = vector.load %arg3[%c1, %c0_12, %c0_13, %c0_14] : memref<3x4x32x8xf32, #tpu.memory_space<vmem>>, vector<1x1x32x8xf32>
    %13 = vector.shape_cast %12 : vector<1x1x32x8xf32> to vector<32x8xf32>
    %14 = arith.truncf %13 : vector<32x8xf32> to vector<32x8xbf16>
    %cst_15 = arith.constant dense<0.000000e+00> : vector<128x8xf32>
    %15 = tpu.matmul %1, %14, %cst_15 {dimension_numbers = #tpu.dot_dimension_numbers<[1], [0], [0], [1], [0, 0, 1, 1], [], []>} : vector<128x32xbf16>, vector<32x8xbf16>, vector<128x8xf32> -> vector<128x8xf32>
    %c1_16 = arith.constant 1 : index
    %c0_17 = arith.constant 0 : index
    %c0_18 = arith.constant 0 : index
    %c0_19 = arith.constant 0 : index
    %16 = vector.load %arg4[%c1_16, %c0_17, %c0_18, %c0_19] : memref<3x4x1x8xf32, #tpu.memory_space<vmem>>, vector<1x1x1x8xf32>
    %17 = vector.shape_cast %16 : vector<1x1x1x8xf32> to vector<1x8xf32>
    %18 = vector.broadcast %17 : vector<1x8xf32> to vector<128x8xf32>
    %19 = arith.addf %15, %18 : vector<128x8xf32>
    %c2 = arith.constant 2 : index
    %c0_20 = arith.constant 0 : index
    %c0_21 = arith.constant 0 : index
    %c0_22 = arith.constant 0 : index
    %20 = vector.load %arg3[%c2, %c0_20, %c0_21, %c0_22] : memref<3x4x32x8xf32, #tpu.memory_space<vmem>>, vector<1x1x32x8xf32>
    %21 = vector.shape_cast %20 : vector<1x1x32x8xf32> to vector<32x8xf32>
    %22 = arith.truncf %21 : vector<32x8xf32> to vector<32x8xbf16>
    %cst_23 = arith.constant dense<0.000000e+00> : vector<128x8xf32>
    %23 = tpu.matmul %1, %22, %cst_23 {dimension_numbers = #tpu.dot_dimension_numbers<[1], [0], [0], [1], [0, 0, 1, 1], [], []>} : vector<128x32xbf16>, vector<32x8xbf16>, vector<128x8xf32> -> vector<128x8xf32>
    %c2_24 = arith.constant 2 : index
    %c0_25 = arith.constant 0 : index
    %c0_26 = arith.constant 0 : index
    %c0_27 = arith.constant 0 : index
    %24 = vector.load %arg4[%c2_24, %c0_25, %c0_26, %c0_27] : memref<3x4x1x8xf32, #tpu.memory_space<vmem>>, vector<1x1x1x8xf32>
    %25 = vector.shape_cast %24 : vector<1x1x1x8xf32> to vector<1x8xf32>
    %26 = vector.broadcast %25 : vector<1x8xf32> to vector<128x8xf32>
    %27 = arith.addf %23, %26 : vector<128x8xf32>
    %28 = arith.truncf %11 : vector<128x8xf32> to vector<128x8xbf16>
    %29 = arith.truncf %19 : vector<128x8xf32> to vector<128x8xbf16>
    "tpu.trace_start"() <{level = 10 : i32, message = "qd,kd->qk"}> : () -> ()
    %cst_28 = arith.constant dense<0.000000e+00> : vector<128x128xf32>
    %30 = tpu.matmul %28, %29, %cst_28 {dimension_numbers = #tpu.dot_dimension_numbers<[1], [1], [0], [0], [0, 0, 1, 0], [], []>} : vector<128x8xbf16>, vector<128x8xbf16>, vector<128x128xf32> -> vector<128x128xf32>
    "tpu.trace_stop"() : () -> ()
    %cst_29 = arith.constant 0.353553385 : f32
    %31 = vector.broadcast %cst_29 : f32 to vector<128x128xf32>
    %32 = arith.mulf %30, %31 : vector<128x128xf32>
    %cst_30 = arith.constant 0.000000e+00 : f32
    %33 = vector.broadcast %cst_30 : f32 to vector<128x128xf32>
    %34 = arith.cmpf ogt, %2, %33 : vector<128x128xf32>
    %cst_31 = arith.constant -1.000000e+09 : f32
    %35 = vector.broadcast %cst_31 : f32 to vector<128x128xf32>
    %36 = arith.select %34, %32, %35 : vector<128x128xi1>, vector<128x128xf32>
    %cst_32 = arith.constant dense<0xFF800000> : vector<128xf32>
    %37 = vector.multi_reduction <maximumf>, %36, %cst_32 [1] : vector<128x128xf32> to vector<128xf32>
    %38 = vector.shape_cast %37 : vector<128xf32> to vector<128x1xf32>
    %39 = vector.broadcast %38 : vector<128x1xf32> to vector<128x128xf32>
    %40 = arith.subf %36, %39 : vector<128x128xf32>
    %41 = math.exp %40 : vector<128x128xf32>
    %cst_33 = arith.constant dense<0.000000e+00> : vector<128xf32>
    %42 = vector.multi_reduction <add>, %41, %cst_33 [1] : vector<128x128xf32> to vector<128xf32>
    %43 = vector.shape_cast %42 : vector<128xf32> to vector<128x1xf32>
    %44 = tpu.reciprocal %43 {approx = true} : vector<128x1xf32> -> vector<128x1xf32>
    %45 = vector.broadcast %44 : vector<128x1xf32> to vector<128x128xf32>
    %46 = arith.mulf %41, %45 : vector<128x128xf32>
    %47 = arith.truncf %46 : vector<128x128xf32> to vector<128x128xbf16>
    %48 = arith.truncf %27 : vector<128x8xf32> to vector<128x8xbf16>
    %cst_34 = arith.constant dense<0.000000e+00> : vector<128x8xf32>
    %49 = tpu.matmul %47, %48, %cst_34 {dimension_numbers = #tpu.dot_dimension_numbers<[1], [0], [0], [1], [0, 0, 1, 1], [], []>} : vector<128x128xbf16>, vector<128x8xbf16>, vector<128x8xf32> -> vector<128x8xf32>
    %c0_35 = arith.constant 0 : index
    %c0_36 = arith.constant 0 : index
    %c0_37 = arith.constant 0 : index
    %50 = vector.load %arg5[%c0_35, %c0_36, %c0_37] : memref<4x8x32xf32, #tpu.memory_space<vmem>>, vector<1x8x32xf32>
    %51 = vector.shape_cast %50 : vector<1x8x32xf32> to vector<8x32xf32>
    %cst_38 = arith.constant dense<0.000000e+00> : vector<128x32xf32>
    %52 = tpu.matmul %49, %51, %cst_38 {dimension_numbers = #tpu.dot_dimension_numbers<[1], [0], [0], [1], [0, 0, 1, 1], [], []>} : vector<128x8xf32>, vector<8x32xf32>, vector<128x32xf32> -> vector<128x32xf32>
    %53 = arith.addf %3, %52 : vector<128x32xf32>
    %c0_39 = arith.constant 0 : index
    %c1_40 = arith.constant 1 : index
    %c0_41 = arith.constant 0 : index
    %c0_42 = arith.constant 0 : index
    %54 = vector.load %arg3[%c0_39, %c1_40, %c0_41, %c0_42] : memref<3x4x32x8xf32, #tpu.memory_space<vmem>>, vector<1x1x32x8xf32>
    %55 = vector.shape_cast %54 : vector<1x1x32x8xf32> to vector<32x8xf32>
    %56 = arith.truncf %55 : vector<32x8xf32> to vector<32x8xbf16>
    %cst_43 = arith.constant dense<0.000000e+00> : vector<128x8xf32>
    %57 = tpu.matmul %1, %56, %cst_43 {dimension_numbers = #tpu.dot_dimension_numbers<[1], [0], [0], [1], [0, 0, 1, 1], [], []>} : vector<128x32xbf16>, vector<32x8xbf16>, vector<128x8xf32> -> vector<128x8xf32>
    %c0_44 = arith.constant 0 : index
    %c1_45 = arith.constant 1 : index
    %c0_46 = arith.constant 0 : index
    %c0_47 = arith.constant 0 : index
    %58 = vector.load %arg4[%c0_44, %c1_45, %c0_46, %c0_47] : memref<3x4x1x8xf32, #tpu.memory_space<vmem>>, vector<1x1x1x8xf32>
    %59 = vector.shape_cast %58 : vector<1x1x1x8xf32> to vector<1x8xf32>
    %60 = vector.broadcast %59 : vector<1x8xf32> to vector<128x8xf32>
    %61 = arith.addf %57, %60 : vector<128x8xf32>
    %c1_48 = arith.constant 1 : index
    %c1_49 = arith.constant 1 : index
    %c0_50 = arith.constant 0 : index
    %c0_51 = arith.constant 0 : index
    %62 = vector.load %arg3[%c1_48, %c1_49, %c0_50, %c0_51] : memref<3x4x32x8xf32, #tpu.memory_space<vmem>>, vector<1x1x32x8xf32>
    %63 = vector.shape_cast %62 : vector<1x1x32x8xf32> to vector<32x8xf32>
    %64 = arith.truncf %63 : vector<32x8xf32> to vector<32x8xbf16>
    %cst_52 = arith.constant dense<0.000000e+00> : vector<128x8xf32>
    %65 = tpu.matmul %1, %64, %cst_52 {dimension_numbers = #tpu.dot_dimension_numbers<[1], [0], [0], [1], [0, 0, 1, 1], [], []>} : vector<128x32xbf16>, vector<32x8xbf16>, vector<128x8xf32> -> vector<128x8xf32>
    %c1_53 = arith.constant 1 : index
    %c1_54 = arith.constant 1 : index
    %c0_55 = arith.constant 0 : index
    %c0_56 = arith.constant 0 : index
    %66 = vector.load %arg4[%c1_53, %c1_54, %c0_55, %c0_56] : memref<3x4x1x8xf32, #tpu.memory_space<vmem>>, vector<1x1x1x8xf32>
    %67 = vector.shape_cast %66 : vector<1x1x1x8xf32> to vector<1x8xf32>
    %68 = vector.broadcast %67 : vector<1x8xf32> to vector<128x8xf32>
    %69 = arith.addf %65, %68 : vector<128x8xf32>
    %c2_57 = arith.constant 2 : index
    %c1_58 = arith.constant 1 : index
    %c0_59 = arith.constant 0 : index
    %c0_60 = arith.constant 0 : index
    %70 = vector.load %arg3[%c2_57, %c1_58, %c0_59, %c0_60] : memref<3x4x32x8xf32, #tpu.memory_space<vmem>>, vector<1x1x32x8xf32>
    %71 = vector.shape_cast %70 : vector<1x1x32x8xf32> to vector<32x8xf32>
    %72 = arith.truncf %71 : vector<32x8xf32> to vector<32x8xbf16>
    %cst_61 = arith.constant dense<0.000000e+00> : vector<128x8xf32>
    %73 = tpu.matmul %1, %72, %cst_61 {dimension_numbers = #tpu.dot_dimension_numbers<[1], [0], [0], [1], [0, 0, 1, 1], [], []>} : vector<128x32xbf16>, vector<32x8xbf16>, vector<128x8xf32> -> vector<128x8xf32>
    %c2_62 = arith.constant 2 : index
    %c1_63 = arith.constant 1 : index
    %c0_64 = arith.constant 0 : index
    %c0_65 = arith.constant 0 : index
    %74 = vector.load %arg4[%c2_62, %c1_63, %c0_64, %c0_65] : memref<3x4x1x8xf32, #tpu.memory_space<vmem>>, vector<1x1x1x8xf32>
    %75 = vector.shape_cast %74 : vector<1x1x1x8xf32> to vector<1x8xf32>
    %76 = vector.broadcast %75 : vector<1x8xf32> to vector<128x8xf32>
    %77 = arith.addf %73, %76 : vector<128x8xf32>
    %78 = arith.truncf %61 : vector<128x8xf32> to vector<128x8xbf16>
    %79 = arith.truncf %69 : vector<128x8xf32> to vector<128x8xbf16>
    "tpu.trace_start"() <{level = 10 : i32, message = "qd,kd->qk"}> : () -> ()
    %cst_66 = arith.constant dense<0.000000e+00> : vector<128x128xf32>
    %80 = tpu.matmul %78, %79, %cst_66 {dimension_numbers = #tpu.dot_dimension_numbers<[1], [1], [0], [0], [0, 0, 1, 0], [], []>} : vector<128x8xbf16>, vector<128x8xbf16>, vector<128x128xf32> -> vector<128x128xf32>
    "tpu.trace_stop"() : () -> ()
    %cst_67 = arith.constant 0.353553385 : f32
    %81 = vector.broadcast %cst_67 : f32 to vector<128x128xf32>
    %82 = arith.mulf %80, %81 : vector<128x128xf32>
    %cst_68 = arith.constant 0.000000e+00 : f32
    %83 = vector.broadcast %cst_68 : f32 to vector<128x128xf32>
    %84 = arith.cmpf ogt, %2, %83 : vector<128x128xf32>
    %cst_69 = arith.constant -1.000000e+09 : f32
    %85 = vector.broadcast %cst_69 : f32 to vector<128x128xf32>
    %86 = arith.select %84, %82, %85 : vector<128x128xi1>, vector<128x128xf32>
    %cst_70 = arith.constant dense<0xFF800000> : vector<128xf32>
    %87 = vector.multi_reduction <maximumf>, %86, %cst_70 [1] : vector<128x128xf32> to vector<128xf32>
    %88 = vector.shape_cast %87 : vector<128xf32> to vector<128x1xf32>
    %89 = vector.broadcast %88 : vector<128x1xf32> to vector<128x128xf32>
    %90 = arith.subf %86, %89 : vector<128x128xf32>
    %91 = math.exp %90 : vector<128x128xf32>
    %cst_71 = arith.constant dense<0.000000e+00> : vector<128xf32>
    %92 = vector.multi_reduction <add>, %91, %cst_71 [1] : vector<128x128xf32> to vector<128xf32>
    %93 = vector.shape_cast %92 : vector<128xf32> to vector<128x1xf32>
    %94 = tpu.reciprocal %93 {approx = true} : vector<128x1xf32> -> vector<128x1xf32>
    %95 = vector.broadcast %94 : vector<128x1xf32> to vector<128x128xf32>
    %96 = arith.mulf %91, %95 : vector<128x128xf32>
    %97 = arith.truncf %96 : vector<128x128xf32> to vector<128x128xbf16>
    %98 = arith.truncf %77 : vector<128x8xf32> to vector<128x8xbf16>
    %cst_72 = arith.constant dense<0.000000e+00> : vector<128x8xf32>
    %99 = tpu.matmul %97, %98, %cst_72 {dimension_numbers = #tpu.dot_dimension_numbers<[1], [0], [0], [1], [0, 0, 1, 1], [], []>} : vector<128x128xbf16>, vector<128x8xbf16>, vector<128x8xf32> -> vector<128x8xf32>
    %c1_73 = arith.constant 1 : index
    %c0_74 = arith.constant 0 : index
    %c0_75 = arith.constant 0 : index
    %100 = vector.load %arg5[%c1_73, %c0_74, %c0_75] : memref<4x8x32xf32, #tpu.memory_space<vmem>>, vector<1x8x32xf32>
    %101 = vector.shape_cast %100 : vector<1x8x32xf32> to vector<8x32xf32>
    %cst_76 = arith.constant dense<0.000000e+00> : vector<128x32xf32>
    %102 = tpu.matmul %99, %101, %cst_76 {dimension_numbers = #tpu.dot_dimension_numbers<[1], [0], [0], [1], [0, 0, 1, 1], [], []>} : vector<128x8xf32>, vector<8x32xf32>, vector<128x32xf32> -> vector<128x32xf32>
    %103 = arith.addf %53, %102 : vector<128x32xf32>
    %c0_77 = arith.constant 0 : index
    %c2_78 = arith.constant 2 : index
    %c0_79 = arith.constant 0 : index
    %c0_80 = arith.constant 0 : index
    %104 = vector.load %arg3[%c0_77, %c2_78, %c0_79, %c0_80] : memref<3x4x32x8xf32, #tpu.memory_space<vmem>>, vector<1x1x32x8xf32>
    %105 = vector.shape_cast %104 : vector<1x1x32x8xf32> to vector<32x8xf32>
    %106 = arith.truncf %105 : vector<32x8xf32> to vector<32x8xbf16>
    %cst_81 = arith.constant dense<0.000000e+00> : vector<128x8xf32>
    %107 = tpu.matmul %1, %106, %cst_81 {dimension_numbers = #tpu.dot_dimension_numbers<[1], [0], [0], [1], [0, 0, 1, 1], [], []>} : vector<128x32xbf16>, vector<32x8xbf16>, vector<128x8xf32> -> vector<128x8xf32>
    %c0_82 = arith.constant 0 : index
    %c2_83 = arith.constant 2 : index
    %c0_84 = arith.constant 0 : index
    %c0_85 = arith.constant 0 : index
    %108 = vector.load %arg4[%c0_82, %c2_83, %c0_84, %c0_85] : memref<3x4x1x8xf32, #tpu.memory_space<vmem>>, vector<1x1x1x8xf32>
    %109 = vector.shape_cast %108 : vector<1x1x1x8xf32> to vector<1x8xf32>
    %110 = vector.broadcast %109 : vector<1x8xf32> to vector<128x8xf32>
    %111 = arith.addf %107, %110 : vector<128x8xf32>
    %c1_86 = arith.constant 1 : index
    %c2_87 = arith.constant 2 : index
    %c0_88 = arith.constant 0 : index
    %c0_89 = arith.constant 0 : index
    %112 = vector.load %arg3[%c1_86, %c2_87, %c0_88, %c0_89] : memref<3x4x32x8xf32, #tpu.memory_space<vmem>>, vector<1x1x32x8xf32>
    %113 = vector.shape_cast %112 : vector<1x1x32x8xf32> to vector<32x8xf32>
    %114 = arith.truncf %113 : vector<32x8xf32> to vector<32x8xbf16>
    %cst_90 = arith.constant dense<0.000000e+00> : vector<128x8xf32>
    %115 = tpu.matmul %1, %114, %cst_90 {dimension_numbers = #tpu.dot_dimension_numbers<[1], [0], [0], [1], [0, 0, 1, 1], [], []>} : vector<128x32xbf16>, vector<32x8xbf16>, vector<128x8xf32> -> vector<128x8xf32>
    %c1_91 = arith.constant 1 : index
    %c2_92 = arith.constant 2 : index
    %c0_93 = arith.constant 0 : index
    %c0_94 = arith.constant 0 : index
    %116 = vector.load %arg4[%c1_91, %c2_92, %c0_93, %c0_94] : memref<3x4x1x8xf32, #tpu.memory_space<vmem>>, vector<1x1x1x8xf32>
    %117 = vector.shape_cast %116 : vector<1x1x1x8xf32> to vector<1x8xf32>
    %118 = vector.broadcast %117 : vector<1x8xf32> to vector<128x8xf32>
    %119 = arith.addf %115, %118 : vector<128x8xf32>
    %c2_95 = arith.constant 2 : index
    %c2_96 = arith.constant 2 : index
    %c0_97 = arith.constant 0 : index
    %c0_98 = arith.constant 0 : index
    %120 = vector.load %arg3[%c2_95, %c2_96, %c0_97, %c0_98] : memref<3x4x32x8xf32, #tpu.memory_space<vmem>>, vector<1x1x32x8xf32>
    %121 = vector.shape_cast %120 : vector<1x1x32x8xf32> to vector<32x8xf32>
    %122 = arith.truncf %121 : vector<32x8xf32> to vector<32x8xbf16>
    %cst_99 = arith.constant dense<0.000000e+00> : vector<128x8xf32>
    %123 = tpu.matmul %1, %122, %cst_99 {dimension_numbers = #tpu.dot_dimension_numbers<[1], [0], [0], [1], [0, 0, 1, 1], [], []>} : vector<128x32xbf16>, vector<32x8xbf16>, vector<128x8xf32> -> vector<128x8xf32>
    %c2_100 = arith.constant 2 : index
    %c2_101 = arith.constant 2 : index
    %c0_102 = arith.constant 0 : index
    %c0_103 = arith.constant 0 : index
    %124 = vector.load %arg4[%c2_100, %c2_101, %c0_102, %c0_103] : memref<3x4x1x8xf32, #tpu.memory_space<vmem>>, vector<1x1x1x8xf32>
    %125 = vector.shape_cast %124 : vector<1x1x1x8xf32> to vector<1x8xf32>
    %126 = vector.broadcast %125 : vector<1x8xf32> to vector<128x8xf32>
    %127 = arith.addf %123, %126 : vector<128x8xf32>
    %128 = arith.truncf %111 : vector<128x8xf32> to vector<128x8xbf16>
    %129 = arith.truncf %119 : vector<128x8xf32> to vector<128x8xbf16>
    "tpu.trace_start"() <{level = 10 : i32, message = "qd,kd->qk"}> : () -> ()
    %cst_104 = arith.constant dense<0.000000e+00> : vector<128x128xf32>
    %130 = tpu.matmul %128, %129, %cst_104 {dimension_numbers = #tpu.dot_dimension_numbers<[1], [1], [0], [0], [0, 0, 1, 0], [], []>} : vector<128x8xbf16>, vector<128x8xbf16>, vector<128x128xf32> -> vector<128x128xf32>
    "tpu.trace_stop"() : () -> ()
    %cst_105 = arith.constant 0.353553385 : f32
    %131 = vector.broadcast %cst_105 : f32 to vector<128x128xf32>
    %132 = arith.mulf %130, %131 : vector<128x128xf32>
    %cst_106 = arith.constant 0.000000e+00 : f32
    %133 = vector.broadcast %cst_106 : f32 to vector<128x128xf32>
    %134 = arith.cmpf ogt, %2, %133 : vector<128x128xf32>
    %cst_107 = arith.constant -1.000000e+09 : f32
    %135 = vector.broadcast %cst_107 : f32 to vector<128x128xf32>
    %136 = arith.select %134, %132, %135 : vector<128x128xi1>, vector<128x128xf32>
    %cst_108 = arith.constant dense<0xFF800000> : vector<128xf32>
    %137 = vector.multi_reduction <maximumf>, %136, %cst_108 [1] : vector<128x128xf32> to vector<128xf32>
    %138 = vector.shape_cast %137 : vector<128xf32> to vector<128x1xf32>
    %139 = vector.broadcast %138 : vector<128x1xf32> to vector<128x128xf32>
    %140 = arith.subf %136, %139 : vector<128x128xf32>
    %141 = math.exp %140 : vector<128x128xf32>
    %cst_109 = arith.constant dense<0.000000e+00> : vector<128xf32>
    %142 = vector.multi_reduction <add>, %141, %cst_109 [1] : vector<128x128xf32> to vector<128xf32>
    %143 = vector.shape_cast %142 : vector<128xf32> to vector<128x1xf32>
    %144 = tpu.reciprocal %143 {approx = true} : vector<128x1xf32> -> vector<128x1xf32>
    %145 = vector.broadcast %144 : vector<128x1xf32> to vector<128x128xf32>
    %146 = arith.mulf %141, %145 : vector<128x128xf32>
    %147 = arith.truncf %146 : vector<128x128xf32> to vector<128x128xbf16>
    %148 = arith.truncf %127 : vector<128x8xf32> to vector<128x8xbf16>
    %cst_110 = arith.constant dense<0.000000e+00> : vector<128x8xf32>
    %149 = tpu.matmul %147, %148, %cst_110 {dimension_numbers = #tpu.dot_dimension_numbers<[1], [0], [0], [1], [0, 0, 1, 1], [], []>} : vector<128x128xbf16>, vector<128x8xbf16>, vector<128x8xf32> -> vector<128x8xf32>
    %c2_111 = arith.constant 2 : index
    %c0_112 = arith.constant 0 : index
    %c0_113 = arith.constant 0 : index
    %150 = vector.load %arg5[%c2_111, %c0_112, %c0_113] : memref<4x8x32xf32, #tpu.memory_space<vmem>>, vector<1x8x32xf32>
    %151 = vector.shape_cast %150 : vector<1x8x32xf32> to vector<8x32xf32>
    %cst_114 = arith.constant dense<0.000000e+00> : vector<128x32xf32>
    %152 = tpu.matmul %149, %151, %cst_114 {dimension_numbers = #tpu.dot_dimension_numbers<[1], [0], [0], [1], [0, 0, 1, 1], [], []>} : vector<128x8xf32>, vector<8x32xf32>, vector<128x32xf32> -> vector<128x32xf32>
    %153 = arith.addf %103, %152 : vector<128x32xf32>
    %c0_115 = arith.constant 0 : index
    %c3 = arith.constant 3 : index
    %c0_116 = arith.constant 0 : index
    %c0_117 = arith.constant 0 : index
    %154 = vector.load %arg3[%c0_115, %c3, %c0_116, %c0_117] : memref<3x4x32x8xf32, #tpu.memory_space<vmem>>, vector<1x1x32x8xf32>
    %155 = vector.shape_cast %154 : vector<1x1x32x8xf32> to vector<32x8xf32>
    %156 = arith.truncf %155 : vector<32x8xf32> to vector<32x8xbf16>
    %cst_118 = arith.constant dense<0.000000e+00> : vector<128x8xf32>
    %157 = tpu.matmul %1, %156, %cst_118 {dimension_numbers = #tpu.dot_dimension_numbers<[1], [0], [0], [1], [0, 0, 1, 1], [], []>} : vector<128x32xbf16>, vector<32x8xbf16>, vector<128x8xf32> -> vector<128x8xf32>
    %c0_119 = arith.constant 0 : index
    %c3_120 = arith.constant 3 : index
    %c0_121 = arith.constant 0 : index
    %c0_122 = arith.constant 0 : index
    %158 = vector.load %arg4[%c0_119, %c3_120, %c0_121, %c0_122] : memref<3x4x1x8xf32, #tpu.memory_space<vmem>>, vector<1x1x1x8xf32>
    %159 = vector.shape_cast %158 : vector<1x1x1x8xf32> to vector<1x8xf32>
    %160 = vector.broadcast %159 : vector<1x8xf32> to vector<128x8xf32>
    %161 = arith.addf %157, %160 : vector<128x8xf32>
    %c1_123 = arith.constant 1 : index
    %c3_124 = arith.constant 3 : index
    %c0_125 = arith.constant 0 : index
    %c0_126 = arith.constant 0 : index
    %162 = vector.load %arg3[%c1_123, %c3_124, %c0_125, %c0_126] : memref<3x4x32x8xf32, #tpu.memory_space<vmem>>, vector<1x1x32x8xf32>
    %163 = vector.shape_cast %162 : vector<1x1x32x8xf32> to vector<32x8xf32>
    %164 = arith.truncf %163 : vector<32x8xf32> to vector<32x8xbf16>
    %cst_127 = arith.constant dense<0.000000e+00> : vector<128x8xf32>
    %165 = tpu.matmul %1, %164, %cst_127 {dimension_numbers = #tpu.dot_dimension_numbers<[1], [0], [0], [1], [0, 0, 1, 1], [], []>} : vector<128x32xbf16>, vector<32x8xbf16>, vector<128x8xf32> -> vector<128x8xf32>
    %c1_128 = arith.constant 1 : index
    %c3_129 = arith.constant 3 : index
    %c0_130 = arith.constant 0 : index
    %c0_131 = arith.constant 0 : index
    %166 = vector.load %arg4[%c1_128, %c3_129, %c0_130, %c0_131] : memref<3x4x1x8xf32, #tpu.memory_space<vmem>>, vector<1x1x1x8xf32>
    %167 = vector.shape_cast %166 : vector<1x1x1x8xf32> to vector<1x8xf32>
    %168 = vector.broadcast %167 : vector<1x8xf32> to vector<128x8xf32>
    %169 = arith.addf %165, %168 : vector<128x8xf32>
    %c2_132 = arith.constant 2 : index
    %c3_133 = arith.constant 3 : index
    %c0_134 = arith.constant 0 : index
    %c0_135 = arith.constant 0 : index
    %170 = vector.load %arg3[%c2_132, %c3_133, %c0_134, %c0_135] : memref<3x4x32x8xf32, #tpu.memory_space<vmem>>, vector<1x1x32x8xf32>
    %171 = vector.shape_cast %170 : vector<1x1x32x8xf32> to vector<32x8xf32>
    %172 = arith.truncf %171 : vector<32x8xf32> to vector<32x8xbf16>
    %cst_136 = arith.constant dense<0.000000e+00> : vector<128x8xf32>
    %173 = tpu.matmul %1, %172, %cst_136 {dimension_numbers = #tpu.dot_dimension_numbers<[1], [0], [0], [1], [0, 0, 1, 1], [], []>} : vector<128x32xbf16>, vector<32x8xbf16>, vector<128x8xf32> -> vector<128x8xf32>
    %c2_137 = arith.constant 2 : index
    %c3_138 = arith.constant 3 : index
    %c0_139 = arith.constant 0 : index
    %c0_140 = arith.constant 0 : index
    %174 = vector.load %arg4[%c2_137, %c3_138, %c0_139, %c0_140] : memref<3x4x1x8xf32, #tpu.memory_space<vmem>>, vector<1x1x1x8xf32>
    %175 = vector.shape_cast %174 : vector<1x1x1x8xf32> to vector<1x8xf32>
    %176 = vector.broadcast %175 : vector<1x8xf32> to vector<128x8xf32>
    %177 = arith.addf %173, %176 : vector<128x8xf32>
    %178 = arith.truncf %161 : vector<128x8xf32> to vector<128x8xbf16>
    %179 = arith.truncf %169 : vector<128x8xf32> to vector<128x8xbf16>
    "tpu.trace_start"() <{level = 10 : i32, message = "qd,kd->qk"}> : () -> ()
    %cst_141 = arith.constant dense<0.000000e+00> : vector<128x128xf32>
    %180 = tpu.matmul %178, %179, %cst_141 {dimension_numbers = #tpu.dot_dimension_numbers<[1], [1], [0], [0], [0, 0, 1, 0], [], []>} : vector<128x8xbf16>, vector<128x8xbf16>, vector<128x128xf32> -> vector<128x128xf32>
    "tpu.trace_stop"() : () -> ()
    %cst_142 = arith.constant 0.353553385 : f32
    %181 = vector.broadcast %cst_142 : f32 to vector<128x128xf32>
    %182 = arith.mulf %180, %181 : vector<128x128xf32>
    %cst_143 = arith.constant 0.000000e+00 : f32
    %183 = vector.broadcast %cst_143 : f32 to vector<128x128xf32>
    %184 = arith.cmpf ogt, %2, %183 : vector<128x128xf32>
    %cst_144 = arith.constant -1.000000e+09 : f32
    %185 = vector.broadcast %cst_144 : f32 to vector<128x128xf32>
    %186 = arith.select %184, %182, %185 : vector<128x128xi1>, vector<128x128xf32>
    %cst_145 = arith.constant dense<0xFF800000> : vector<128xf32>
    %187 = vector.multi_reduction <maximumf>, %186, %cst_145 [1] : vector<128x128xf32> to vector<128xf32>
    %188 = vector.shape_cast %187 : vector<128xf32> to vector<128x1xf32>
    %189 = vector.broadcast %188 : vector<128x1xf32> to vector<128x128xf32>
    %190 = arith.subf %186, %189 : vector<128x128xf32>
    %191 = math.exp %190 : vector<128x128xf32>
    %cst_146 = arith.constant dense<0.000000e+00> : vector<128xf32>
    %192 = vector.multi_reduction <add>, %191, %cst_146 [1] : vector<128x128xf32> to vector<128xf32>
    %193 = vector.shape_cast %192 : vector<128xf32> to vector<128x1xf32>
    %194 = tpu.reciprocal %193 {approx = true} : vector<128x1xf32> -> vector<128x1xf32>
    %195 = vector.broadcast %194 : vector<128x1xf32> to vector<128x128xf32>
    %196 = arith.mulf %191, %195 : vector<128x128xf32>
    %197 = arith.truncf %196 : vector<128x128xf32> to vector<128x128xbf16>
    %198 = arith.truncf %177 : vector<128x8xf32> to vector<128x8xbf16>
    %cst_147 = arith.constant dense<0.000000e+00> : vector<128x8xf32>
    %199 = tpu.matmul %197, %198, %cst_147 {dimension_numbers = #tpu.dot_dimension_numbers<[1], [0], [0], [1], [0, 0, 1, 1], [], []>} : vector<128x128xbf16>, vector<128x8xbf16>, vector<128x8xf32> -> vector<128x8xf32>
    %c3_148 = arith.constant 3 : index
    %c0_149 = arith.constant 0 : index
    %c0_150 = arith.constant 0 : index
    %200 = vector.load %arg5[%c3_148, %c0_149, %c0_150] : memref<4x8x32xf32, #tpu.memory_space<vmem>>, vector<1x8x32xf32>
    %201 = vector.shape_cast %200 : vector<1x8x32xf32> to vector<8x32xf32>
    %cst_151 = arith.constant dense<0.000000e+00> : vector<128x32xf32>
    %202 = tpu.matmul %199, %201, %cst_151 {dimension_numbers = #tpu.dot_dimension_numbers<[1], [0], [0], [1], [0, 0, 1, 1], [], []>} : vector<128x8xf32>, vector<8x32xf32>, vector<128x32xf32> -> vector<128x32xf32>
    %203 = arith.addf %153, %202 : vector<128x32xf32>
    %c0_152 = arith.constant 0 : index
    %c0_153 = arith.constant 0 : index
    %204 = vector.load %arg6[%c0_152, %c0_153] : memref<1x32xf32, #tpu.memory_space<vmem>>, vector<1x32xf32>
    %205 = vector.broadcast %204 : vector<1x32xf32> to vector<128x32xf32>
    %206 = arith.addf %203, %205 : vector<128x32xf32>
    %207 = arith.addf %0, %206 : vector<128x32xf32>
    %c0_154 = arith.constant 0 : index
    %c0_155 = arith.constant 0 : index
    %208 = vector.load %arg7[%c0_154, %c0_155] : memref<1x32xf32, #tpu.memory_space<vmem>>, vector<1x32xf32>
    %c0_156 = arith.constant 0 : index
    %c0_157 = arith.constant 0 : index
    %209 = vector.load %arg8[%c0_156, %c0_157] : memref<1x32xf32, #tpu.memory_space<vmem>>, vector<1x32xf32>
    %cst_158 = arith.constant dense<0.000000e+00> : vector<128xf32>
    %210 = vector.multi_reduction <add>, %207, %cst_158 [1] : vector<128x32xf32> to vector<128xf32>
    %211 = vector.shape_cast %210 : vector<128xf32> to vector<128x1xf32>
    %cst_159 = arith.constant 3.200000e+01 : f32
    %212 = vector.broadcast %cst_159 : f32 to vector<128x1xf32>
    %213 = arith.divf %211, %212 : vector<128x1xf32>
    %214 = vector.broadcast %213 : vector<128x1xf32> to vector<128x32xf32>
    %215 = arith.subf %207, %214 : vector<128x32xf32>
    %216 = arith.mulf %215, %215 : vector<128x32xf32>
    %cst_160 = arith.constant dense<0.000000e+00> : vector<128xf32>
    %217 = vector.multi_reduction <add>, %216, %cst_160 [1] : vector<128x32xf32> to vector<128xf32>
    %218 = vector.shape_cast %217 : vector<128xf32> to vector<128x1xf32>
    %cst_161 = arith.constant 3.200000e+01 : f32
    %219 = vector.broadcast %cst_161 : f32 to vector<128x1xf32>
    %220 = arith.divf %218, %219 : vector<128x1xf32>
    %221 = vector.broadcast %213 : vector<128x1xf32> to vector<128x32xf32>
    %222 = arith.subf %207, %221 : vector<128x32xf32>
    %cst_162 = arith.constant 9.99999974E-6 : f32
    %223 = vector.broadcast %cst_162 : f32 to vector<128x1xf32>
    %224 = arith.addf %220, %223 : vector<128x1xf32>
    %225 = math.rsqrt %224 : vector<128x1xf32>
    %226 = vector.broadcast %225 : vector<128x1xf32> to vector<128x32xf32>
    %227 = arith.mulf %222, %226 : vector<128x32xf32>
    %228 = vector.broadcast %208 : vector<1x32xf32> to vector<128x32xf32>
    %229 = arith.mulf %227, %228 : vector<128x32xf32>
    %230 = vector.broadcast %209 : vector<1x32xf32> to vector<128x32xf32>
    %231 = arith.addf %229, %230 : vector<128x32xf32>
    %232 = arith.truncf %231 : vector<128x32xf32> to vector<128x32xbf16>
    %c0_163 = arith.constant 0 : index
    %c0_164 = arith.constant 0 : index
    %233 = vector.load %arg9[%c0_163, %c0_164] : memref<32x64xbf16, #tpu.memory_space<vmem>>, vector<32x64xbf16>
    %cst_165 = arith.constant dense<0.000000e+00> : vector<128x64xf32>
    %234 = tpu.matmul %232, %233, %cst_165 {dimension_numbers = #tpu.dot_dimension_numbers<[1], [0], [0], [1], [0, 0, 1, 1], [], []>} : vector<128x32xbf16>, vector<32x64xbf16>, vector<128x64xf32> -> vector<128x64xf32>
    %c0_166 = arith.constant 0 : index
    %c0_167 = arith.constant 0 : index
    %235 = vector.load %arg10[%c0_166, %c0_167] : memref<1x64xf32, #tpu.memory_space<vmem>>, vector<1x64xf32>
    %236 = vector.broadcast %235 : vector<1x64xf32> to vector<128x64xf32>
    %237 = arith.addf %234, %236 : vector<128x64xf32>
    %cst_168 = arith.constant 0.000000e+00 : f32
    %238 = vector.broadcast %cst_168 : f32 to vector<128x64xf32>
    %239 = arith.maximumf %237, %238 : vector<128x64xf32>
    %240 = arith.truncf %239 : vector<128x64xf32> to vector<128x64xbf16>
    %c0_169 = arith.constant 0 : index
    %c0_170 = arith.constant 0 : index
    %241 = vector.load %arg11[%c0_169, %c0_170] : memref<64x32xbf16, #tpu.memory_space<vmem>>, vector<64x32xbf16>
    %cst_171 = arith.constant dense<0.000000e+00> : vector<128x32xf32>
    %242 = tpu.matmul %240, %241, %cst_171 {dimension_numbers = #tpu.dot_dimension_numbers<[1], [0], [0], [1], [0, 0, 1, 1], [], []>} : vector<128x64xbf16>, vector<64x32xbf16>, vector<128x32xf32> -> vector<128x32xf32>
    %c0_172 = arith.constant 0 : index
    %c0_173 = arith.constant 0 : index
    %243 = vector.load %arg12[%c0_172, %c0_173] : memref<1x32xf32, #tpu.memory_space<vmem>>, vector<1x32xf32>
    %244 = vector.broadcast %243 : vector<1x32xf32> to vector<128x32xf32>
    %245 = arith.addf %242, %244 : vector<128x32xf32>
    %246 = arith.addf %231, %245 : vector<128x32xf32>
    %c0_174 = arith.constant 0 : index
    %c0_175 = arith.constant 0 : index
    %247 = vector.load %arg13[%c0_174, %c0_175] : memref<1x32xf32, #tpu.memory_space<vmem>>, vector<1x32xf32>
    %c0_176 = arith.constant 0 : index
    %c0_177 = arith.constant 0 : index
    %248 = vector.load %arg14[%c0_176, %c0_177] : memref<1x32xf32, #tpu.memory_space<vmem>>, vector<1x32xf32>
    %cst_178 = arith.constant dense<0.000000e+00> : vector<128xf32>
    %249 = vector.multi_reduction <add>, %246, %cst_178 [1] : vector<128x32xf32> to vector<128xf32>
    %250 = vector.shape_cast %249 : vector<128xf32> to vector<128x1xf32>
    %cst_179 = arith.constant 3.200000e+01 : f32
    %251 = vector.broadcast %cst_179 : f32 to vector<128x1xf32>
    %252 = arith.divf %250, %251 : vector<128x1xf32>
    %253 = vector.broadcast %252 : vector<128x1xf32> to vector<128x32xf32>
    %254 = arith.subf %246, %253 : vector<128x32xf32>
    %255 = arith.mulf %254, %254 : vector<128x32xf32>
    %cst_180 = arith.constant dense<0.000000e+00> : vector<128xf32>
    %256 = vector.multi_reduction <add>, %255, %cst_180 [1] : vector<128x32xf32> to vector<128xf32>
    %257 = vector.shape_cast %256 : vector<128xf32> to vector<128x1xf32>
    %cst_181 = arith.constant 3.200000e+01 : f32
    %258 = vector.broadcast %cst_181 : f32 to vector<128x1xf32>
    %259 = arith.divf %257, %258 : vector<128x1xf32>
    %260 = vector.broadcast %252 : vector<128x1xf32> to vector<128x32xf32>
    %261 = arith.subf %246, %260 : vector<128x32xf32>
    %cst_182 = arith.constant 9.99999974E-6 : f32
    %262 = vector.broadcast %cst_182 : f32 to vector<128x1xf32>
    %263 = arith.addf %259, %262 : vector<128x1xf32>
    %264 = math.rsqrt %263 : vector<128x1xf32>
    %265 = vector.broadcast %264 : vector<128x1xf32> to vector<128x32xf32>
    %266 = arith.mulf %261, %265 : vector<128x32xf32>
    %267 = vector.broadcast %247 : vector<1x32xf32> to vector<128x32xf32>
    %268 = arith.mulf %266, %267 : vector<128x32xf32>
    %269 = vector.broadcast %248 : vector<1x32xf32> to vector<128x32xf32>
    %270 = arith.addf %268, %269 : vector<128x32xf32>
    %c0_183 = arith.constant 0 : index
    %c0_184 = arith.constant 0 : index
    %271 = vector.load %arg2[%c0_183, %c0_184] : memref<128x1xf32, #tpu.memory_space<vmem>>, vector<128x1xf32>
    %272 = vector.broadcast %271 : vector<128x1xf32> to vector<128x32xf32>
    %273 = arith.mulf %270, %272 : vector<128x32xf32>
    %c0_185 = arith.constant 0 : index
    %c0_186 = arith.constant 0 : index
    %274 = vector.load %arg15[%c0_185, %c0_186] : memref<128x32xf32, #tpu.memory_space<vmem>>, vector<128x32xf32>
    tpu.vector_store %arg15[%c0_185, %c0_186], %273 {strides = array<i32>} : memref<128x32xf32, #tpu.memory_space<vmem>>, vector<128x32xf32>,
    return
  }
}

module attributes {stable_mosaic.version = 11 : i64} {
  func.func @_rho_out_kernel(%arg0: memref<128x32xf32, #tpu.memory_space<vmem>>, %arg1: memref<16x128xf32, #tpu.memory_space<vmem>>, %arg2: memref<32x32xbf16, #tpu.memory_space<vmem>>, %arg3: memref<1x32xf32, #tpu.memory_space<vmem>>, %arg4: memref<1x32xf32, #tpu.memory_space<vmem>>, %arg5: memref<16x32xf32, #tpu.memory_space<vmem>>) attributes {dimension_semantics = [], scalar_prefetch = 0 : i64, scratch_operands = 0 : i64, tpu.core_type = #tpu.core_type<tc>} {
    %c0 = arith.constant 0 : index
    %c0_0 = arith.constant 0 : index
    %0 = vector.load %arg1[%c0, %c0_0] : memref<16x128xf32, #tpu.memory_space<vmem>>, vector<16x128xf32>
    %c0_1 = arith.constant 0 : index
    %c0_2 = arith.constant 0 : index
    %1 = vector.load %arg0[%c0_1, %c0_2] : memref<128x32xf32, #tpu.memory_space<vmem>>, vector<128x32xf32>
    %cst = arith.constant dense<0.000000e+00> : vector<16x32xf32>
    %2 = tpu.matmul %0, %1, %cst {dimension_numbers = #tpu.dot_dimension_numbers<[1], [0], [0], [1], [0, 0, 1, 1], [], []>} : vector<16x128xf32>, vector<128x32xf32>, vector<16x32xf32> -> vector<16x32xf32>
    %3 = arith.truncf %2 : vector<16x32xf32> to vector<16x32xbf16>
    %c0_3 = arith.constant 0 : index
    %c0_4 = arith.constant 0 : index
    %4 = vector.load %arg2[%c0_3, %c0_4] : memref<32x32xbf16, #tpu.memory_space<vmem>>, vector<32x32xbf16>
    %cst_5 = arith.constant dense<0.000000e+00> : vector<16x32xf32>
    %5 = tpu.matmul %3, %4, %cst_5 {dimension_numbers = #tpu.dot_dimension_numbers<[1], [0], [0], [1], [0, 0, 1, 1], [], []>} : vector<16x32xbf16>, vector<32x32xbf16>, vector<16x32xf32> -> vector<16x32xf32>
    %cst_6 = arith.constant dense<0.000000e+00> : vector<32xf32>
    %6 = vector.multi_reduction <add>, %5, %cst_6 [0] : vector<16x32xf32> to vector<32xf32>
    %7 = vector.shape_cast %6 : vector<32xf32> to vector<1x32xf32>
    %cst_7 = arith.constant 1.600000e+01 : f32
    %8 = vector.broadcast %cst_7 : f32 to vector<1x32xf32>
    %9 = arith.divf %7, %8 : vector<1x32xf32>
    %10 = vector.broadcast %9 : vector<1x32xf32> to vector<16x32xf32>
    %11 = arith.subf %5, %10 : vector<16x32xf32>
    %12 = arith.mulf %11, %11 : vector<16x32xf32>
    %cst_8 = arith.constant dense<0.000000e+00> : vector<32xf32>
    %13 = vector.multi_reduction <add>, %12, %cst_8 [0] : vector<16x32xf32> to vector<32xf32>
    %14 = vector.shape_cast %13 : vector<32xf32> to vector<1x32xf32>
    %cst_9 = arith.constant 1.600000e+01 : f32
    %15 = vector.broadcast %cst_9 : f32 to vector<1x32xf32>
    %16 = arith.divf %14, %15 : vector<1x32xf32>
    %17 = vector.broadcast %9 : vector<1x32xf32> to vector<16x32xf32>
    %18 = arith.subf %5, %17 : vector<16x32xf32>
    %cst_10 = arith.constant 9.99999974E-6 : f32
    %19 = vector.broadcast %cst_10 : f32 to vector<1x32xf32>
    %20 = arith.addf %16, %19 : vector<1x32xf32>
    %21 = math.rsqrt %20 : vector<1x32xf32>
    %22 = vector.broadcast %21 : vector<1x32xf32> to vector<16x32xf32>
    %23 = arith.mulf %18, %22 : vector<16x32xf32>
    %c0_11 = arith.constant 0 : index
    %c0_12 = arith.constant 0 : index
    %24 = vector.load %arg3[%c0_11, %c0_12] : memref<1x32xf32, #tpu.memory_space<vmem>>, vector<1x32xf32>
    %25 = vector.broadcast %24 : vector<1x32xf32> to vector<16x32xf32>
    %26 = arith.mulf %23, %25 : vector<16x32xf32>
    %c0_13 = arith.constant 0 : index
    %c0_14 = arith.constant 0 : index
    %27 = vector.load %arg4[%c0_13, %c0_14] : memref<1x32xf32, #tpu.memory_space<vmem>>, vector<1x32xf32>
    %28 = vector.broadcast %27 : vector<1x32xf32> to vector<16x32xf32>
    %29 = arith.addf %26, %28 : vector<16x32xf32>
    %c0_15 = arith.constant 0 : index
    %c0_16 = arith.constant 0 : index
    %30 = vector.load %arg5[%c0_15, %c0_16] : memref<16x32xf32, #tpu.memory_space<vmem>>, vector<16x32xf32>
    tpu.vector_store %arg5[%c0_15, %c0_16], %29 {strides = array<i32>} : memref<16x32xf32, #tpu.memory_space<vmem>>, vector<16x32xf32>,
    return
  }
}

</mosaic_0001>

<bundles_post_ra>
// kernel: signnet_forward.5
= control target key start
LH: loop header
LB: loop body
LE: loop exit
PB: predicated region body
PF: predicated region fallthrough
CT: control target
= control target key end

     0   :  { %vm52_vm0 = vcmask 7168   ;;  %v1160_v0 = vmov 0   ;;  %s1161_s21 = smov 1.0   ;;  %s2258_s0 = inlined_call_operand.vmem [shape: f32[128,1], index: 0, kind: input, shape index: {}]   ;;  %s2259_s1 = inlined_call_operand.vmem [shape: f32[128,1], index: 1, kind: input, shape index: {}]   ;;  %s2260_s2 = inlined_call_operand.vmem [shape: f32[1,32], index: 2, kind: input, shape index: {}]   ;;  %s2261_s3 = inlined_call_operand.vmem [shape: f32[1,32], index: 3, kind: input, shape index: {}]   ;;  %s2262_s6 = inlined_call_operand.vmem [shape: bf16[32,32], index: 6, kind: input, shape index: {}]   ;;  %s2263_s4 = inlined_call_operand.vmem [shape: f32[1,32], index: 4, kind: input, shape index: {}]   ;;  %s2264_s5 = inlined_call_operand.vmem [shape: f32[1,32], index: 5, kind: input, shape index: {}]   ;;  %s2265_s7 = inlined_call_operand.vmem [shape: f32[1,32], index: 7, kind: input, shape index: {}]   ;;  %s2266_s8 = inlined_call_operand.vmem [shape: f32[1,32], index: 8, kind: input, shape index: {}]   ;;  %s2267_s9 = inlined_call_operand.vmem [shape: f32[1,32], index: 9, kind: input, shape index: {}]   ;;  %s2268_s10 = inlined_call_operand.vmem [shape: f32[128,32], index: 10, kind: output, shape index: {}]  }
   0x1   :  { %1151 = vset.pattern.permute.xlu1 %v1160_v0  ;;  %v98_v1 = vld [vmem:[%s2258_s0 + $0x8] sm:$0xff]  ;;  %1150 = vset.pattern.permute.xlu0 %v1160_v0  ;;  %v36_v2 = vld [vmem:[%s2259_s1] sm:$0xff]  ;;  %v99_v4 = vld [vmem:[%s2258_s0 + $0x10] sm:$0xff] }
   0x2   :  { %121 = vperm.xlu1 %1151, %v98_v1   ;;  %v37_v3 = vld [vmem:[%s2259_s1 + $0x8] sm:$0xff]  ;;  %v53_v5 = vsel %vm52_vm0, %v36_v2, 0.0  ;;  %v38_v7 = vld [vmem:[%s2259_s1 + $0x10] sm:$0xff]  ;;  %v1239_v8 = vld [vmem:[%s2259_s1 + $0x18] sm:$0xff]  ;;  %vm541_vm1 = vcmp.gt.f32.partialorder %v36_v2, 0.0 }
   0x3   :  { %v54_v6 = vsel %vm52_vm0, %v37_v3, 0.0  ;;  %v1244_v10 = vld [vmem:[%s2259_s1 + $0x20] sm:$0xff]  ;;  %v56_v11 = vsel %vm52_vm0, %v38_v7, 0.0  ;;  %v58_v12 = vsel %vm52_vm0, %v1239_v8, 0.0  ;;  %v1252_v13 = vld [vmem:[%s2259_s1 + $0x28] sm:$0xff]  ;;  %v1255_v15 = vsel %vm541_vm1, 1, %v1160_v0 }
   0x4   :  { %v55_v9 = vadd.f32 %v54_v6, %v53_v5  ;;  %v100_v16 = vld [vmem:[%s2258_s0 + $0x18] sm:$0xff]  ;;  %v60_v17 = vsel %vm52_vm0, %v1244_v10, 0.0  ;;  %v1265_v18 = vld [vmem:[%s2259_s1 + $0x30] sm:$0xff]  ;;  %v62_v20 = vsel %vm52_vm0, %v1252_v13, 0.0  ;;  %vm543_vm2 = vcmp.gt.f32.partialorder %v38_v7, 0.0  ;;  %v1291_v28 = vld [vmem:[%s2259_s1 + $0x40] sm:$0xff] }
   0x5   :  { %vm545_vm3 = vcmp.gt.f32.partialorder %v1244_v10, 0.0  ;;  %vm547_vm4 = vcmp.gt.f32.partialorder %v1265_v18, 0.0  ;;  %v1274_v21 = vld [vmem:[%s2259_s1 + $0x38] sm:$0xff]  ;;  %v1277_v23 = vsel %vm543_vm2, 1, %v1160_v0  ;;  %v64_v26 = vsel %vm52_vm0, %v1265_v18, 0.0  ;;  %v1306_v33 = vld [vmem:[%s2259_s1 + $0x48] sm:$0xff] }
   0x6   :  { %126 = vperm.xlu1 %1151, %v99_v4   ;;  %v57_v14 = vadd.f32 %v56_v11, %v55_v9  ;;  %v1280_v24 = vsel %vm545_vm3, 1, %v1160_v0  ;;  %v1283_v25 = vsel %vm547_vm4, 1, %v1160_v0  ;;  %vm542_vm5 = vcmp.gt.f32.partialorder %v37_v3, 0.0  ;;  %v1319_v38 = vld [vmem:[%s2259_s1 + $0x50] sm:$0xff]  ;;  %v1326_v40 = vld [vmem:[%s2259_s1 + $0x58] sm:$0xff]  ;;  %v101_v42 = vld [vmem:[%s2258_s0 + $0x20] sm:$0xff] }
   0x7   :  { %vm544_vm6 = vcmp.gt.f32.partialorder %v1239_v8, 0.0  ;;  %v1294_v29 = vsel %vm542_vm5, 1, %v1160_v0  ;;  %v66_v31 = vsel %vm52_vm0, %v1274_v21, 0.0  ;;  %vm546_vm7 = vcmp.gt.f32.partialorder %v1252_v13, 0.0  ;;  %v1336_v44 = vld [vmem:[%s2259_s1 + $0x60] sm:$0xff]  ;;  %v1343_v47 = vld [vmem:[%s2259_s1 + $0x68] sm:$0xff] }
   0x8   :  { %v59_v19 = vadd.f32 %v58_v12, %v57_v14  ;;  %v1297_v30 = vsel %vm544_vm6, 1, %v1160_v0  ;;  %vm548_vm8 = vcmp.gt.f32.partialorder %v1274_v21, 0.0  ;;  %v1309_v34 = vsel %vm546_vm7, 1, %v1160_v0  ;;  %v1350_v50 = vld [vmem:[%s2259_s1 + $0x70] sm:$0xff]  ;;  %v1357_v53 = vld [vmem:[%s2259_s1 + $0x78] sm:$0xff]  ;;  %v102_v55 = vld [vmem:[%s2258_s0 + $0x28] sm:$0xff] }
   0x9   :  { %v1312_v35 = vsel %vm548_vm8, 1, %v1160_v0  ;;  %v68_v36 = vsel %vm52_vm0, %v1291_v28, 0.0  ;;  %v70_v39 = vsel %vm52_vm0, %v1306_v33, 0.0  ;;  %v72_v43 = vsel %vm52_vm0, %v1319_v38, 0.0  ;;  %v103_v61 = vld [vmem:[%s2258_s0 + $0x30] sm:$0xff]  ;;  %v104_v62 = vld [vmem:[%s2258_s0 + $0x38] sm:$0xff] }
   0xa   :  { %131 = vperm.xlu1 %1151, %v100_v16   ;;  %v61_v22 = vadd.f32 %v60_v17, %v59_v19  ;;  %v74_v46 = vsel %vm52_vm0, %v1326_v40, 0.0  ;;  %v76_v49 = vsel %vm52_vm0, %v1336_v44, 0.0  ;;  %v78_v52 = vsel %vm52_vm0, %v1343_v47, 0.0  ;;  %v105_v63 = vld [vmem:[%s2258_s0 + $0x40] sm:$0xff]  ;;  %v106_v1 = vld [vmem:[%s2258_s0 + $0x48] sm:$0xff]  ;;  %v108_v4 = vld [vmem:[%s2258_s0 + $0x58] sm:$0xff] }
   0xb   :  { %v80_v56 = vsel %vm52_vm0, %v1350_v50, 0.0  ;;  %v82_v58 = vsel %vm52_vm0, %v1357_v53, 0.0  ;;  %v109_v5 = vld [vmem:[%s2258_s0 + $0x60] sm:$0xff]  ;;  %v110_v6 = vld [vmem:[%s2258_s0 + $0x68] sm:$0xff]  ;;  %vm549_vm9 = vcmp.gt.f32.partialorder %v1291_v28, 0.0  ;;  %vm551_vm10 = vcmp.gt.f32.partialorder %v1319_v38, 0.0 }
   0xc   :  { %v63_v27 = vadd.f32 %v62_v20, %v61_v22  ;;  %v565_v9 = vsel %vm549_vm9, 1, %v1160_v0  ;;  %vm553_vm11 = vcmp.gt.f32.partialorder %v1336_v44, 0.0  ;;  %vm555_vm12 = vcmp.gt.f32.partialorder %v1350_v50, 0.0 }
   0xd   :  { %v569_v11 = vsel %vm553_vm11, 1, %v1160_v0  ;;  %vm550_vm13 = vcmp.gt.f32.partialorder %v1306_v33, 0.0  ;;  %v571_v12 = vsel %vm555_vm12, 1, %v1160_v0  ;;  %vm552_vm14 = vcmp.gt.f32.partialorder %v1326_v40, 0.0 }
   0xe   :  { %243 = vperm.xlu1 %1151, %v36_v2   ;;  %v65_v32 = vadd.f32 %v64_v26, %v63_v27  ;;  %v97_v2 = vld [vmem:[%s2258_s0] sm:$0xff]  ;;  %v568_v14 = vsel %vm552_vm14, 1, %v1160_v0  ;;  %vm554_vm15 = vcmp.gt.f32.partialorder %v1343_v47, 0.0  ;;  %vm556_vm0 = vcmp.gt.f32.partialorder %v1357_v53, 0.0 }
   0xf   :  { %v572_v16 = vsel %vm556_vm0, 1, %v1160_v0  ;;  %vm353_vm1 = vcmask 261120  }
  0x10   :  { %v67_v37 = vadd.f32 %v66_v31, %v65_v32 }
  0x12   :  { %248 = vperm.xlu1 %1151, %v37_v3   ;;  %v69_v41 = vadd.f32 %v68_v36, %v67_v37  ;;  %v107_v3 = vld [vmem:[%s2258_s0 + $0x50] sm:$0xff] }
  0x14   :  { %v71_v45 = vadd.f32 %v70_v39, %v69_v41  ;;  %v1457_v39 = vld [vmem:[%s2261_s3] ss:$0 sm:$0xff] }
  0x16   :  { %136 = vperm.xlu1 %1151, %v101_v42   ;;  %v73_v48 = vadd.f32 %v72_v43, %v71_v45 }
  0x18   :  { %v75_v51 = vadd.f32 %v74_v46, %v73_v48 }
  0x1a   :  { %253 = vperm.xlu1 %1151, %v38_v7   ;;  %v77_v54 = vadd.f32 %v76_v49, %v75_v51  ;;  %v111_v7 = vld [vmem:[%s2258_s0 + $0x70] sm:$0xff] }
  0x1c   :  { %v79_v57 = vadd.f32 %v78_v52, %v77_v54 }
  0x1e   :  { %141 = vperm.xlu1 %1151, %v102_v55   ;;  %v81_v59 = vadd.f32 %v80_v56, %v79_v57 }
  0x20   :  { %v83_v60 = vadd.f32 %v82_v58, %v81_v59 }
  0x22   :  { %84 = vadd.xlane.f32.xlu0 %v83_v60  ;;  %258 = vperm.xlu1 %1151, %v1239_v8   ;;  %v112_v8 = vld [vmem:[%s2258_s0 + $0x78] sm:$0xff] }
  0x26   :  { %146 = vperm.xlu1 %1151, %v103_v61  }
  0x2a   :  { %263 = vperm.xlu1 %1151, %v1244_v10   ;;  %v567_v10 = vsel %vm551_vm10, 1, %v1160_v0 }
  0x2e   :  { %151 = vperm.xlu1 %1151, %v104_v62  }
  0x32   :  { %156 = vperm.xlu1 %1151, %v105_v63  }
  0x36   :  { %161 = vperm.xlu1 %1151, %v106_v1  }
  0x38   :  { %116 = vperm.xlu0 %1150, %v97_v2  }
  0x3a   :  { %166 = vperm.xlu1 %1151, %v107_v3  }
  0x3c   :  { %268 = vperm.xlu0 %1150, %v1252_v13   ;;  %v566_v13 = vsel %vm550_vm13, 1, %v1160_v0 }
  0x3e   :  { %171 = vperm.xlu1 %1151, %v108_v4  }
  0x40   :  { %273 = vperm.xlu0 %1150, %v1265_v18  }
  0x42   :  { %176 = vperm.xlu1 %1151, %v109_v5  }
  0x44   :  { %278 = vperm.xlu0 %1150, %v1274_v21  }
  0x46   :  { %181 = vperm.xlu1 %1151, %v110_v6  }
  0x48   :  { %283 = vperm.xlu0 %1150, %v1291_v28  }
  0x4a   :  { %186 = vperm.xlu1 %1151, %v111_v7  }
  0x4c   :  { %288 = vperm.xlu0 %1150, %v1306_v33  }
  0x4e   :  { %191 = vperm.xlu1 %1151, %v112_v8  }
  0x50   :  { %293 = vperm.xlu0 %1150, %v1319_v38  }
  0x52   :  { %313 = vperm.xlu1 %1151, %v1350_v50  }
  0x54   :  { %298 = vperm.xlu0 %1150, %v1326_v40  }
  0x56   :  { %574 = vperm.xlu1 %1151, %v1255_v15   ;;  %v570_v15 = vsel %vm554_vm15, 1, %v1160_v0 }
  0x58   :  { %303 = vperm.xlu0 %1150, %v1336_v44  }
  0x5a   :  { %580 = vperm.xlu1 %1151, %v1277_v23  }
  0x5c   :  { %308 = vperm.xlu0 %1150, %v1343_v47  }
  0x5e   :  { %586 = vperm.xlu1 %1151, %v1280_v24  }
  0x60   :  { %318 = vperm.xlu0 %1150, %v1357_v53  }
  0x62   :  { %592 = vperm.xlu1 %1151, %v1283_v25  }
  0x64   :  { %577 = vperm.xlu0 %1150, %v1294_v29  }
  0x66   :  { %598 = vperm.xlu1 %1151, %v565_v9  }
  0x68   :  { %583 = vperm.xlu0 %1150, %v1297_v30  }
  0x6a   :  { %604 = vperm.xlu1 %1151, %v567_v10  }
  0x6c   :  { %589 = vperm.xlu0 %1150, %v1309_v34  }
  0x6e   :  { %610 = vperm.xlu1 %1151, %v569_v11  }
  0x70   :  { %595 = vperm.xlu0 %1150, %v1312_v35   ;;  %v1449_v35 = vld [vmem:[%s2260_s2] ss:$0 sm:$0xff] }
  0x72   :  { %616 = vperm.xlu1 %1151, %v571_v12  }
  0x74   :  { %601 = vperm.xlu0 %1150, %v566_v13  }
  0x78   :  { %607 = vperm.xlu0 %1150, %v568_v14  }
  0x7c   :  { %613 = vperm.xlu0 %1150, %v570_v15  }
  0x80   :  { %619 = vperm.xlu0 %1150, %v572_v16  }
  0x81   :  { %v122_v17 = vpop.permute.xlu1 %121 }
  0x82   :  { %v201_v36 = vmul.f32 %v1449_v35, %v122_v17 }
  0x84   :  { %v224_v41 = vadd.f32 %v1457_v39, %v201_v36 }
  0x85   :  { %v127_v18 = vpop.permute.xlu1 %126 }
  0x86   :  { %v202_v42 = vmul.f32 %v1449_v35, %v127_v18 }
  0x88   :  { %v225_v48 = vadd.f32 %v1457_v39, %v202_v42 }
  0x89   :  { %v132_v19 = vpop.permute.xlu1 %131 }
  0x8a   :  { %v203_v46 = vmul.f32 %v1449_v35, %v132_v19 }
  0x8c   :  { %v226_v50 = vadd.f32 %v1457_v39, %v203_v46 }
  0x8d   :  { %v1436_v20 = vpop.permute.xlu1 %243 }
  0x91   :  { %v1438_v21 = vpop.permute.xlu1 %248 }
  0x92   :  { %v1467_v47 = vmul.f32 %v1438_v21, %v224_v41 }
  0x94   :  { %v338_v51 = vmul.f32 %v1467_v47, %v1438_v21 }
  0x95   :  { %v137_v22 = vpop.permute.xlu1 %136 }
  0x96   :  { %v204_v54 = vmul.f32 %v1449_v35, %v137_v22  ;;  %v355_v58 = vsel %vm353_vm1, %v338_v51, 0.0 }
  0x98   :  { %v227_v59 = vadd.f32 %v1457_v39, %v204_v54 }
  0x99   :  { %v1440_v24 = vpop.permute.xlu1 %253 }
  0x9a   :  { %v1480_v55 = vmul.f32 %v1440_v24, %v225_v48 }
  0x9c   :  { %v339_v60 = vmul.f32 %v1480_v55, %v1440_v24 }
  0x9d   :  { %v142_v28 = vpop.permute.xlu1 %141 }
  0x9e   :  { %v205_v61 = vmul.f32 %v1449_v35, %v142_v28  ;;  %v357_v4 = vsel %vm353_vm1, %v339_v60, 0.0  ;;  %v1153_v28 = vld [vmem:[%s2262_s6 + $0x8] sm:$0xff]  }
  0xa0   :  { %v228_v5 = vadd.f32 %v1457_v39, %v205_v61 }
  0xa1   :  { %v1442_v0 = vpop.permute.xlu1 %258 }
  0xa2   :  { %v1485_v57 = vmul.f32 %v1442_v0, %v226_v50 }
  0xa4   :  { %v340_v2 = vmul.f32 %v1485_v57, %v1442_v0 }
  0xa5   :  { %v147_v32 = vpop.permute.xlu1 %146 }
  0xa6   :  { %v206_v6 = vmul.f32 %v1449_v35, %v147_v32  ;;  %v359_v8 = vsel %vm353_vm1, %v340_v2, 0.0 }
  0xa8   :  { %v229_v12 = vadd.f32 %v1457_v39, %v206_v6 }
  0xa9   :  { %v1444_v33 = vpop.permute.xlu1 %263 }
  0xaa   :  { %v1501_v7 = vmul.f32 %v1444_v33, %v227_v59 }
  0xac   :  { %v341_v13 = vmul.f32 %v1501_v7, %v1444_v33 }
  0xad   :  { %v152_v37 = vpop.permute.xlu1 %151 }
  0xae   :  { %v207_v14 = vmul.f32 %v1449_v35, %v152_v37  ;;  %v361_v18 = vsel %vm353_vm1, %v341_v13, 0.0 }
  0xaf   :  { %v85_v23 = vpop.xlane.xlu0 %84 }
  0xb0   :  { %v86_v25 = vrot.slane %v85_v23, 4  ;;  %v230_v19 = vadd.f32 %v1457_v39, %v207_v14 }
  0xb1   :  { %v157_v44 = vpop.permute.xlu1 %156 }
  0xb2   :  { %v87_v26 = vadd.f32 %v86_v25, %v85_v23  ;;  %v208_v16 = vmul.f32 %v1449_v35, %v157_v44 }
  0xb4   :  { %v88_v27 = vrot.slane %v87_v26, 2 }
  0xb5   :  { %v162_v52 = vpop.permute.xlu1 %161 }
  0xb6   :  { %v89_v29 = vadd.f32 %v88_v27, %v87_v26  ;;  %v1152_v27 = vld [vmem:[%s2262_s6] sm:$0xff]  }
  0xb7   :  { %v117_v34 = vpop.permute.xlu0 %116  ;;  %1120 = vmatprep.subr.bf16.mxu0 %v1152_v27  ;;  %1140 = vmatprep.subr.bf16.mxu1 %v1152_v27 }
  0xb8   :  { %v90_v30 = vrot.slane %v89_v29, 1  ;;  %v200_v40 = vmul.f32 %v1449_v35, %v117_v34  ;;  %1121 = vmatpush3.bf16.msra.mxu0 %v1152_v27  ;;  %1142 = vmatpush3.bf16.msra.mxu1 %v1152_v27 }
  0xb9   :  { %v167_v63 = vpop.permute.xlu1 %166  ;;  %1122 = vmatprep.subr.bf16.mxu0 %v1153_v28  ;;  %1141 = vmatprep.subr.bf16.mxu1 %v1153_v28 }
  0xba   :  { %v91_v31 = vadd.f32 %v90_v30, %v89_v29  ;;  %v223_v43 = vadd.f32 %v1457_v39, %v200_v40  ;;  %v231_v29 = vadd.f32 %v1457_v39, %v208_v16  ;;  %v209_v30 = vmul.f32 %v1449_v35, %v162_v52 }
  0xbb   :  { %v1452_v38 = vpop.permute.xlu0 %268  ;;  %v210_v50 = vmul.f32 %v1449_v35, %v167_v63 }
  0xbc   :  { %1144 = vpush %v91_v31  ;;  %2302 = vst [vmem:[#allocation2_spill] sm:$0xff] %v1452_v38  ;;  %v1471_v49 = vmul.f32 %v1436_v20, %v223_v43  ;;  %v1511_v15 = vmul.f32 %v1452_v38, %v228_v5  ;;  %v232_v43 = vadd.f32 %v1457_v39, %v209_v30  ;;  %1123 = vmatpush3.bf16.msra.mxu0 %v1153_v28 }
  0xbd   :  { %v172_v10 = vpop.permute.xlu1 %171  ;;  %1143 = vmatpush3.bf16.msra.mxu1 %v1153_v28  ;;  %v233_v61 = vadd.f32 %v1457_v39, %v210_v50 }
  0xbe   :  { %v337_v56 = vmul.f32 %v1471_v49, %v1436_v20  ;;  %v342_v22 = vmul.f32 %v1511_v15, %v1452_v38  ;;  %v211_v51 = vmul.f32 %v1449_v35, %v172_v10 }
  0xbf   :  { %v1463_v45 = vpop.permute.xlu0 %273 }
  0xc0   :  { %v354_v62 = vsel %vm353_vm1, %v337_v56, 0.0  ;;  %v1519_v23 = vmul.f32 %v1463_v45, %v229_v12  ;;  %v363_v32 = vsel %vm353_vm1, %v342_v22, 0.0  ;;  %v234_v63 = vadd.f32 %v1457_v39, %v211_v51 }
  0xc1   :  { %v356_v3 = vadd.f32 %v355_v58, %v354_v62  ;;  %v177_v25 = vpop.permute.xlu1 %176 }
  0xc2   :  { %v343_v34 = vmul.f32 %v1519_v23, %v1463_v45  ;;  %v212_v62 = vmul.f32 %v1449_v35, %v177_v25 }
  0xc3   :  { %v1476_v53 = vpop.permute.xlu0 %278  ;;  %v358_v9 = vadd.f32 %v357_v4, %v356_v3 }
  0xc4   :  { %2303 = vst [vmem:[#allocation3_spill] sm:$0xff] %v1476_v53  ;;  %v1535_v36 = vmul.f32 %v1476_v53, %v230_v19  ;;  %v365_v44 = vsel %vm353_vm1, %v343_v34, 0.0 }
  0xc5   :  { %v360_v17 = vadd.f32 %v359_v8, %v358_v9  ;;  %v182_v41 = vpop.permute.xlu1 %181  ;;  %v235_v9 = vadd.f32 %v1457_v39, %v212_v62 }
  0xc6   :  { %v344_v46 = vmul.f32 %v1535_v36, %v1476_v53  ;;  %v213_v4 = vmul.f32 %v1449_v35, %v182_v41 }
  0xc7   :  { %v1493_v1 = vpop.permute.xlu0 %283  ;;  %v362_v31 = vadd.f32 %v361_v18, %v360_v17 }
  0xc8   :  { %2304 = vst [vmem:[#allocation4_spill] sm:$0xff] %v1493_v1  ;;  %v1544_v48 = vmul.f32 %v1493_v1, %v231_v29  ;;  %v367_v54 = vsel %vm353_vm1, %v344_v46, 0.0  ;;  %v236_v16 = vadd.f32 %v1457_v39, %v213_v4 }
  0xc9   :  { %v364_v40 = vadd.f32 %v363_v32, %v362_v31  ;;  %v187_v59 = vpop.permute.xlu1 %186 }
  0xca   :  { %v345_v56 = vmul.f32 %v1544_v48, %v1493_v1  ;;  %v214_v22 = vmul.f32 %v1449_v35, %v187_v59 }
  0xcb   :  { %v1504_v11 = vpop.permute.xlu0 %288  ;;  %v366_v52 = vadd.f32 %v365_v44, %v364_v40 }
  0xcc   :  { %2305 = vst [vmem:[#allocation5_spill] sm:$0xff] %v1504_v11  ;;  %v1552_v58 = vmul.f32 %v1504_v11, %v232_v43  ;;  %v369_v5 = vsel %vm353_vm1, %v345_v56, 0.0  ;;  %v237_v34 = vadd.f32 %v1457_v39, %v214_v22 }
  0xcd   :  { %v368_v3 = vadd.f32 %v367_v54, %v366_v52  ;;  %v192_v13 = vpop.permute.xlu1 %191 }
  0xce   :  { %v346_v6 = vmul.f32 %v1552_v58, %v1504_v11  ;;  %v215_v29 = vmul.f32 %v1449_v35, %v192_v13 }
  0xcf   :  { %v1521_v26 = vpop.permute.xlu0 %293  ;;  %v370_v12 = vadd.f32 %v369_v5, %v368_v3 }
  0xd0   :  { %2306 = vst [vmem:[#allocation6_spill] sm:$0xff] %v1521_v26  ;;  %v1564_v8 = vmul.f32 %v1521_v26, %v233_v61  ;;  %v371_v17 = vsel %vm353_vm1, %v346_v6, 0.0  ;;  %v238_v44 = vadd.f32 %v1457_v39, %v215_v29 }
  0xd1   :  { %v372_v28 = vadd.f32 %v371_v17, %v370_v12  ;;  %v1589_v32 = vpop.permute.xlu1 %313 }
  0xd2   :  { %v347_v18 = vmul.f32 %v1564_v8, %v1521_v26  ;;  %2310 = vst [vmem:[#allocation10_spill] sm:$0xff] %v1589_v32  ;;  %v1599_v35 = vmul.f32 %v1589_v32, %v237_v34 }
  0xd3   :  { %v1537_v42 = vpop.permute.xlu0 %298 }
  0xd4   :  { %2307 = vst [vmem:[#allocation7_spill] sm:$0xff] %v1537_v42  ;;  %v1568_v10 = vmul.f32 %v1537_v42, %v234_v63  ;;  %v373_v30 = vsel %vm353_vm1, %v347_v18, 0.0  ;;  %v351_v56 = vmul.f32 %v1599_v35, %v1589_v32 }
  0xd5   :  { %v374_v41 = vadd.f32 %v373_v30, %v372_v28 }
  0xd6   :  { %v348_v25 = vmul.f32 %v1568_v10, %v1537_v42  ;;  %v381_v39 = vsel %vm353_vm1, %v351_v56, 0.0 }
  0xd7   :  { %v1554_v60 = vpop.permute.xlu0 %303 }
  0xd8   :  { %2308 = vst [vmem:[#allocation8_spill] sm:$0xff] %v1554_v60  ;;  %v1577_v19 = vmul.f32 %v1554_v60, %v235_v9 }
  0xda   :  { %v349_v31 = vmul.f32 %v1577_v19, %v1554_v60 }
  0xdb   :  { %v1570_v14 = vpop.permute.xlu0 %308 }
  0xdc   :  { %2309 = vst [vmem:[#allocation9_spill] sm:$0xff] %v1570_v14  ;;  %v1583_v27 = vmul.f32 %v1570_v14, %v236_v16  ;;  %v377_v46 = vsel %vm353_vm1, %v349_v31, 0.0 }
  0xde   :  { %v350_v40 = vmul.f32 %v1583_v27, %v1570_v14 }
  0xdf   :  { %v1595_v43 = vpop.permute.xlu0 %318 }
  0xe0   :  { %2311 = vst [vmem:[#allocation11_spill] sm:$0xff] %v1595_v43  ;;  %v379_v51 = vsel %vm353_vm1, %v350_v40, 0.0  ;;  %v1604_v52 = vmul.f32 %v1595_v43, %v238_v44 }
  0xe2   :  { %v352_v61 = vmul.f32 %v1604_v52, %v1595_v43 }
  0xed   :  { %s1145_s18 = spop %1144 }
  0xee   :  { %s93_s22 = smax.f32 %s1161_s21, %s1145_s18 }
  0xef   :  { %v94_v37 = vstv %s93_s22 }
  0xf0   :  { %1154 = vrcp.f32 %v94_v37  ;;  %v375_v37 = vsel %vm353_vm1, %v348_v25, 0.0 }
  0xf1   :  { %v376_v50 = vadd.f32 %v375_v37, %v374_v41 }
  0xf3   :  { %v378_v54 = vadd.f32 %v377_v46, %v376_v50 }
  0xf5   :  { %v380_v59 = vadd.f32 %v379_v51, %v378_v54 }
  0xf7   :  { %v382_v62 = vadd.f32 %v381_v39, %v380_v59 }
  0xfa   :  { %v1155_v2 = vpop.eup %1154 }
  0xfb   :  { %1146 = vpush %v1155_v2  ;;  %v383_v2 = vsel %vm353_vm1, %v352_v61, 0.0 }
  0xfc   :  { %v384_v63 = vadd.f32 %v383_v2, %v382_v62 }
  0xfe   :  { %v385_v3 = vrot.slane %v384_v63, 4 }
 0x100   :  { %v386_v4 = vadd.f32 %v385_v3, %v384_v63 }
 0x102   :  { %v387_v5 = vrot.slane %v386_v4, 2 }
 0x104   :  { %v388_v6 = vadd.f32 %v387_v5, %v386_v4 }
 0x106   :  { %v389_v9 = vrot.slane %v388_v6, 1 }
 0x108   :  { %v390_v12 = vadd.f32 %v389_v9, %v388_v6 }
 0x12c   :  { %s1147_s6 = spop %1146 }
 0x12d   :  { %v1612_v13 = vstv %s1147_s6 }
 0x12e   :  { %2312 = vst [vmem:[#allocation12_spill] sm:$0xff] %v1612_v13  ;;  %v392_v16 = vmul.f32 %v1612_v13, %v390_v12 }
 0x130   :  { %v1616_v17 = vsub.f32 %v1471_v49, %v392_v16  ;;  %v1619_v18 = vsub.f32 %v1467_v47, %v392_v16  ;;  %v1622_v22 = vsub.f32 %v1480_v55, %v392_v16  ;;  %v1625_v25 = vsub.f32 %v1485_v57, %v392_v16 }
 0x131   :  { %v1632_v30 = vsub.f32 %v1501_v7, %v392_v16  ;;  %v1637_v34 = vsub.f32 %v1511_v15, %v392_v16  ;;  %v1644_v44 = vsub.f32 %v1519_v23, %v392_v16  ;;  %v1650_v51 = vsub.f32 %v1535_v36, %v392_v16 }
 0x132   :  { %v409_v28 = vmul.f32 %v1616_v17, %v1616_v17  ;;  %v410_v29 = vmul.f32 %v1619_v18, %v1619_v18  ;;  %v411_v31 = vmul.f32 %v1622_v22, %v1622_v22  ;;  %v412_v37 = vmul.f32 %v1625_v25, %v1625_v25 }
 0x133   :  { %v413_v46 = vmul.f32 %v1632_v30, %v1632_v30  ;;  %v414_v54 = vmul.f32 %v1637_v34, %v1637_v34  ;;  %v1658_v62 = vsub.f32 %v1544_v48, %v392_v16  ;;  %v415_v2 = vmul.f32 %v1644_v44, %v1644_v44 }
 0x134   :  { %v425_v40 = vmul.f32 %v409_v28, %v1436_v20  ;;  %v426_v41 = vmul.f32 %v410_v29, %v1438_v21  ;;  %v427_v50 = vmul.f32 %v411_v31, %v1440_v24  ;;  %v428_v56 = vmul.f32 %v412_v37, %v1442_v0 }
 0x135   :  { %v429_v63 = vmul.f32 %v413_v46, %v1444_v33  ;;  %v1665_v5 = vsub.f32 %v1552_v58, %v392_v16  ;;  %v416_v6 = vmul.f32 %v1650_v51, %v1650_v51  ;;  %v430_v9 = vmul.f32 %v414_v54, %v1452_v38 }
 0x136   :  { %v441_v59 = vsel %vm353_vm1, %v425_v40, 0.0  ;;  %v442_v61 = vsel %vm353_vm1, %v426_v41, 0.0  ;;  %v444_v3 = vsel %vm353_vm1, %v427_v50, 0.0  ;;  %v446_v12 = vsel %vm353_vm1, %v428_v56, 0.0 }
 0x137   :  { %v443_v39 = vadd.f32 %v442_v61, %v441_v59  ;;  %v1672_v29 = vsub.f32 %v1564_v8, %v392_v16  ;;  %v417_v31 = vmul.f32 %v1658_v62, %v1658_v62  ;;  %v431_v37 = vmul.f32 %v415_v2, %v1463_v45 }
 0x138   :  { %v448_v40 = vsel %vm353_vm1, %v429_v63, 0.0  ;;  %v1679_v46 = vsub.f32 %v1568_v10, %v392_v16  ;;  %v418_v50 = vmul.f32 %v1665_v5, %v1665_v5  ;;  %v432_v54 = vmul.f32 %v416_v6, %v1476_v53 }
 0x139   :  { %v445_v4 = vadd.f32 %v444_v3, %v443_v39  ;;  %v450_v56 = vsel %vm353_vm1, %v430_v9, 0.0  ;;  %v1686_v61 = vsub.f32 %v1577_v19, %v392_v16  ;;  %v419_v39 = vmul.f32 %v1672_v29, %v1672_v29 }
 0x13a   :  { %v433_v2 = vmul.f32 %v417_v31, %v1493_v1  ;;  %v452_v63 = vsel %vm353_vm1, %v431_v37, 0.0  ;;  %v420_v6 = vmul.f32 %v1679_v46, %v1679_v46  ;;  %v434_v9 = vmul.f32 %v418_v50, %v1504_v11 }
 0x13b   :  { %v447_v28 = vadd.f32 %v446_v12, %v445_v4  ;;  %v1693_v4 = vsub.f32 %v1583_v27, %v392_v16  ;;  %v454_v12 = vsel %vm353_vm1, %v432_v54, 0.0  ;;  %v421_v31 = vmul.f32 %v1686_v61, %v1686_v61 }
 0x13c   :  { %v435_v37 = vmul.f32 %v419_v39, %v1521_v26  ;;  %v436_v54 = vmul.f32 %v420_v6, %v1537_v42  ;;  %v1725_v42 = vpop.permute.xlu0 %577 }
 0x13d   :  { %v449_v41 = vadd.f32 %v448_v40, %v447_v28  ;;  %v1700_v40 = vsub.f32 %v1599_v35, %v392_v16  ;;  %v422_v50 = vmul.f32 %v1693_v4, %v1693_v4  ;;  %v437_v11 = vmul.f32 %v421_v31, %v1554_v60 }
 0x13e   :  { %v460_v39 = vsel %vm353_vm1, %v435_v37, 0.0  ;;  %vm622_vm3 = vcmp.eq.s32.totalorder %v1725_v42, 1 }
 0x13f   :  { %v451_v59 = vadd.f32 %v450_v56, %v449_v41  ;;  %v456_v41 = vsel %vm353_vm1, %v433_v2, 0.0 }
 0x141   :  { %v453_v3 = vadd.f32 %v452_v63, %v451_v59  ;;  %v1707_v59 = vsub.f32 %v1604_v52, %v392_v16  ;;  %v458_v63 = vsel %vm353_vm1, %v434_v9, 0.0  ;;  %v464_v9 = vsel %vm353_vm1, %v437_v11, 0.0 }
 0x143   :  { %v455_v28 = vadd.f32 %v454_v12, %v453_v3  ;;  %v423_v12 = vmul.f32 %v1700_v40, %v1700_v40  ;;  %v424_v16 = vmul.f32 %v1707_v59, %v1707_v59 }
 0x145   :  { %v457_v56 = vadd.f32 %v456_v41, %v455_v28  ;;  %v438_v28 = vmul.f32 %v422_v50, %v1570_v14  ;;  %v462_v41 = vsel %vm353_vm1, %v436_v54, 0.0  ;;  %v439_v6 = vmul.f32 %v423_v12, %v1589_v32  ;;  %v1733_v12 = vpop.permute.xlu0 %583 }
 0x146   :  { %v440_v31 = vmul.f32 %v424_v16, %v1595_v43  ;;  %vm624_vm6 = vcmp.eq.s32.totalorder %v1733_v12, 1 }
 0x147   :  { %v459_v3 = vadd.f32 %v458_v63, %v457_v56  ;;  %v1723_v63 = vpop.permute.xlu1 %574  ;;  %v466_v37 = vsel %vm353_vm1, %v438_v28, 0.0 }
 0x148   :  { %v470_v54 = vsel %vm353_vm1, %v440_v31, 0.0  ;;  %vm621_vm2 = vcmp.eq.s32.totalorder %v1723_v63, 1 }
 0x149   :  { %v461_v2 = vadd.f32 %v460_v39, %v459_v3  ;;  %v468_v39 = vsel %vm353_vm1, %v439_v6, 0.0  ;;  %v1737_v14 = vpop.permute.xlu0 %589 }
 0x14a   :  { %vm626_vm11 = vcmp.eq.s32.totalorder %v1737_v14, 1 }
 0x14b   :  { %v463_v26 = vadd.f32 %v462_v41, %v461_v2  ;;  %v1731_v41 = vpop.permute.xlu1 %580 }
 0x14c   :  { %vm623_vm5 = vcmp.eq.s32.totalorder %v1731_v41, 1 }
 0x14d   :  { %v465_v56 = vadd.f32 %v464_v9, %v463_v26  ;;  %v1741_v6 = vpop.permute.xlu0 %595 }
 0x14e   :  { %vm628_vm14 = vcmp.eq.s32.totalorder %v1741_v6, 1 }
 0x14f   :  { %v467_v3 = vadd.f32 %v466_v37, %v465_v56  ;;  %v1735_v32 = vpop.permute.xlu1 %586 }
 0x150   :  { %vm625_vm10 = vcmp.eq.s32.totalorder %v1735_v32, 1 }
 0x151   :  { %v469_v50 = vadd.f32 %v468_v39, %v467_v3 }
 0x153   :  { %v471_v2 = vadd.f32 %v470_v54, %v469_v50  ;;  %v1739_v37 = vpop.permute.xlu1 %592  ;;  %v1746_v50 = vpop.permute.xlu0 %601 }
 0x154   :  { %2313 = vst [vmem:[#allocation13_spill] sm:$0xff] %v1746_v50  ;;  %vm630_vm8 = vcmp.eq.s32.totalorder %v1746_v50, 1  ;;  %vm627_vm13 = vcmp.eq.s32.totalorder %v1739_v37, 1 }
 0x155   :  { %v472_v11 = vrot.slane %v471_v2, 4 }
 0x157   :  { %v473_v26 = vadd.f32 %v472_v11, %v471_v2  ;;  %v1744_v39 = vpop.permute.xlu1 %598  ;;  %v1750_v2 = vpop.permute.xlu0 %607 }
 0x158   :  { %2315 = vst [vmem:[#allocation15_spill] sm:$0xff] %v1750_v2  ;;  %vm629_vm4 = vcmp.eq.s32.totalorder %v1744_v39, 1  ;;  %vm632_vm9 = vcmp.eq.s32.totalorder %v1750_v2, 1 }
 0x159   :  { %v474_v9 = vrot.slane %v473_v26, 2 }
 0x15b   :  { %v475_v16 = vadd.f32 %v474_v9, %v473_v26  ;;  %v1748_v54 = vpop.permute.xlu1 %604  ;;  %v1765_v26 = vld [vmem:[%s2263_s4] ss:$0 sm:$0xff] }
 0x15c   :  { %2314 = vst [vmem:[#allocation14_spill] sm:$0xff] %v1748_v54  ;;  %vm631_vm7 = vcmp.eq.s32.totalorder %v1748_v54, 1 }
 0x15d   :  { %v476_v28 = vrot.slane %v475_v16, 1 }
 0x15f   :  { %v477_v56 = vadd.f32 %v476_v28, %v475_v16  ;;  %v1800_v53 = vpop.permute.xlu1 %610 }
 0x160   :  { %2316 = vst [vmem:[#allocation16_spill] sm:$0xff] %v1800_v53  ;;  %vm2291_vm12 = vcmp.eq.s32.totalorder %v1800_v53, 1 }
 0x161   :  { %v478_v31 = vmul.f32 %v477_v56, %v1612_v13 }
 0x163   :  { %v479_v3 = vadd.f32 1e-05, %v478_v31  ;;  %v1778_v31 = vld [vmem:[%s2264_s5] ss:$0 sm:$0xff] }
 0x165   :  { %1156 = vrsqrt.f32 %v479_v3 }
 0x16f   :  { %v1755_v11 = vpop.eup %1156 }
 0x170   :  { %v481_v9 = vmul.f32 %v1755_v11, %v1616_v17  ;;  %v482_v16 = vmul.f32 %v1755_v11, %v1619_v18  ;;  %v489_v28 = vmul.f32 %v1755_v11, %v1658_v62  ;;  %v490_v56 = vmul.f32 %v1755_v11, %v1665_v5 }
 0x171   :  { %v483_v3 = vmul.f32 %v1755_v11, %v1622_v22  ;;  %v484_v17 = vmul.f32 %v1755_v11, %v1625_v25  ;;  %v491_v18 = vmul.f32 %v1755_v11, %v1672_v29  ;;  %v492_v62 = vmul.f32 %v1755_v11, %v1679_v46 }
 0x172   :  { %v503_v13 = vmul.f32 %v1765_v26, %v481_v9  ;;  %v504_v5 = vmul.f32 %v1765_v26, %v482_v16  ;;  %v511_v43 = vmul.f32 %v1765_v26, %v489_v28  ;;  %v512_v60 = vmul.f32 %v1765_v26, %v490_v56 }
 0x173   :  { %v505_v1 = vmul.f32 %v1765_v26, %v483_v3  ;;  %v506_v22 = vmul.f32 %v1765_v26, %v484_v17  ;;  %v513_v25 = vmul.f32 %v1765_v26, %v491_v18  ;;  %v514_v38 = vmul.f32 %v1765_v26, %v492_v62 }
 0x174   :  { %v525_v29 = vadd.f32 %v1778_v31, %v503_v13  ;;  %v526_v46 = vadd.f32 %v1778_v31, %v504_v5  ;;  %v533_v9 = vadd.f32 %v1778_v31, %v511_v43  ;;  %v534_v16 = vadd.f32 %v1778_v31, %v512_v60  ;;  %v1821_v5 = vpop.permute.xlu0 %613 }
 0x175   :  { %v527_v28 = vadd.f32 %v1778_v31, %v505_v1  ;;  %v528_v56 = vadd.f32 %v1778_v31, %v506_v22  ;;  %v535_v3 = vadd.f32 %v1778_v31, %v513_v25  ;;  %v536_v17 = vadd.f32 %v1778_v31, %v514_v38  ;;  %2317 = vst [vmem:[#allocation17_spill] sm:$0xff] %v1821_v5 }
 0x176   :  { %v637_v13 = vsel %vm621_vm2, %v525_v29, %v1471_v49  ;;  %v638_v43 = vsel %vm622_vm3, %v526_v46, %v1467_v47  ;;  %v645_v60 = vsel %vm629_vm4, %v533_v9, %v1544_v48  ;;  %v646_v1 = vsel %vm630_vm8, %v534_v16, %v1552_v58 }
 0x177   :  { %v653_v38 = vmax.f32 %v637_v13, 0.0  ;;  %v654_v18 = vmax.f32 %v638_v43, 0.0  ;;  %v661_v62 = vmax.f32 %v645_v60, 0.0  ;;  %v662_v49 = vmax.f32 %v646_v1, 0.0 }
 0x178   :  { %v639_v47 = vsel %vm623_vm5, %v527_v28, %v1480_v55  ;;  %v640_v48 = vsel %vm624_vm6, %v528_v56, %v1485_v57  ;;  %v647_v58 = vsel %vm631_vm7, %v535_v3, %v1564_v8  ;;  %v648_v22 = vsel %vm632_vm9, %v536_v17, %v1568_v10 }
 0x179   :  { %v669_v25 = vpack.c.bf16 %v654_v18, %v653_v38  ;;  %v673_v29 = vpack.c.bf16 %v662_v49, %v661_v62  ;;  %v655_v46 = vmax.f32 %v639_v47, 0.0  ;;  %v656_v9 = vmax.f32 %v640_v48, 0.0 }
 0x17a   :  { %v663_v16 = vmax.f32 %v647_v58, 0.0  ;;  %v664_v55 = vmax.f32 %v648_v22, 0.0  ;;  %v485_v28 = vmul.f32 %v1755_v11, %v1632_v30  ;;  %v486_v57 = vmul.f32 %v1755_v11, %v1637_v34  ;;  %v1879_v58 = vpop.permute.xlu0 %619 }
 0x17b   :  { %vm634_vm15 = vcmp.eq.s32.totalorder %v1821_v5, 1  ;;  %1124 = vmatprep.mubr.msk.bf16.mxu0 %vm353_vm1, %v669_v25  ;;  %1132 = vmatprep.mubr.msk.bf16.mxu1 %vm353_vm1, %v673_v29  ;;  %v670_v8 = vpack.c.bf16 %v656_v9, %v655_v46  ;;  %v493_v10 = vmul.f32 %v1755_v11, %v1686_v61  ;;  %v494_v56 = vmul.f32 %v1755_v11, %v1693_v4 }
 0x17c   :  { %v674_v3 = vpack.c.bf16 %v664_v55, %v663_v16  ;;  %v507_v30 = vmul.f32 %v1765_v26, %v485_v28  ;;  %v508_v34 = vmul.f32 %v1765_v26, %v486_v57  ;;  %v487_v17 = vmul.f32 %v1755_v11, %v1644_v44  ;;  %2319 = vst [vmem:[#allocation19_spill] sm:$0xff] %v1879_v58 }
 0x17d   :  { %1125 = vmatmul.mubr.msk.bf16.vlgmr.msra.gmra.mrb[0].mxu0 %vm353_vm1, %v670_v8  ;;  %v515_v13 = vmul.f32 %v1765_v26, %v493_v10  ;;  %v516_v43 = vmul.f32 %v1765_v26, %v494_v56  ;;  %v488_v61 = vmul.f32 %v1755_v11, %v1650_v51  ;;  %v495_v4 = vmul.f32 %v1755_v11, %v1700_v40 }
 0x17e   :  { %1133 = vmatmul.mubr.msk.bf16.vlgmr.msra.gmra.mrb[0].mxu1 %vm353_vm1, %v674_v3  ;;  %v529_v60 = vadd.f32 %v1778_v31, %v507_v30  ;;  %v530_v1 = vadd.f32 %v1778_v31, %v508_v34  ;;  %v509_v44 = vmul.f32 %v1765_v26, %v487_v17  ;;  %v496_v38 = vmul.f32 %v1755_v11, %v1707_v59  ;;  %v1877_v11 = vpop.permute.xlu1 %616 }
 0x17f   :  { %v537_v18 = vadd.f32 %v1778_v31, %v515_v13  ;;  %v538_v62 = vadd.f32 %v1778_v31, %v516_v43  ;;  %v510_v51 = vmul.f32 %v1765_v26, %v488_v61  ;;  %v517_v49 = vmul.f32 %v1765_v26, %v495_v4  ;;  %2318 = vst [vmem:[#allocation18_spill] sm:$0xff] %v1877_v11 }
 0x180   :  { %v641_v40 = vsel %vm625_vm10, %v529_v60, %v1501_v7  ;;  %v642_v47 = vsel %vm626_vm11, %v530_v1, %v1511_v15  ;;  %v531_v48 = vadd.f32 %v1778_v31, %v509_v44  ;;  %v518_v59 = vmul.f32 %v1765_v26, %v496_v38 }
 0x181   :  { %v657_v22 = vmax.f32 %v641_v40, 0.0  ;;  %v658_v25 = vmax.f32 %v642_v47, 0.0  ;;  %v649_v29 = vsel %vm2291_vm12, %v537_v18, %v1577_v19  ;;  %v650_v7 = vsel %vm634_vm15, %v538_v62, %v1583_v27 }
 0x182   :  { %v665_v46 = vmax.f32 %v649_v29, 0.0  ;;  %v666_v15 = vmax.f32 %v650_v7, 0.0  ;;  %v532_v9 = vadd.f32 %v1778_v31, %v510_v51  ;;  %v643_v26 = vsel %vm627_vm13, %v531_v48, %v1519_v23 }
 0x183   :  { %v671_v16 = vpack.c.bf16 %v658_v25, %v657_v22  ;;  %v659_v55 = vmax.f32 %v643_v26, 0.0  ;;  %v539_v28 = vadd.f32 %v1778_v31, %v517_v49  ;;  %v540_v57 = vadd.f32 %v1778_v31, %v518_v59 }
 0x184   :  { %vm635_vm0 = vcmp.eq.s32.totalorder %v1877_v11, 1  ;;  %vm636_vm12 = vcmp.eq.s32.totalorder %v1879_v58, 1  ;;  %v675_v19 = vpack.c.bf16 %v666_v15, %v665_v46  ;;  %v644_v27 = vsel %vm628_vm14, %v532_v9, %v1535_v36  ;;  %v1911_v36 = vld [vmem:[%s2265_s7] ss:$0 sm:$0xff] }
 0x185   :  { %1128 = vmatprep.mubr.msk.bf16.mxu0 %vm353_vm1, %v671_v16  ;;  %v660_v8 = vmax.f32 %v644_v27, 0.0  ;;  %v651_v23 = vsel %vm635_vm0, %v539_v28, %v1599_v35  ;;  %v652_v31 = vsel %vm636_vm12, %v540_v57, %v1604_v52 }
 0x186   :  { %1136 = vmatprep.mubr.msk.bf16.mxu1 %vm353_vm1, %v675_v19  ;;  %v667_v10 = vmax.f32 %v651_v23, 0.0  ;;  %v668_v56 = vmax.f32 %v652_v31, 0.0 }
 0x187   :  { %v672_v3 = vpack.c.bf16 %v660_v8, %v659_v55 }
 0x188   :  { %v676_v30 = vpack.c.bf16 %v668_v56, %v667_v10 }
 0x189   :  { %1129 = vmatmul.mubr.msk.bf16.gmra.mrb[4].mxu0 %vm353_vm1, %v672_v3 }
 0x18a   :  { %1137 = vmatmul.mubr.msk.bf16.gmra.mrb[4].mxu1 %vm353_vm1, %v676_v30 }
 0x250   :  { %v1126_v35 = vpop.f32.mrb[0].mxu0 }
 0x251   :  { %v767_v34 = vadd.f32 %v1126_v35, %v1911_v36  ;;  %v1134_v17 = vpop.f32.mrb[0].mxu1  ;;  %v758_v52 = vpop.f32.mrb[1].mxu0 }
 0x252   :  { %v759_v13 = vadd.f32 %v1911_v36, %v758_v52  ;;  %v790_v43 = vpop.f32.mrb[1].mxu1  ;;  %v1127_v61 = vpop.f32.mrb[2].mxu0 }
 0x253   :  { %v1135_v4 = vpop.f32.mrb[2].mxu1  ;;  %v761_v60 = vpop.f32.mrb[3].mxu0  ;;  %v1916_v1 = vmul.f32 %v767_v34, %v1440_v24  ;;  %v770_v38 = vadd.f32 %v1127_v61, %v1911_v36  ;;  %v791_v19 = vadd.f32 %v1911_v36, %v790_v43  ;;  %v2321_v61 = vld [vmem:[#allocation2_spill] sm:$0xff] }
 0x254   :  { %v1919_v44 = vmul.f32 %v759_v13, %v1436_v20  ;;  %v762_v18 = vadd.f32 %v1911_v36, %v761_v60  ;;  %v793_v62 = vpop.f32.mrb[3].mxu1  ;;  %v2320_v13 = vld [vmem:[#allocation3_spill] sm:$0xff] }
 0x255   :  { %v841_v40 = vmul.f32 %v1916_v1, %v1440_v24  ;;  %v1931_v47 = vmul.f32 %v770_v38, %v1442_v0  ;;  %v794_v34 = vadd.f32 %v1911_v36, %v793_v62  ;;  %v799_v38 = vadd.f32 %v1134_v17, %v1911_v36 }
 0x256   :  { %v839_v51 = vmul.f32 %v1919_v44, %v1436_v20  ;;  %v1926_v49 = vmul.f32 %v762_v18, %v1438_v21  ;;  %v2322_v18 = vld [vmem:[#allocation4_spill] sm:$0xff] }
 0x257   :  { %v858_v29 = vsel %vm353_vm1, %v841_v40, 0.0  ;;  %v842_v7 = vmul.f32 %v1931_v47, %v1442_v0 }
 0x258   :  { %v840_v48 = vmul.f32 %v1926_v49, %v1438_v21  ;;  %v855_v59 = vsel %vm353_vm1, %v839_v51, 0.0  ;;  %v1963_v51 = vmul.f32 %v791_v19, %v2322_v18  ;;  %v2325_v19 = vld [vmem:[#allocation7_spill] sm:$0xff] }
 0x259   :  { %v860_v31 = vsel %vm353_vm1, %v842_v7, 0.0 }
 0x25a   :  { %v856_v22 = vsel %vm353_vm1, %v840_v48, 0.0 }
 0x25b   :  { %v857_v25 = vadd.f32 %v856_v22, %v855_v59  ;;  %v802_v22 = vadd.f32 %v1135_v4, %v1911_v36 }
 0x25c   :  { %v1130_v46 = vpop.f32.mrb[4].mxu0 }
 0x25d   :  { %v859_v15 = vadd.f32 %v858_v29, %v857_v25  ;;  %v783_v9 = vadd.f32 %v1130_v46, %v1911_v36  ;;  %v1138_v26 = vpop.f32.mrb[4].mxu1  ;;  %v774_v16 = vpop.f32.mrb[5].mxu0  ;;  %v2323_v25 = vld [vmem:[#allocation5_spill] sm:$0xff] }
 0x25e   :  { %v775_v55 = vadd.f32 %v1911_v36, %v774_v16  ;;  %v806_v28 = vpop.f32.mrb[5].mxu1  ;;  %v1131_v57 = vpop.f32.mrb[6].mxu0  ;;  %v1972_v29 = vmul.f32 %v794_v34, %v2323_v25  ;;  %v847_v16 = vmul.f32 %v1963_v51, %v2322_v18 }
 0x25f   :  { %v786_v27 = vadd.f32 %v1131_v57, %v1911_v36  ;;  %v1139_v8 = vpop.f32.mrb[6].mxu1  ;;  %v777_v23 = vpop.f32.mrb[7].mxu0  ;;  %v1946_v10 = vmul.f32 %v783_v9, %v1463_v45  ;;  %v861_v35 = vadd.f32 %v860_v31, %v859_v15  ;;  %v2324_v15 = vld [vmem:[#allocation6_spill] sm:$0xff]  ;;  %v807_v57 = vadd.f32 %v1911_v36, %v806_v28  ;;  %v2326_v28 = vld [vmem:[#allocation8_spill] sm:$0xff] }
 0x260   :  { %v1949_v56 = vmul.f32 %v775_v55, %v1444_v33  ;;  %v778_v3 = vadd.f32 %v1911_v36, %v777_v23  ;;  %v809_v30 = vpop.f32.mrb[7].mxu1  ;;  %v1978_v9 = vmul.f32 %v799_v38, %v2324_v15  ;;  %v848_v23 = vmul.f32 %v1972_v29, %v2323_v25 }
 0x261   :  { %v1956_v43 = vmul.f32 %v786_v27, %v2320_v13  ;;  %v845_v40 = vmul.f32 %v1946_v10, %v1463_v45  ;;  %v1985_v27 = vmul.f32 %v802_v22, %v2325_v19  ;;  %v815_v38 = vadd.f32 %v1138_v26, %v1911_v36 }
 0x262   :  { %v843_v52 = vmul.f32 %v1949_v56, %v1444_v33  ;;  %v1959_v60 = vmul.f32 %v778_v3, %v2321_v61  ;;  %v810_v3 = vadd.f32 %v1911_v36, %v809_v30  ;;  %v849_v34 = vmul.f32 %v1978_v9, %v2324_v15  ;;  %v2328_v30 = vld [vmem:[#allocation9_spill] sm:$0xff] }
 0x263   :  { %v846_v17 = vmul.f32 %v1956_v43, %v2320_v13  ;;  %v866_v55 = vsel %vm353_vm1, %v845_v40, 0.0  ;;  %v1996_v40 = vmul.f32 %v807_v57, %v2326_v28  ;;  %v818_v22 = vadd.f32 %v1139_v8, %v1911_v36 }
 0x264   :  { %v862_v48 = vsel %vm353_vm1, %v843_v52, 0.0  ;;  %v844_v62 = vmul.f32 %v1959_v60, %v2321_v61  ;;  %v870_v52 = vsel %vm353_vm1, %v847_v16, 0.0  ;;  %v2330_v16 = vld [vmem:[#allocation10_spill] sm:$0xff] }
 0x265   :  { %v863_v59 = vadd.f32 %v862_v48, %v861_v35  ;;  %v868_v31 = vsel %vm353_vm1, %v846_v17, 0.0  ;;  %2327 = vst [vmem:[#allocation3_spill] sm:$0xff] %v1996_v40  ;;  %v2003_v17 = vmul.f32 %v810_v3, %v2328_v30  ;;  %v851_v26 = vmul.f32 %v1996_v40, %v2326_v28 }
 0x266   :  { %v864_v7 = vsel %vm353_vm1, %v844_v62, 0.0  ;;  %v850_v62 = vmul.f32 %v1985_v27, %v2325_v19 }
 0x267   :  { %v865_v46 = vadd.f32 %v864_v7, %v863_v59  ;;  %v872_v59 = vsel %vm353_vm1, %v848_v23, 0.0  ;;  %2329 = vst [vmem:[#allocation2_spill] sm:$0xff] %v2003_v17  ;;  %v852_v36 = vmul.f32 %v2003_v17, %v2328_v30  ;;  %v878_v3 = vsel %vm353_vm1, %v851_v26, 0.0  ;;  %v2333_v26 = vld [vmem:[#allocation12_spill] sm:$0xff] }
 0x269   :  { %v867_v4 = vadd.f32 %v866_v55, %v865_v46  ;;  %v874_v46 = vsel %vm353_vm1, %v849_v34, 0.0  ;;  %v2007_v55 = vmul.f32 %v815_v38, %v2330_v16  ;;  %v880_v38 = vsel %vm353_vm1, %v852_v36, 0.0 }
 0x26b   :  { %v869_v35 = vadd.f32 %v868_v31, %v867_v4  ;;  %2331 = vst [vmem:[#allocation4_spill] sm:$0xff] %v2007_v55  ;;  %v876_v4 = vsel %vm353_vm1, %v850_v62, 0.0  ;;  %v2332_v31 = vld [vmem:[#allocation11_spill] sm:$0xff]  ;;  %v853_v23 = vmul.f32 %v2007_v55, %v2330_v16 }
 0x26d   :  { %v871_v48 = vadd.f32 %v870_v52, %v869_v35  ;;  %v2013_v35 = vmul.f32 %v818_v22, %v2332_v31  ;;  %v882_v62 = vsel %vm353_vm1, %v853_v23, 0.0 }
 0x26f   :  { %v873_v7 = vadd.f32 %v872_v59, %v871_v48  ;;  %v854_v52 = vmul.f32 %v2013_v35, %v2332_v31 }
 0x271   :  { %v875_v57 = vadd.f32 %v874_v46, %v873_v7  ;;  %v884_v22 = vsel %vm353_vm1, %v854_v52, 0.0 }
 0x273   :  { %v877_v8 = vadd.f32 %v876_v4, %v875_v57 }
 0x275   :  { %v879_v34 = vadd.f32 %v878_v3, %v877_v8 }
 0x277   :  { %v881_v48 = vadd.f32 %v880_v38, %v879_v34 }
 0x279   :  { %v883_v59 = vadd.f32 %v882_v62, %v881_v48 }
 0x27b   :  { %v885_v7 = vadd.f32 %v884_v22, %v883_v59 }
 0x27d   :  { %v886_v46 = vrot.slane %v885_v7, 4 }
 0x27f   :  { %v887_v57 = vadd.f32 %v886_v46, %v885_v7 }
 0x281   :  { %v888_v4 = vrot.slane %v887_v57, 2 }
 0x283   :  { %v889_v58 = vadd.f32 %v888_v4, %v887_v57 }
 0x285   :  { %v890_v11 = vrot.slane %v889_v58, 1 }
 0x287   :  { %v891_v5 = vadd.f32 %v890_v11, %v889_v58 }
 0x289   :  { %v892_v8 = vmul.f32 %v891_v5, %v2333_v26 }
 0x28b   :  { %v2027_v3 = vsub.f32 %v1919_v44, %v892_v8  ;;  %v2030_v36 = vsub.f32 %v1926_v49, %v892_v8  ;;  %v2033_v23 = vsub.f32 %v1916_v1, %v892_v8  ;;  %v2036_v34 = vsub.f32 %v1931_v47, %v892_v8 }
 0x28c   :  { %v2043_v5 = vsub.f32 %v1949_v56, %v892_v8  ;;  %v2048_v38 = vsub.f32 %v1959_v60, %v892_v8  ;;  %v2055_v22 = vsub.f32 %v1946_v10, %v892_v8  ;;  %v2061_v57 = vsub.f32 %v1956_v43, %v892_v8 }
 0x28d   :  { %v909_v52 = vmul.f32 %v2027_v3, %v2027_v3  ;;  %v910_v11 = vmul.f32 %v2030_v36, %v2030_v36  ;;  %v911_v58 = vmul.f32 %v2033_v23, %v2033_v23  ;;  %v912_v48 = vmul.f32 %v2036_v34, %v2036_v34 }
 0x28e   :  { %v913_v7 = vmul.f32 %v2043_v5, %v2043_v5  ;;  %v914_v4 = vmul.f32 %v2048_v38, %v2048_v38  ;;  %v915_v2 = vmul.f32 %v2055_v22, %v2055_v22  ;;  %v2076_v50 = vsub.f32 %v1972_v29, %v892_v8 }
 0x28f   :  { %v925_v62 = vmul.f32 %v909_v52, %v1436_v20  ;;  %v926_v59 = vmul.f32 %v910_v11, %v1438_v21  ;;  %v927_v46 = vmul.f32 %v911_v58, %v1440_v24  ;;  %v928_v53 = vmul.f32 %v912_v48, %v1442_v0 }
 0x290   :  { %v2069_v11 = vsub.f32 %v1963_v51, %v892_v8  ;;  %v929_v24 = vmul.f32 %v913_v7, %v1444_v33  ;;  %v916_v0 = vmul.f32 %v2061_v57, %v2061_v57  ;;  %v930_v48 = vmul.f32 %v914_v4, %v2321_v61 }
 0x291   :  { %v941_v20 = vsel %vm353_vm1, %v925_v62, 0.0  ;;  %v942_v21 = vsel %vm353_vm1, %v926_v59, 0.0  ;;  %v944_v58 = vsel %vm353_vm1, %v927_v46, 0.0  ;;  %v946_v62 = vsel %vm353_vm1, %v928_v53, 0.0 }
 0x292   :  { %v943_v52 = vadd.f32 %v942_v21, %v941_v20  ;;  %v2083_v20 = vsub.f32 %v1978_v9, %v892_v8  ;;  %v917_v33 = vmul.f32 %v2069_v11, %v2069_v11  ;;  %v931_v7 = vmul.f32 %v915_v2, %v1463_v45 }
 0x293   :  { %v948_v46 = vsel %vm353_vm1, %v929_v24, 0.0  ;;  %v918_v61 = vmul.f32 %v2076_v50, %v2076_v50  ;;  %v932_v53 = vmul.f32 %v916_v0, %v2320_v13 }
 0x294   :  { %v945_v54 = vadd.f32 %v944_v58, %v943_v52  ;;  %v2090_v52 = vsub.f32 %v1985_v27, %v892_v8  ;;  %v2097_v58 = vsub.f32 %v1996_v40, %v892_v8  ;;  %v919_v45 = vmul.f32 %v2083_v20, %v2083_v20 }
 0x295   :  { %v933_v2 = vmul.f32 %v917_v33, %v2322_v18  ;;  %v952_v24 = vsel %vm353_vm1, %v931_v7, 0.0  ;;  %v934_v13 = vmul.f32 %v918_v61, %v2323_v25  ;;  %v954_v0 = vsel %vm353_vm1, %v932_v53, 0.0 }
 0x296   :  { %v947_v59 = vadd.f32 %v946_v62, %v945_v54  ;;  %v950_v54 = vsel %vm353_vm1, %v930_v48, 0.0  ;;  %v935_v18 = vmul.f32 %v919_v45, %v2324_v15 }
 0x297   :  { %v956_v33 = vsel %vm353_vm1, %v933_v2, 0.0  ;;  %v958_v25 = vsel %vm353_vm1, %v934_v13, 0.0 }
 0x298   :  { %v949_v21 = vadd.f32 %v948_v46, %v947_v59  ;;  %v906_v59 = vsub.f32 %v2003_v17, %v892_v8  ;;  %v920_v46 = vmul.f32 %v2090_v52, %v2090_v52 }
 0x29a   :  { %v951_v4 = vadd.f32 %v950_v54, %v949_v21  ;;  %v907_v21 = vsub.f32 %v2007_v55, %v892_v8  ;;  %v921_v54 = vmul.f32 %v2097_v58, %v2097_v58  ;;  %v936_v17 = vmul.f32 %v920_v46, %v2325_v19 }
 0x29c   :  { %v953_v62 = vadd.f32 %v952_v24, %v951_v4  ;;  %v908_v4 = vsub.f32 %v2013_v35, %v892_v8  ;;  %v922_v24 = vmul.f32 %v906_v59, %v906_v59  ;;  %v923_v53 = vmul.f32 %v907_v21, %v907_v21 }
 0x29d   :  { %v962_v45 = vsel %vm353_vm1, %v936_v17, 0.0 }
 0x29e   :  { %v955_v48 = vadd.f32 %v954_v0, %v953_v62  ;;  %v937_v62 = vmul.f32 %v921_v54, %v2326_v28  ;;  %v960_v0 = vsel %vm353_vm1, %v935_v18, 0.0  ;;  %v924_v40 = vmul.f32 %v908_v4, %v908_v4 }
 0x29f   :  { %v938_v15 = vmul.f32 %v922_v24, %v2328_v30  ;;  %v939_v8 = vmul.f32 %v923_v53, %v2330_v16 }
 0x2a0   :  { %v957_v7 = vadd.f32 %v956_v33, %v955_v48  ;;  %v964_v48 = vsel %vm353_vm1, %v937_v62, 0.0  ;;  %v940_v46 = vmul.f32 %v924_v40, %v2332_v31 }
 0x2a1   :  { %v966_v13 = vsel %vm353_vm1, %v938_v15, 0.0  ;;  %v968_v28 = vsel %vm353_vm1, %v939_v8, 0.0 }
 0x2a2   :  { %v959_v61 = vadd.f32 %v958_v25, %v957_v7  ;;  %v970_v18 = vsel %vm353_vm1, %v940_v46, 0.0 }
 0x2a4   :  { %v961_v55 = vadd.f32 %v960_v0, %v959_v61 }
 0x2a6   :  { %v963_v2 = vadd.f32 %v962_v45, %v961_v55  ;;  %v1108_v45 = vld [vmem:[%s2266_s8] ss:$0 sm:$0xff] }
 0x2a8   :  { %v965_v19 = vadd.f32 %v964_v48, %v963_v2 }
 0x2aa   :  { %v967_v33 = vadd.f32 %v966_v13, %v965_v19 }
 0x2ac   :  { %v969_v54 = vadd.f32 %v968_v28, %v967_v33 }
 0x2ae   :  { %v971_v7 = vadd.f32 %v970_v18, %v969_v54 }
 0x2b0   :  { %v972_v30 = vrot.slane %v971_v7, 4 }
 0x2b2   :  { %v973_v24 = vadd.f32 %v972_v30, %v971_v7 }
 0x2b4   :  { %v974_v17 = vrot.slane %v973_v24, 2 }
 0x2b6   :  { %v975_v55 = vadd.f32 %v974_v17, %v973_v24 }
 0x2b8   :  { %v976_v25 = vrot.slane %v975_v55, 1 }
 0x2ba   :  { %v977_v16 = vadd.f32 %v976_v25, %v975_v55 }
 0x2bc   :  { %v978_v61 = vmul.f32 %v977_v16, %v2333_v26 }
 0x2be   :  { %v979_v53 = vadd.f32 1e-05, %v978_v61 }
 0x2c0   :  { %1158 = vrsqrt.f32 %v979_v53 }
 0x2ca   :  { %v1159_v40 = vpop.eup %1158 }
 0x2cb   :  { %v981_v31 = vmul.f32 %v1159_v40, %v2027_v3  ;;  %v982_v62 = vmul.f32 %v1159_v40, %v2030_v36  ;;  %v983_v0 = vmul.f32 %v1159_v40, %v2033_v23  ;;  %v984_v15 = vmul.f32 %v1159_v40, %v2036_v34 }
 0x2cc   :  { %v985_v2 = vmul.f32 %v1159_v40, %v2043_v5  ;;  %v986_v8 = vmul.f32 %v1159_v40, %v2048_v38  ;;  %v987_v26 = vmul.f32 %v1159_v40, %v2055_v22  ;;  %v988_v48 = vmul.f32 %v1159_v40, %v2061_v57  ;;  %v1109_v22 = vld [vmem:[%s2267_s9] ss:$0 sm:$0xff] }
 0x2cd   :  { %v989_v3 = vmul.f32 %v1159_v40, %v2069_v11  ;;  %v990_v36 = vmul.f32 %v1159_v40, %v2076_v50  ;;  %v991_v23 = vmul.f32 %v1159_v40, %v2083_v20  ;;  %v992_v34 = vmul.f32 %v1159_v40, %v2090_v52 }
 0x2ce   :  { %v993_v19 = vmul.f32 %v1159_v40, %v2097_v58  ;;  %v994_v46 = vmul.f32 %v1159_v40, %v906_v59  ;;  %v995_v13 = vmul.f32 %v1159_v40, %v907_v21  ;;  %v996_v33 = vmul.f32 %v1159_v40, %v908_v4 }
 0x2cf   :  { %v1003_v5 = vmul.f32 %v1108_v45, %v981_v31  ;;  %v1004_v28 = vmul.f32 %v1108_v45, %v982_v62  ;;  %v1005_v38 = vmul.f32 %v1108_v45, %v983_v0  ;;  %v1006_v54 = vmul.f32 %v1108_v45, %v984_v15 }
 0x2d0   :  { %v1007_v57 = vmul.f32 %v1108_v45, %v985_v2  ;;  %v1008_v11 = vmul.f32 %v1108_v45, %v986_v8  ;;  %v1009_v50 = vmul.f32 %v1108_v45, %v987_v26  ;;  %v1010_v18 = vmul.f32 %v1108_v45, %v988_v48 }
 0x2d1   :  { %v1011_v20 = vmul.f32 %v1108_v45, %v989_v3  ;;  %v1012_v7 = vmul.f32 %v1108_v45, %v990_v36  ;;  %v1013_v52 = vmul.f32 %v1108_v45, %v991_v23  ;;  %v1014_v30 = vmul.f32 %v1108_v45, %v992_v34 }
 0x2d2   :  { %v1015_v58 = vmul.f32 %v1108_v45, %v993_v19  ;;  %v1016_v59 = vmul.f32 %v1108_v45, %v994_v46  ;;  %v1017_v21 = vmul.f32 %v1108_v45, %v995_v13  ;;  %v1018_v4 = vmul.f32 %v1108_v45, %v996_v33 }
 0x2d3   :  { %v1025_v24 = vadd.f32 %v1109_v22, %v1003_v5  ;;  %v1026_v17 = vadd.f32 %v1109_v22, %v1004_v28  ;;  %v1027_v55 = vadd.f32 %v1109_v22, %v1005_v38  ;;  %v1028_v25 = vadd.f32 %v1109_v22, %v1006_v54 }
 0x2d4   :  { %v1029_v16 = vadd.f32 %v1109_v22, %v1007_v57  ;;  %v1030_v61 = vadd.f32 %v1109_v22, %v1008_v11  ;;  %v1031_v53 = vadd.f32 %v1109_v22, %v1009_v50  ;;  %v1032_v40 = vadd.f32 %v1109_v22, %v1010_v18 }
 0x2d5   :  { %v1033_v31 = vadd.f32 %v1109_v22, %v1011_v20  ;;  %v1034_v62 = vadd.f32 %v1109_v22, %v1012_v7  ;;  %v1035_v0 = vadd.f32 %v1109_v22, %v1013_v52  ;;  %v1036_v15 = vadd.f32 %v1109_v22, %v1014_v30 }
 0x2d6   :  { %v1037_v2 = vadd.f32 %v1109_v22, %v1015_v58  ;;  %v1038_v8 = vadd.f32 %v1109_v22, %v1016_v59  ;;  %v1039_v26 = vadd.f32 %v1109_v22, %v1017_v21  ;;  %v1040_v48 = vadd.f32 %v1109_v22, %v1018_v4 }
 0x2d7   :  { %v1041_v45 = vsel %vm621_vm2, %v1025_v24, %v1919_v44  ;;  %v1042_v3 = vsel %vm622_vm3, %v1026_v17, %v1926_v49  ;;  %v1043_v36 = vsel %vm623_vm5, %v1027_v55, %v1916_v1  ;;  %v1044_v23 = vsel %vm624_vm6, %v1028_v25, %v1931_v47  ;;  %v2337_v47 = vld [vmem:[#allocation3_spill] sm:$0xff] }
 0x2d8   :  { %v1045_v34 = vsel %vm625_vm10, %v1029_v16, %v1949_v56  ;;  %v1046_v63 = vsel %vm626_vm11, %v1030_v61, %v1959_v60  ;;  %v1047_v42 = vsel %vm627_vm13, %v1031_v53, %v1946_v10  ;;  %v1048_v41 = vsel %vm628_vm14, %v1032_v40, %v1956_v43  ;;  %v2338_v10 = vld [vmem:[#allocation16_spill] sm:$0xff]  ;;  %v2340_v56 = vld [vmem:[#allocation2_spill] sm:$0xff] }
 0x2d9   :  { %v1049_v12 = vsel %vm629_vm4, %v1033_v31, %v1963_v51  ;;  %v1050_v32 = vsel %vm630_vm8, %v1034_v62, %v1972_v29  ;;  %v1051_v14 = vsel %vm631_vm7, %v1035_v0, %v1978_v9  ;;  %v1052_v37 = vsel %vm632_vm9, %v1036_v15, %v1985_v27  ;;  %v2342_v60 = vld [vmem:[#allocation4_spill] sm:$0xff] }
 0x2da   :  { %vm2339_vm2 = vcmp.eq.s32.totalorder %v2338_v10, 1  ;;  %v1054_v39 = vsel %vm634_vm15, %v1038_v8, %v2340_v56  ;;  %v1055_v29 = vsel %vm635_vm0, %v1039_v26, %v2342_v60  ;;  %v1056_v9 = vsel %vm636_vm12, %v1040_v48, %v2013_v35 }
 0x2db   :  { %v1053_v6 = vsel %vm2339_vm2, %v1037_v2, %v2337_v47  ;;  %v1057_v46 = vmax.f32 %v1041_v45, 0.0  ;;  %v1058_v13 = vmax.f32 %v1042_v3, 0.0  ;;  %v1059_v33 = vmax.f32 %v1043_v36, 0.0 }
 0x2dc   :  { %v1060_v27 = vmax.f32 %v1044_v23, 0.0  ;;  %v1061_v5 = vmax.f32 %v1045_v34, 0.0  ;;  %v1062_v28 = vmax.f32 %v1046_v63, 0.0  ;;  %v1063_v38 = vmax.f32 %v1047_v42, 0.0 }
 0x2dd   :  { %v1064_v54 = vmax.f32 %v1048_v41, 0.0  ;;  %v1065_v22 = vmax.f32 %v1049_v12, 0.0  ;;  %v1066_v57 = vmax.f32 %v1050_v32, 0.0  ;;  %v1067_v11 = vmax.f32 %v1051_v14, 0.0  ;;  %1073 = vst.msk [vmem:[%s2268_s10] sm:$0xff] %vm353_vm1, %v1057_v46  ;;  %1074 = vst.msk [vmem:[%s2268_s10 + $0x8] sm:$0xff] %vm353_vm1, %v1058_v13 }
 0x2de   :  { %v1068_v50 = vmax.f32 %v1052_v37, 0.0  ;;  %1075 = vst.msk [vmem:[%s2268_s10 + $0x10] sm:$0xff] %vm353_vm1, %v1059_v33  ;;  %1076 = vst.msk [vmem:[%s2268_s10 + $0x18] sm:$0xff] %vm353_vm1, %v1060_v27  ;;  %v1069_v35 = vmax.f32 %v1053_v6, 0.0  ;;  %v1070_v18 = vmax.f32 %v1054_v39, 0.0  ;;  %v1071_v20 = vmax.f32 %v1055_v29, 0.0 }
 0x2df   :  { %v1072_v7 = vmax.f32 %v1056_v9, 0.0  ;;  %1077 = vst.msk [vmem:[%s2268_s10 + $0x20] sm:$0xff] %vm353_vm1, %v1061_v5  ;;  %1078 = vst.msk [vmem:[%s2268_s10 + $0x28] sm:$0xff] %vm353_vm1, %v1062_v28 }
 0x2e0   :  { %1079 = vst.msk [vmem:[%s2268_s10 + $0x30] sm:$0xff] %vm353_vm1, %v1063_v38  ;;  %1080 = vst.msk [vmem:[%s2268_s10 + $0x38] sm:$0xff] %vm353_vm1, %v1064_v54 }
 0x2e1   :  { %1081 = vst.msk [vmem:[%s2268_s10 + $0x40] sm:$0xff] %vm353_vm1, %v1065_v22  ;;  %1082 = vst.msk [vmem:[%s2268_s10 + $0x48] sm:$0xff] %vm353_vm1, %v1066_v57 }
 0x2e2   :  { %1083 = vst.msk [vmem:[%s2268_s10 + $0x50] sm:$0xff] %vm353_vm1, %v1067_v11  ;;  %1084 = vst.msk [vmem:[%s2268_s10 + $0x58] sm:$0xff] %vm353_vm1, %v1068_v50 }
 0x2e3   :  { %1085 = vst.msk [vmem:[%s2268_s10 + $0x60] sm:$0xff] %vm353_vm1, %v1069_v35  ;;  %1086 = vst.msk [vmem:[%s2268_s10 + $0x68] sm:$0xff] %vm353_vm1, %v1070_v18 }
 0x2e4   :  { %1087 = vst.msk [vmem:[%s2268_s10 + $0x70] sm:$0xff] %vm353_vm1, %v1071_v20  ;;  %1088 = vst.msk [vmem:[%s2268_s10 + $0x78] sm:$0xff] %vm353_vm1, %v1072_v7 }

// kernel: mul.33
= control target key start
LH: loop header
LB: loop body
LE: loop exit
PB: predicated region body
PF: predicated region fallthrough
CT: control target
= control target key end

     0   :  { %s131_s10 = smov 120   ;;  %s132_s11 = smov 104   ;;  %vm3_vm0 = vcmask 64512   ;;  %vm9_vm1 = vcmask 1048512   ;;  %vm15_vm2 = vcmask 982912   ;;  %vm21_vm3 = vcmask 917312   ;;  %s207_s0 = inlined_call_operand.vmem [shape: f32[16,8], index: 0, kind: input, shape index: {}]   ;;  %s208_s1 = inlined_call_operand.vmem [shape: f32[128], index: 1, kind: output, shape index: {}]  }
   0x1   :  { %v101_v0 = vld [vmem:[%s207_s0 + $0xf] sm:$0x1]   ;;  %v103_v1 = vld [vmem:[%s207_s0 + $0xd] sm:$0x1]   ;;  %v102_v2 = vld [vmem:[%s207_s0 + $0xe] sm:$0x1]  }
   0x2   :  { %7 = vrot.lane.b32.xlu0 %v101_v0, %s131_s10  ;;  %19 = vrot.lane.b32.xlu1 %v103_v1, %s132_s11  ;;  %v104_v3 = vld [vmem:[%s207_s0 + $0xc] sm:$0x1]   ;;  %s133_s16 = smov 112   ;;  %s134_s17 = smov 96   ;;  %v105_v4 = vld [vmem:[%s207_s0 + $0xb] sm:$0x1]  }
   0x3   :  { %v106_v5 = vld [vmem:[%s207_s0 + $0xa] sm:$0x1]   ;;  %v2_v6 = vld [vmem:[%s207_s0] sm:$0x1]   ;;  %s135_s24 = smov 88   ;;  %s136_s25 = smov 80  }
   0x4   :  { %4 = vst.msk [vmem:[#allocation0] sm:$0x1] %vm3_vm0, %v2_v6   ;;  %v107_v7 = vld [vmem:[%s207_s0 + $0x9] sm:$0x1]   ;;  %v108_v8 = vld [vmem:[%s207_s0 + $0x8] sm:$0x1]  }
   0x5   :  { %s137_s30 = smov 72   ;;  %s138_s2 = smov 64   ;;  %v109_v9 = vld [vmem:[%s207_s0 + $0x7] sm:$0x1]   ;;  %v110_v10 = vld [vmem:[%s207_s0 + $0x6] sm:$0x1]  }
   0x6   :  { %13 = vrot.lane.b32.xlu0 %v102_v2, %s133_s16  ;;  %25 = vrot.lane.b32.xlu1 %v104_v3, %s134_s17  ;;  %s139_s7 = smov 56   ;;  %s140_s8 = smov 48   ;;  %v111_v11 = vld [vmem:[%s207_s0 + $0x5] sm:$0x1]   ;;  %v112_v12 = vld [vmem:[%s207_s0 + $0x4] sm:$0x1]  }
   0x7   :  { %s141_s13 = smov 40   ;;  %s142_s14 = smov 32   ;;  %v113_v13 = vld [vmem:[%s207_s0 + $0x3] sm:$0x1]   ;;  %v114_v14 = vld [vmem:[%s207_s0 + $0x2] sm:$0x1]  }
   0x8   :  { %s143_s19 = smov 24   ;;  %s144_s20 = smov 16   ;;  %v115_v15 = vld [vmem:[%s207_s0 + $0x1] sm:$0x1]   ;;  %vm27_vm4 = vcmask 851712   ;;  %vm33_vm5 = vcmask 786112  }
   0x9   :  { %s145_s0 = smov 8   ;;  %vm39_vm6 = vcmask 720512   ;;  %vm45_vm7 = vcmask 654912   ;;  %vm51_vm8 = vcmask 589312   ;;  %vm57_vm9 = vcmask 523712  }
   0xa   :  { %31 = vrot.lane.b32.xlu0 %v105_v4, %s135_s24  ;;  %37 = vrot.lane.b32.xlu1 %v106_v5, %s136_s25  ;;  %vm63_vm10 = vcmask 458112   ;;  %vm69_vm11 = vcmask 392512   ;;  %vm75_vm12 = vcmask 326912   ;;  %vm81_vm13 = vcmask 261312  }
   0xb   :  { %vm87_vm14 = vcmask 195712   ;;  %vm93_vm15 = vcmask 130112  }
   0xe   :  { %43 = vrot.lane.b32.xlu0 %v107_v7, %s137_s30  ;;  %49 = vrot.lane.b32.xlu1 %v108_v8, %s138_s2 }
  0x12   :  { %55 = vrot.lane.b32.xlu0 %v109_v9, %s139_s7  ;;  %61 = vrot.lane.b32.xlu1 %v110_v10, %s140_s8 }
  0x16   :  { %67 = vrot.lane.b32.xlu0 %v111_v11, %s141_s13  ;;  %73 = vrot.lane.b32.xlu1 %v112_v12, %s142_s14 }
  0x1a   :  { %79 = vrot.lane.b32.xlu0 %v113_v13, %s143_s19  ;;  %85 = vrot.lane.b32.xlu1 %v114_v14, %s144_s20 }
  0x1e   :  { %91 = vrot.lane.b32.xlu0 %v115_v15, %s145_s0 }
  0x74   :  { %v8_v16 = vpop.permute.xlu0 %7   ;;  %v20_v17 = vpop.permute.xlu1 %19  }
  0x75   :  { %10 = vst.msk [vmem:[#allocation0] sm:$0x1] %vm9_vm1, %v8_v16  }
  0x78   :  { %v14_v18 = vpop.permute.xlu0 %13   ;;  %v26_v19 = vpop.permute.xlu1 %25  }
  0x79   :  { %16 = vst.msk [vmem:[#allocation0] sm:$0x1] %vm15_vm2, %v14_v18  }
  0x7a   :  { %22 = vst.msk [vmem:[#allocation0] sm:$0x1] %vm21_vm3, %v20_v17  }
  0x7b   :  { %28 = vst.msk [vmem:[#allocation0] sm:$0x1] %vm27_vm4, %v26_v19  }
  0x7c   :  { %v32_v20 = vpop.permute.xlu0 %31   ;;  %v38_v21 = vpop.permute.xlu1 %37  }
  0x7d   :  { %34 = vst.msk [vmem:[#allocation0] sm:$0x1] %vm33_vm5, %v32_v20  }
  0x7e   :  { %40 = vst.msk [vmem:[#allocation0] sm:$0x1] %vm39_vm6, %v38_v21  }
  0x80   :  { %v44_v22 = vpop.permute.xlu0 %43   ;;  %v50_v23 = vpop.permute.xlu1 %49  }
  0x81   :  { %46 = vst.msk [vmem:[#allocation0] sm:$0x1] %vm45_vm7, %v44_v22  }
  0x82   :  { %52 = vst.msk [vmem:[#allocation0] sm:$0x1] %vm51_vm8, %v50_v23  }
  0x84   :  { %v56_v24 = vpop.permute.xlu0 %55   ;;  %v62_v25 = vpop.permute.xlu1 %61  }
  0x85   :  { %58 = vst.msk [vmem:[#allocation0] sm:$0x1] %vm57_vm9, %v56_v24  }
  0x86   :  { %64 = vst.msk [vmem:[#allocation0] sm:$0x1] %vm63_vm10, %v62_v25  }
  0x88   :  { %v68_v26 = vpop.permute.xlu0 %67   ;;  %v74_v27 = vpop.permute.xlu1 %73  }
  0x89   :  { %70 = vst.msk [vmem:[#allocation0] sm:$0x1] %vm69_vm11, %v68_v26  }
  0x8a   :  { %76 = vst.msk [vmem:[#allocation0] sm:$0x1] %vm75_vm12, %v74_v27  }
  0x8c   :  { %v80_v28 = vpop.permute.xlu0 %79   ;;  %v86_v29 = vpop.permute.xlu1 %85  }
  0x8d   :  { %82 = vst.msk [vmem:[#allocation0] sm:$0x1] %vm81_vm13, %v80_v28  }
  0x8e   :  { %88 = vst.msk [vmem:[#allocation0] sm:$0x1] %vm87_vm14, %v86_v29  }
  0x90   :  { %v92_v30 = vpop.permute.xlu0 %91  }
  0x91   :  { %94 = vst.msk [vmem:[#allocation0] sm:$0x1] %vm93_vm15, %v92_v30  }
  0x98   :  { %v98_v31 = vld [vmem:[#allocation0] sm:$0x1] }
  0x99   :  { %100 = vst [vmem:[%s208_s1] sm:$0x1] %v98_v31 }

// kernel: signnet_forward.6
= control target key start
LH: loop header
LB: loop body
LE: loop exit
PB: predicated region body
PF: predicated region fallthrough
CT: control target
= control target key end

     0   :  { %v3606_v0 = vmov 0   ;;  %vm67_vm0 = vcmask 7168   ;;  %s3607_s29 = smov 1.0   ;;  %s6178_s0 = inlined_call_operand.vmem [shape: f32[128,1], index: 0, kind: input, shape index: {}]   ;;  %s6179_s2 = inlined_call_operand.vmem [shape: f32[128,1], index: 2, kind: input, shape index: {}]   ;;  %s6180_s1 = inlined_call_operand.vmem [shape: bf16[128,128], index: 1, kind: input, shape index: {}]   ;;  %s6181_s9 = inlined_call_operand.vmem [shape: bf16[32,32], index: 9, kind: input, shape index: {}]   ;;  %s6182_s3 = inlined_call_operand.vmem [shape: f32[1,32], index: 3, kind: input, shape index: {}]   ;;  %s6183_s5 = inlined_call_operand.vmem [shape: bf16[32,32], index: 5, kind: input, shape index: {}]   ;;  %s6184_s4 = inlined_call_operand.vmem [shape: f32[1,32], index: 4, kind: input, shape index: {}]   ;;  %s6185_s6 = inlined_call_operand.vmem [shape: f32[1,32], index: 6, kind: input, shape index: {}]   ;;  %s6186_s7 = inlined_call_operand.vmem [shape: f32[1,32], index: 7, kind: input, shape index: {}]   ;;  %s6187_s8 = inlined_call_operand.vmem [shape: f32[1,32], index: 8, kind: input, shape index: {}]   ;;  %s6188_s11 = inlined_call_operand.vmem [shape: bf16[32,32], index: 11, kind: input, shape index: {}]   ;;  %s6189_s10 = inlined_call_operand.vmem [shape: f32[1,32], index: 10, kind: input, shape index: {}]   ;;  %s6190_s12 = inlined_call_operand.vmem [shape: f32[1,32], index: 12, kind: input, shape index: {}]   ;;  %s6191_s13 = inlined_call_operand.vmem [shape: f32[1,32], index: 13, kind: input, shape index: {}]   ;;  %s6192_s14 = inlined_call_operand.vmem [shape: f32[1,32], index: 14, kind: input, shape index: {}]   ;;  %s6193_s15 = inlined_call_operand.vmem [shape: f32[128,32], index: 15, kind: output, shape index: {}]  }
   0x1   :  { %3561 = vset.pattern.permute.xlu1 %v3606_v0  ;;  %3560 = vset.pattern.permute.xlu0 %v3606_v0  ;;  %v3693_v1 = vld [vmem:[%s6178_s0 + $0x10] sm:$0xff]  ;;  %v3698_v2 = vld [vmem:[%s6178_s0] sm:$0xff]  ;;  %v3705_v3 = vld [vmem:[%s6178_s0 + $0x18] sm:$0xff] }
   0x2   :  { %157 = vperm.xlu1 %3561, %v3693_v1   ;;  %147 = vperm.xlu0 %3560, %v3698_v2   ;;  %v3710_v4 = vld [vmem:[%s6178_s0 + $0x8] sm:$0xff]  ;;  %v3722_v6 = vld [vmem:[%s6179_s2] sm:$0xff]  ;;  %v3741_v11 = vld [vmem:[%s6179_s2 + $0x10] sm:$0xff] }
   0x3   :  { %v3717_v5 = vld [vmem:[%s6178_s0 + $0x28] sm:$0xff]  ;;  %v3732_v8 = vld [vmem:[%s6178_s0 + $0x20] sm:$0xff]  ;;  %v68_v9 = vsel %vm67_vm0, %v3722_v6, 0.0  ;;  %v3746_v12 = vld [vmem:[%s6179_s2 + $0x18] sm:$0xff]  ;;  %v71_v14 = vsel %vm67_vm0, %v3741_v11, 0.0  ;;  %vm909_vm1 = vcmp.gt.f32.partialorder %v3722_v6, 0.0 }
   0x4   :  { %v3727_v7 = vld [vmem:[%s6179_s2 + $0x8] sm:$0xff]  ;;  %v3753_v15 = vld [vmem:[%s6179_s2 + $0x20] sm:$0xff]  ;;  %v73_v16 = vsel %vm67_vm0, %v3746_v12, 0.0  ;;  %v3762_v18 = vld [vmem:[%s6178_s0 + $0x38] sm:$0xff]  ;;  %vm911_vm3 = vcmp.gt.f32.partialorder %v3741_v11, 0.0  ;;  %vm912_vm4 = vcmp.gt.f32.partialorder %v3746_v12, 0.0 }
   0x5   :  { %v69_v10 = vsel %vm67_vm0, %v3727_v7, 0.0  ;;  %v3767_v19 = vld [vmem:[%s6178_s0 + $0x30] sm:$0xff]  ;;  %v75_v20 = vsel %vm67_vm0, %v3753_v15, 0.0  ;;  %v3774_v21 = vld [vmem:[%s6179_s2 + $0x28] sm:$0xff]  ;;  %v3788_v26 = vld [vmem:[%s6178_s0 + $0x40] sm:$0xff]  ;;  %vm910_vm2 = vcmp.gt.f32.partialorder %v3727_v7, 0.0 }
   0x6   :  { %162 = vperm.xlu1 %3561, %v3705_v3   ;;  %152 = vperm.xlu0 %3560, %v3710_v4   ;;  %v70_v13 = vadd.f32 %v69_v10, %v68_v9  ;;  %v77_v24 = vsel %vm67_vm0, %v3774_v21, 0.0  ;;  %v3783_v25 = vld [vmem:[%s6178_s0 + $0x48] sm:$0xff]  ;;  %v3793_v27 = vld [vmem:[%s6179_s2 + $0x30] sm:$0xff]  ;;  %v3802_v30 = vld [vmem:[%s6178_s0 + $0x58] sm:$0xff]  ;;  %v925_v10 = vsel %vm909_vm1, 1, %v3606_v0  ;;  %vm913_vm5 = vcmp.gt.f32.partialorder %v3753_v15, 0.0 }
   0x7   :  { %v79_v29 = vsel %vm67_vm0, %v3793_v27, 0.0  ;;  %v3807_v31 = vld [vmem:[%s6178_s0 + $0x50] sm:$0xff]  ;;  %v3812_v32 = vld [vmem:[%s6179_s2 + $0x38] sm:$0xff]  ;;  %v3821_v35 = vld [vmem:[%s6178_s0 + $0x68] sm:$0xff]  ;;  %vm914_vm6 = vcmp.gt.f32.partialorder %v3774_v21, 0.0  ;;  %vm915_vm7 = vcmp.gt.f32.partialorder %v3793_v27, 0.0 }
   0x8   :  { %v72_v17 = vadd.f32 %v71_v14, %v70_v13  ;;  %v81_v34 = vsel %vm67_vm0, %v3812_v32, 0.0  ;;  %v3826_v36 = vld [vmem:[%s6178_s0 + $0x60] sm:$0xff]  ;;  %v3840_v40 = vld [vmem:[%s6178_s0 + $0x78] sm:$0xff]  ;;  %v3845_v41 = vld [vmem:[%s6178_s0 + $0x70] sm:$0xff]  ;;  %v926_v13 = vsel %vm910_vm2, 1, %v3606_v0  ;;  %v927_v14 = vsel %vm911_vm3, 1, %v3606_v0 }
   0x9   :  { %v3831_v37 = vld [vmem:[%s6179_s2 + $0x40] sm:$0xff]  ;;  %v3850_v42 = vld [vmem:[%s6179_s2 + $0x48] sm:$0xff]  ;;  %v3859_v45 = vld [vmem:[%s6179_s2 + $0x50] sm:$0xff]  ;;  %vm916_vm8 = vcmp.gt.f32.partialorder %v3812_v32, 0.0  ;;  %vm6351_vm1 = vcmask 261120  }
   0xa   :  { %172 = vperm.xlu1 %3561, %v3717_v5   ;;  %167 = vperm.xlu0 %3560, %v3732_v8   ;;  %v74_v22 = vadd.f32 %v73_v16, %v72_v17  ;;  %v83_v39 = vsel %vm67_vm0, %v3831_v37, 0.0  ;;  %v85_v44 = vsel %vm67_vm0, %v3850_v42, 0.0  ;;  %v87_v47 = vsel %vm67_vm0, %v3859_v45, 0.0  ;;  %v3867_v48 = vld [vmem:[%s6179_s2 + $0x58] sm:$0xff]  ;;  %v3872_v49 = vld [vmem:[%s6179_s2 + $0x60] sm:$0xff]  ;;  %v3887_v54 = vld [vmem:[%s6179_s2 + $0x68] sm:$0xff] }
   0xb   :  { %v89_v51 = vsel %vm67_vm0, %v3867_v48, 0.0  ;;  %v3880_v52 = vld [vmem:[%s6180_s1] sm:$0xff]   ;;  %v91_v53 = vsel %vm67_vm0, %v3872_v49, 0.0  ;;  %v93_v57 = vsel %vm67_vm0, %v3887_v54, 0.0  ;;  %v3897_v58 = vld [vmem:[%s6179_s2 + $0x70] sm:$0xff]  ;;  %v66_v61 = vld [vmem:[%s6179_s2 + $0x78] sm:$0xff] }
   0xc   :  { %v76_v23 = vadd.f32 %v75_v20, %v74_v22  ;;  %3306 = vmatprep.mubr.bf16.mxu0 %v3880_v52  ;;  %v95_v60 = vsel %vm67_vm0, %v3897_v58, 0.0  ;;  %v97_v63 = vsel %vm67_vm0, %v66_v61, 0.0  ;;  %v928_v16 = vsel %vm912_vm4, 1, %v3606_v0 }
   0xd   :  { %vm917_vm9 = vcmp.gt.f32.partialorder %v3831_v37, 0.0  ;;  %vm918_vm10 = vcmp.gt.f32.partialorder %v3850_v42, 0.0  ;;  %vm919_vm11 = vcmp.gt.f32.partialorder %v3859_v45, 0.0  ;;  %vm920_vm12 = vcmp.gt.f32.partialorder %v3867_v48, 0.0 }
   0xe   :  { %182 = vperm.xlu1 %3561, %v3762_v18   ;;  %177 = vperm.xlu0 %3560, %v3767_v19   ;;  %v78_v28 = vadd.f32 %v77_v24, %v76_v23  ;;  %v934_v17 = vsel %vm918_vm10, 1, %v3606_v0  ;;  %v935_v20 = vsel %vm919_vm11, 1, %v3606_v0  ;;  %vm921_vm13 = vcmp.gt.f32.partialorder %v3872_v49, 0.0 }
   0xf   :  { %vm922_vm14 = vcmp.gt.f32.partialorder %v3887_v54, 0.0  ;;  %v937_v22 = vsel %vm921_vm13, 1, %v3606_v0  ;;  %vm923_vm15 = vcmp.gt.f32.partialorder %v3897_v58, 0.0  ;;  %vm924_vm0 = vcmp.gt.f32.partialorder %v66_v61, 0.0 }
  0x10   :  { %v80_v33 = vadd.f32 %v79_v29, %v78_v28  ;;  %v938_v23 = vsel %vm922_vm14, 1, %v3606_v0  ;;  %v939_v24 = vsel %vm923_vm15, 1, %v3606_v0  ;;  %v1762_v28 = vmul.f32 -1.0, %v3698_v2 }
  0x11   :  { %v1763_v29 = vmul.f32 -1.0, %v3710_v4  ;;  %v1768_v2 = vmul.f32 -1.0, %v3767_v19  ;;  %v1769_v4 = vmul.f32 -1.0, %v3762_v18 }
  0x12   :  { %192 = vperm.xlu1 %3561, %v3783_v25   ;;  %187 = vperm.xlu0 %3560, %v3788_v26   ;;  %v82_v38 = vadd.f32 %v81_v34, %v80_v33  ;;  %v1765_v33 = vmul.f32 -1.0, %v3705_v3  ;;  %v1766_v34 = vmul.f32 -1.0, %v3732_v8  ;;  %v1770_v3 = vmul.f32 -1.0, %v3788_v26 }
  0x14   :  { %v84_v43 = vadd.f32 %v83_v39, %v82_v38 }
  0x16   :  { %202 = vperm.xlu1 %3561, %v3802_v30   ;;  %197 = vperm.xlu0 %3560, %v3807_v31   ;;  %v86_v46 = vadd.f32 %v85_v44, %v84_v43  ;;  %v1771_v43 = vmul.f32 -1.0, %v3783_v25  ;;  %v1773_v25 = vmul.f32 -1.0, %v3802_v30 }
  0x18   :  { %v88_v50 = vadd.f32 %v87_v47, %v86_v46  ;;  %v1772_v46 = vmul.f32 -1.0, %v3807_v31  ;;  %v1774_v31 = vmul.f32 -1.0, %v3826_v36 }
  0x1a   :  { %212 = vperm.xlu1 %3561, %v3821_v35   ;;  %207 = vperm.xlu0 %3560, %v3826_v36   ;;  %v90_v55 = vadd.f32 %v89_v51, %v88_v50 }
  0x1c   :  { %v92_v56 = vadd.f32 %v91_v53, %v90_v55 }
  0x1e   :  { %222 = vperm.xlu1 %3561, %v3840_v40   ;;  %217 = vperm.xlu0 %3560, %v3845_v41   ;;  %v94_v59 = vadd.f32 %v93_v57, %v92_v56  ;;  %v1775_v56 = vmul.f32 -1.0, %v3821_v35 }
  0x20   :  { %v96_v62 = vadd.f32 %v95_v60, %v94_v59 }
  0x22   :  { %612 = vperm.xlu1 %3561, %v3722_v6   ;;  %v98_v9 = vadd.f32 %v97_v63, %v96_v62  ;;  %v929_v6 = vsel %vm913_vm5, 1, %v3606_v0 }
  0x26   :  { %617 = vperm.xlu1 %3561, %v3727_v7   ;;  %v930_v7 = vsel %vm914_vm6, 1, %v3606_v0 }
  0x2a   :  { %622 = vperm.xlu1 %3561, %v3741_v11   ;;  %v931_v11 = vsel %vm915_vm7, 1, %v3606_v0 }
  0x2e   :  { %627 = vperm.xlu1 %3561, %v3746_v12   ;;  %v932_v12 = vsel %vm916_vm8, 1, %v3606_v0 }
  0x32   :  { %632 = vperm.xlu1 %3561, %v3753_v15   ;;  %v933_v15 = vsel %vm917_vm9, 1, %v3606_v0 }
  0x36   :  { %637 = vperm.xlu1 %3561, %v3774_v21   ;;  %v936_v21 = vsel %vm920_vm12, 1, %v3606_v0 }
  0x3a   :  { %642 = vperm.xlu1 %3561, %v3793_v27   ;;  %v940_v27 = vsel %vm924_vm0, 1, %v3606_v0 }
  0x3d   :  { %99 = vadd.xlane.f32.xlu0 %v98_v9 }
  0x3e   :  { %647 = vperm.xlu1 %3561, %v3812_v32   ;;  %v1764_v32 = vmul.f32 -1.0, %v3693_v1  ;;  %v3958_v1 = vld [vmem:[%s6182_s3] ss:$0 sm:$0xff] }
  0x42   :  { %657 = vperm.xlu1 %3561, %v3850_v42  }
  0x46   :  { %662 = vperm.xlu1 %3561, %v3859_v45  }
  0x4a   :  { %667 = vperm.xlu1 %3561, %v3867_v48  }
  0x4e   :  { %672 = vperm.xlu1 %3561, %v3872_v49  }
  0x52   :  { %677 = vperm.xlu1 %3561, %v3887_v54  }
  0x53   :  { %652 = vperm.xlu0 %3560, %v3831_v37   ;;  %v1767_v37 = vmul.f32 -1.0, %v3717_v5 }
  0x56   :  { %682 = vperm.xlu1 %3561, %v3897_v58   ;;  %v1776_v58 = vmul.f32 -1.0, %v3845_v41 }
  0x57   :  { %687 = vperm.xlu0 %3560, %v66_v61   ;;  %v1777_v61 = vmul.f32 -1.0, %v3840_v40 }
  0x5a   :  { %942 = vperm.xlu1 %3561, %v925_v10  }
  0x5b   :  { %945 = vperm.xlu0 %3560, %v926_v13  }
  0x5e   :  { %948 = vperm.xlu1 %3561, %v927_v14  }
  0x5f   :  { %951 = vperm.xlu0 %3560, %v928_v16  }
  0x62   :  { %954 = vperm.xlu1 %3561, %v929_v6  }
  0x63   :  { %957 = vperm.xlu0 %3560, %v930_v7  }
  0x66   :  { %960 = vperm.xlu1 %3561, %v931_v11  }
  0x67   :  { %963 = vperm.xlu0 %3560, %v932_v12  }
  0x6a   :  { %966 = vperm.xlu1 %3561, %v933_v15  }
  0x6b   :  { %969 = vperm.xlu0 %3560, %v934_v17  }
  0x6e   :  { %972 = vperm.xlu1 %3561, %v935_v20  }
  0x6f   :  { %975 = vperm.xlu0 %3560, %v936_v21   ;;  %v3570_v21 = vld [vmem:[%s6181_s9] sm:$0xff]  }
  0x72   :  { %978 = vperm.xlu1 %3561, %v937_v22  }
  0x73   :  { %981 = vperm.xlu0 %3560, %v938_v23   ;;  %v4042_v23 = vld [vmem:[%s6180_s1 + $0x8] sm:$0xff]  }
  0x74   :  { %6355 = vst [vmem:[#allocation4_spill] sm:$0xff] %v4042_v23 }
  0x76   :  { %984 = vperm.xlu1 %3561, %v939_v24   ;;  %v4047_v24 = vld [vmem:[%s6180_s1 + $0x10] sm:$0xff]  }
  0x77   :  { %987 = vperm.xlu0 %3560, %v940_v27   ;;  %6356 = vst [vmem:[#allocation5_spill] sm:$0xff] %v4047_v24  ;;  %v3571_v27 = vld [vmem:[%s6181_s9 + $0x8] sm:$0xff]  }
  0x7a   :  { %1780 = vperm.xlu1 %3561, %v1762_v28  }
  0x7b   :  { %1785 = vperm.xlu0 %3560, %v1763_v29  }
  0x7e   :  { %1790 = vperm.xlu1 %3561, %v1764_v32   ;;  %v4061_v32 = vld [vmem:[%s6180_s1 + $0x18] sm:$0xff]  }
  0x7f   :  { %1795 = vperm.xlu0 %3560, %v1765_v33   ;;  %6359 = vst [vmem:[#allocation8_spill] sm:$0xff] %v4061_v32  ;;  %v4066_v33 = vld [vmem:[%s6180_s1 + $0x20] sm:$0xff]  }
  0x80   :  { %6360 = vst [vmem:[#allocation9_spill] sm:$0xff] %v4066_v33 }
  0x81   :  { %v158_v38 = vpop.permute.xlu1 %157  ;;  %v148_v0 = vpop.permute.xlu0 %147 }
  0x82   :  { %1800 = vperm.xlu1 %3561, %v1766_v34   ;;  %v3962_v5 = vmul.f32 %v3958_v1, %v158_v38  ;;  %v3965_v42 = vmul.f32 %v3958_v1, %v148_v0  ;;  %v4077_v38 = vld [vmem:[%s6180_s1 + $0x28] sm:$0xff]   ;;  %v4082_v0 = vld [vmem:[%s6180_s1 + $0x30] sm:$0xff]  }
  0x83   :  { %1805 = vperm.xlu0 %3560, %v1767_v37   ;;  %6363 = vst [vmem:[#allocation12_spill] sm:$0xff] %v4077_v38  ;;  %6364 = vst [vmem:[#allocation13_spill] sm:$0xff] %v4082_v0 }
  0x85   :  { %v163_v8 = vpop.permute.xlu1 %162  ;;  %v153_v39 = vpop.permute.xlu0 %152 }
  0x86   :  { %v3968_v19 = vmul.f32 %v3958_v1, %v163_v8  ;;  %v3971_v18 = vmul.f32 %v3958_v1, %v153_v39  ;;  %1810 = vperm.xlu1 %3561, %v1768_v2  }
  0x87   :  { %1815 = vperm.xlu0 %3560, %v1769_v4  }
  0x88   :  { %v270_v26 = vpack.c.bf16 %v3971_v18, %v3965_v42  ;;  %v271_v47 = vpack.c.bf16 %v3968_v19, %v3962_v5 }
  0x89   :  { %v173_v44 = vpop.permute.xlu1 %172  ;;  %v168_v45 = vpop.permute.xlu0 %167 }
  0x8a   :  { %v3980_v48 = vmul.f32 %v3958_v1, %v173_v44  ;;  %v3983_v49 = vmul.f32 %v3958_v1, %v168_v45  ;;  %3290 = vmatprep.subr.bf16.mxu0 %v270_v26  ;;  %1820 = vperm.xlu1 %3561, %v1770_v3   ;;  %v4093_v3 = vld [vmem:[%s6180_s1 + $0x38] sm:$0xff]  }
  0x8b   :  { %1825 = vperm.xlu0 %3560, %v1771_v43   ;;  %3291 = vmatpush3.bf16.msra.mxu0 %v270_v26  ;;  %6367 = vst [vmem:[#allocation16_spill] sm:$0xff] %v4093_v3 }
  0x8c   :  { %3292 = vmatprep.subr.bf16.mxu0 %v271_v47  ;;  %v272_v53 = vpack.c.bf16 %v3980_v48, %v3983_v49 }
  0x8d   :  { %v183_v50 = vpop.permute.xlu1 %182  ;;  %v178_v51 = vpop.permute.xlu0 %177 }
  0x8e   :  { %v3990_v54 = vmul.f32 %v3958_v1, %v183_v50  ;;  %v3993_v55 = vmul.f32 %v3958_v1, %v178_v51  ;;  %1830 = vperm.xlu1 %3561, %v1772_v46  }
  0x8f   :  { %1835 = vperm.xlu0 %3560, %v1773_v25   ;;  %3293 = vmatpush3.bf16.msra.mxu0 %v271_v47 }
  0x90   :  { %3294 = vmatprep.subr.bf16.mxu0 %v272_v53  ;;  %v273_v36 = vpack.c.bf16 %v3990_v54, %v3993_v55 }
  0x91   :  { %v193_v30 = vpop.permute.xlu1 %192  ;;  %v188_v57 = vpop.permute.xlu0 %187 }
  0x92   :  { %v4000_v59 = vmul.f32 %v3958_v1, %v193_v30  ;;  %v4003_v60 = vmul.f32 %v3958_v1, %v188_v57  ;;  %1840 = vperm.xlu1 %3561, %v1774_v31  }
  0x93   :  { %1845 = vperm.xlu0 %3560, %v1775_v56   ;;  %3295 = vmatpush3.bf16.msra.mxu0 %v272_v53 }
  0x94   :  { %3296 = vmatprep.subr.bf16.mxu0 %v273_v36  ;;  %v274_v41 = vpack.c.bf16 %v4000_v59, %v4003_v60 }
  0x95   :  { %v203_v35 = vpop.permute.xlu1 %202  ;;  %v198_v62 = vpop.permute.xlu0 %197 }
  0x96   :  { %v4009_v63 = vmul.f32 %v3958_v1, %v203_v35  ;;  %v4012_v9 = vmul.f32 %v3958_v1, %v198_v62  ;;  %1850 = vperm.xlu1 %3561, %v1776_v58  }
  0x97   :  { %1855 = vperm.xlu0 %3560, %v1777_v61   ;;  %3297 = vmatpush3.bf16.msra.mxu0 %v273_v36 }
  0x98   :  { %3298 = vmatprep.subr.bf16.mxu0 %v274_v41  ;;  %v275_v13 = vpack.c.bf16 %v4009_v63, %v4012_v9 }
  0x99   :  { %v213_v10 = vpop.permute.xlu1 %212  ;;  %v208_v40 = vpop.permute.xlu0 %207 }
  0x9a   :  { %v4017_v14 = vmul.f32 %v3958_v1, %v213_v10  ;;  %v4020_v16 = vmul.f32 %v3958_v1, %v208_v40 }
  0x9b   :  { %3299 = vmatpush3.bf16.msra.mxu0 %v274_v41 }
  0x9c   :  { %3300 = vmatprep.subr.bf16.mxu0 %v275_v13  ;;  %v276_v11 = vpack.c.bf16 %v4017_v14, %v4020_v16 }
  0x9d   :  { %v223_v6 = vpop.permute.xlu1 %222  ;;  %v218_v7 = vpop.permute.xlu0 %217 }
  0x9e   :  { %v4025_v12 = vmul.f32 %v3958_v1, %v223_v6  ;;  %v4028_v15 = vmul.f32 %v3958_v1, %v218_v7 }
  0x9f   :  { %3301 = vmatpush3.bf16.msra.mxu0 %v275_v13 }
  0xa0   :  { %3302 = vmatprep.subr.bf16.mxu0 %v276_v11  ;;  %v277_v20 = vpack.c.bf16 %v4025_v12, %v4028_v15 }
  0xa1   :  { %v4030_v17 = vpop.permute.xlu1 %612 }
  0xa2   :  { %6353 = vst [vmem:[#allocation2_spill] sm:$0xff] %v4030_v17 }
  0xa3   :  { %3303 = vmatpush3.bf16.msra.mxu0 %v276_v11 }
  0xa4   :  { %3304 = vmatprep.subr.bf16.mxu0 %v277_v20 }
  0xa5   :  { %v4037_v22 = vpop.permute.xlu1 %617 }
  0xa6   :  { %6354 = vst [vmem:[#allocation3_spill] sm:$0xff] %v4037_v22 }
  0xa7   :  { %3305 = vmatpush3.bf16.msra.mxu0 %v277_v20 }
  0xa8   :  { %3374 = vmatprep.subr.bf16.mxu0 %v3570_v21 }
  0xa9   :  { %v4052_v28 = vpop.permute.xlu1 %622 }
  0xaa   :  { %6357 = vst [vmem:[#allocation6_spill] sm:$0xff] %v4052_v28  ;;  %3307 = vmatmul.mubr.bf16.vlgmr.msra.gmra.mrb[0].mxu0 %v4042_v23 }
  0xab   :  { %3310 = vmatprep.mubr.bf16.mxu0 %v4047_v24  ;;  %3375 = vmatpush3.bf16.msra.mxu0 %v3570_v21 }
  0xac   :  { %3376 = vmatprep.subr.bf16.mxu0 %v3571_v27 }
  0xad   :  { %v4056_v29 = vpop.permute.xlu1 %627 }
  0xae   :  { %6358 = vst [vmem:[#allocation7_spill] sm:$0xff] %v4056_v29 }
  0xaf   :  { %3377 = vmatpush3.bf16.msra.mxu0 %v3571_v27  ;;  %v4157_v27 = vld [vmem:[%s6183_s5] sm:$0xff]  }
  0xb0   :  { %6393 = vst [vmem:[#allocation42_spill] sm:$0xff] %v4157_v27  ;;  %3322 = vmatprep.subr.bf16.mxu1 %v4157_v27 }
  0xb1   :  { %v4068_v34 = vpop.permute.xlu1 %632  ;;  %3323 = vmatpush3.bf16.msra.mxu1 %v4157_v27  ;;  %v4168_v27 = vld [vmem:[%s6184_s4] ss:$0 sm:$0xff] }
  0xb2   :  { %6361 = vst [vmem:[#allocation10_spill] sm:$0xff] %v4068_v34  ;;  %3311 = vmatmul.mubr.bf16.gmra.mrb[4].mxu0 %v4061_v32 }
  0xb3   :  { %3314 = vmatprep.mubr.bf16.mxu0 %v4066_v33 }
  0xb5   :  { %v4072_v37 = vpop.permute.xlu1 %637 }
  0xb6   :  { %6362 = vst [vmem:[#allocation11_spill] sm:$0xff] %v4072_v37 }
  0xb9   :  { %v4084_v2 = vpop.permute.xlu1 %642 }
  0xba   :  { %6365 = vst [vmem:[#allocation14_spill] sm:$0xff] %v4084_v2  ;;  %3315 = vmatmul.mubr.bf16.gmra.mrb[8].mxu0 %v4077_v38 }
  0xbb   :  { %3318 = vmatprep.mubr.bf16.mxu0 %v4082_v0 }
  0xbd   :  { %v4088_v4 = vpop.permute.xlu1 %647 }
  0xbe   :  { %6366 = vst [vmem:[#allocation15_spill] sm:$0xff] %v4088_v4 }
  0xc1   :  { %v4095_v8 = vpop.permute.xlu1 %657 }
  0xc2   :  { %6368 = vst [vmem:[#allocation17_spill] sm:$0xff] %v4095_v8  ;;  %3319 = vmatmul.mubr.bf16.gmra.mrb[12].mxu0 %v4093_v3 }
  0xc5   :  { %v4098_v39 = vpop.permute.xlu1 %662 }
  0xc6   :  { %6369 = vst [vmem:[#allocation18_spill] sm:$0xff] %v4098_v39 }
  0xc9   :  { %v4100_v43 = vpop.permute.xlu1 %667 }
  0xca   :  { %6370 = vst [vmem:[#allocation19_spill] sm:$0xff] %v4100_v43  ;;  %v100_v26 = vpop.xlane.xlu0 %99 }
  0xcd   :  { %v4102_v44 = vpop.permute.xlu1 %672 }
  0xce   :  { %6371 = vst [vmem:[#allocation20_spill] sm:$0xff] %v4102_v44 }
  0xd1   :  { %v4104_v45 = vpop.permute.xlu1 %677 }
  0xd2   :  { %6372 = vst [vmem:[#allocation21_spill] sm:$0xff] %v4104_v45  ;;  %v4106_v46 = vpop.permute.xlu0 %652 }
  0xd3   :  { %6373 = vst [vmem:[#allocation22_spill] sm:$0xff] %v4106_v46 }
  0xd5   :  { %v4108_v47 = vpop.permute.xlu1 %682 }
  0xd6   :  { %v4110_v25 = vpop.permute.xlu0 %687 }
  0xd9   :  { %v4112_v50 = vpop.permute.xlu1 %942 }
  0xda   :  { %6374 = vst [vmem:[#allocation23_spill] sm:$0xff] %v4112_v50  ;;  %v4114_v51 = vpop.permute.xlu0 %945  ;;  %vm989_vm2 = vcmp.eq.s32.totalorder %v4112_v50, 1 }
  0xdb   :  { %6375 = vst [vmem:[#allocation24_spill] sm:$0xff] %v4114_v51  ;;  %vm990_vm3 = vcmp.eq.s32.totalorder %v4114_v51, 1 }
  0xdd   :  { %v4116_v31 = vpop.permute.xlu1 %948 }
  0xde   :  { %6376 = vst [vmem:[#allocation25_spill] sm:$0xff] %v4116_v31  ;;  %v4118_v53 = vpop.permute.xlu0 %951  ;;  %vm991_vm4 = vcmp.eq.s32.totalorder %v4116_v31, 1 }
  0xdf   :  { %6377 = vst [vmem:[#allocation26_spill] sm:$0xff] %v4118_v53  ;;  %vm992_vm5 = vcmp.eq.s32.totalorder %v4118_v53, 1 }
  0xe1   :  { %v4120_v56 = vpop.permute.xlu1 %954 }
  0xe2   :  { %6378 = vst [vmem:[#allocation27_spill] sm:$0xff] %v4120_v56  ;;  %v4122_v30 = vpop.permute.xlu0 %957  ;;  %vm993_vm6 = vcmp.eq.s32.totalorder %v4120_v56, 1 }
  0xe3   :  { %6379 = vst [vmem:[#allocation28_spill] sm:$0xff] %v4122_v30  ;;  %vm994_vm7 = vcmp.eq.s32.totalorder %v4122_v30, 1 }
  0xe5   :  { %v4124_v57 = vpop.permute.xlu1 %960 }
  0xe6   :  { %6380 = vst [vmem:[#allocation29_spill] sm:$0xff] %v4124_v57  ;;  %v4126_v58 = vpop.permute.xlu0 %963  ;;  %vm995_vm8 = vcmp.eq.s32.totalorder %v4124_v57, 1 }
  0xe7   :  { %6381 = vst [vmem:[#allocation30_spill] sm:$0xff] %v4126_v58  ;;  %vm996_vm9 = vcmp.eq.s32.totalorder %v4126_v58, 1 }
  0xe9   :  { %v4128_v36 = vpop.permute.xlu1 %966 }
  0xea   :  { %6382 = vst [vmem:[#allocation31_spill] sm:$0xff] %v4128_v36  ;;  %v4130_v61 = vpop.permute.xlu0 %969  ;;  %vm997_vm10 = vcmp.eq.s32.totalorder %v4128_v36, 1 }
  0xeb   :  { %6383 = vst [vmem:[#allocation32_spill] sm:$0xff] %v4130_v61 }
  0xed   :  { %v4132_v35 = vpop.permute.xlu1 %972 }
  0xee   :  { %6384 = vst [vmem:[#allocation33_spill] sm:$0xff] %v4132_v35  ;;  %v4134_v62 = vpop.permute.xlu0 %975 }
  0xef   :  { %6385 = vst [vmem:[#allocation34_spill] sm:$0xff] %v4134_v62 }
  0xf1   :  { %v4136_v41 = vpop.permute.xlu1 %978 }
  0xf2   :  { %6386 = vst [vmem:[#allocation35_spill] sm:$0xff] %v4136_v41  ;;  %v4138_v10 = vpop.permute.xlu0 %981 }
  0xf3   :  { %6387 = vst [vmem:[#allocation36_spill] sm:$0xff] %v4138_v10 }
  0xf5   :  { %v4140_v40 = vpop.permute.xlu1 %984 }
  0xf6   :  { %6388 = vst [vmem:[#allocation37_spill] sm:$0xff] %v4140_v40  ;;  %v4142_v13 = vpop.permute.xlu0 %987 }
  0xf7   :  { %6389 = vst [vmem:[#allocation38_spill] sm:$0xff] %v4142_v13 }
  0xf9   :  { %v1781_v6 = vpop.permute.xlu1 %1780 }
  0xfa   :  { %v4145_v7 = vmul.f32 %v3958_v1, %v1781_v6  ;;  %v1786_v11 = vpop.permute.xlu0 %1785  ;;  %v101_v6 = vrot.slane %v100_v26, 4 }
  0xfb   :  { %v4148_v20 = vmul.f32 %v3958_v1, %v1786_v11  ;;  %v3573_v1 = vld [vmem:[%s6183_s5 + $0x8] sm:$0xff]  }
  0xfc   :  { %6390 = vst [vmem:[#allocation39_spill] sm:$0xff] %v4145_v7  ;;  %3324 = vmatprep.subr.bf16.mxu1 %v3573_v1  ;;  %v102_v11 = vadd.f32 %v101_v6, %v100_v26  ;;  %v256_v26 = vadd.f32 %v4168_v27, %v3962_v5 }
  0xfd   :  { %6391 = vst [vmem:[#allocation40_spill] sm:$0xff] %v4148_v20  ;;  %v4152_v21 = vpack.c.bf16 %v4148_v20, %v4145_v7  ;;  %3325 = vmatpush3.bf16.msra.mxu1 %v3573_v1 }
  0xfe   :  { %v103_v20 = vrot.slane %v102_v11, 2 }
  0xff   :  { %6392 = vst [vmem:[#allocation41_spill] sm:$0xff] %v4152_v21  ;;  %3414 = vmatprep.subr.bf16.mxu0 %v4152_v21 }
 0x100   :  { %v104_v7 = vadd.f32 %v103_v20, %v102_v11  ;;  %v257_v20 = vadd.f32 %v4168_v27, %v3968_v19  ;;  %v258_v19 = vadd.f32 %v4168_v27, %v3983_v49 }
 0x102   :  { %v105_v3 = vrot.slane %v104_v7, 1 }
 0x104   :  { %v106_v0 = vadd.f32 %v105_v3, %v104_v7  ;;  %v254_v3 = vadd.f32 %v4168_v27, %v3965_v42  ;;  %v260_v42 = vadd.f32 %v4168_v27, %v3993_v55 }
 0x106   :  { %3554 = vpush %v106_v0 }
 0x137   :  { %s3555_s28 = spop %3554 }
 0x138   :  { %s108_s30 = smax.f32 %s3607_s29, %s3555_s28 }
 0x139   :  { %v109_v21 = vstv %s108_s30 }
 0x13a   :  { %3576 = vrcp.f32 %v109_v21 }
 0x144   :  { %v3577_v38 = vpop.eup %3576 }
 0x145   :  { %3556 = vpush %v3577_v38  ;;  %v255_v38 = vadd.f32 %v4168_v27, %v3971_v18  ;;  %v261_v18 = vadd.f32 %v4168_v27, %v3990_v54  ;;  %v264_v54 = vadd.f32 %v4168_v27, %v4012_v9 }
 0x176   :  { %s3557_s20 = spop %3556 }
 0x17d   :  { %v3308_v1 = vpop.f32.mrb[0].mxu0 }
 0x17e   :  { %v425_v0 = vadd.f32 %v3308_v1, %v256_v26  ;;  %v360_v7 = vpop.f32.mrb[1].mxu0 }
 0x17f   :  { %v423_v21 = vadd.f32 %v360_v7, %v254_v3  ;;  %v3309_v6 = vpop.f32.mrb[2].mxu0 }
 0x180   :  { %v426_v11 = vadd.f32 %v3309_v6, %v257_v20  ;;  %v363_v33 = vpop.f32.mrb[3].mxu0  ;;  %v441_v24 = vmax.f32 %v425_v0, 0.0 }
 0x181   :  { %v424_v32 = vadd.f32 %v363_v33, %v255_v38  ;;  %v439_v5 = vmax.f32 %v423_v21, 0.0 }
 0x182   :  { %v442_v23 = vmax.f32 %v426_v11, 0.0 }
 0x183   :  { %v440_v13 = vmax.f32 %v424_v32, 0.0 }
 0x184   :  { %v456_v40 = vpack.c.bf16 %v442_v23, %v441_v24  ;;  %v259_v23 = vadd.f32 %v4168_v27, %v3980_v48 }
 0x185   :  { %v3312_v26 = vpop.f32.mrb[4].mxu0  ;;  %v455_v1 = vpack.c.bf16 %v440_v13, %v439_v5  ;;  %v262_v5 = vadd.f32 %v4168_v27, %v4003_v60 }
 0x186   :  { %v429_v3 = vadd.f32 %v3312_v26, %v260_v42  ;;  %v376_v7 = vpop.f32.mrb[5].mxu0  ;;  %v265_v26 = vadd.f32 %v4168_v27, %v4009_v63  ;;  %v268_v63 = vadd.f32 %v4168_v27, %v4028_v15 }
 0x187   :  { %v427_v33 = vadd.f32 %v376_v7, %v258_v19  ;;  %v3313_v0 = vpop.f32.mrb[6].mxu0  ;;  %3326 = vmatprep.mubr.msk.bf16.mxu1 %vm6351_vm1, %v455_v1  ;;  %v263_v1 = vadd.f32 %v4168_v27, %v4000_v59 }
 0x188   :  { %v430_v24 = vadd.f32 %v3313_v0, %v261_v18  ;;  %v379_v55 = vpop.f32.mrb[7].mxu0  ;;  %3327 = vmatmul.mubr.msk.bf16.vlgmr.msra.gmra.mrb[0].mxu1 %vm6351_vm1, %v456_v40  ;;  %v445_v20 = vmax.f32 %v429_v3, 0.0 }
 0x189   :  { %v428_v32 = vadd.f32 %v379_v55, %v259_v23  ;;  %v443_v13 = vmax.f32 %v427_v33, 0.0 }
 0x18a   :  { %v446_v49 = vmax.f32 %v430_v24, 0.0 }
 0x18b   :  { %v444_v21 = vmax.f32 %v428_v32, 0.0  ;;  %v266_v32 = vadd.f32 %v4168_v27, %v4020_v16 }
 0x18c   :  { %v458_v6 = vpack.c.bf16 %v446_v49, %v445_v20  ;;  %v269_v49 = vadd.f32 %v4168_v27, %v4025_v12 }
 0x18d   :  { %v457_v38 = vpack.c.bf16 %v444_v21, %v443_v13  ;;  %v3316_v11 = vpop.f32.mrb[8].mxu0 }
 0x18e   :  { %v433_v42 = vadd.f32 %v3316_v11, %v264_v54  ;;  %v392_v48 = vpop.f32.mrb[9].mxu0 }
 0x18f   :  { %v431_v40 = vadd.f32 %v392_v48, %v262_v5  ;;  %v3317_v19 = vpop.f32.mrb[10].mxu0  ;;  %3330 = vmatprep.mubr.msk.bf16.mxu1 %vm6351_vm1, %v457_v38 }
 0x190   :  { %v434_v3 = vadd.f32 %v3317_v19, %v265_v26  ;;  %v395_v7 = vpop.f32.mrb[11].mxu0  ;;  %3331 = vmatmul.mubr.msk.bf16.gmra.mrb[4].mxu1 %vm6351_vm1, %v458_v6  ;;  %v449_v18 = vmax.f32 %v433_v42, 0.0  ;;  %v267_v6 = vadd.f32 %v4168_v27, %v4017_v14  ;;  %v4214_v14 = vld [vmem:[%s6185_s6] ss:$0 sm:$0xff] }
 0x191   :  { %v432_v9 = vadd.f32 %v395_v7, %v263_v1  ;;  %v447_v60 = vmax.f32 %v431_v40, 0.0 }
 0x192   :  { %v450_v33 = vmax.f32 %v434_v3, 0.0 }
 0x193   :  { %v448_v0 = vmax.f32 %v432_v9, 0.0 }
 0x194   :  { %v460_v23 = vpack.c.bf16 %v450_v33, %v449_v18 }
 0x195   :  { %v459_v24 = vpack.c.bf16 %v448_v0, %v447_v60  ;;  %v3320_v55 = vpop.f32.mrb[12].mxu0 }
 0x196   :  { %v437_v20 = vadd.f32 %v3320_v55, %v268_v63  ;;  %v408_v59 = vpop.f32.mrb[13].mxu0 }
 0x197   :  { %v435_v13 = vadd.f32 %v408_v59, %v266_v32  ;;  %v3321_v21 = vpop.f32.mrb[14].mxu0  ;;  %3334 = vmatprep.mubr.msk.bf16.mxu1 %vm6351_vm1, %v459_v24 }
 0x198   :  { %v438_v54 = vadd.f32 %v3321_v21, %v269_v49  ;;  %v411_v38 = vpop.f32.mrb[15].mxu0  ;;  %3335 = vmatmul.mubr.msk.bf16.gmra.mrb[8].mxu1 %vm6351_vm1, %v460_v23  ;;  %v453_v11 = vmax.f32 %v437_v20, 0.0 }
 0x199   :  { %v436_v15 = vadd.f32 %v411_v38, %v267_v6  ;;  %v451_v16 = vmax.f32 %v435_v13, 0.0 }
 0x19a   :  { %v454_v5 = vmax.f32 %v438_v54, 0.0 }
 0x19b   :  { %v452_v42 = vmax.f32 %v436_v15, 0.0 }
 0x19c   :  { %v462_v48 = vpack.c.bf16 %v454_v5, %v453_v11 }
 0x19d   :  { %v461_v26 = vpack.c.bf16 %v452_v42, %v451_v16 }
 0x19f   :  { %3338 = vmatprep.mubr.msk.bf16.mxu1 %vm6351_vm1, %v461_v26 }
 0x1a0   :  { %3339 = vmatmul.mubr.msk.bf16.gmra.mrb[12].mxu1 %vm6351_vm1, %v462_v48 }
 0x1a1   :  { %3358 = vmatprep.mubr.bf16.mxu1 %v3880_v52 }
 0x25b   :  { %v3328_v12 = vpop.f32.mrb[0].mxu1 }
 0x25c   :  { %v554_v27 = vadd.f32 %v3328_v12, %v4214_v14  ;;  %v545_v40 = vpop.f32.mrb[1].mxu1 }
 0x25d   :  { %v546_v19 = vadd.f32 %v4214_v14, %v545_v40  ;;  %v3329_v1 = vpop.f32.mrb[2].mxu1 }
 0x25e   :  { %v557_v3 = vadd.f32 %v3329_v1, %v4214_v14  ;;  %v548_v7 = vpop.f32.mrb[3].mxu1  ;;  %v4220_v9 = vmul.f32 %v4052_v28, %v554_v27 }
 0x25f   :  { %v4223_v52 = vmul.f32 %v4030_v17, %v546_v19  ;;  %v549_v18 = vadd.f32 %v4214_v14, %v548_v7 }
 0x260   :  { %v4229_v60 = vmul.f32 %v4056_v29, %v557_v3  ;;  %v708_v23 = vmul.f32 %v4220_v9, %v4052_v28 }
 0x261   :  { %v706_v33 = vmul.f32 %v4223_v52, %v4030_v17  ;;  %v4232_v0 = vmul.f32 %v4037_v22, %v549_v18 }
 0x262   :  { %v709_v59 = vmul.f32 %v4229_v60, %v4056_v29  ;;  %v725_v15 = vsel %vm6351_vm1, %v708_v23, 0.0 }
 0x263   :  { %v707_v63 = vmul.f32 %v4232_v0, %v4037_v22  ;;  %v3332_v24 = vpop.f32.mrb[4].mxu1  ;;  %v722_v20 = vsel %vm6351_vm1, %v706_v33, 0.0 }
 0x264   :  { %v570_v55 = vadd.f32 %v3332_v24, %v4214_v14  ;;  %v561_v32 = vpop.f32.mrb[5].mxu1  ;;  %v727_v48 = vsel %vm6351_vm1, %v709_v59, 0.0 }
 0x265   :  { %v723_v49 = vsel %vm6351_vm1, %v707_v63, 0.0  ;;  %v562_v13 = vadd.f32 %v4214_v14, %v561_v32  ;;  %v3333_v21 = vpop.f32.mrb[6].mxu1 }
 0x266   :  { %v724_v6 = vadd.f32 %v723_v49, %v722_v20  ;;  %v573_v54 = vadd.f32 %v3333_v21, %v4214_v14  ;;  %v564_v38 = vpop.f32.mrb[7].mxu1  ;;  %v4247_v11 = vmul.f32 %v4084_v2, %v570_v55 }
 0x267   :  { %v4250_v5 = vmul.f32 %v4068_v34, %v562_v13  ;;  %v565_v16 = vadd.f32 %v4214_v14, %v564_v38 }
 0x268   :  { %v726_v42 = vadd.f32 %v725_v15, %v724_v6  ;;  %v4257_v12 = vmul.f32 %v4088_v4, %v573_v54  ;;  %v712_v19 = vmul.f32 %v4247_v11, %v4084_v2 }
 0x269   :  { %v710_v26 = vmul.f32 %v4250_v5, %v4068_v34  ;;  %v4260_v27 = vmul.f32 %v4072_v37, %v565_v16 }
 0x26a   :  { %v728_v40 = vadd.f32 %v727_v48, %v726_v42  ;;  %v713_v63 = vmul.f32 %v4257_v12, %v4088_v4  ;;  %v733_v13 = vsel %vm6351_vm1, %v712_v19, 0.0 }
 0x26b   :  { %v729_v1 = vsel %vm6351_vm1, %v710_v26, 0.0  ;;  %v711_v3 = vmul.f32 %v4260_v27, %v4072_v37  ;;  %v3336_v7 = vpop.f32.mrb[8].mxu1 }
 0x26c   :  { %v730_v18 = vadd.f32 %v729_v1, %v728_v40  ;;  %v586_v33 = vadd.f32 %v3336_v7, %v4214_v14  ;;  %v577_v23 = vpop.f32.mrb[9].mxu1  ;;  %v735_v15 = vsel %vm6351_vm1, %v713_v63, 0.0 }
 0x26d   :  { %v731_v24 = vsel %vm6351_vm1, %v711_v3, 0.0  ;;  %v578_v55 = vadd.f32 %v4214_v14, %v577_v23  ;;  %v3337_v32 = vpop.f32.mrb[10].mxu1 }
 0x26e   :  { %v732_v20 = vadd.f32 %v731_v24, %v730_v18  ;;  %v589_v59 = vadd.f32 %v3337_v32, %v4214_v14  ;;  %v580_v49 = vpop.f32.mrb[11].mxu1  ;;  %v4275_v21 = vmul.f32 %v4098_v39, %v586_v33 }
 0x26f   :  { %v4278_v6 = vmul.f32 %v4106_v46, %v578_v55  ;;  %v581_v54 = vadd.f32 %v4214_v14, %v580_v49 }
 0x270   :  { %v734_v38 = vadd.f32 %v733_v13, %v732_v20  ;;  %v4285_v42 = vmul.f32 %v4100_v43, %v589_v59  ;;  %v716_v40 = vmul.f32 %v4275_v21, %v4098_v39 }
 0x271   :  { %v714_v16 = vmul.f32 %v4278_v6, %v4106_v46  ;;  %v4288_v48 = vmul.f32 %v4095_v8, %v581_v54 }
 0x272   :  { %v736_v26 = vadd.f32 %v735_v15, %v734_v38  ;;  %v717_v23 = vmul.f32 %v4285_v42, %v4100_v43  ;;  %v741_v49 = vsel %vm6351_vm1, %v716_v40, 0.0 }
 0x273   :  { %v737_v19 = vsel %vm6351_vm1, %v714_v16, 0.0  ;;  %v715_v1 = vmul.f32 %v4288_v48, %v4095_v8  ;;  %v3340_v3 = vpop.f32.mrb[12].mxu1 }
 0x274   :  { %v738_v7 = vadd.f32 %v737_v19, %v736_v26  ;;  %v602_v18 = vadd.f32 %v3340_v3, %v4214_v14  ;;  %v593_v33 = vpop.f32.mrb[13].mxu1  ;;  %v743_v16 = vsel %vm6351_vm1, %v717_v23, 0.0 }
 0x275   :  { %v739_v63 = vsel %vm6351_vm1, %v715_v1, 0.0  ;;  %v594_v24 = vadd.f32 %v4214_v14, %v593_v33  ;;  %v3341_v55 = vpop.f32.mrb[14].mxu1 }
 0x276   :  { %v740_v32 = vadd.f32 %v739_v63, %v738_v7  ;;  %v605_v20 = vadd.f32 %v3341_v55, %v4214_v14  ;;  %v596_v59 = vpop.f32.mrb[15].mxu1  ;;  %v4303_v13 = vmul.f32 %v4108_v47, %v602_v18 }
 0x277   :  { %v4306_v54 = vmul.f32 %v4102_v44, %v594_v24  ;;  %v597_v38 = vadd.f32 %v4214_v14, %v596_v59 }
 0x278   :  { %v742_v15 = vadd.f32 %v741_v49, %v740_v32  ;;  %v4313_v19 = vmul.f32 %v4110_v25, %v605_v20  ;;  %v720_v3 = vmul.f32 %v4303_v13, %v4108_v47 }
 0x279   :  { %v718_v26 = vmul.f32 %v4306_v54, %v4102_v44  ;;  %v4316_v1 = vmul.f32 %v4104_v45, %v597_v38 }
 0x27a   :  { %v744_v40 = vadd.f32 %v743_v16, %v742_v15  ;;  %v721_v33 = vmul.f32 %v4313_v19, %v4110_v25  ;;  %v749_v24 = vsel %vm6351_vm1, %v720_v3, 0.0 }
 0x27b   :  { %v745_v7 = vsel %vm6351_vm1, %v718_v26, 0.0  ;;  %v719_v14 = vmul.f32 %v4316_v1, %v4104_v45 }
 0x27c   :  { %v746_v18 = vadd.f32 %v745_v7, %v744_v40  ;;  %v751_v32 = vsel %vm6351_vm1, %v721_v33, 0.0  ;;  %v4328_v40 = vstv %s3557_s20 }
 0x27d   :  { %v747_v23 = vsel %vm6351_vm1, %v719_v14, 0.0 }
 0x27e   :  { %v748_v63 = vadd.f32 %v747_v23, %v746_v18 }
 0x280   :  { %v750_v55 = vadd.f32 %v749_v24, %v748_v63 }
 0x282   :  { %v752_v20 = vadd.f32 %v751_v32, %v750_v55 }
 0x284   :  { %v753_v59 = vrot.slane %v752_v20, 4 }
 0x286   :  { %v754_v49 = vadd.f32 %v753_v59, %v752_v20 }
 0x288   :  { %v755_v38 = vrot.slane %v754_v49, 2 }
 0x28a   :  { %v756_v15 = vadd.f32 %v755_v38, %v754_v49 }
 0x28c   :  { %v757_v16 = vrot.slane %v756_v15, 1 }
 0x28e   :  { %v758_v26 = vadd.f32 %v757_v16, %v756_v15 }
 0x290   :  { %v760_v7 = vmul.f32 %v4328_v40, %v758_v26 }
 0x292   :  { %v4332_v14 = vsub.f32 %v4223_v52, %v760_v7  ;;  %v4335_v3 = vsub.f32 %v4232_v0, %v760_v7  ;;  %v4338_v18 = vsub.f32 %v4220_v9, %v760_v7  ;;  %v4341_v33 = vsub.f32 %v4229_v60, %v760_v7 }
 0x293   :  { %v4348_v24 = vsub.f32 %v4250_v5, %v760_v7  ;;  %v4353_v32 = vsub.f32 %v4260_v27, %v760_v7  ;;  %v4360_v38 = vsub.f32 %v4247_v11, %v760_v7  ;;  %v4366_v26 = vsub.f32 %v4257_v12, %v760_v7 }
 0x294   :  { %v777_v23 = vmul.f32 %v4332_v14, %v4332_v14  ;;  %v778_v63 = vmul.f32 %v4335_v3, %v4335_v3  ;;  %v779_v55 = vmul.f32 %v4338_v18, %v4338_v18  ;;  %v780_v20 = vmul.f32 %v4341_v33, %v4341_v33 }
 0x295   :  { %v781_v15 = vmul.f32 %v4348_v24, %v4348_v24  ;;  %v782_v10 = vmul.f32 %v4353_v32, %v4353_v32  ;;  %v783_v62 = vmul.f32 %v4360_v38, %v4360_v38  ;;  %v4381_v61 = vsub.f32 %v4288_v48, %v760_v7 }
 0x296   :  { %v793_v59 = vmul.f32 %v777_v23, %v4030_v17  ;;  %v794_v49 = vmul.f32 %v778_v63, %v4037_v22  ;;  %v795_v16 = vmul.f32 %v779_v55, %v4052_v28  ;;  %v796_v41 = vmul.f32 %v780_v20, %v4056_v29 }
 0x297   :  { %v4374_v17 = vsub.f32 %v4278_v6, %v760_v7  ;;  %v797_v55 = vmul.f32 %v781_v15, %v4068_v34  ;;  %v784_v20 = vmul.f32 %v4366_v26, %v4366_v26  ;;  %v4395_v34 = vsub.f32 %v4285_v42, %v760_v7 }
 0x298   :  { %v809_v23 = vsel %vm6351_vm1, %v793_v59, 0.0  ;;  %v810_v63 = vsel %vm6351_vm1, %v794_v49, 0.0  ;;  %v812_v28 = vsel %vm6351_vm1, %v795_v16, 0.0  ;;  %v798_v59 = vmul.f32 %v782_v10, %v4072_v37 }
 0x299   :  { %v811_v22 = vadd.f32 %v810_v63, %v809_v23  ;;  %v814_v49 = vsel %vm6351_vm1, %v796_v41, 0.0  ;;  %v4388_v63 = vsub.f32 %v4275_v21, %v760_v7  ;;  %v785_v15 = vmul.f32 %v4374_v17, %v4374_v17 }
 0x29a   :  { %v799_v16 = vmul.f32 %v783_v62, %v4084_v2  ;;  %v786_v10 = vmul.f32 %v4381_v61, %v4381_v61  ;;  %v800_v41 = vmul.f32 %v784_v20, %v4088_v4  ;;  %v4402_v37 = vsub.f32 %v4306_v54, %v760_v7 }
 0x29b   :  { %v813_v35 = vadd.f32 %v812_v28, %v811_v22  ;;  %v816_v22 = vsel %vm6351_vm1, %v797_v55, 0.0  ;;  %v787_v62 = vmul.f32 %v4388_v63, %v4388_v63  ;;  %v801_v55 = vmul.f32 %v785_v15, %v4106_v46 }
 0x29c   :  { %v4409_v2 = vsub.f32 %v4316_v1, %v760_v7  ;;  %v788_v20 = vmul.f32 %v4395_v34, %v4395_v34  ;;  %v4416_v4 = vsub.f32 %v4303_v13, %v760_v7  ;;  %v789_v15 = vmul.f32 %v4402_v37, %v4402_v37 }
 0x29d   :  { %v815_v23 = vadd.f32 %v814_v49, %v813_v35  ;;  %v818_v35 = vsel %vm6351_vm1, %v798_v59, 0.0  ;;  %v802_v59 = vmul.f32 %v786_v10, %v4095_v8  ;;  %v4423_v46 = vsub.f32 %v4313_v19, %v760_v7 }
 0x29e   :  { %v790_v10 = vmul.f32 %v4409_v2, %v4409_v2  ;;  %v791_v8 = vmul.f32 %v4416_v4, %v4416_v4  ;;  %v805_v29 = vmul.f32 %v789_v15, %v4102_v44 }
 0x29f   :  { %v817_v28 = vadd.f32 %v816_v22, %v815_v23  ;;  %v820_v23 = vsel %vm6351_vm1, %v799_v16, 0.0  ;;  %v803_v16 = vmul.f32 %v787_v62, %v4098_v39  ;;  %v792_v7 = vmul.f32 %v4423_v46, %v4423_v46 }
 0x2a1   :  { %v819_v49 = vadd.f32 %v818_v35, %v817_v28  ;;  %v822_v28 = vsel %vm6351_vm1, %v800_v41, 0.0  ;;  %v804_v41 = vmul.f32 %v788_v20, %v4100_v43  ;;  %v828_v62 = vsel %vm6351_vm1, %v803_v16, 0.0 }
 0x2a2   :  { %v807_v20 = vmul.f32 %v791_v8, %v4108_v47 }
 0x2a3   :  { %v821_v22 = vadd.f32 %v820_v23, %v819_v49  ;;  %v824_v49 = vsel %vm6351_vm1, %v801_v55, 0.0 }
 0x2a4   :  { %v836_v16 = vsel %vm6351_vm1, %v807_v20, 0.0 }
 0x2a5   :  { %v823_v35 = vadd.f32 %v822_v28, %v821_v22  ;;  %v826_v22 = vsel %vm6351_vm1, %v802_v59, 0.0  ;;  %v832_v59 = vsel %vm6351_vm1, %v805_v29, 0.0 }
 0x2a7   :  { %v825_v23 = vadd.f32 %v824_v49, %v823_v35  ;;  %v806_v35 = vmul.f32 %v790_v10, %v4104_v45  ;;  %v830_v49 = vsel %vm6351_vm1, %v804_v41, 0.0 }
 0x2a9   :  { %v827_v28 = vadd.f32 %v826_v22, %v825_v23  ;;  %v808_v22 = vmul.f32 %v792_v7, %v4110_v25  ;;  %v834_v15 = vsel %vm6351_vm1, %v806_v35, 0.0 }
 0x2ab   :  { %v829_v55 = vadd.f32 %v828_v62, %v827_v28  ;;  %v838_v62 = vsel %vm6351_vm1, %v808_v22, 0.0 }
 0x2ad   :  { %v831_v39 = vadd.f32 %v830_v49, %v829_v55 }
 0x2af   :  { %v833_v23 = vadd.f32 %v832_v59, %v831_v39  ;;  %v4468_v59 = vld [vmem:[%s6187_s8] ss:$0 sm:$0xff] }
 0x2b1   :  { %v835_v44 = vadd.f32 %v834_v15, %v833_v23 }
 0x2b3   :  { %v837_v28 = vadd.f32 %v836_v16, %v835_v44 }
 0x2b5   :  { %v839_v43 = vadd.f32 %v838_v62, %v837_v28 }
 0x2b7   :  { %v840_v10 = vrot.slane %v839_v43, 4 }
 0x2b9   :  { %v841_v45 = vadd.f32 %v840_v10, %v839_v43  ;;  %v4455_v43 = vld [vmem:[%s6186_s7] ss:$0 sm:$0xff] }
 0x2bb   :  { %v842_v41 = vrot.slane %v841_v45, 2 }
 0x2bd   :  { %v843_v55 = vadd.f32 %v842_v41, %v841_v45 }
 0x2bf   :  { %v844_v49 = vrot.slane %v843_v55, 1 }
 0x2c1   :  { %v845_v8 = vadd.f32 %v844_v49, %v843_v55 }
 0x2c3   :  { %v846_v29 = vmul.f32 %v845_v8, %v4328_v40 }
 0x2c5   :  { %v847_v39 = vadd.f32 1e-05, %v846_v29 }
 0x2c7   :  { %3578 = vrsqrt.f32 %v847_v39 }
 0x2d1   :  { %v4446_v7 = vpop.eup %3578 }
 0x2d2   :  { %v849_v44 = vmul.f32 %v4446_v7, %v4332_v14  ;;  %v850_v45 = vmul.f32 %v4446_v7, %v4335_v3  ;;  %v851_v35 = vmul.f32 %v4446_v7, %v4338_v18  ;;  %v852_v20 = vmul.f32 %v4446_v7, %v4341_v33 }
 0x2d3   :  { %v853_v23 = vmul.f32 %v4446_v7, %v4348_v24  ;;  %v854_v14 = vmul.f32 %v4446_v7, %v4353_v32  ;;  %v855_v3 = vmul.f32 %v4446_v7, %v4360_v38  ;;  %v856_v18 = vmul.f32 %v4446_v7, %v4366_v26 }
 0x2d4   :  { %v871_v22 = vmul.f32 %v4455_v43, %v849_v44  ;;  %v872_v33 = vmul.f32 %v4455_v43, %v850_v45  ;;  %v873_v15 = vmul.f32 %v4455_v43, %v851_v35  ;;  %v874_v16 = vmul.f32 %v4455_v43, %v852_v20 }
 0x2d5   :  { %v875_v28 = vmul.f32 %v4455_v43, %v853_v23  ;;  %v876_v24 = vmul.f32 %v4455_v43, %v854_v14  ;;  %v877_v32 = vmul.f32 %v4455_v43, %v855_v3  ;;  %v878_v62 = vmul.f32 %v4455_v43, %v856_v18 }
 0x2d6   :  { %v893_v38 = vadd.f32 %v4468_v59, %v871_v22  ;;  %v894_v26 = vadd.f32 %v4468_v59, %v872_v33  ;;  %v895_v10 = vadd.f32 %v4468_v59, %v873_v15  ;;  %v896_v41 = vadd.f32 %v4468_v59, %v874_v16 }
 0x2d7   :  { %v897_v55 = vadd.f32 %v4468_v59, %v875_v28  ;;  %v898_v49 = vadd.f32 %v4468_v59, %v876_v24  ;;  %v899_v8 = vadd.f32 %v4468_v59, %v877_v32  ;;  %v900_v29 = vadd.f32 %v4468_v59, %v878_v62  ;;  %v6400_v24 = vld [vmem:[#allocation32_spill] sm:$0xff] }
 0x2d8   :  { %v1005_v39 = vsel %vm989_vm2, %v893_v38, %v4223_v52  ;;  %v1006_v44 = vsel %vm990_vm3, %v894_v26, %v4232_v0  ;;  %v1007_v45 = vsel %vm991_vm4, %v895_v10, %v4220_v9  ;;  %v1008_v35 = vsel %vm992_vm5, %v896_v41, %v4229_v60 }
 0x2d9   :  { %v4506_v20 = vmax.f32 %v1005_v39, 0.0  ;;  %v4508_v23 = vmax.f32 %v1006_v44, 0.0  ;;  %v4510_v14 = vmax.f32 %v1007_v45, 0.0  ;;  %v4512_v3 = vmax.f32 %v1008_v35, 0.0  ;;  %v6403_v44 = vld [vmem:[#allocation33_spill] sm:$0xff] }
 0x2da   :  { %v1009_v9 = vsel %vm993_vm6, %v897_v55, %v4250_v5  ;;  %v1010_v52 = vsel %vm994_vm7, %v898_v49, %v4260_v27  ;;  %v1011_v0 = vsel %vm995_vm8, %v899_v8, %v4247_v11  ;;  %v1012_v18 = vsel %vm996_vm9, %v900_v29, %v4257_v12 }
 0x2db   :  { %6394 = vst [vmem:[#allocation43_spill] sm:$0xff] %v4506_v20  ;;  %6395 = vst [vmem:[#allocation44_spill] sm:$0xff] %v4508_v23  ;;  %v1053_v60 = vpack.c.bf16 %v4508_v23, %v4506_v20  ;;  %v4530_v22 = vmax.f32 %v1009_v9, 0.0  ;;  %v4532_v33 = vmax.f32 %v1010_v52, 0.0  ;;  %v857_v5 = vmul.f32 %v4446_v7, %v4374_v17 }
 0x2dc   :  { %6396 = vst [vmem:[#allocation45_spill] sm:$0xff] %v4510_v14  ;;  %6397 = vst [vmem:[#allocation46_spill] sm:$0xff] %v4512_v3  ;;  %v858_v27 = vmul.f32 %v4446_v7, %v4381_v61  ;;  %v1054_v15 = vpack.c.bf16 %v4512_v3, %v4510_v14  ;;  %v859_v11 = vmul.f32 %v4446_v7, %v4388_v63  ;;  %vm6284_vm11 = vcmp.eq.s32.totalorder %v6400_v24, 1 }
 0x2dd   :  { %6398 = vst [vmem:[#allocation47_spill] sm:$0xff] %v4530_v22  ;;  %6399 = vst [vmem:[#allocation48_spill] sm:$0xff] %v4532_v33  ;;  %3342 = vmatprep.subr.bf16.mxu1 %v1053_v60  ;;  %v860_v12 = vmul.f32 %v4446_v7, %v4395_v34  ;;  %v861_v16 = vmul.f32 %v4446_v7, %v4402_v37  ;;  %v879_v17 = vmul.f32 %v4455_v43, %v857_v5 }
 0x2de   :  { %3343 = vmatpush3.bf16.msra.mxu1 %v1053_v60  ;;  %v880_v61 = vmul.f32 %v4455_v43, %v858_v27  ;;  %v862_v28 = vmul.f32 %v4446_v7, %v4409_v2  ;;  %v4552_v63 = vmax.f32 %v1011_v0, 0.0  ;;  %v881_v34 = vmul.f32 %v4455_v43, %v859_v11  ;;  %v6407_v0 = vld [vmem:[#allocation35_spill] sm:$0xff] }
 0x2df   :  { %3344 = vmatprep.subr.bf16.mxu1 %v1054_v15  ;;  %v882_v32 = vmul.f32 %v4455_v43, %v860_v12  ;;  %v1055_v37 = vpack.c.bf16 %v4532_v33, %v4530_v22  ;;  %v4558_v62 = vmax.f32 %v1012_v18, 0.0  ;;  %v901_v38 = vadd.f32 %v4468_v59, %v879_v17  ;;  %v6408_v18 = vld [vmem:[#allocation36_spill] sm:$0xff]  ;;  %v6411_v12 = vld [vmem:[#allocation37_spill] sm:$0xff] }
 0x2e0   :  { %6401 = vst [vmem:[#allocation49_spill] sm:$0xff] %v4552_v63  ;;  %v902_v26 = vadd.f32 %v4468_v59, %v880_v61  ;;  %v883_v2 = vmul.f32 %v4455_v43, %v861_v16  ;;  %v884_v10 = vmul.f32 %v4455_v43, %v862_v28  ;;  %v863_v41 = vmul.f32 %v4446_v7, %v4416_v4  ;;  %v6404_v4 = vld [vmem:[#allocation34_spill] sm:$0xff] }
 0x2e1   :  { %6402 = vst [vmem:[#allocation50_spill] sm:$0xff] %v4558_v62  ;;  %v864_v55 = vmul.f32 %v4446_v7, %v4423_v46  ;;  %v1013_v49 = vsel %vm997_vm10, %v901_v38, %v4278_v6  ;;  %v903_v29 = vadd.f32 %v4468_v59, %v881_v34  ;;  %v904_v39 = vadd.f32 %v4468_v59, %v882_v32  ;;  %v6412_v16 = vld [vmem:[#allocation38_spill] sm:$0xff]  ;;  %v6418_v38 = vld [vmem:[#allocation5_spill] sm:$0xff] }
 0x2e2   :  { %3345 = vmatpush3.bf16.msra.mxu1 %v1054_v15  ;;  %v1014_v8 = vsel %vm6284_vm11, %v902_v26, %v4288_v48  ;;  %vm999_vm12 = vcmp.eq.s32.totalorder %v6403_v44, 1  ;;  %vm6240_vm13 = vcmp.eq.s32.totalorder %v6404_v4, 1  ;;  %v1056_v46 = vpack.c.bf16 %v4558_v62, %v4552_v63  ;;  %v6420_v26 = vld [vmem:[#allocation9_spill] sm:$0xff] }
 0x2e3   :  { %3346 = vmatprep.subr.bf16.mxu1 %v1055_v37  ;;  %v4580_v7 = vmax.f32 %v1013_v49, 0.0  ;;  %v4582_v45 = vmax.f32 %v1014_v8, 0.0  ;;  %v905_v6 = vadd.f32 %v4468_v59, %v883_v2  ;;  %v885_v48 = vmul.f32 %v4455_v43, %v863_v41  ;;  %v6421_v2 = vld [vmem:[#allocation12_spill] sm:$0xff]  ;;  %v3575_v49 = vld [vmem:[%s6188_s11 + $0x8] sm:$0xff]   ;;  %v6424_v8 = vld [vmem:[#allocation42_spill] sm:$0xff] }
 0x2e4   :  { %v1015_v35 = vsel %vm999_vm12, %v903_v29, %v4275_v21  ;;  %v1016_v9 = vsel %vm6240_vm13, %v904_v39, %v4285_v42  ;;  %v906_v52 = vadd.f32 %v4468_v59, %v884_v10  ;;  %v886_v60 = vmul.f32 %v4455_v43, %v864_v55  ;;  %v6422_v10 = vld [vmem:[#allocation13_spill] sm:$0xff]  ;;  %v6423_v41 = vld [vmem:[#allocation16_spill] sm:$0xff]  ;;  %v3574_v55 = vld [vmem:[%s6188_s11] sm:$0xff]   ;;  %v1791_v29 = vpop.permute.xlu1 %1790  ;;  %v1796_v39 = vpop.permute.xlu0 %1795 }
 0x2e5   :  { %6405 = vst [vmem:[#allocation51_spill] sm:$0xff] %v4580_v7  ;;  %6406 = vst [vmem:[#allocation52_spill] sm:$0xff] %v4582_v45  ;;  %vm1001_vm14 = vcmp.eq.s32.totalorder %v6407_v0, 1  ;;  %vm1002_vm15 = vcmp.eq.s32.totalorder %v6408_v18, 1  ;;  %v1057_v5 = vpack.c.bf16 %v4582_v45, %v4580_v7  ;;  %v4598_v27 = vmax.f32 %v1015_v35, 0.0 }
 0x2e6   :  { %3347 = vmatpush3.bf16.msra.mxu1 %v1055_v37  ;;  %v4600_v15 = vmax.f32 %v1016_v9, 0.0  ;;  %v1017_v21 = vsel %vm1001_vm14, %v905_v6, %v4306_v54  ;;  %v1018_v42 = vsel %vm1002_vm15, %v906_v52, %v4316_v1  ;;  %v907_v43 = vadd.f32 %v4468_v59, %v885_v48 }
 0x2e7   :  { %3348 = vmatprep.subr.bf16.mxu1 %v1056_v46  ;;  %6409 = vst [vmem:[#allocation53_spill] sm:$0xff] %v4598_v27  ;;  %v908_v11 = vadd.f32 %v4468_v59, %v886_v60  ;;  %vm1003_vm0 = vcmp.eq.s32.totalorder %v6411_v12, 1  ;;  %vm1004_vm13 = vcmp.eq.s32.totalorder %v6412_v16, 1  ;;  %v4614_v61 = vmax.f32 %v1017_v21, 0.0 }
 0x2e8   :  { %6410 = vst [vmem:[#allocation54_spill] sm:$0xff] %v4600_v15  ;;  %v1058_v17 = vpack.c.bf16 %v4600_v15, %v4598_v27  ;;  %v4616_v28 = vmax.f32 %v1018_v42, 0.0  ;;  %v1019_v54 = vsel %vm1003_vm0, %v907_v43, %v4303_v13  ;;  %v6417_v13 = vld [vmem:[#allocation4_spill] sm:$0xff]  ;;  %v1806_v6 = vpop.permute.xlu0 %1805 }
 0x2e9   :  { %6413 = vst [vmem:[#allocation55_spill] sm:$0xff] %v4614_v61  ;;  %v1020_v1 = vsel %vm1004_vm13, %v908_v11, %v4313_v19  ;;  %v4626_v34 = vmax.f32 %v1019_v54, 0.0  ;;  %v6419_v19 = vld [vmem:[#allocation8_spill] sm:$0xff] }
 0x2ea   :  { %3349 = vmatpush3.bf16.msra.mxu1 %v1056_v46  ;;  %6414 = vst [vmem:[#allocation56_spill] sm:$0xff] %v4616_v28  ;;  %v1059_v59 = vpack.c.bf16 %v4616_v28, %v4614_v61  ;;  %v4628_v32 = vmax.f32 %v1020_v1, 0.0  ;;  %v1801_v46 = vpop.permute.xlu1 %1800 }
 0x2eb   :  { %3350 = vmatprep.subr.bf16.mxu1 %v1057_v5  ;;  %6415 = vst [vmem:[#allocation57_spill] sm:$0xff] %v4626_v34 }
 0x2ec   :  { %6416 = vst [vmem:[#allocation58_spill] sm:$0xff] %v4628_v32  ;;  %v1060_v37 = vpack.c.bf16 %v4628_v32, %v4626_v34  ;;  %v1816_v52 = vpop.permute.xlu0 %1815 }
 0x2ee   :  { %3351 = vmatpush3.bf16.msra.mxu1 %v1057_v5  ;;  %v1811_v35 = vpop.permute.xlu1 %1810 }
 0x2ef   :  { %3352 = vmatprep.subr.bf16.mxu1 %v1058_v17 }
 0x2f2   :  { %3353 = vmatpush3.bf16.msra.mxu1 %v1058_v17  ;;  %v4653_v17 = vld [vmem:[%s6182_s3] ss:$0 sm:$0xff] }
 0x2f3   :  { %3354 = vmatprep.subr.bf16.mxu1 %v1059_v59  ;;  %v4656_v54 = vmul.f32 %v4653_v17, %v1791_v29  ;;  %v4659_v1 = vmul.f32 %v4653_v17, %v1796_v39 }
 0x2f6   :  { %3355 = vmatpush3.bf16.msra.mxu1 %v1059_v59 }
 0x2f7   :  { %3356 = vmatprep.subr.bf16.mxu1 %v1060_v37 }
 0x2fa   :  { %3357 = vmatpush3.bf16.msra.mxu1 %v1060_v37 }
 0x2fb   :  { %3394 = vmatprep.subr.bf16.mxu1 %v3574_v55 }
 0x2fd   :  { %3359 = vmatmul.mubr.bf16.vlgmr.msra.gmra.mrb[16].mxu1 %v6417_v13  ;;  %v1821_v13 = vpop.permute.xlu1 %1820 }
 0x2fe   :  { %3362 = vmatprep.mubr.bf16.mxu1 %v6418_v38  ;;  %3395 = vmatpush3.bf16.msra.mxu1 %v3574_v55  ;;  %v1826_v38 = vpop.permute.xlu0 %1825  ;;  %v6425_v55 = vld [vmem:[#allocation41_spill] sm:$0xff] }
 0x2ff   :  { %3396 = vmatprep.subr.bf16.mxu1 %v3575_v49 }
 0x302   :  { %3397 = vmatpush3.bf16.msra.mxu1 %v3575_v49 }
 0x303   :  { %3446 = vmatprep.subr.bf16.mxu1 %v6424_v8 }
 0x305   :  { %3363 = vmatmul.mubr.bf16.gmra.mrb[20].mxu1 %v6419_v19 }
 0x306   :  { %3366 = vmatprep.mubr.bf16.mxu1 %v6420_v26  ;;  %v1891_v26 = vpack.c.bf16 %v4659_v1, %v4656_v54 }
 0x30d   :  { %3367 = vmatmul.mubr.bf16.gmra.mrb[24].mxu1 %v6421_v2  ;;  %v4665_v2 = vmul.f32 %v4653_v17, %v1801_v46 }
 0x30e   :  { %3370 = vmatprep.mubr.bf16.mxu1 %v6422_v10  ;;  %v4668_v10 = vmul.f32 %v4653_v17, %v1806_v6 }
 0x310   :  { %v1892_v6 = vpack.c.bf16 %v4668_v10, %v4665_v2 }
 0x315   :  { %3371 = vmatmul.mubr.bf16.gmra.mrb[28].mxu1 %v6423_v41 }
 0x3d0   :  { %v3360_v48 = vpop.f32.mrb[16].mxu1 }
 0x3d1   :  { %v1095_v9 = vpop.f32.mrb[17].mxu1  ;;  %v1160_v5 = vadd.f32 %v3360_v48, %v4510_v14  ;;  %v6453_v14 = vld [vmem:[#allocation7_spill] sm:$0xff] }
 0x3d2   :  { %v3361_v60 = vpop.f32.mrb[18].mxu1  ;;  %v1158_v43 = vadd.f32 %v1095_v9, %v4506_v20  ;;  %v4679_v9 = vmul.f32 %v4653_v17, %v1811_v35  ;;  %v4691_v35 = vmul.f32 %v4653_v17, %v1826_v38  ;;  %v6454_v20 = vld [vmem:[#allocation10_spill] sm:$0xff] }
 0x3d3   :  { %v1161_v21 = vadd.f32 %v3361_v60, %v4512_v3  ;;  %v1098_v42 = vpop.f32.mrb[19].mxu1  ;;  %v4682_v60 = vmul.f32 %v4653_v17, %v1816_v52 }
 0x3d4   :  { %v1159_v11 = vadd.f32 %v1098_v42, %v4508_v23  ;;  %v1836_v42 = vpop.permute.xlu0 %1835 }
 0x3d5   :  { %v1175_v59 = vpack.c.bf16 %v1161_v21, %v1160_v5  ;;  %v1831_v5 = vpop.permute.xlu1 %1830 }
 0x3d6   :  { %v1174_v37 = vpack.c.bf16 %v1159_v11, %v1158_v43 }
 0x3d8   :  { %v3364_v19 = vpop.f32.mrb[20].mxu1  ;;  %3378 = vmatprep.mubr.msk.bf16.mxu0 %vm6351_vm1, %v1174_v37  ;;  %v4688_v37 = vmul.f32 %v4653_v17, %v1821_v13 }
 0x3d9   :  { %v1111_v41 = vpop.f32.mrb[21].mxu1  ;;  %3379 = vmatmul.mubr.msk.bf16.vlgmr.msra.gmra.mrb[16].mxu0 %vm6351_vm1, %v1175_v59  ;;  %v1164_v8 = vadd.f32 %v3364_v19, %v4552_v63  ;;  %v1893_v59 = vpack.c.bf16 %v4682_v60, %v4679_v9 }
 0x3da   :  { %3415 = vmatpush3.bf16.msra.mxu0 %v6425_v55  ;;  %v3365_v49 = vpop.f32.mrb[22].mxu1  ;;  %v1162_v48 = vadd.f32 %v1111_v41, %v4530_v22  ;;  %v1841_v41 = vpop.permute.xlu1 %1840  ;;  %v1894_v38 = vpack.c.bf16 %v4691_v35, %v4688_v37 }
 0x3db   :  { %v1165_v29 = vadd.f32 %v3365_v49, %v4558_v62  ;;  %3416 = vmatprep.subr.bf16.mxu0 %v1891_v26  ;;  %v1114_v39 = vpop.f32.mrb[23].mxu1 }
 0x3dc   :  { %v1163_v46 = vadd.f32 %v1114_v39, %v4532_v33  ;;  %v4701_v39 = vmul.f32 %v4653_v17, %v1831_v5 }
 0x3dd   :  { %v1177_v21 = vpack.c.bf16 %v1165_v29, %v1164_v8  ;;  %v1846_v8 = vpop.permute.xlu0 %1845 }
 0x3de   :  { %v1176_v43 = vpack.c.bf16 %v1163_v46, %v1162_v48  ;;  %3417 = vmatpush3.bf16.msra.mxu0 %v1891_v26  ;;  %v4704_v48 = vmul.f32 %v4653_v17, %v1836_v42  ;;  %v1851_v5 = vpop.permute.xlu1 %1850 }
 0x3df   :  { %3418 = vmatprep.subr.bf16.mxu0 %v1892_v6 }
 0x3e0   :  { %v3368_v11 = vpop.f32.mrb[24].mxu1  ;;  %3382 = vmatprep.mubr.msk.bf16.mxu0 %vm6351_vm1, %v1176_v43  ;;  %v1895_v43 = vpack.c.bf16 %v4704_v48, %v4701_v39 }
 0x3e1   :  { %v1127_v52 = vpop.f32.mrb[25].mxu1  ;;  %3383 = vmatmul.mubr.msk.bf16.gmra.mrb[20].mxu0 %vm6351_vm1, %v1177_v21  ;;  %v1168_v26 = vadd.f32 %v3368_v11, %v4598_v27  ;;  %v4710_v11 = vmul.f32 %v4653_v17, %v1841_v41  ;;  %v1856_v42 = vpop.permute.xlu0 %1855 }
 0x3e2   :  { %3419 = vmatpush3.bf16.msra.mxu0 %v1892_v6  ;;  %v3369_v19 = vpop.f32.mrb[26].mxu1  ;;  %v1166_v29 = vadd.f32 %v1127_v52, %v4580_v7  ;;  %v4713_v52 = vmul.f32 %v4653_v17, %v1846_v8 }
 0x3e3   :  { %v1169_v55 = vadd.f32 %v3369_v19, %v4600_v15  ;;  %3420 = vmatprep.subr.bf16.mxu0 %v1893_v59  ;;  %v1130_v49 = vpop.f32.mrb[27].mxu1 }
 0x3e4   :  { %v1167_v13 = vadd.f32 %v1130_v49, %v4582_v45  ;;  %v1896_v8 = vpack.c.bf16 %v4713_v52, %v4710_v11 }
 0x3e5   :  { %v1179_v46 = vpack.c.bf16 %v1169_v55, %v1168_v26 }
 0x3e6   :  { %v1178_v6 = vpack.c.bf16 %v1167_v13, %v1166_v29  ;;  %3421 = vmatpush3.bf16.msra.mxu0 %v1893_v59  ;;  %v4723_v13 = vmul.f32 %v4653_v17, %v1851_v5  ;;  %v3587_v5 = vld [vmem:[%s6180_s1] sm:$0xff]  }
 0x3e7   :  { %3422 = vmatprep.subr.bf16.mxu0 %v1894_v38 }
 0x3e8   :  { %v3372_v21 = vpop.f32.mrb[28].mxu1  ;;  %3386 = vmatprep.mubr.msk.bf16.mxu0 %vm6351_vm1, %v1178_v6 }
 0x3e9   :  { %v1143_v19 = vpop.f32.mrb[29].mxu1  ;;  %3387 = vmatmul.mubr.msk.bf16.gmra.mrb[24].mxu0 %vm6351_vm1, %v1179_v46  ;;  %v1172_v26 = vadd.f32 %v3372_v21, %v4626_v34  ;;  %v4726_v46 = vmul.f32 %v4653_v17, %v1856_v42  ;;  %v4738_v17 = vld [vmem:[%s6180_s1 + $0x8] sm:$0xff]   ;;  %v4756_v42 = vld [vmem:[%s6180_s1 + $0x20] sm:$0xff]  }
 0x3ea   :  { %3423 = vmatpush3.bf16.msra.mxu0 %v1894_v38  ;;  %v3373_v59 = vpop.f32.mrb[30].mxu1  ;;  %v1170_v29 = vadd.f32 %v1143_v19, %v4614_v61  ;;  %6426 = vst [vmem:[#allocation4_spill] sm:$0xff] %v4738_v17  ;;  %v4750_v19 = vld [vmem:[%s6180_s1 + $0x18] sm:$0xff]   ;;  %6429 = vst [vmem:[#allocation9_spill] sm:$0xff] %v4756_v42 }
 0x3eb   :  { %v1173_v55 = vadd.f32 %v3373_v59, %v4628_v32  ;;  %3424 = vmatprep.subr.bf16.mxu0 %v1895_v43  ;;  %v1146_v49 = vpop.f32.mrb[31].mxu1  ;;  %v1897_v21 = vpack.c.bf16 %v4726_v46, %v4723_v13  ;;  %6428 = vst [vmem:[#allocation8_spill] sm:$0xff] %v4750_v19  ;;  %v4762_v59 = vld [vmem:[%s6180_s1 + $0x28] sm:$0xff]  }
 0x3ec   :  { %v1171_v41 = vadd.f32 %v1146_v49, %v4616_v28  ;;  %6430 = vst [vmem:[#allocation12_spill] sm:$0xff] %v4762_v59  ;;  %v3118_v49 = vld [vmem:[%s6189_s10] ss:$0 sm:$0xff] }
 0x3ed   :  { %v1181_v38 = vpack.c.bf16 %v1173_v55, %v1172_v26  ;;  %v4768_v26 = vld [vmem:[%s6180_s1 + $0x30] sm:$0xff]   ;;  %v4774_v55 = vld [vmem:[%s6180_s1 + $0x38] sm:$0xff]  }
 0x3ee   :  { %v1180_v6 = vpack.c.bf16 %v1171_v41, %v1170_v29  ;;  %3425 = vmatpush3.bf16.msra.mxu0 %v1895_v43  ;;  %v4744_v43 = vld [vmem:[%s6180_s1 + $0x10] sm:$0xff]   ;;  %6431 = vst [vmem:[#allocation13_spill] sm:$0xff] %v4774_v55 }
 0x3ef   :  { %3426 = vmatprep.subr.bf16.mxu0 %v1896_v8  ;;  %6427 = vst [vmem:[#allocation5_spill] sm:$0xff] %v4744_v43 }
 0x3f0   :  { %3390 = vmatprep.mubr.msk.bf16.mxu0 %vm6351_vm1, %v1180_v6 }
 0x3f1   :  { %3391 = vmatmul.mubr.msk.bf16.gmra.mrb[28].mxu0 %vm6351_vm1, %v1181_v38 }
 0x3f2   :  { %3427 = vmatpush3.bf16.msra.mxu0 %v1896_v8  ;;  %3430 = vmatprep.mubr.bf16.mxu0 %v3587_v5 }
 0x3f3   :  { %3428 = vmatprep.subr.bf16.mxu0 %v1897_v21 }
 0x3f6   :  { %3429 = vmatpush3.bf16.msra.mxu0 %v1897_v21 }
 0x3f9   :  { %3431 = vmatmul.mubr.bf16.vlgmr.msra.gmra.mrb[32].mxu0 %v4738_v17 }
 0x3fa   :  { %3434 = vmatprep.mubr.bf16.mxu0 %v4744_v43  ;;  %v6463_v43 = vld [vmem:[#allocation20_spill] sm:$0xff] }
 0x401   :  { %3435 = vmatmul.mubr.bf16.gmra.mrb[36].mxu0 %v4750_v19 }
 0x402   :  { %3438 = vmatprep.mubr.bf16.mxu0 %v4756_v42 }
 0x409   :  { %3439 = vmatmul.mubr.bf16.gmra.mrb[40].mxu0 %v4762_v59 }
 0x40a   :  { %3442 = vmatprep.mubr.bf16.mxu0 %v4768_v26 }
 0x411   :  { %3443 = vmatmul.mubr.bf16.gmra.mrb[44].mxu0 %v4774_v55 }
 0x412   :  { %3482 = vmatprep.mubr.bf16.mxu0 %v3587_v5 }
 0x4ac   :  { %v3380_v29 = vpop.f32.mrb[16].mxu0 }
 0x4ad   :  { %v1272_v41 = vadd.f32 %v3380_v29, %v3118_v49  ;;  %v1263_v8 = vpop.f32.mrb[17].mxu0 }
 0x4ae   :  { %v1264_v38 = vadd.f32 %v3118_v49, %v1263_v8  ;;  %v3381_v6 = vpop.f32.mrb[18].mxu0 }
 0x4af   :  { %v1275_v21 = vadd.f32 %v3381_v6, %v3118_v49  ;;  %v1266_v32 = vpop.f32.mrb[19].mxu0  ;;  %v1328_v28 = vmax.f32 %v1272_v41, 0.0 }
 0x4b0   :  { %v1267_v34 = vadd.f32 %v3118_v49, %v1266_v32  ;;  %v1326_v15 = vmax.f32 %v1264_v38, 0.0  ;;  %v3595_v32 = vld [vmem:[%s6183_s5] sm:$0xff]  }
 0x4b1   :  { %v1329_v61 = vmax.f32 %v1275_v21, 0.0 }
 0x4b2   :  { %v1327_v27 = vmax.f32 %v1267_v34, 0.0 }
 0x4b3   :  { %v1343_v45 = vpack.c.bf16 %v1329_v61, %v1328_v28 }
 0x4b4   :  { %v1342_v7 = vpack.c.bf16 %v1327_v27, %v1326_v15  ;;  %v3384_v62 = vpop.f32.mrb[20].mxu0 }
 0x4b5   :  { %v1288_v5 = vadd.f32 %v3384_v62, %v3118_v49  ;;  %v1279_v63 = vpop.f32.mrb[21].mxu0  ;;  %v3596_v62 = vld [vmem:[%s6183_s5 + $0x8] sm:$0xff]  }
 0x4b6   :  { %v1280_v33 = vadd.f32 %v3118_v49, %v1279_v63  ;;  %v3385_v22 = vpop.f32.mrb[22].mxu0  ;;  %3398 = vmatprep.mubr.msk.bf16.mxu1 %vm6351_vm1, %v1342_v7 }
 0x4b7   :  { %v1291_v29 = vadd.f32 %v3385_v22, %v3118_v49  ;;  %v1282_v3 = vpop.f32.mrb[23].mxu0  ;;  %3399 = vmatmul.mubr.msk.bf16.vlgmr.msra.gmra.mrb[32].mxu1 %vm6351_vm1, %v1343_v45  ;;  %v1332_v34 = vmax.f32 %v1288_v5, 0.0 }
 0x4b8   :  { %v1283_v8 = vadd.f32 %v3118_v49, %v1282_v3  ;;  %3447 = vmatpush3.bf16.msra.mxu1 %v3595_v32  ;;  %v1330_v63 = vmax.f32 %v1280_v33, 0.0 }
 0x4b9   :  { %v1333_v61 = vmax.f32 %v1291_v29, 0.0  ;;  %3448 = vmatprep.subr.bf16.mxu1 %v3596_v62 }
 0x4ba   :  { %v1331_v27 = vmax.f32 %v1283_v8, 0.0 }
 0x4bb   :  { %v1345_v7 = vpack.c.bf16 %v1333_v61, %v1332_v34 }
 0x4bc   :  { %v1344_v22 = vpack.c.bf16 %v1331_v27, %v1330_v63  ;;  %v3388_v15 = vpop.f32.mrb[24].mxu0  ;;  %3449 = vmatpush3.bf16.msra.mxu1 %v3596_v62 }
 0x4bd   :  { %v1304_v45 = vadd.f32 %v3388_v15, %v3118_v49  ;;  %v1295_v3 = vpop.f32.mrb[25].mxu0 }
 0x4be   :  { %v1296_v28 = vadd.f32 %v3118_v49, %v1295_v3  ;;  %v3389_v41 = vpop.f32.mrb[26].mxu0  ;;  %3402 = vmatprep.mubr.msk.bf16.mxu1 %vm6351_vm1, %v1344_v22 }
 0x4bf   :  { %v1307_v38 = vadd.f32 %v3389_v41, %v3118_v49  ;;  %v1298_v6 = vpop.f32.mrb[27].mxu0  ;;  %3403 = vmatmul.mubr.msk.bf16.gmra.mrb[36].mxu1 %vm6351_vm1, %v1345_v7  ;;  %v1336_v5 = vmax.f32 %v1304_v45, 0.0 }
 0x4c0   :  { %v1299_v21 = vadd.f32 %v3118_v49, %v1298_v6  ;;  %v1334_v32 = vmax.f32 %v1296_v28, 0.0 }
 0x4c1   :  { %v1337_v29 = vmax.f32 %v1307_v38, 0.0 }
 0x4c2   :  { %v1335_v33 = vmax.f32 %v1299_v21, 0.0  ;;  %v4795_v21 = vld [vmem:[%s6184_s4] ss:$0 sm:$0xff] }
 0x4c3   :  { %v1347_v8 = vpack.c.bf16 %v1337_v29, %v1336_v5  ;;  %v1876_v5 = vadd.f32 %v4795_v21, %v4656_v54 }
 0x4c4   :  { %v1346_v34 = vpack.c.bf16 %v1335_v33, %v1334_v32  ;;  %v3392_v61 = vpop.f32.mrb[28].mxu0  ;;  %v6432_v33 = vld [vmem:[#allocation39_spill] sm:$0xff] }
 0x4c5   :  { %v1320_v63 = vadd.f32 %v3392_v61, %v3118_v49  ;;  %v1311_v62 = vpop.f32.mrb[29].mxu0  ;;  %v1877_v61 = vadd.f32 %v4795_v21, %v4659_v1  ;;  %v1880_v1 = vadd.f32 %v4795_v21, %v4679_v9 }
 0x4c6   :  { %v1312_v27 = vadd.f32 %v3118_v49, %v1311_v62  ;;  %v3393_v15 = vpop.f32.mrb[30].mxu0  ;;  %3406 = vmatprep.mubr.msk.bf16.mxu1 %vm6351_vm1, %v1346_v34  ;;  %v1874_v34 = vadd.f32 %v4795_v21, %v6432_v33 }
 0x4c7   :  { %v1323_v3 = vadd.f32 %v3393_v15, %v3118_v49  ;;  %v1314_v22 = vpop.f32.mrb[31].mxu0  ;;  %3407 = vmatmul.mubr.msk.bf16.gmra.mrb[40].mxu1 %vm6351_vm1, %v1347_v8  ;;  %v1340_v7 = vmax.f32 %v1320_v63, 0.0 }
 0x4c8   :  { %v1315_v41 = vadd.f32 %v3118_v49, %v1314_v22  ;;  %v1338_v45 = vmax.f32 %v1312_v27, 0.0  ;;  %v6433_v27 = vld [vmem:[#allocation40_spill] sm:$0xff] }
 0x4c9   :  { %v1341_v6 = vmax.f32 %v1323_v3, 0.0  ;;  %v1875_v15 = vadd.f32 %v4795_v21, %v6433_v27 }
 0x4ca   :  { %v1339_v38 = vmax.f32 %v1315_v41, 0.0 }
 0x4cb   :  { %v1349_v28 = vpack.c.bf16 %v1341_v6, %v1340_v7 }
 0x4cc   :  { %v1348_v29 = vpack.c.bf16 %v1339_v38, %v1338_v45  ;;  %v3432_v32 = vpop.f32.mrb[32].mxu0 }
 0x4cd   :  { %v1997_v8 = vadd.f32 %v3432_v32, %v1876_v5  ;;  %v1932_v49 = vpop.f32.mrb[33].mxu0 }
 0x4ce   :  { %v1995_v63 = vadd.f32 %v1932_v49, %v1874_v34  ;;  %3410 = vmatprep.mubr.msk.bf16.mxu1 %vm6351_vm1, %v1348_v29  ;;  %v3433_v62 = vpop.f32.mrb[34].mxu0  ;;  %v1878_v29 = vadd.f32 %v4795_v21, %v4665_v2 }
 0x4cf   :  { %v1998_v3 = vadd.f32 %v3433_v62, %v1877_v61  ;;  %3411 = vmatmul.mubr.msk.bf16.gmra.mrb[44].mxu1 %vm6351_vm1, %v1349_v28  ;;  %v1935_v54 = vpop.f32.mrb[35].mxu0  ;;  %v2013_v41 = vmax.f32 %v1997_v8, 0.0  ;;  %v1881_v28 = vadd.f32 %v4795_v21, %v4682_v60  ;;  %v1879_v8 = vadd.f32 %v4795_v21, %v4668_v10 }
 0x4d0   :  { %v1996_v22 = vadd.f32 %v1935_v54, %v1875_v15  ;;  %v2011_v6 = vmax.f32 %v1995_v63, 0.0  ;;  %v1884_v60 = vadd.f32 %v4795_v21, %v4701_v39 }
 0x4d1   :  { %v2014_v7 = vmax.f32 %v1998_v3, 0.0 }
 0x4d2   :  { %v2012_v45 = vmax.f32 %v1996_v22, 0.0 }
 0x4d3   :  { %v2028_v38 = vpack.c.bf16 %v2014_v7, %v2013_v41  ;;  %v1882_v7 = vadd.f32 %v4795_v21, %v4688_v37 }
 0x4d4   :  { %v2027_v5 = vpack.c.bf16 %v2012_v45, %v2011_v6  ;;  %v3436_v32 = vpop.f32.mrb[36].mxu0  ;;  %v1885_v45 = vadd.f32 %v4795_v21, %v4704_v48  ;;  %v1888_v48 = vadd.f32 %v4795_v21, %v4723_v13 }
 0x4d5   :  { %v2001_v33 = vadd.f32 %v3436_v32, %v1880_v1  ;;  %v1948_v34 = vpop.f32.mrb[37].mxu0 }
 0x4d6   :  { %v1999_v49 = vadd.f32 %v1948_v34, %v1878_v29  ;;  %v3437_v61 = vpop.f32.mrb[38].mxu0  ;;  %3450 = vmatprep.mubr.msk.bf16.mxu1 %vm6351_vm1, %v2027_v5  ;;  %v1883_v5 = vadd.f32 %v4795_v21, %v4691_v35 }
 0x4d7   :  { %v2002_v63 = vadd.f32 %v3437_v61, %v1881_v28  ;;  %v1951_v62 = vpop.f32.mrb[39].mxu0  ;;  %3451 = vmatmul.mubr.msk.bf16.vlgmr.msra.gmra.mrb[48].mxu1 %vm6351_vm1, %v2028_v38  ;;  %v2017_v27 = vmax.f32 %v2001_v33, 0.0 }
 0x4d8   :  { %v2000_v9 = vadd.f32 %v1951_v62, %v1879_v8  ;;  %v2015_v2 = vmax.f32 %v1999_v49, 0.0 }
 0x4d9   :  { %v2018_v15 = vmax.f32 %v2002_v63, 0.0  ;;  %v1886_v63 = vadd.f32 %v4795_v21, %v4710_v11 }
 0x4da   :  { %v2016_v3 = vmax.f32 %v2000_v9, 0.0  ;;  %v1889_v9 = vadd.f32 %v4795_v21, %v4726_v46 }
 0x4db   :  { %v2030_v54 = vpack.c.bf16 %v2018_v15, %v2017_v27 }
 0x4dc   :  { %v2029_v22 = vpack.c.bf16 %v2016_v3, %v2015_v2  ;;  %v3440_v41 = vpop.f32.mrb[40].mxu0  ;;  %v1887_v2 = vadd.f32 %v4795_v21, %v4713_v52 }
 0x4dd   :  { %v2005_v6 = vadd.f32 %v3440_v41, %v1884_v60  ;;  %v1964_v10 = vpop.f32.mrb[41].mxu0 }
 0x4de   :  { %v2003_v38 = vadd.f32 %v1964_v10, %v1882_v7  ;;  %v3441_v1 = vpop.f32.mrb[42].mxu0  ;;  %3454 = vmatprep.mubr.msk.bf16.mxu1 %vm6351_vm1, %v2029_v22 }
 0x4df   :  { %v2006_v32 = vadd.f32 %v3441_v1, %v1885_v45  ;;  %v1967_v29 = vpop.f32.mrb[43].mxu0  ;;  %3455 = vmatmul.mubr.msk.bf16.gmra.mrb[52].mxu1 %vm6351_vm1, %v2030_v54  ;;  %v2021_v33 = vmax.f32 %v2005_v6, 0.0 }
 0x4e0   :  { %v2004_v39 = vadd.f32 %v1967_v29, %v1883_v5  ;;  %v2019_v37 = vmax.f32 %v2003_v38, 0.0 }
 0x4e1   :  { %v2022_v34 = vmax.f32 %v2006_v32, 0.0 }
 0x4e2   :  { %v2020_v28 = vmax.f32 %v2004_v39, 0.0 }
 0x4e3   :  { %v2032_v49 = vpack.c.bf16 %v2022_v34, %v2021_v33 }
 0x4e4   :  { %v2031_v61 = vpack.c.bf16 %v2020_v28, %v2019_v37  ;;  %v3444_v8 = vpop.f32.mrb[44].mxu0 }
 0x4e5   :  { %v2009_v62 = vadd.f32 %v3444_v8, %v1888_v48  ;;  %v1980_v35 = vpop.f32.mrb[45].mxu0 }
 0x4e6   :  { %v2007_v27 = vadd.f32 %v1980_v35, %v1886_v63  ;;  %v3445_v15 = vpop.f32.mrb[46].mxu0  ;;  %3458 = vmatprep.mubr.msk.bf16.mxu1 %vm6351_vm1, %v2031_v61  ;;  %v4875_v61 = vld [vmem:[%s6185_s6] ss:$0 sm:$0xff] }
 0x4e7   :  { %v2010_v3 = vadd.f32 %v3445_v15, %v1889_v9  ;;  %v1983_v54 = vpop.f32.mrb[47].mxu0  ;;  %3459 = vmatmul.mubr.msk.bf16.gmra.mrb[56].mxu1 %vm6351_vm1, %v2032_v49  ;;  %v2025_v60 = vmax.f32 %v2009_v62, 0.0 }
 0x4e8   :  { %v2008_v13 = vadd.f32 %v1983_v54, %v1887_v2  ;;  %v2023_v11 = vmax.f32 %v2007_v27, 0.0  ;;  %v6450_v27 = vld [vmem:[#allocation2_spill] sm:$0xff]  ;;  %v6451_v2 = vld [vmem:[#allocation3_spill] sm:$0xff] }
 0x4e9   :  { %v2026_v22 = vmax.f32 %v2010_v3, 0.0 }
 0x4ea   :  { %v2024_v41 = vmax.f32 %v2008_v13, 0.0 }
 0x4eb   :  { %v2034_v7 = vpack.c.bf16 %v2026_v22, %v2025_v60  ;;  %v6452_v22 = vld [vmem:[#allocation6_spill] sm:$0xff] }
 0x4ec   :  { %v2033_v6 = vpack.c.bf16 %v2024_v41, %v2023_v11 }
 0x4ee   :  { %3462 = vmatprep.mubr.msk.bf16.mxu1 %vm6351_vm1, %v2033_v6 }
 0x4ef   :  { %3463 = vmatmul.mubr.msk.bf16.gmra.mrb[60].mxu1 %vm6351_vm1, %v2034_v7 }
 0x4f0   :  { %3494 = vmatprep.mubr.bf16.mxu1 %v4768_v26 }
 0x58a   :  { %v4840_v46 = vpop.f32.mrb[32].mxu1 }
 0x58b   :  { %6434 = vst [vmem:[#allocation16_spill] sm:$0xff] %v4840_v46  ;;  %v4842_v52 = vpop.f32.mrb[33].mxu1 }
 0x58c   :  { %6435 = vst [vmem:[#allocation42_spill] sm:$0xff] %v4842_v52  ;;  %v4844_v21 = vpop.f32.mrb[34].mxu1 }
 0x58d   :  { %6436 = vst [vmem:[#allocation41_spill] sm:$0xff] %v4844_v21  ;;  %v4846_v10 = vpop.f32.mrb[35].mxu1 }
 0x58e   :  { %6437 = vst [vmem:[#allocation39_spill] sm:$0xff] %v4846_v10  ;;  %v6459_v10 = vld [vmem:[#allocation18_spill] sm:$0xff] }
 0x592   :  { %v4848_v45 = vpop.f32.mrb[36].mxu1 }
 0x593   :  { %6438 = vst [vmem:[#allocation40_spill] sm:$0xff] %v4848_v45  ;;  %v4850_v38 = vpop.f32.mrb[37].mxu1 }
 0x594   :  { %6439 = vst [vmem:[#allocation59_spill] sm:$0xff] %v4850_v38  ;;  %v4852_v1 = vpop.f32.mrb[38].mxu1 }
 0x595   :  { %6440 = vst [vmem:[#allocation60_spill] sm:$0xff] %v4852_v1  ;;  %v4854_v5 = vpop.f32.mrb[39].mxu1 }
 0x596   :  { %6441 = vst [vmem:[#allocation61_spill] sm:$0xff] %v4854_v5 }
 0x59a   :  { %v4856_v32 = vpop.f32.mrb[40].mxu1 }
 0x59b   :  { %6442 = vst [vmem:[#allocation62_spill] sm:$0xff] %v4856_v32  ;;  %v4858_v29 = vpop.f32.mrb[41].mxu1 }
 0x59c   :  { %6443 = vst [vmem:[#allocation63_spill] sm:$0xff] %v4858_v29  ;;  %v4860_v26 = vpop.f32.mrb[42].mxu1 }
 0x59d   :  { %6444 = vst [vmem:[#allocation64_spill] sm:$0xff] %v4860_v26  ;;  %v4862_v39 = vpop.f32.mrb[43].mxu1 }
 0x59e   :  { %6445 = vst [vmem:[#allocation65_spill] sm:$0xff] %v4862_v39 }
 0x5a2   :  { %v4864_v33 = vpop.f32.mrb[44].mxu1 }
 0x5a3   :  { %6446 = vst [vmem:[#allocation66_spill] sm:$0xff] %v4864_v33  ;;  %v4866_v34 = vpop.f32.mrb[45].mxu1 }
 0x5a4   :  { %6447 = vst [vmem:[#allocation67_spill] sm:$0xff] %v4866_v34  ;;  %v4868_v37 = vpop.f32.mrb[46].mxu1 }
 0x5a5   :  { %6448 = vst [vmem:[#allocation68_spill] sm:$0xff] %v4868_v37  ;;  %v4870_v28 = vpop.f32.mrb[47].mxu1 }
 0x5a6   :  { %6449 = vst [vmem:[#allocation69_spill] sm:$0xff] %v4870_v28 }
 0x5aa   :  { %v3452_v49 = vpop.f32.mrb[48].mxu1 }
 0x5ab   :  { %v2093_v48 = vpop.f32.mrb[49].mxu1  ;;  %v2102_v9 = vadd.f32 %v4875_v61, %v3452_v49 }
 0x5ac   :  { %v2094_v8 = vadd.f32 %v4875_v61, %v2093_v48  ;;  %v3453_v63 = vpop.f32.mrb[50].mxu1 }
 0x5ad   :  { %v2096_v62 = vpop.f32.mrb[51].mxu1  ;;  %v4889_v11 = vmul.f32 %v2102_v9, %v6452_v22  ;;  %v2105_v7 = vadd.f32 %v4875_v61, %v3453_v63 }
 0x5ae   :  { %v2097_v35 = vadd.f32 %v4875_v61, %v2096_v62  ;;  %v4881_v15 = vmul.f32 %v2094_v8, %v6450_v27 }
 0x5af   :  { %v2174_v62 = vmul.f32 %v4889_v11, %v6452_v22  ;;  %v4900_v23 = vmul.f32 %v2105_v7, %v6453_v14  ;;  %v6455_v7 = vld [vmem:[#allocation11_spill] sm:$0xff] }
 0x5b0   :  { %v4884_v3 = vmul.f32 %v2097_v35, %v6451_v2  ;;  %v2172_v41 = vmul.f32 %v4881_v15, %v6450_v27 }
 0x5b2   :  { %v2173_v54 = vmul.f32 %v4884_v3, %v6451_v2  ;;  %v3456_v13 = vpop.f32.mrb[52].mxu1  ;;  %v2188_v35 = vsel %vm6351_vm1, %v2172_v41, 0.0 }
 0x5b3   :  { %v2109_v60 = vpop.f32.mrb[53].mxu1 }
 0x5b4   :  { %v3457_v6 = vpop.f32.mrb[54].mxu1  ;;  %v2189_v48 = vsel %vm6351_vm1, %v2173_v54, 0.0  ;;  %v2110_v8 = vadd.f32 %v4875_v61, %v2109_v60  ;;  %v2191_v54 = vsel %vm6351_vm1, %v2174_v62, 0.0  ;;  %v2175_v60 = vmul.f32 %v4900_v23, %v6453_v14 }
 0x5b5   :  { %v2112_v49 = vpop.f32.mrb[55].mxu1  ;;  %v2190_v9 = vadd.f32 %v2189_v48, %v2188_v35  ;;  %v2121_v45 = vadd.f32 %v4875_v61, %v3457_v6 }
 0x5b6   :  { %v4903_v37 = vmul.f32 %v2110_v8, %v6454_v20  ;;  %v2113_v63 = vadd.f32 %v4875_v61, %v2112_v49  ;;  %v2193_v8 = vsel %vm6351_vm1, %v2175_v60, 0.0  ;;  %v2118_v49 = vadd.f32 %v4875_v61, %v3456_v13 }
 0x5b7   :  { %v2192_v26 = vadd.f32 %v2191_v54, %v2190_v9  ;;  %v6456_v9 = vld [vmem:[#allocation14_spill] sm:$0xff] }
 0x5b8   :  { %v2176_v41 = vmul.f32 %v4903_v37, %v6454_v20  ;;  %v4912_v48 = vmul.f32 %v2113_v63, %v6455_v7  ;;  %v4920_v54 = vmul.f32 %v2118_v49, %v6456_v9  ;;  %v6458_v49 = vld [vmem:[#allocation22_spill] sm:$0xff] }
 0x5b9   :  { %v2194_v35 = vadd.f32 %v2193_v8, %v2192_v26 }
 0x5ba   :  { %v3460_v33 = vpop.f32.mrb[56].mxu1  ;;  %v2195_v39 = vsel %vm6351_vm1, %v2176_v41, 0.0  ;;  %v2177_v62 = vmul.f32 %v4912_v48, %v6455_v7  ;;  %v2178_v26 = vmul.f32 %v4920_v54, %v6456_v9  ;;  %v6457_v41 = vld [vmem:[#allocation15_spill] sm:$0xff] }
 0x5bb   :  { %v2125_v28 = vpop.f32.mrb[57].mxu1  ;;  %v2196_v63 = vadd.f32 %v2195_v39, %v2194_v35  ;;  %v4928_v8 = vmul.f32 %v2121_v45, %v6457_v41  ;;  %v2134_v46 = vadd.f32 %v4875_v61, %v3460_v33  ;;  %v6460_v33 = vld [vmem:[#allocation17_spill] sm:$0xff] }
 0x5bc   :  { %v3461_v34 = vpop.f32.mrb[58].mxu1  ;;  %v2197_v60 = vsel %vm6351_vm1, %v2177_v62, 0.0  ;;  %v2126_v13 = vadd.f32 %v4875_v61, %v2125_v28  ;;  %v2199_v39 = vsel %vm6351_vm1, %v2178_v26, 0.0 }
 0x5bd   :  { %v2128_v32 = vpop.f32.mrb[59].mxu1  ;;  %v2198_v21 = vadd.f32 %v2197_v60, %v2196_v63  ;;  %v2179_v35 = vmul.f32 %v4928_v8, %v6457_v41  ;;  %v2137_v28 = vadd.f32 %v4875_v61, %v3461_v34  ;;  %v4940_v59 = vmul.f32 %v2134_v46, %v6459_v10 }
 0x5be   :  { %v4932_v52 = vmul.f32 %v2126_v13, %v6458_v49  ;;  %v2129_v6 = vadd.f32 %v4875_v61, %v2128_v32  ;;  %v6461_v32 = vld [vmem:[#allocation19_spill] sm:$0xff] }
 0x5bf   :  { %v2200_v62 = vadd.f32 %v2199_v39, %v2198_v21  ;;  %v2201_v60 = vsel %vm6351_vm1, %v2179_v35, 0.0  ;;  %v4949_v13 = vmul.f32 %v2137_v28, %v6461_v32  ;;  %v2182_v42 = vmul.f32 %v4940_v59, %v6459_v10 }
 0x5c0   :  { %v2180_v45 = vmul.f32 %v4932_v52, %v6458_v49  ;;  %v4945_v63 = vmul.f32 %v2129_v6, %v6460_v33 }
 0x5c1   :  { %6462 = vst [vmem:[#allocation18_spill] sm:$0xff] %v4949_v13  ;;  %v2202_v26 = vadd.f32 %v2201_v60, %v2200_v62  ;;  %v2183_v35 = vmul.f32 %v4949_v13, %v6461_v32  ;;  %v2207_v55 = vsel %vm6351_vm1, %v2182_v42, 0.0 }
 0x5c2   :  { %v3464_v29 = vpop.f32.mrb[60].mxu1  ;;  %v2203_v21 = vsel %vm6351_vm1, %v2180_v45, 0.0  ;;  %v2181_v46 = vmul.f32 %v4945_v63, %v6460_v33 }
 0x5c3   :  { %v2141_v1 = vpop.f32.mrb[61].mxu1  ;;  %v2204_v34 = vadd.f32 %v2203_v21, %v2202_v26  ;;  %v2150_v39 = vadd.f32 %v4875_v61, %v3464_v29  ;;  %v6465_v29 = vld [vmem:[#allocation21_spill] sm:$0xff] }
 0x5c4   :  { %v3465_v5 = vpop.f32.mrb[62].mxu1  ;;  %v2142_v6 = vadd.f32 %v4875_v61, %v2141_v1  ;;  %v2205_v28 = vsel %vm6351_vm1, %v2181_v46, 0.0 }
 0x5c5   :  { %v2144_v38 = vpop.f32.mrb[63].mxu1  ;;  %v2153_v62 = vadd.f32 %v4875_v61, %v3465_v5  ;;  %v2206_v19 = vadd.f32 %v2205_v28, %v2204_v34  ;;  %v4968_v26 = vmul.f32 %v2150_v39, %v4108_v47  ;;  %v2209_v5 = vsel %vm6351_vm1, %v2183_v35, 0.0 }
 0x5c6   :  { %v2145_v60 = vadd.f32 %v4875_v61, %v2144_v38  ;;  %v4964_v45 = vmul.f32 %v2142_v6, %v6463_v43 }
 0x5c7   :  { %6464 = vst [vmem:[#allocation70_spill] sm:$0xff] %v4968_v26  ;;  %v2208_v21 = vadd.f32 %v2207_v55, %v2206_v19  ;;  %v4977_v38 = vmul.f32 %v2153_v62, %v4110_v25  ;;  %v2186_v39 = vmul.f32 %v4968_v26, %v4108_v47 }
 0x5c8   :  { %v4971_v1 = vmul.f32 %v2145_v60, %v6465_v29  ;;  %v2184_v46 = vmul.f32 %v4964_v45, %v6463_v43 }
 0x5c9   :  { %v2210_v34 = vadd.f32 %v2209_v5, %v2208_v21  ;;  %v2187_v55 = vmul.f32 %v4977_v38, %v4110_v25  ;;  %v2215_v35 = vsel %vm6351_vm1, %v2186_v39, 0.0 }
 0x5ca   :  { %v2185_v61 = vmul.f32 %v4971_v1, %v6465_v29  ;;  %v2211_v42 = vsel %vm6351_vm1, %v2184_v46, 0.0 }
 0x5cb   :  { %v2212_v19 = vadd.f32 %v2211_v42, %v2210_v34  ;;  %v2217_v60 = vsel %vm6351_vm1, %v2187_v55, 0.0 }
 0x5cc   :  { %v2213_v6 = vsel %vm6351_vm1, %v2185_v61, 0.0 }
 0x5cd   :  { %v2214_v28 = vadd.f32 %v2213_v6, %v2212_v19 }
 0x5cf   :  { %v2216_v62 = vadd.f32 %v2215_v35, %v2214_v28 }
 0x5d1   :  { %v2218_v17 = vadd.f32 %v2217_v60, %v2216_v62 }
 0x5d3   :  { %v2219_v16 = vrot.slane %v2218_v17, 4 }
 0x5d5   :  { %v2220_v21 = vadd.f32 %v2219_v16, %v2218_v17 }
 0x5d7   :  { %v2221_v5 = vrot.slane %v2220_v21, 2 }
 0x5d9   :  { %v2222_v46 = vadd.f32 %v2221_v5, %v2220_v21 }
 0x5db   :  { %v2223_v12 = vrot.slane %v2222_v46, 1 }
 0x5dd   :  { %v2224_v0 = vadd.f32 %v2223_v12, %v2222_v46 }
 0x5df   :  { %v2225_v18 = vmul.f32 %v2224_v0, %v4328_v40 }
 0x5e1   :  { %v4991_v61 = vsub.f32 %v4881_v15, %v2225_v18  ;;  %v4994_v34 = vsub.f32 %v4884_v3, %v2225_v18  ;;  %v5001_v16 = vsub.f32 %v4889_v11, %v2225_v18  ;;  %v5006_v0 = vsub.f32 %v4900_v23, %v2225_v18 }
 0x5e2   :  { %v5013_v28 = vsub.f32 %v4903_v37, %v2225_v18  ;;  %v5019_v21 = vsub.f32 %v4912_v48, %v2225_v18 }
 0x5e3   :  { %v2242_v42 = vmul.f32 %v4991_v61, %v4991_v61  ;;  %v2243_v39 = vmul.f32 %v4994_v34, %v4994_v34  ;;  %v2244_v6 = vmul.f32 %v5001_v16, %v5001_v16  ;;  %v2245_v35 = vmul.f32 %v5006_v0, %v5006_v0 }
 0x5e4   :  { %v2246_v5 = vmul.f32 %v5013_v28, %v5013_v28 }
 0x5e5   :  { %v2258_v17 = vmul.f32 %v2242_v42, %v6450_v27  ;;  %v2259_v12 = vmul.f32 %v2243_v39, %v6451_v2  ;;  %v2260_v62 = vmul.f32 %v2244_v6, %v6452_v22  ;;  %v2261_v46 = vmul.f32 %v2245_v35, %v6453_v14 }
 0x5e6   :  { %v2247_v6 = vmul.f32 %v5019_v21, %v5019_v21  ;;  %v5036_v27 = vsub.f32 %v4932_v52, %v2225_v18 }
 0x5e7   :  { %v2274_v19 = vsel %vm6351_vm1, %v2258_v17, 0.0  ;;  %v2275_v55 = vsel %vm6351_vm1, %v2259_v12, 0.0  ;;  %v2277_v42 = vsel %vm6351_vm1, %v2260_v62, 0.0  ;;  %v5026_v17 = vsub.f32 %v4920_v54, %v2225_v18 }
 0x5e8   :  { %v2276_v60 = vadd.f32 %v2275_v55, %v2274_v19  ;;  %v5029_v12 = vsub.f32 %v4928_v8, %v2225_v18  ;;  %v2262_v19 = vmul.f32 %v2246_v5, %v6454_v20  ;;  %v2279_v55 = vsel %vm6351_vm1, %v2261_v46, 0.0 }
 0x5e9   :  { %v2248_v35 = vmul.f32 %v5026_v17, %v5026_v17  ;;  %v5041_v62 = vsub.f32 %v4945_v63, %v2225_v18  ;;  %v5048_v46 = vsub.f32 %v4940_v59, %v2225_v18  ;;  %v5054_v20 = vsub.f32 %v4949_v13, %v2225_v18 }
 0x5ea   :  { %v2278_v39 = vadd.f32 %v2277_v42, %v2276_v60  ;;  %v2249_v60 = vmul.f32 %v5029_v12, %v5029_v12  ;;  %v2263_v42 = vmul.f32 %v2247_v6, %v6455_v7  ;;  %v2281_v14 = vsel %vm6351_vm1, %v2262_v19, 0.0 }
 0x5eb   :  { %v2251_v2 = vmul.f32 %v5041_v62, %v5041_v62  ;;  %v2239_v13 = vsub.f32 %v4971_v1, %v2225_v18  ;;  %v2253_v44 = vmul.f32 %v5054_v20, %v5054_v20 }
 0x5ec   :  { %v2280_v22 = vadd.f32 %v2279_v55, %v2278_v39  ;;  %v2250_v39 = vmul.f32 %v5036_v27, %v5036_v27  ;;  %v2264_v55 = vmul.f32 %v2248_v35, %v6456_v9  ;;  %v2265_v4 = vmul.f32 %v2249_v60, %v6457_v41 }
 0x5ed   :  { %v2283_v6 = vsel %vm6351_vm1, %v2263_v42, 0.0  ;;  %v2267_v60 = vmul.f32 %v2251_v2, %v6460_v33  ;;  %v2269_v2 = vmul.f32 %v2253_v44, %v6461_v32 }
 0x5ee   :  { %v2282_v5 = vadd.f32 %v2281_v14, %v2280_v22  ;;  %v5061_v14 = vsub.f32 %v4964_v45, %v2225_v18  ;;  %v2252_v22 = vmul.f32 %v5048_v46, %v5048_v46  ;;  %v2266_v7 = vmul.f32 %v2250_v39, %v6458_v49 }
 0x5ef   :  { %v2285_v35 = vsel %vm6351_vm1, %v2264_v55, 0.0  ;;  %v2287_v42 = vsel %vm6351_vm1, %v2265_v4, 0.0  ;;  %v2255_v49 = vmul.f32 %v2239_v13, %v2239_v13  ;;  %v2291_v4 = vsel %vm6351_vm1, %v2267_v60, 0.0 }
 0x5f0   :  { %v2284_v19 = vadd.f32 %v2283_v6, %v2282_v5  ;;  %v5073_v6 = vsub.f32 %v4968_v26, %v2225_v18  ;;  %v2254_v41 = vmul.f32 %v5061_v14, %v5061_v14  ;;  %v2268_v39 = vmul.f32 %v2252_v22, %v6459_v10 }
 0x5f1   :  { %v2289_v55 = vsel %vm6351_vm1, %v2266_v7, 0.0 }
 0x5f2   :  { %v2286_v9 = vadd.f32 %v2285_v35, %v2284_v19  ;;  %v5080_v35 = vsub.f32 %v4977_v38, %v2225_v18  ;;  %v2270_v33 = vmul.f32 %v2254_v41, %v6463_v43  ;;  %v2293_v26 = vsel %vm6351_vm1, %v2268_v39, 0.0 }
 0x5f3   :  { %v2271_v18 = vmul.f32 %v2255_v49, %v6465_v29 }
 0x5f4   :  { %v2288_v5 = vadd.f32 %v2287_v42, %v2286_v9  ;;  %v2256_v42 = vmul.f32 %v5073_v6, %v5073_v6  ;;  %v2257_v7 = vmul.f32 %v5080_v35, %v5080_v35  ;;  %v2297_v60 = vsel %vm6351_vm1, %v2270_v33, 0.0 }
 0x5f5   :  { %v2299_v41 = vsel %vm6351_vm1, %v2271_v18, 0.0 }
 0x5f6   :  { %v2290_v19 = vadd.f32 %v2289_v55, %v2288_v5  ;;  %v2295_v5 = vsel %vm6351_vm1, %v2269_v2, 0.0  ;;  %v2272_v44 = vmul.f32 %v2256_v42, %v4108_v47 }
 0x5f8   :  { %v2292_v9 = vadd.f32 %v2291_v4, %v2290_v19  ;;  %v2273_v4 = vmul.f32 %v2257_v7, %v4110_v25 }
 0x5fa   :  { %v2294_v22 = vadd.f32 %v2293_v26, %v2292_v9  ;;  %v2301_v26 = vsel %vm6351_vm1, %v2272_v44, 0.0  ;;  %v2303_v9 = vsel %vm6351_vm1, %v2273_v4, 0.0 }
 0x5fc   :  { %v2296_v55 = vadd.f32 %v2295_v5, %v2294_v22 }
 0x5fe   :  { %v2298_v19 = vadd.f32 %v2297_v60, %v2296_v55 }
 0x600   :  { %v2300_v43 = vadd.f32 %v2299_v41, %v2298_v19  ;;  %v5116_v19 = vld [vmem:[%s6186_s7] ss:$0 sm:$0xff] }
 0x602   :  { %v2302_v39 = vadd.f32 %v2301_v26, %v2300_v43  ;;  %v5130_v26 = vld [vmem:[%s6187_s8] ss:$0 sm:$0xff] }
 0x604   :  { %v2304_v32 = vadd.f32 %v2303_v9, %v2302_v39 }
 0x606   :  { %v2305_v49 = vrot.slane %v2304_v32, 4 }
 0x608   :  { %v2306_v29 = vadd.f32 %v2305_v49, %v2304_v32 }
 0x60a   :  { %v2307_v2 = vrot.slane %v2306_v29, 2 }
 0x60c   :  { %v2308_v22 = vadd.f32 %v2307_v2, %v2306_v29 }
 0x60e   :  { %v2309_v5 = vrot.slane %v2308_v22, 1 }
 0x610   :  { %v2310_v42 = vadd.f32 %v2309_v5, %v2308_v22 }
 0x612   :  { %v2311_v33 = vmul.f32 %v2310_v42, %v4328_v40 }
 0x614   :  { %v2312_v55 = vadd.f32 1e-05, %v2311_v33 }
 0x616   :  { %3580 = vrsqrt.f32 %v2312_v55 }
 0x620   :  { %v5099_v7 = vpop.eup %3580 }
 0x621   :  { %v2314_v18 = vmul.f32 %v5099_v7, %v4991_v61  ;;  %v2315_v43 = vmul.f32 %v5099_v7, %v4994_v34  ;;  %v2316_v44 = vmul.f32 %v5099_v7, %v5001_v16  ;;  %v2317_v32 = vmul.f32 %v5099_v7, %v5006_v0 }
 0x622   :  { %v2318_v29 = vmul.f32 %v5099_v7, %v5013_v28  ;;  %v2319_v60 = vmul.f32 %v5099_v7, %v5019_v21  ;;  %v2320_v0 = vmul.f32 %v5099_v7, %v5026_v17  ;;  %v2327_v41 = vmul.f32 %v5099_v7, %v2239_v13 }
 0x623   :  { %v2330_v61 = vmul.f32 %v5116_v19, %v2314_v18  ;;  %v2331_v34 = vmul.f32 %v5116_v19, %v2315_v43  ;;  %v2332_v16 = vmul.f32 %v5116_v19, %v2316_v44  ;;  %v2333_v4 = vmul.f32 %v5116_v19, %v2317_v32 }
 0x624   :  { %v2334_v28 = vmul.f32 %v5116_v19, %v2318_v29  ;;  %v2335_v21 = vmul.f32 %v5116_v19, %v2319_v60  ;;  %v2321_v13 = vmul.f32 %v5099_v7, %v5029_v12  ;;  %v2336_v55 = vmul.f32 %v5116_v19, %v2320_v0 }
 0x625   :  { %v2346_v39 = vadd.f32 %v5130_v26, %v2330_v61  ;;  %v2347_v9 = vadd.f32 %v5130_v26, %v2331_v34  ;;  %v2348_v49 = vadd.f32 %v5130_v26, %v2332_v16  ;;  %v2349_v17 = vadd.f32 %v5130_v26, %v2333_v4 }
 0x626   :  { %v2350_v2 = vadd.f32 %v5130_v26, %v2334_v28  ;;  %v2351_v22 = vadd.f32 %v5130_v26, %v2335_v21  ;;  %v2343_v32 = vmul.f32 %v5116_v19, %v2327_v41  ;;  %v2337_v60 = vmul.f32 %v5116_v19, %v2321_v13 }
 0x627   :  { %v2362_v5 = vsel %vm989_vm2, %v2346_v39, %v4881_v15  ;;  %v2363_v42 = vsel %vm990_vm3, %v2347_v9, %v4884_v3  ;;  %v2364_v33 = vsel %vm991_vm4, %v2348_v49, %v4889_v11  ;;  %v2365_v12 = vsel %vm992_vm5, %v2349_v17, %v4900_v23 }
 0x628   :  { %v5150_v18 = vmax.f32 %v2362_v5, 0.0  ;;  %v5152_v43 = vmax.f32 %v2363_v42, 0.0  ;;  %v5157_v44 = vmax.f32 %v2364_v33, 0.0  ;;  %v5159_v15 = vmax.f32 %v2365_v12, 0.0 }
 0x629   :  { %v2366_v3 = vsel %vm993_vm6, %v2350_v2, %v4903_v37  ;;  %v2367_v11 = vsel %vm994_vm7, %v2351_v22, %v4912_v48  ;;  %v2352_v61 = vadd.f32 %v5130_v26, %v2336_v55  ;;  %v2322_v34 = vmul.f32 %v5099_v7, %v5036_v27 }
 0x62a   :  { %6466 = vst [vmem:[#allocation71_spill] sm:$0xff] %v5150_v18  ;;  %6467 = vst [vmem:[#allocation72_spill] sm:$0xff] %v5152_v43  ;;  %v2410_v29 = vpack.c.bf16 %v5152_v43, %v5150_v18  ;;  %v5171_v23 = vmax.f32 %v2366_v3, 0.0  ;;  %v2323_v37 = vmul.f32 %v5099_v7, %v5041_v62  ;;  %v2411_v48 = vpack.c.bf16 %v5159_v15, %v5157_v44 }
 0x62b   :  { %6468 = vst [vmem:[#allocation73_spill] sm:$0xff] %v5157_v44  ;;  %6469 = vst [vmem:[#allocation74_spill] sm:$0xff] %v5159_v15  ;;  %v5180_v16 = vmax.f32 %v2367_v11, 0.0  ;;  %v2353_v0 = vadd.f32 %v5130_v26, %v2337_v60  ;;  %v2324_v4 = vmul.f32 %v5099_v7, %v5048_v46  ;;  %v2368_v27 = vsel %vm995_vm8, %v2352_v61, %v4920_v54  ;;  %v6478_v11 = vld [vmem:[#allocation34_spill] sm:$0xff] }
 0x62c   :  { %6470 = vst [vmem:[#allocation75_spill] sm:$0xff] %v5171_v23  ;;  %3466 = vmatprep.subr.bf16.mxu0 %v2410_v29  ;;  %3538 = vmatprep.subr.bf16.mxu1 %v2410_v29  ;;  %v2338_v62 = vmul.f32 %v5116_v19, %v2322_v34  ;;  %v2339_v28 = vmul.f32 %v5116_v19, %v2323_v37  ;;  %v5193_v41 = vmax.f32 %v2368_v27, 0.0 }
 0x62d   :  { %6471 = vst [vmem:[#allocation76_spill] sm:$0xff] %v5180_v16  ;;  %3467 = vmatpush3.bf16.msra.mxu0 %v2410_v29  ;;  %3546 = vmatpush3.bf16.msra.mxu1 %v2410_v29  ;;  %v2369_v21 = vsel %vm996_vm9, %v2353_v0, %v4928_v8  ;;  %v2325_v46 = vmul.f32 %v5099_v7, %v5054_v20 }
 0x62e   :  { %3468 = vmatprep.subr.bf16.mxu0 %v2411_v48  ;;  %3539 = vmatprep.subr.bf16.mxu1 %v2411_v48  ;;  %6472 = vst [vmem:[#allocation77_spill] sm:$0xff] %v5193_v41  ;;  %v2340_v39 = vmul.f32 %v5116_v19, %v2324_v4  ;;  %v5198_v9 = vmax.f32 %v2369_v21, 0.0  ;;  %v2354_v54 = vadd.f32 %v5130_v26, %v2338_v62  ;;  %v6486_v21 = vld [vmem:[#allocation70_spill] sm:$0xff] }
 0x62f   :  { %v2355_v49 = vadd.f32 %v5130_v26, %v2339_v28  ;;  %v2326_v17 = vmul.f32 %v5099_v7, %v5061_v14  ;;  %v2412_v2 = vpack.c.bf16 %v5180_v16, %v5171_v23  ;;  %v2341_v8 = vmul.f32 %v5116_v19, %v2325_v46 }
 0x630   :  { %6473 = vst [vmem:[#allocation78_spill] sm:$0xff] %v5198_v9  ;;  %v2356_v22 = vadd.f32 %v5130_v26, %v2340_v39  ;;  %v2328_v20 = vmul.f32 %v5099_v7, %v5073_v6  ;;  %v2370_v13 = vsel %vm997_vm10, %v2354_v54, %v4932_v52  ;;  %v2329_v5 = vmul.f32 %v5099_v7, %v5080_v35  ;;  %v6477_v7 = vld [vmem:[#allocation18_spill] sm:$0xff] }
 0x631   :  { %3469 = vmatpush3.bf16.msra.mxu0 %v2411_v48  ;;  %3547 = vmatpush3.bf16.msra.mxu1 %v2411_v48  ;;  %v2371_v14 = vsel %vm6284_vm11, %v2355_v49, %v4945_v63  ;;  %v2357_v42 = vadd.f32 %v5130_v26, %v2341_v8  ;;  %v2359_v33 = vadd.f32 %v5130_v26, %v2343_v32  ;;  %v5223_v12 = vmax.f32 %v2370_v13, 0.0  ;;  %v3602_v8 = vld [vmem:[%s6188_s11] sm:$0xff]   ;;  %v6493_v13 = vld [vmem:[#allocation5_spill] sm:$0xff] }
 0x632   :  { %3470 = vmatprep.subr.bf16.mxu0 %v2412_v2  ;;  %3540 = vmatprep.subr.bf16.mxu1 %v2412_v2  ;;  %v2413_v6 = vpack.c.bf16 %v5198_v9, %v5193_v41  ;;  %v2342_v55 = vmul.f32 %v5116_v19, %v2326_v17  ;;  %v5225_v52 = vmax.f32 %v2371_v14, 0.0  ;;  %v2372_v3 = vsel %vm999_vm12, %v2356_v22, %v4940_v59  ;;  %v6491_v22 = vld [vmem:[#allocation4_spill] sm:$0xff]  ;;  %v3603_v14 = vld [vmem:[%s6181_s9 + $0x8] sm:$0xff]  }
 0x633   :  { %6474 = vst [vmem:[#allocation79_spill] sm:$0xff] %v5223_v12  ;;  %v2344_v35 = vmul.f32 %v5116_v19, %v2328_v20  ;;  %vm6479_vm11 = vcmp.eq.s32.totalorder %v6478_v11, 1  ;;  %v2345_v60 = vmul.f32 %v5116_v19, %v2329_v5  ;;  %v2375_v34 = vsel %vm1002_vm15, %v2359_v33, %v4971_v1  ;;  %v6492_v20 = vld [vmem:[#allocation13_spill] sm:$0xff]  ;;  %v3604_v5 = vld [vmem:[%s6188_s11 + $0x8] sm:$0xff]  }
 0x634   :  { %6475 = vst [vmem:[#allocation80_spill] sm:$0xff] %v5225_v52  ;;  %v2373_v32 = vsel %vm6479_vm11, %v2357_v42, %v6477_v7  ;;  %v2358_v29 = vadd.f32 %v5130_v26, %v2342_v55  ;;  %v2414_v59 = vpack.c.bf16 %v5225_v52, %v5223_v12  ;;  %v5241_v37 = vmax.f32 %v2372_v3, 0.0  ;;  %v6494_v42 = vld [vmem:[#allocation8_spill] sm:$0xff]  ;;  %v6495_v33 = vld [vmem:[#allocation9_spill] sm:$0xff] }
 0x635   :  { %3471 = vmatpush3.bf16.msra.mxu0 %v2412_v2  ;;  %3548 = vmatpush3.bf16.msra.mxu1 %v2412_v2  ;;  %v5243_v48 = vmax.f32 %v2373_v32, 0.0  ;;  %v2360_v19 = vadd.f32 %v5130_v26, %v2344_v35  ;;  %v2361_v27 = vadd.f32 %v5130_v26, %v2345_v60  ;;  %v5250_v1 = vmax.f32 %v2375_v34, 0.0 }
 0x636   :  { %3472 = vmatprep.subr.bf16.mxu0 %v2413_v6  ;;  %3541 = vmatprep.subr.bf16.mxu1 %v2413_v6  ;;  %6481 = vst [vmem:[#allocation18_spill] sm:$0xff] %v5241_v37  ;;  %v2374_v4 = vsel %vm1001_vm14, %v2358_v29, %v4964_v45 }
 0x637   :  { %6482 = vst [vmem:[#allocation81_spill] sm:$0xff] %v5243_v48  ;;  %6484 = vst [vmem:[#allocation82_spill] sm:$0xff] %v5250_v1  ;;  %v2415_v62 = vpack.c.bf16 %v5243_v48, %v5241_v37  ;;  %v5254_v28 = vmax.f32 %v2374_v4, 0.0  ;;  %v2376_v39 = vsel %vm1003_vm0, %v2360_v19, %v6486_v21  ;;  %v2377_v54 = vsel %vm1004_vm13, %v2361_v27, %v4977_v38  ;;  %v3601_v38 = vld [vmem:[%s6181_s9] sm:$0xff]  }
 0x638   :  { %v5264_v49 = vmax.f32 %v2376_v39, 0.0  ;;  %v5266_v17 = vmax.f32 %v2377_v54, 0.0 }
 0x639   :  { %3473 = vmatpush3.bf16.msra.mxu0 %v2413_v6  ;;  %3549 = vmatpush3.bf16.msra.mxu1 %v2413_v6  ;;  %6485 = vst [vmem:[#allocation83_spill] sm:$0xff] %v5254_v28  ;;  %v2416_v26 = vpack.c.bf16 %v5250_v1, %v5254_v28  ;;  %v6496_v6 = vld [vmem:[#allocation12_spill] sm:$0xff] }
 0x63a   :  { %3474 = vmatprep.subr.bf16.mxu0 %v2414_v59  ;;  %3542 = vmatprep.subr.bf16.mxu1 %v2414_v59  ;;  %6489 = vst [vmem:[#allocation70_spill] sm:$0xff] %v5264_v49  ;;  %6490 = vst [vmem:[#allocation84_spill] sm:$0xff] %v5266_v17  ;;  %v2417_v2 = vpack.c.bf16 %v5266_v17, %v5264_v49 }
 0x63d   :  { %3475 = vmatpush3.bf16.msra.mxu0 %v2414_v59  ;;  %3550 = vmatpush3.bf16.msra.mxu1 %v2414_v59 }
 0x63e   :  { %3476 = vmatprep.subr.bf16.mxu0 %v2415_v62  ;;  %3543 = vmatprep.subr.bf16.mxu1 %v2415_v62 }
 0x641   :  { %3477 = vmatpush3.bf16.msra.mxu0 %v2415_v62  ;;  %3551 = vmatpush3.bf16.msra.mxu1 %v2415_v62 }
 0x642   :  { %3478 = vmatprep.subr.bf16.mxu0 %v2416_v26  ;;  %3544 = vmatprep.subr.bf16.mxu1 %v2416_v26 }
 0x645   :  { %3479 = vmatpush3.bf16.msra.mxu0 %v2416_v26  ;;  %3552 = vmatpush3.bf16.msra.mxu1 %v2416_v26 }
 0x646   :  { %3480 = vmatprep.subr.bf16.mxu0 %v2417_v2  ;;  %3545 = vmatprep.subr.bf16.mxu1 %v2417_v2 }
 0x649   :  { %3481 = vmatpush3.bf16.msra.mxu0 %v2417_v2  ;;  %3553 = vmatpush3.bf16.msra.mxu1 %v2417_v2 }
 0x64a   :  { %3498 = vmatprep.subr.bf16.mxu1 %v3601_v38  ;;  %3518 = vmatprep.subr.bf16.mxu0 %v3602_v8 }
 0x64c   :  { %3483 = vmatmul.mubr.bf16.vlgmr.msra.gmra.mrb[48].mxu0 %v6491_v22  ;;  %3495 = vmatmul.mubr.bf16.vlgmr.msra.gmra.mrb[64].mxu1 %v6492_v20 }
 0x64d   :  { %3486 = vmatprep.mubr.bf16.mxu0 %v6493_v13  ;;  %3499 = vmatpush3.bf16.msra.mxu1 %v3601_v38 }
 0x64e   :  { %3500 = vmatprep.subr.bf16.mxu1 %v3603_v14  ;;  %3519 = vmatpush3.bf16.msra.mxu0 %v3602_v8 }
 0x64f   :  { %3520 = vmatprep.subr.bf16.mxu0 %v3604_v5 }
 0x651   :  { %3501 = vmatpush3.bf16.msra.mxu1 %v3603_v14 }
 0x652   :  { %3521 = vmatpush3.bf16.msra.mxu0 %v3604_v5 }
 0x654   :  { %3487 = vmatmul.mubr.bf16.gmra.mrb[52].mxu0 %v6494_v42 }
 0x655   :  { %3490 = vmatprep.mubr.bf16.mxu0 %v6495_v33 }
 0x65c   :  { %3491 = vmatmul.mubr.bf16.gmra.mrb[56].mxu0 %v6496_v6 }
 0x71f   :  { %v3484_v55 = vpop.f32.mrb[48].mxu0  ;;  %v3496_v3 = vpop.f32.mrb[64].mxu1 }
 0x720   :  { %v2452_v35 = vpop.f32.mrb[49].mxu0  ;;  %v2500_v7 = vpop.f32.mrb[65].mxu1  ;;  %v2517_v60 = vadd.f32 %v3484_v55, %v5157_v44  ;;  %v2529_v34 = vadd.f32 %v3496_v3, %v5264_v49  ;;  %v6522_v49 = vld [vmem:[#allocation22_spill] sm:$0xff] }
 0x721   :  { %v3485_v32 = vpop.f32.mrb[50].mxu0  ;;  %v3497_v29 = vpop.f32.mrb[66].mxu1  ;;  %v2515_v62 = vadd.f32 %v2452_v35, %v5150_v18  ;;  %v2527_v21 = vadd.f32 %v2500_v7, %v5254_v28 }
 0x722   :  { %v2518_v59 = vadd.f32 %v3485_v32, %v5159_v15  ;;  %v2530_v4 = vadd.f32 %v3497_v29, %v5266_v17  ;;  %v2455_v19 = vpop.f32.mrb[51].mxu0  ;;  %v2503_v27 = vpop.f32.mrb[67].mxu1  ;;  %v6519_v17 = vld [vmem:[#allocation63_spill] sm:$0xff] }
 0x723   :  { %v2516_v39 = vadd.f32 %v2455_v19, %v5152_v43  ;;  %v2528_v54 = vadd.f32 %v2503_v27, %v5250_v1 }
 0x724   :  { %v2532_v26 = vpack.c.bf16 %v2518_v59, %v2517_v60  ;;  %v2538_v2 = vpack.c.bf16 %v2530_v4, %v2529_v34 }
 0x725   :  { %v2531_v38 = vpack.c.bf16 %v2516_v39, %v2515_v62  ;;  %v2537_v8 = vpack.c.bf16 %v2528_v54, %v2527_v21  ;;  %v3605_v21 = vld [vmem:[%s6189_s10] ss:$0 sm:$0xff] }
 0x727   :  { %v3488_v22 = vpop.f32.mrb[52].mxu0  ;;  %3502 = vmatprep.mubr.msk.bf16.mxu1 %vm6351_vm1, %v2531_v38 }
 0x728   :  { %v2468_v20 = vpop.f32.mrb[53].mxu0  ;;  %3503 = vmatmul.mubr.msk.bf16.vlgmr.msra.gmra.mrb[68].mxu1 %vm6351_vm1, %v2532_v26  ;;  %v2521_v14 = vadd.f32 %v3488_v22, %v5193_v41 }
 0x729   :  { %v3489_v13 = vpop.f32.mrb[54].mxu0  ;;  %v2519_v33 = vadd.f32 %v2468_v20, %v5171_v23 }
 0x72a   :  { %v2522_v5 = vadd.f32 %v3489_v13, %v5198_v9  ;;  %v2471_v42 = vpop.f32.mrb[55].mxu0  ;;  %v6533_v9 = vld [vmem:[#allocation20_spill] sm:$0xff] }
 0x72b   :  { %v2520_v6 = vadd.f32 %v2471_v42, %v5180_v16 }
 0x72c   :  { %v2534_v55 = vpack.c.bf16 %v2522_v5, %v2521_v14 }
 0x72d   :  { %v2533_v3 = vpack.c.bf16 %v2520_v6, %v2519_v33 }
 0x72f   :  { %v3492_v35 = vpop.f32.mrb[56].mxu0  ;;  %3506 = vmatprep.mubr.msk.bf16.mxu1 %vm6351_vm1, %v2533_v3 }
 0x730   :  { %v2484_v7 = vpop.f32.mrb[57].mxu0  ;;  %3507 = vmatmul.mubr.msk.bf16.gmra.mrb[72].mxu1 %vm6351_vm1, %v2534_v55  ;;  %v2525_v29 = vadd.f32 %v3492_v35, %v5241_v37 }
 0x731   :  { %v3493_v32 = vpop.f32.mrb[58].mxu0  ;;  %v2523_v59 = vadd.f32 %v2484_v7, %v5223_v12  ;;  %v6530_v12 = vld [vmem:[#allocation67_spill] sm:$0xff] }
 0x732   :  { %v2526_v60 = vadd.f32 %v3493_v32, %v5243_v48  ;;  %v2487_v34 = vpop.f32.mrb[59].mxu0 }
 0x733   :  { %v2524_v4 = vadd.f32 %v2487_v34, %v5225_v52 }
 0x734   :  { %v2536_v19 = vpack.c.bf16 %v2526_v60, %v2525_v29 }
 0x735   :  { %v2535_v27 = vpack.c.bf16 %v2524_v4, %v2523_v59 }
 0x737   :  { %3510 = vmatprep.mubr.msk.bf16.mxu1 %vm6351_vm1, %v2535_v27 }
 0x738   :  { %3511 = vmatmul.mubr.msk.bf16.gmra.mrb[76].mxu1 %vm6351_vm1, %v2536_v19 }
 0x739   :  { %3514 = vmatprep.mubr.msk.bf16.mxu1 %vm6351_vm1, %v2537_v8 }
 0x740   :  { %3515 = vmatmul.mubr.msk.bf16.gmra.mrb[80].mxu1 %vm6351_vm1, %v2538_v2 }
 0x7fb   :  { %v3504_v62 = vpop.f32.mrb[68].mxu1 }
 0x7fc   :  { %v2606_v39 = vadd.f32 %v3605_v21, %v3504_v62  ;;  %v2597_v54 = vpop.f32.mrb[69].mxu1 }
 0x7fd   :  { %v2598_v26 = vadd.f32 %v3605_v21, %v2597_v54  ;;  %v3505_v38 = vpop.f32.mrb[70].mxu1 }
 0x7fe   :  { %v2609_v22 = vadd.f32 %v3605_v21, %v3505_v38  ;;  %v2600_v20 = vpop.f32.mrb[71].mxu1  ;;  %v2662_v14 = vmax.f32 %v2606_v39, 0.0 }
 0x7ff   :  { %v2601_v13 = vadd.f32 %v3605_v21, %v2600_v20  ;;  %v2660_v42 = vmax.f32 %v2598_v26, 0.0 }
 0x800   :  { %v2663_v5 = vmax.f32 %v2609_v22, 0.0 }
 0x801   :  { %v2661_v33 = vmax.f32 %v2601_v13, 0.0 }
 0x802   :  { %v2677_v6 = vpack.c.bf16 %v2663_v5, %v2662_v14 }
 0x803   :  { %v2676_v8 = vpack.c.bf16 %v2661_v33, %v2660_v42  ;;  %v3508_v55 = vpop.f32.mrb[72].mxu1 }
 0x804   :  { %v2622_v2 = vadd.f32 %v3605_v21, %v3508_v55  ;;  %v2613_v3 = vpop.f32.mrb[73].mxu1 }
 0x805   :  { %v2614_v35 = vadd.f32 %v3605_v21, %v2613_v3  ;;  %v3509_v7 = vpop.f32.mrb[74].mxu1  ;;  %3522 = vmatprep.mubr.msk.bf16.mxu0 %vm6351_vm1, %v2676_v8 }
 0x806   :  { %v2625_v32 = vadd.f32 %v3605_v21, %v3509_v7  ;;  %v2616_v29 = vpop.f32.mrb[75].mxu1  ;;  %3523 = vmatmul.mubr.msk.bf16.vlgmr.msra.gmra.mrb[60].mxu0 %vm6351_vm1, %v2677_v6  ;;  %v2666_v34 = vmax.f32 %v2622_v2, 0.0 }
 0x807   :  { %v2617_v60 = vadd.f32 %v3605_v21, %v2616_v29  ;;  %v2664_v4 = vmax.f32 %v2614_v35, 0.0 }
 0x808   :  { %v2667_v59 = vmax.f32 %v2625_v32, 0.0 }
 0x809   :  { %v2665_v19 = vmax.f32 %v2617_v60, 0.0 }
 0x80a   :  { %v2679_v27 = vpack.c.bf16 %v2667_v59, %v2666_v34 }
 0x80b   :  { %v2678_v62 = vpack.c.bf16 %v2665_v19, %v2664_v4  ;;  %v3512_v39 = vpop.f32.mrb[76].mxu1 }
 0x80c   :  { %v2638_v54 = vadd.f32 %v3605_v21, %v3512_v39  ;;  %v2629_v26 = vpop.f32.mrb[77].mxu1 }
 0x80d   :  { %v2630_v38 = vadd.f32 %v3605_v21, %v2629_v26  ;;  %v3513_v22 = vpop.f32.mrb[78].mxu1  ;;  %3526 = vmatprep.mubr.msk.bf16.mxu0 %vm6351_vm1, %v2678_v62  ;;  %v6497_v26 = vld [vmem:[#allocation39_spill] sm:$0xff] }
 0x80e   :  { %v2641_v20 = vadd.f32 %v3605_v21, %v3513_v22  ;;  %v2632_v13 = vpop.f32.mrb[79].mxu1  ;;  %3527 = vmatmul.mubr.msk.bf16.gmra.mrb[64].mxu0 %vm6351_vm1, %v2679_v27  ;;  %v2670_v5 = vmax.f32 %v2638_v54, 0.0  ;;  %v5326_v54 = vld [vmem:[%s6190_s12] ss:$0 sm:$0xff] }
 0x80f   :  { %v2633_v14 = vadd.f32 %v3605_v21, %v2632_v13  ;;  %v2668_v33 = vmax.f32 %v2630_v38, 0.0  ;;  %v1435_v38 = vadd.f32 %v5326_v54, %v6497_v26  ;;  %v6498_v22 = vld [vmem:[#allocation42_spill] sm:$0xff] }
 0x810   :  { %v2671_v42 = vmax.f32 %v2641_v20, 0.0  ;;  %v6499_v20 = vld [vmem:[#allocation3_spill] sm:$0xff] }
 0x811   :  { %v2669_v6 = vmax.f32 %v2633_v14, 0.0  ;;  %v5333_v13 = vmul.f32 %v1435_v38, %v6499_v20  ;;  %v6501_v14 = vld [vmem:[#allocation16_spill] sm:$0xff] }
 0x812   :  { %v2681_v8 = vpack.c.bf16 %v2671_v42, %v2670_v5  ;;  %v1440_v5 = vadd.f32 %v6501_v14, %v5326_v54  ;;  %v6502_v42 = vld [vmem:[#allocation2_spill] sm:$0xff] }
 0x813   :  { %v2680_v55 = vpack.c.bf16 %v2669_v6, %v2668_v33  ;;  %v3516_v2 = vpop.f32.mrb[80].mxu1  ;;  %6500 = vst [vmem:[#allocation4_spill] sm:$0xff] %v5333_v13  ;;  %v1513_v6 = vmul.f32 %v5333_v13, %v6499_v20 }
 0x814   :  { %v2654_v3 = vadd.f32 %v3605_v21, %v3516_v2  ;;  %v2645_v35 = vpop.f32.mrb[81].mxu1 }
 0x815   :  { %v2646_v7 = vadd.f32 %v3605_v21, %v2645_v35  ;;  %v3517_v32 = vpop.f32.mrb[82].mxu1  ;;  %3530 = vmatprep.mubr.msk.bf16.mxu0 %vm6351_vm1, %v2680_v55 }
 0x816   :  { %v2657_v29 = vadd.f32 %v3605_v21, %v3517_v32  ;;  %v2648_v60 = vpop.f32.mrb[83].mxu1  ;;  %3531 = vmatmul.mubr.msk.bf16.gmra.mrb[68].mxu0 %vm6351_vm1, %v2681_v8  ;;  %v2674_v59 = vmax.f32 %v2654_v3, 0.0  ;;  %v6504_v8 = vld [vmem:[#allocation6_spill] sm:$0xff]  ;;  %v6506_v3 = vld [vmem:[#allocation41_spill] sm:$0xff]  ;;  %v6507_v32 = vld [vmem:[#allocation59_spill] sm:$0xff] }
 0x817   :  { %v2649_v34 = vadd.f32 %v3605_v21, %v2648_v60  ;;  %v2672_v19 = vmax.f32 %v2646_v7, 0.0  ;;  %v1432_v21 = vadd.f32 %v5326_v54, %v6498_v22  ;;  %v5343_v55 = vmul.f32 %v1440_v5, %v6504_v8  ;;  %v6513_v5 = vld [vmem:[#allocation11_spill] sm:$0xff] }
 0x818   :  { %v2675_v4 = vmax.f32 %v2657_v29, 0.0  ;;  %v1443_v35 = vadd.f32 %v6506_v3, %v5326_v54  ;;  %v1529_v7 = vsel %vm6351_vm1, %v1513_v6, 0.0  ;;  %v1448_v29 = vadd.f32 %v5326_v54, %v6507_v32  ;;  %v6515_v3 = vld [vmem:[#allocation40_spill] sm:$0xff] }
 0x819   :  { %v2673_v27 = vmax.f32 %v2649_v34, 0.0  ;;  %v5338_v33 = vmul.f32 %v1432_v21, %v6502_v42  ;;  %6505 = vst [vmem:[#allocation5_spill] sm:$0xff] %v5343_v55  ;;  %v1514_v60 = vmul.f32 %v5343_v55, %v6504_v8 }
 0x81a   :  { %v2683_v62 = vpack.c.bf16 %v2675_v4, %v2674_v59  ;;  %v6508_v59 = vld [vmem:[#allocation7_spill] sm:$0xff] }
 0x81b   :  { %v2682_v39 = vpack.c.bf16 %v2673_v27, %v2672_v19  ;;  %6503 = vst [vmem:[#allocation13_spill] sm:$0xff] %v5338_v33  ;;  %v1512_v2 = vmul.f32 %v5338_v33, %v6502_v42  ;;  %v5356_v4 = vmul.f32 %v1443_v35, %v6508_v59  ;;  %v6510_v27 = vld [vmem:[#allocation10_spill] sm:$0xff]  ;;  %v1531_v38 = vsel %vm6351_vm1, %v1514_v60, 0.0 }
 0x81c   :  { %v1456_v35 = vadd.f32 %v6515_v3, %v5326_v54  ;;  %v6516_v60 = vld [vmem:[#allocation14_spill] sm:$0xff] }
 0x81d   :  { %3534 = vmatprep.mubr.msk.bf16.mxu0 %vm6351_vm1, %v2682_v39  ;;  %v1528_v34 = vsel %vm6351_vm1, %v1512_v2, 0.0  ;;  %6509 = vst [vmem:[#allocation8_spill] sm:$0xff] %v5356_v4  ;;  %v6512_v39 = vld [vmem:[#allocation61_spill] sm:$0xff]  ;;  %v1515_v22 = vmul.f32 %v5356_v4, %v6508_v59 }
 0x81e   :  { %3535 = vmatmul.mubr.msk.bf16.gmra.mrb[72].mxu0 %vm6351_vm1, %v2683_v62  ;;  %v1530_v19 = vadd.f32 %v1529_v7, %v1528_v34  ;;  %v5359_v62 = vmul.f32 %v1448_v29, %v6510_v27  ;;  %v1451_v26 = vadd.f32 %v5326_v54, %v6512_v39  ;;  %v5378_v34 = vmul.f32 %v1456_v35, %v6516_v60  ;;  %v6524_v35 = vld [vmem:[#allocation65_spill] sm:$0xff] }
 0x81f   :  { %v1533_v2 = vsel %vm6351_vm1, %v1515_v22, 0.0  ;;  %v1464_v22 = vadd.f32 %v5326_v54, %v6519_v17  ;;  %v1467_v28 = vadd.f32 %v5326_v54, %v6524_v35 }
 0x820   :  { %6511 = vst [vmem:[#allocation9_spill] sm:$0xff] %v5359_v62  ;;  %v1532_v21 = vadd.f32 %v1531_v38, %v1530_v19  ;;  %v1516_v14 = vmul.f32 %v5359_v62, %v6510_v27  ;;  %v5369_v6 = vmul.f32 %v1451_v26, %v6513_v5  ;;  %6517 = vst [vmem:[#allocation39_spill] sm:$0xff] %v5378_v34  ;;  %v6518_v19 = vld [vmem:[#allocation60_spill] sm:$0xff] }
 0x821   :  { %v1459_v39 = vadd.f32 %v6518_v19, %v5326_v54  ;;  %v5391_v1 = vmul.f32 %v1464_v22, %v6522_v49  ;;  %v6525_v19 = vld [vmem:[#allocation17_spill] sm:$0xff] }
 0x822   :  { %6514 = vst [vmem:[#allocation12_spill] sm:$0xff] %v5369_v6  ;;  %v1534_v7 = vadd.f32 %v1533_v2, %v1532_v21  ;;  %v1535_v32 = vsel %vm6351_vm1, %v1516_v14, 0.0  ;;  %v1517_v29 = vmul.f32 %v5369_v6, %v6513_v5  ;;  %v1518_v21 = vmul.f32 %v5378_v34, %v6516_v60  ;;  %v6520_v2 = vld [vmem:[#allocation15_spill] sm:$0xff] }
 0x823   :  { %v5388_v14 = vmul.f32 %v1459_v39, %v6520_v2  ;;  %6523 = vst [vmem:[#allocation3_spill] sm:$0xff] %v5391_v1  ;;  %v1520_v17 = vmul.f32 %v5391_v1, %v6522_v49  ;;  %v5401_v48 = vmul.f32 %v1467_v28, %v6525_v19 }
 0x824   :  { %v1536_v38 = vadd.f32 %v1535_v32, %v1534_v7  ;;  %v1537_v26 = vsel %vm6351_vm1, %v1517_v29, 0.0  ;;  %v1539_v7 = vsel %vm6351_vm1, %v1518_v21, 0.0 }
 0x825   :  { %6521 = vst [vmem:[#allocation42_spill] sm:$0xff] %v5388_v14  ;;  %v1519_v32 = vmul.f32 %v5388_v14, %v6520_v2  ;;  %6526 = vst [vmem:[#allocation16_spill] sm:$0xff] %v5401_v48  ;;  %v1543_v35 = vsel %vm6351_vm1, %v1520_v17, 0.0  ;;  %v1521_v21 = vmul.f32 %v5401_v48, %v6525_v19 }
 0x826   :  { %v1538_v3 = vadd.f32 %v1537_v26, %v1536_v38  ;;  %v6527_v38 = vld [vmem:[#allocation62_spill] sm:$0xff] }
 0x827   :  { %v1541_v39 = vsel %vm6351_vm1, %v1519_v32, 0.0  ;;  %v1472_v26 = vadd.f32 %v6527_v38, %v5326_v54  ;;  %v1545_v28 = vsel %vm6351_vm1, %v1521_v21, 0.0  ;;  %v1480_v32 = vadd.f32 %v5326_v54, %v6530_v12 }
 0x828   :  { %v1540_v29 = vadd.f32 %v1539_v7, %v1538_v3  ;;  %v6529_v3 = vld [vmem:[#allocation64_spill] sm:$0xff] }
 0x829   :  { %v5410_v37 = vmul.f32 %v1472_v26, %v6459_v10  ;;  %v1475_v7 = vadd.f32 %v6529_v3, %v5326_v54  ;;  %v5423_v41 = vmul.f32 %v1480_v32, %v6533_v9  ;;  %v6535_v26 = vld [vmem:[#allocation69_spill] sm:$0xff] }
 0x82a   :  { %v1542_v22 = vadd.f32 %v1541_v39, %v1540_v29  ;;  %v6531_v39 = vld [vmem:[#allocation19_spill] sm:$0xff]  ;;  %v1483_v16 = vadd.f32 %v5326_v54, %v6535_v26  ;;  %v6536_v3 = vld [vmem:[#allocation21_spill] sm:$0xff] }
 0x82b   :  { %6528 = vst [vmem:[#allocation2_spill] sm:$0xff] %v5410_v37  ;;  %v1522_v29 = vmul.f32 %v5410_v37, %v6459_v10  ;;  %v5420_v17 = vmul.f32 %v1475_v7, %v6531_v39  ;;  %6534 = vst [vmem:[#allocation41_spill] sm:$0xff] %v5423_v41  ;;  %v1524_v12 = vmul.f32 %v5423_v41, %v6533_v9  ;;  %v6538_v7 = vld [vmem:[#allocation66_spill] sm:$0xff] }
 0x82c   :  { %v1544_v52 = vadd.f32 %v1543_v35, %v1542_v22  ;;  %v5433_v23 = vmul.f32 %v1483_v16, %v6536_v3 }
 0x82d   :  { %6532 = vst [vmem:[#allocation6_spill] sm:$0xff] %v5420_v17  ;;  %v1547_v22 = vsel %vm6351_vm1, %v1522_v29, 0.0  ;;  %v1523_v35 = vmul.f32 %v5420_v17, %v6531_v39  ;;  %v1551_v26 = vsel %vm6351_vm1, %v1524_v12, 0.0 }
 0x82e   :  { %v1546_v38 = vadd.f32 %v1545_v28, %v1544_v52  ;;  %6537 = vst [vmem:[#allocation59_spill] sm:$0xff] %v5433_v23  ;;  %v1488_v28 = vadd.f32 %v6538_v7, %v5326_v54  ;;  %v1525_v29 = vmul.f32 %v5433_v23, %v6536_v3 }
 0x82f   :  { %v1549_v52 = vsel %vm6351_vm1, %v1523_v35, 0.0 }
 0x830   :  { %v1548_v21 = vadd.f32 %v1547_v22, %v1546_v38  ;;  %v5442_v15 = vmul.f32 %v1488_v28, %v4108_v47  ;;  %v6540_v38 = vld [vmem:[#allocation68_spill] sm:$0xff]  ;;  %v1553_v16 = vsel %vm6351_vm1, %v1525_v29, 0.0 }
 0x831   :  { %v1491_v22 = vadd.f32 %v6540_v38, %v5326_v54 }
 0x832   :  { %v1550_v32 = vadd.f32 %v1549_v52, %v1548_v21  ;;  %6539 = vst [vmem:[#allocation7_spill] sm:$0xff] %v5442_v15  ;;  %v1526_v35 = vmul.f32 %v5442_v15, %v4108_v47 }
 0x833   :  { %v5450_v7 = vmul.f32 %v1491_v22, %v4110_v25 }
 0x834   :  { %v1552_v44 = vadd.f32 %v1551_v26, %v1550_v32  ;;  %v1555_v12 = vsel %vm6351_vm1, %v1526_v35, 0.0 }
 0x835   :  { %6541 = vst [vmem:[#allocation10_spill] sm:$0xff] %v5450_v7  ;;  %v1527_v52 = vmul.f32 %v5450_v7, %v4110_v25 }
 0x836   :  { %v1554_v21 = vadd.f32 %v1553_v16, %v1552_v44 }
 0x837   :  { %v1557_v43 = vsel %vm6351_vm1, %v1527_v52, 0.0 }
 0x838   :  { %v1556_v28 = vadd.f32 %v1555_v12, %v1554_v21 }
 0x83a   :  { %v1558_v18 = vadd.f32 %v1557_v43, %v1556_v28 }
 0x83c   :  { %v1559_v38 = vrot.slane %v1558_v18, 4 }
 0x83e   :  { %v1560_v32 = vadd.f32 %v1559_v38, %v1558_v18 }
 0x840   :  { %v1561_v26 = vrot.slane %v1560_v32, 2 }
 0x842   :  { %v1562_v29 = vadd.f32 %v1561_v26, %v1560_v32 }
 0x844   :  { %v1563_v45 = vrot.slane %v1562_v29, 1 }
 0x846   :  { %v1564_v46 = vadd.f32 %v1563_v45, %v1562_v29 }
 0x848   :  { %v5457_v61 = vmul.f32 %v1564_v46, %v4328_v40 }
 0x84a   :  { %v5461_v44 = vsub.f32 %v5338_v33, %v5457_v61  ;;  %v5465_v22 = vsub.f32 %v5333_v13, %v5457_v61  ;;  %v5473_v45 = vsub.f32 %v5343_v55, %v5457_v61  ;;  %v5479_v35 = vsub.f32 %v5356_v4, %v5457_v61 }
 0x84b   :  { %v5487_v28 = vsub.f32 %v5359_v62, %v5457_v61  ;;  %v5494_v29 = vsub.f32 %v5369_v6, %v5457_v61  ;;  %v5502_v0 = vsub.f32 %v5378_v34, %v5457_v61 }
 0x84c   :  { %v1582_v43 = vmul.f32 %v5461_v44, %v5461_v44  ;;  %v1583_v18 = vmul.f32 %v5465_v22, %v5465_v22  ;;  %v1584_v21 = vmul.f32 %v5473_v45, %v5473_v45  ;;  %v1585_v38 = vmul.f32 %v5479_v35, %v5479_v35 }
 0x84e   :  { %v1598_v46 = vmul.f32 %v1582_v43, %v6502_v42  ;;  %v1599_v16 = vmul.f32 %v1583_v18, %v6499_v20  ;;  %v1600_v32 = vmul.f32 %v1584_v21, %v6504_v8  ;;  %v1586_v43 = vmul.f32 %v5487_v28, %v5487_v28 }
 0x84f   :  { %v1601_v18 = vmul.f32 %v1585_v38, %v6508_v59  ;;  %v1587_v21 = vmul.f32 %v5494_v29, %v5494_v29 }
 0x850   :  { %v1614_v12 = vsel %vm6351_vm1, %v1598_v46, 0.0  ;;  %v1615_v52 = vsel %vm6351_vm1, %v1599_v16, 0.0  ;;  %v1617_v46 = vsel %vm6351_vm1, %v1600_v32, 0.0 }
 0x851   :  { %v1616_v26 = vadd.f32 %v1615_v52, %v1614_v12  ;;  %v1602_v12 = vmul.f32 %v1586_v43, %v6510_v27  ;;  %v1619_v52 = vsel %vm6351_vm1, %v1601_v18, 0.0  ;;  %v1603_v58 = vmul.f32 %v1587_v21, %v6513_v5 }
 0x853   :  { %v1618_v16 = vadd.f32 %v1617_v46, %v1616_v26  ;;  %v5512_v26 = vsub.f32 %v5388_v14, %v5457_v61  ;;  %v1588_v46 = vmul.f32 %v5502_v0, %v5502_v0  ;;  %v5528_v14 = vsub.f32 %v5391_v1, %v5457_v61 }
 0x855   :  { %v1620_v63 = vadd.f32 %v1619_v52, %v1618_v16  ;;  %v1621_v16 = vsel %vm6351_vm1, %v1602_v12, 0.0 }
 0x857   :  { %v1622_v57 = vadd.f32 %v1621_v16, %v1620_v63 }
 0x8d9   :  { %v3524_v11 = vpop.f32.mrb[60].mxu0 }
 0x8da   :  { %v2751_v24 = vadd.f32 %v3524_v11, %v5326_v54  ;;  %v2742_v36 = vpop.f32.mrb[61].mxu0 }
 0x8db   :  { %v2743_v38 = vadd.f32 %v5326_v54, %v2742_v36  ;;  %v3525_v32 = vpop.f32.mrb[62].mxu0 }
 0x8dc   :  { %v2754_v43 = vadd.f32 %v3525_v32, %v5326_v54  ;;  %v2745_v18 = vpop.f32.mrb[63].mxu0  ;;  %v5520_v11 = vmul.f32 %v2751_v24, %v6504_v8  ;;  %v1589_v24 = vmul.f32 %v5512_v26, %v5512_v26 }
 0x8dd   :  { %v5523_v36 = vmul.f32 %v2743_v38, %v6502_v42  ;;  %v2746_v52 = vadd.f32 %v5326_v54, %v2745_v18  ;;  %v1604_v38 = vmul.f32 %v1588_v46, %v6516_v60  ;;  %v1623_v18 = vsel %vm6351_vm1, %v1603_v58, 0.0 }
 0x8de   :  { %v5533_v32 = vmul.f32 %v2754_v43, %v6508_v59  ;;  %v2823_v1 = vmul.f32 %v5520_v11, %v6504_v8  ;;  %v5548_v43 = vsub.f32 %v5401_v48, %v5457_v61  ;;  %v1624_v34 = vadd.f32 %v1623_v18, %v1622_v57 }
 0x8df   :  { %v2821_v21 = vmul.f32 %v5523_v36, %v6502_v42  ;;  %v5536_v12 = vmul.f32 %v2746_v52, %v6499_v20  ;;  %v1590_v52 = vmul.f32 %v5528_v14, %v5528_v14  ;;  %v1605_v48 = vmul.f32 %v1589_v24, %v6520_v2 }
 0x8e0   :  { %6542 = vst [vmem:[#allocation61_spill] sm:$0xff] %v5548_v43  ;;  %v2824_v6 = vmul.f32 %v5533_v32, %v6508_v59  ;;  %v1625_v4 = vsel %vm6351_vm1, %v1604_v38, 0.0 }
 0x8e1   :  { %v2822_v63 = vmul.f32 %v5536_v12, %v6499_v20  ;;  %v3528_v16 = vpop.f32.mrb[64].mxu0  ;;  %v2837_v58 = vsel %vm6351_vm1, %v2821_v21, 0.0  ;;  %v1626_v24 = vadd.f32 %v1625_v4, %v1624_v34  ;;  %v1627_v4 = vsel %vm6351_vm1, %v1605_v48, 0.0 }
 0x8e2   :  { %v2767_v30 = vadd.f32 %v3528_v16, %v5326_v54  ;;  %v2758_v46 = vpop.f32.mrb[65].mxu0  ;;  %v2840_v16 = vsel %vm6351_vm1, %v2823_v1, 0.0 }
 0x8e3   :  { %v2838_v56 = vsel %vm6351_vm1, %v2822_v63, 0.0  ;;  %v2759_v62 = vadd.f32 %v5326_v54, %v2758_v46  ;;  %v3529_v53 = vpop.f32.mrb[66].mxu0  ;;  %v5571_v46 = vsub.f32 %v5410_v37, %v5457_v61 }
 0x8e4   :  { %v2839_v31 = vadd.f32 %v2838_v56, %v2837_v58  ;;  %v2770_v57 = vadd.f32 %v3529_v53, %v5326_v54  ;;  %v2761_v18 = vpop.f32.mrb[67].mxu0  ;;  %v5563_v21 = vmul.f32 %v2767_v30, %v6516_v60  ;;  %v2842_v56 = vsel %vm6351_vm1, %v2824_v6, 0.0 }
 0x8e5   :  { %v5566_v55 = vmul.f32 %v2759_v62, %v6510_v27  ;;  %v2762_v63 = vadd.f32 %v5326_v54, %v2761_v18  ;;  %6544 = vst [vmem:[#allocation40_spill] sm:$0xff] %v5571_v46  ;;  %v1591_v62 = vmul.f32 %v5548_v43, %v5548_v43  ;;  %v1606_v58 = vmul.f32 %v1590_v52, %v6522_v49 }
 0x8e6   :  { %6543 = vst [vmem:[#allocation11_spill] sm:$0xff] %v5563_v21  ;;  %v2841_v38 = vadd.f32 %v2840_v16, %v2839_v31  ;;  %v5577_v1 = vmul.f32 %v2770_v57, %v6520_v2  ;;  %v2827_v31 = vmul.f32 %v5563_v21, %v6516_v60  ;;  %v1628_v16 = vadd.f32 %v1627_v4, %v1626_v24 }
 0x8e7   :  { %v2825_v53 = vmul.f32 %v5566_v55, %v6510_v27  ;;  %v5580_v30 = vmul.f32 %v2762_v63, %v6513_v5  ;;  %v1592_v52 = vmul.f32 %v5571_v46, %v5571_v46  ;;  %v1607_v13 = vmul.f32 %v1591_v62, %v6525_v19 }
 0x8e8   :  { %6545 = vst [vmem:[#allocation14_spill] sm:$0xff] %v5577_v1  ;;  %v2843_v18 = vadd.f32 %v2842_v56, %v2841_v38  ;;  %v2828_v48 = vmul.f32 %v5577_v1, %v6520_v2  ;;  %v1629_v50 = vsel %vm6351_vm1, %v1606_v58, 0.0  ;;  %v5642_v46 = vsub.f32 %v5433_v23, %v5457_v61 }
 0x8e9   :  { %6546 = vst [vmem:[#allocation60_spill] sm:$0xff] %v5580_v30  ;;  %v2844_v6 = vsel %vm6351_vm1, %v2825_v53, 0.0  ;;  %v2826_v34 = vmul.f32 %v5580_v30, %v6513_v5  ;;  %v3532_v57 = vpop.f32.mrb[68].mxu0  ;;  %v1630_v62 = vadd.f32 %v1629_v50, %v1628_v16  ;;  %v1631_v50 = vsel %vm6351_vm1, %v1607_v13, 0.0 }
 0x8ea   :  { %v2845_v63 = vadd.f32 %v2844_v6, %v2843_v18  ;;  %v2783_v37 = vadd.f32 %v3532_v57, %v5326_v54  ;;  %v2774_v51 = vpop.f32.mrb[69].mxu0  ;;  %v2848_v6 = vsel %vm6351_vm1, %v2827_v31, 0.0  ;;  %6552 = vst [vmem:[#allocation62_spill] sm:$0xff] %v5642_v46 }
 0x8eb   :  { %v2846_v38 = vsel %vm6351_vm1, %v2826_v34, 0.0  ;;  %v2775_v56 = vadd.f32 %v5326_v54, %v2774_v51  ;;  %v3533_v53 = vpop.f32.mrb[70].mxu0  ;;  %v5611_v51 = vsub.f32 %v5420_v17, %v5457_v61 }
 0x8ec   :  { %v2847_v24 = vadd.f32 %v2846_v38, %v2845_v63  ;;  %v2786_v18 = vadd.f32 %v3533_v53, %v5326_v54  ;;  %v2777_v4 = vpop.f32.mrb[71].mxu0  ;;  %v5603_v57 = vmul.f32 %v2783_v37, %v6459_v10  ;;  %v2850_v63 = vsel %vm6351_vm1, %v2828_v48, 0.0 }
 0x8ed   :  { %v5606_v33 = vmul.f32 %v2775_v56, %v6522_v49  ;;  %v2778_v34 = vadd.f32 %v5326_v54, %v2777_v4  ;;  %6549 = vst [vmem:[#allocation22_spill] sm:$0xff] %v5611_v51  ;;  %v5624_v56 = vsub.f32 %v5423_v41, %v5457_v61  ;;  %v1608_v53 = vmul.f32 %v1592_v52, %v6459_v10 }
 0x8ee   :  { %6547 = vst [vmem:[#allocation63_spill] sm:$0xff] %v5603_v57  ;;  %v2849_v58 = vadd.f32 %v2848_v6, %v2847_v24  ;;  %v5617_v31 = vmul.f32 %v2786_v18, %v6531_v39  ;;  %v2831_v16 = vmul.f32 %v5603_v57, %v6459_v10  ;;  %v1593_v6 = vmul.f32 %v5611_v51, %v5611_v51 }
 0x8ef   :  { %6548 = vst [vmem:[#allocation15_spill] sm:$0xff] %v5606_v33  ;;  %v2829_v38 = vmul.f32 %v5606_v33, %v6522_v49  ;;  %v5620_v37 = vmul.f32 %v2778_v34, %v6525_v19  ;;  %v1632_v34 = vadd.f32 %v1631_v50, %v1630_v62  ;;  %v1633_v43 = vsel %vm6351_vm1, %v1608_v53, 0.0 }
 0x8f0   :  { %6550 = vst [vmem:[#allocation65_spill] sm:$0xff] %v5617_v31  ;;  %v2851_v4 = vadd.f32 %v2850_v63, %v2849_v58  ;;  %v2832_v13 = vmul.f32 %v5617_v31, %v6531_v39  ;;  %v2856_v50 = vsel %vm6351_vm1, %v2831_v16, 0.0  ;;  %v1609_v23 = vmul.f32 %v1593_v6, %v6531_v39 }
 0x8f1   :  { %6551 = vst [vmem:[#allocation17_spill] sm:$0xff] %v5620_v37  ;;  %v2852_v48 = vsel %vm6351_vm1, %v2829_v38, 0.0  ;;  %v2830_v24 = vmul.f32 %v5620_v37, %v6525_v19  ;;  %v3536_v18 = vpop.f32.mrb[72].mxu0  ;;  %v1634_v53 = vadd.f32 %v1633_v43, %v1632_v34  ;;  %v1595_v34 = vmul.f32 %v5642_v46, %v5642_v46 }
 0x8f2   :  { %v2853_v41 = vadd.f32 %v2852_v48, %v2851_v4  ;;  %v2799_v17 = vadd.f32 %v3536_v18, %v5326_v54  ;;  %v2790_v52 = vpop.f32.mrb[73].mxu0 }
 0x8f3   :  { %v2854_v58 = vsel %vm6351_vm1, %v2830_v24, 0.0  ;;  %v2791_v63 = vadd.f32 %v5326_v54, %v2790_v52  ;;  %v3537_v38 = vpop.f32.mrb[74].mxu0  ;;  %v1594_v52 = vmul.f32 %v5624_v56, %v5624_v56 }
 0x8f4   :  { %v2855_v51 = vadd.f32 %v2854_v58, %v2853_v41  ;;  %v2802_v62 = vadd.f32 %v3537_v38, %v5326_v54  ;;  %v2793_v4 = vpop.f32.mrb[75].mxu0  ;;  %v5648_v48 = vmul.f32 %v2799_v17, %v4108_v47  ;;  %v2858_v58 = vsel %vm6351_vm1, %v2832_v13, 0.0 }
 0x8f5   :  { %v5651_v24 = vmul.f32 %v2791_v63, %v6533_v9  ;;  %v2794_v18 = vadd.f32 %v5326_v54, %v2793_v4  ;;  %v5668_v54 = vsub.f32 %v5442_v15, %v5457_v61  ;;  %v1610_v13 = vmul.f32 %v1594_v52, %v6533_v9 }
 0x8f6   :  { %6553 = vst [vmem:[#allocation64_spill] sm:$0xff] %v5648_v48  ;;  %v2857_v41 = vadd.f32 %v2856_v50, %v2855_v51  ;;  %v5661_v17 = vmul.f32 %v2802_v62, %v4110_v25  ;;  %v2835_v43 = vmul.f32 %v5648_v48, %v4108_v47  ;;  %v1635_v62 = vsel %vm6351_vm1, %v1609_v23, 0.0 }
 0x8f7   :  { %6554 = vst [vmem:[#allocation67_spill] sm:$0xff] %v5651_v24  ;;  %v2833_v16 = vmul.f32 %v5651_v24, %v6533_v9  ;;  %v5664_v63 = vmul.f32 %v2794_v18, %v6536_v3  ;;  %6557 = vst [vmem:[#allocation69_spill] sm:$0xff] %v5668_v54  ;;  %v1636_v50 = vadd.f32 %v1635_v62, %v1634_v53  ;;  %v1637_v23 = vsel %vm6351_vm1, %v1610_v13, 0.0 }
 0x8f8   :  { %6555 = vst [vmem:[#allocation19_spill] sm:$0xff] %v5661_v17  ;;  %v2859_v38 = vadd.f32 %v2858_v58, %v2857_v41  ;;  %v2836_v18 = vmul.f32 %v5661_v17, %v4110_v25  ;;  %v2864_v15 = vsel %vm6351_vm1, %v2835_v43, 0.0  ;;  %v1596_v46 = vmul.f32 %v5668_v54, %v5668_v54 }
 0x8f9   :  { %6556 = vst [vmem:[#allocation20_spill] sm:$0xff] %v5664_v63  ;;  %v2860_v51 = vsel %vm6351_vm1, %v2833_v16, 0.0  ;;  %v2834_v6 = vmul.f32 %v5664_v63, %v6536_v3  ;;  %v5684_v16 = vsub.f32 %v5450_v7, %v5457_v61  ;;  %v1611_v52 = vmul.f32 %v1595_v34, %v6536_v3 }
 0x8fa   :  { %v2861_v4 = vadd.f32 %v2860_v51, %v2859_v38  ;;  %v1638_v38 = vadd.f32 %v1637_v23, %v1636_v50  ;;  %v2866_v51 = vsel %vm6351_vm1, %v2836_v18, 0.0  ;;  %v1612_v61 = vmul.f32 %v1596_v46, %v4108_v47 }
 0x8fb   :  { %v2862_v41 = vsel %vm6351_vm1, %v2834_v6, 0.0  ;;  %v1597_v6 = vmul.f32 %v5684_v16, %v5684_v16 }
 0x8fc   :  { %v2863_v58 = vadd.f32 %v2862_v41, %v2861_v4  ;;  %v1639_v4 = vsel %vm6351_vm1, %v1611_v52, 0.0  ;;  %v1641_v34 = vsel %vm6351_vm1, %v1612_v61, 0.0 }
 0x8fd   :  { %v1640_v41 = vadd.f32 %v1639_v4, %v1638_v38  ;;  %v1613_v54 = vmul.f32 %v1597_v6, %v4110_v25 }
 0x8fe   :  { %v2865_v53 = vadd.f32 %v2864_v15, %v2863_v58 }
 0x8ff   :  { %v1642_v15 = vadd.f32 %v1641_v34, %v1640_v41  ;;  %v1643_v18 = vsel %vm6351_vm1, %v1613_v54, 0.0 }
 0x900   :  { %v2867_v62 = vadd.f32 %v2866_v51, %v2865_v53 }
 0x901   :  { %v1644_v23 = vadd.f32 %v1643_v18, %v1642_v15 }
 0x902   :  { %v2868_v43 = vrot.slane %v2867_v62, 4 }
 0x903   :  { %v1645_v46 = vrot.slane %v1644_v23, 4 }
 0x904   :  { %v2869_v7 = vadd.f32 %v2868_v43, %v2867_v62 }
 0x905   :  { %v1646_v54 = vadd.f32 %v1645_v46, %v1644_v23 }
 0x906   :  { %v2870_v13 = vrot.slane %v2869_v7, 2 }
 0x907   :  { %v1647_v41 = vrot.slane %v1646_v54, 2 }
 0x908   :  { %v2871_v50 = vadd.f32 %v2870_v13, %v2869_v7 }
 0x90a   :  { %v2872_v58 = vrot.slane %v2871_v50, 1 }
 0x90c   :  { %v2873_v53 = vadd.f32 %v2872_v58, %v2871_v50 }
 0x90e   :  { %v5700_v51 = vmul.f32 %v2873_v53, %v4328_v40  ;;  %v1648_v53 = vadd.f32 %v1647_v41, %v1646_v54 }
 0x910   :  { %v5704_v52 = vsub.f32 %v5523_v36, %v5700_v51  ;;  %v5708_v38 = vsub.f32 %v5536_v12, %v5700_v51  ;;  %v5712_v7 = vsub.f32 %v5520_v11, %v5700_v51  ;;  %v5716_v62 = vsub.f32 %v5533_v32, %v5700_v51 }
 0x911   :  { %v5724_v4 = vsub.f32 %v5566_v55, %v5700_v51  ;;  %v5730_v34 = vsub.f32 %v5580_v30, %v5700_v51  ;;  %v5738_v18 = vsub.f32 %v5563_v21, %v5700_v51  ;;  %v5745_v46 = vsub.f32 %v5577_v1, %v5700_v51 }
 0x912   :  { %v2891_v6 = vmul.f32 %v5704_v52, %v5704_v52  ;;  %v2892_v61 = vmul.f32 %v5708_v38, %v5708_v38  ;;  %v2893_v43 = vmul.f32 %v5712_v7, %v5712_v7  ;;  %v2894_v13 = vmul.f32 %v5716_v62, %v5716_v62 }
 0x913   :  { %v2895_v58 = vmul.f32 %v5724_v4, %v5724_v4  ;;  %v2896_v30 = vmul.f32 %v5730_v34, %v5730_v34  ;;  %v5754_v21 = vsub.f32 %v5606_v33, %v5700_v51  ;;  %v1649_v41 = vrot.slane %v1648_v53, 1 }
 0x914   :  { %v2907_v15 = vmul.f32 %v2891_v6, %v6502_v42  ;;  %v2908_v50 = vmul.f32 %v2892_v61, %v6499_v20  ;;  %v2909_v23 = vmul.f32 %v2893_v43, %v6504_v8  ;;  %v2910_v42 = vmul.f32 %v2894_v13, %v6508_v59 }
 0x915   :  { %v2897_v8 = vmul.f32 %v5738_v18, %v5738_v18  ;;  %v2911_v54 = vmul.f32 %v2895_v58, %v6510_v27  ;;  %v5762_v59 = vsub.f32 %v5620_v37, %v5700_v51  ;;  %v2898_v13 = vmul.f32 %v5745_v46, %v5745_v46 }
 0x916   :  { %v2923_v20 = vsel %vm6351_vm1, %v2907_v15, 0.0  ;;  %v2924_v6 = vsel %vm6351_vm1, %v2908_v50, 0.0  ;;  %v2926_v43 = vsel %vm6351_vm1, %v2909_v23, 0.0  ;;  %v2912_v15 = vmul.f32 %v2896_v30, %v6513_v5 }
 0x917   :  { %v2925_v61 = vadd.f32 %v2924_v6, %v2923_v20  ;;  %v2928_v50 = vsel %vm6351_vm1, %v2910_v42, 0.0  ;;  %v5770_v6 = vsub.f32 %v5603_v57, %v5700_v51  ;;  %v2899_v27 = vmul.f32 %v5754_v21, %v5754_v21  ;;  %v6587_v57 = vld [vmem:[#allocation34_spill] sm:$0xff] }
 0x918   :  { %v2913_v58 = vmul.f32 %v2897_v8, %v6516_v60  ;;  %v2930_v23 = vsel %vm6351_vm1, %v2911_v54, 0.0  ;;  %v5778_v37 = vsub.f32 %v5617_v31, %v5700_v51  ;;  %v2900_v5 = vmul.f32 %v5762_v59, %v5762_v59 }
 0x919   :  { %v2927_v1 = vadd.f32 %v2926_v43, %v2925_v61  ;;  %v1650_v61 = vadd.f32 %v1649_v41, %v1648_v53  ;;  %v2932_v30 = vsel %vm6351_vm1, %v2912_v15, 0.0  ;;  %v2901_v60 = vmul.f32 %v5770_v6, %v5770_v6 }
 0x91a   :  { %v2915_v53 = vmul.f32 %v2899_v27, %v6522_v49  ;;  %v2934_v8 = vsel %vm6351_vm1, %v2913_v58, 0.0  ;;  %v2916_v15 = vmul.f32 %v2900_v5, %v6525_v19  ;;  %v5803_v49 = vsub.f32 %v5648_v48, %v5700_v51 }
 0x91b   :  { %v2929_v20 = vadd.f32 %v2928_v50, %v2927_v1  ;;  %v2914_v1 = vmul.f32 %v2898_v13, %v6520_v2  ;;  %v5786_v50 = vsub.f32 %v5651_v24, %v5700_v51  ;;  %v1651_v54 = vmul.f32 %v1650_v61, %v4328_v40  ;;  %v6582_v24 = vld [vmem:[#allocation32_spill] sm:$0xff] }
 0x91c   :  { %v5795_v2 = vsub.f32 %v5664_v63, %v5700_v51  ;;  %v2902_v13 = vmul.f32 %v5778_v37, %v5778_v37  ;;  %v2917_v58 = vmul.f32 %v2901_v60, %v6459_v10  ;;  %v2938_v61 = vsel %vm6351_vm1, %v2915_v53, 0.0 }
 0x91d   :  { %v2931_v43 = vadd.f32 %v2930_v23, %v2929_v20  ;;  %v2936_v20 = vsel %vm6351_vm1, %v2914_v1, 0.0  ;;  %v2903_v27 = vmul.f32 %v5786_v50, %v5786_v50  ;;  %v2940_v1 = vsel %vm6351_vm1, %v2916_v15, 0.0 }
 0x91e   :  { %v2904_v19 = vmul.f32 %v5795_v2, %v5795_v2  ;;  %v2918_v5 = vmul.f32 %v2902_v13, %v6531_v39  ;;  %v2942_v60 = vsel %vm6351_vm1, %v2917_v58, 0.0  ;;  %vm6583_vm11 = vcmp.eq.s32.totalorder %v6582_v24, 1  ;;  %v6638_v24 = vld [vmem:[#allocation72_spill] sm:$0xff] }
 0x91f   :  { %v2933_v42 = vadd.f32 %v2932_v30, %v2931_v43  ;;  %v1652_v43 = vadd.f32 1e-05, %v1651_v54  ;;  %v2919_v10 = vmul.f32 %v2903_v27, %v6533_v9 }
 0x920   :  { %v2920_v54 = vmul.f32 %v2904_v19, %v6536_v3 }
 0x921   :  { %v2935_v41 = vadd.f32 %v2934_v8, %v2933_v42  ;;  %v5811_v42 = vsub.f32 %v5661_v17, %v5700_v51  ;;  %3582 = vrsqrt.f32 %v1652_v43  ;;  %v2946_v15 = vsel %vm6351_vm1, %v2919_v10, 0.0 }
 0x922   :  { %v2948_v9 = vsel %vm6351_vm1, %v2920_v54, 0.0  ;;  %v6558_v54 = vld [vmem:[#allocation61_spill] sm:$0xff] }
 0x923   :  { %v2937_v23 = vadd.f32 %v2936_v20, %v2935_v41  ;;  %v2905_v41 = vmul.f32 %v5803_v49, %v5803_v49  ;;  %v2906_v51 = vmul.f32 %v5811_v42, %v5811_v42  ;;  %v2944_v20 = vsel %vm6351_vm1, %v2918_v5, 0.0 }
 0x925   :  { %v2939_v30 = vadd.f32 %v2938_v61, %v2937_v23  ;;  %v2921_v13 = vmul.f32 %v2905_v41, %v4108_v47  ;;  %v2922_v61 = vmul.f32 %v2906_v51, %v4110_v25  ;;  %v5838_v25 = vld [vmem:[%s6191_s13] ss:$0 sm:$0xff] }
 0x927   :  { %v2941_v8 = vadd.f32 %v2940_v1, %v2939_v30  ;;  %v2950_v58 = vsel %vm6351_vm1, %v2921_v13, 0.0  ;;  %v2952_v30 = vsel %vm6351_vm1, %v2922_v61, 0.0  ;;  %vm6588_vm1 = vcmp.eq.s32.totalorder %v6587_v57, 1 }
 0x929   :  { %v2943_v53 = vadd.f32 %v2942_v60, %v2941_v8 }
 0x92b   :  { %v2945_v39 = vadd.f32 %v2944_v20, %v2943_v53  ;;  %v3583_v1 = vpop.eup %3582  ;;  %v6559_v20 = vld [vmem:[#allocation40_spill] sm:$0xff] }
 0x92c   :  { %v1654_v5 = vmul.f32 %v3583_v1, %v5461_v44  ;;  %v1655_v47 = vmul.f32 %v3583_v1, %v5465_v22  ;;  %v1656_v8 = vmul.f32 %v3583_v1, %v5473_v45  ;;  %v1657_v41 = vmul.f32 %v3583_v1, %v5479_v35 }
 0x92d   :  { %v2947_v23 = vadd.f32 %v2946_v15, %v2945_v39  ;;  %v1658_v10 = vmul.f32 %v3583_v1, %v5487_v28  ;;  %v1659_v60 = vmul.f32 %v3583_v1, %v5494_v29  ;;  %v1660_v53 = vmul.f32 %v3583_v1, %v5502_v0  ;;  %v6560_v39 = vld [vmem:[#allocation22_spill] sm:$0xff] }
 0x92e   :  { %v1661_v44 = vmul.f32 %v3583_v1, %v5512_v26  ;;  %v1662_v22 = vmul.f32 %v3583_v1, %v5528_v14  ;;  %v1663_v45 = vmul.f32 %v3583_v1, %v6558_v54  ;;  %v1664_v35 = vmul.f32 %v3583_v1, %v6559_v20 }
 0x92f   :  { %v2949_v27 = vadd.f32 %v2948_v9, %v2947_v23  ;;  %v1665_v13 = vmul.f32 %v3583_v1, %v6560_v39  ;;  %v1666_v15 = vmul.f32 %v3583_v1, %v5624_v56  ;;  %v6561_v23 = vld [vmem:[#allocation62_spill] sm:$0xff]  ;;  %v6562_v9 = vld [vmem:[#allocation69_spill] sm:$0xff]  ;;  %v1669_v0 = vmul.f32 %v3583_v1, %v5684_v16 }
 0x930   :  { %v1667_v61 = vmul.f32 %v3583_v1, %v6561_v23  ;;  %v1668_v29 = vmul.f32 %v3583_v1, %v6562_v9  ;;  %v1677_v26 = vmul.f32 %v5838_v25, %v1655_v47  ;;  %v1678_v14 = vmul.f32 %v5838_v25, %v1656_v8  ;;  %v5860_v56 = vld [vmem:[%s6192_s14] ss:$0 sm:$0xff] }
 0x931   :  { %v2951_v43 = vadd.f32 %v2950_v58, %v2949_v27  ;;  %v1676_v27 = vmul.f32 %v5838_v25, %v1654_v5  ;;  %v1679_v58 = vmul.f32 %v5838_v25, %v1657_v41  ;;  %v1682_v16 = vmul.f32 %v5838_v25, %v1660_v53 }
 0x932   :  { %v1683_v1 = vmul.f32 %v5838_v25, %v1661_v44  ;;  %v1685_v5 = vmul.f32 %v5838_v25, %v1663_v45  ;;  %v1686_v47 = vmul.f32 %v5838_v25, %v1664_v35  ;;  %v1687_v8 = vmul.f32 %v5838_v25, %v1665_v13 }
 0x933   :  { %v2953_v3 = vadd.f32 %v2952_v30, %v2951_v43  ;;  %v1680_v43 = vmul.f32 %v5838_v25, %v1658_v10  ;;  %v1688_v10 = vmul.f32 %v5838_v25, %v1666_v15  ;;  %v1690_v54 = vmul.f32 %v5838_v25, %v1668_v29 }
 0x934   :  { %v1698_v53 = vadd.f32 %v5860_v56, %v1676_v27  ;;  %v1699_v44 = vadd.f32 %v5860_v56, %v1677_v26  ;;  %v1701_v20 = vadd.f32 %v5860_v56, %v1679_v58  ;;  %v1704_v13 = vadd.f32 %v5860_v56, %v1682_v16  ;;  %v6563_v58 = vld [vmem:[#allocation13_spill] sm:$0xff]  ;;  %v6565_v16 = vld [vmem:[#allocation4_spill] sm:$0xff] }
 0x935   :  { %v2954_v19 = vrot.slane %v2953_v3, 4  ;;  %v1702_v35 = vadd.f32 %v5860_v56, %v1680_v43  ;;  %v1705_v15 = vadd.f32 %v5860_v56, %v1683_v1  ;;  %v1708_v9 = vadd.f32 %v5860_v56, %v1686_v47  ;;  %v6616_v43 = vld [vmem:[#allocation11_spill] sm:$0xff]  ;;  %v6618_v1 = vld [vmem:[#allocation14_spill] sm:$0xff] }
 0x936   :  { %v1709_v29 = vadd.f32 %v5860_v56, %v1687_v8  ;;  %v1712_v26 = vadd.f32 %v5860_v56, %v1690_v54  ;;  %v6569_v8 = vld [vmem:[#allocation8_spill] sm:$0xff] }
 0x937   :  { %v2955_v51 = vadd.f32 %v2954_v19, %v2953_v3  ;;  %v1681_v3 = vmul.f32 %v5838_v25, %v1659_v60  ;;  %v1684_v19 = vmul.f32 %v5838_v25, %v1662_v22  ;;  %v1691_v60 = vmul.f32 %v5838_v25, %v1669_v0 }
 0x938   :  { %v1700_v22 = vadd.f32 %v5860_v56, %v1678_v14  ;;  %v1710_v0 = vadd.f32 %v5860_v56, %v1688_v10  ;;  %v1717_v10 = vsel %vm992_vm5, %v1701_v20, %v6569_v8  ;;  %v6581_v8 = vld [vmem:[#allocation16_spill] sm:$0xff] }
 0x939   :  { %v2956_v28 = vrot.slane %v2955_v51, 2  ;;  %v1703_v39 = vadd.f32 %v5860_v56, %v1681_v3  ;;  %v1706_v23 = vadd.f32 %v5860_v56, %v1684_v19  ;;  %v1713_v14 = vadd.f32 %v5860_v56, %v1691_v60  ;;  %v6567_v19 = vld [vmem:[#allocation5_spill] sm:$0xff] }
 0x93a   :  { %v1716_v47 = vsel %vm991_vm4, %v1700_v22, %v6567_v19  ;;  %v6579_v19 = vld [vmem:[#allocation3_spill] sm:$0xff] }
 0x93b   :  { %v2957_v30 = vadd.f32 %v2956_v28, %v2955_v51  ;;  %v1689_v51 = vmul.f32 %v5838_v25, %v1667_v61  ;;  %v1707_v61 = vadd.f32 %v5860_v56, %v1685_v5  ;;  %v1722_v20 = vsel %vm997_vm10, %v1706_v23, %v6579_v19  ;;  %v6593_v19 = vld [vmem:[#allocation7_spill] sm:$0xff] }
 0x93c   :  { %v1732_v57 = vmax.f32 %v1716_v47, 0.0  ;;  %v6620_v5 = vld [vmem:[#allocation15_spill] sm:$0xff] }
 0x93d   :  { %v2958_v41 = vrot.slane %v2957_v30, 1  ;;  %v1711_v27 = vadd.f32 %v5860_v56, %v1689_v51  ;;  %v6571_v51 = vld [vmem:[#allocation9_spill] sm:$0xff] }
 0x93e   :  { %v1718_v60 = vsel %vm993_vm6, %v1702_v35, %v6571_v51  ;;  %v1723_v35 = vsel %vm6583_vm11, %v1707_v61, %v6581_v8  ;;  %v6584_v51 = vld [vmem:[#allocation2_spill] sm:$0xff]  ;;  %v1728_v61 = vsel %vm1003_vm0, %v1712_v26, %v6593_v19  ;;  %v6597_v19 = vld [vmem:[#allocation43_spill] sm:$0xff] }
 0x93f   :  { %v2959_v45 = vadd.f32 %v2958_v41, %v2957_v30  ;;  %v1714_v30 = vsel %vm989_vm2, %v1698_v53, %v6563_v58  ;;  %v6595_v8 = vld [vmem:[#allocation10_spill] sm:$0xff]  ;;  %v1739_v58 = vmax.f32 %v1723_v35, 0.0  ;;  %v1744_v63 = vmax.f32 %v1728_v61, 0.0  ;;  %v6603_v35 = vld [vmem:[#allocation49_spill] sm:$0xff] }
 0x940   :  { %v6622_v41 = vld [vmem:[#allocation17_spill] sm:$0xff] }
 0x941   :  { %v2960_v28 = vmul.f32 %v2959_v45, %v4328_v40  ;;  %v1715_v40 = vsel %vm990_vm3, %v1699_v44, %v6565_v16  ;;  %v6573_v45 = vld [vmem:[#allocation12_spill] sm:$0xff]  ;;  %v6577_v16 = vld [vmem:[#allocation42_spill] sm:$0xff] }
 0x942   :  { %v1719_v53 = vsel %vm994_vm7, %v1703_v39, %v6573_v45  ;;  %v1721_v22 = vsel %vm996_vm9, %v1705_v15, %v6577_v16  ;;  %v1724_v39 = vsel %vm999_vm12, %v1708_v9, %v6584_v51  ;;  %v6586_v45 = vld [vmem:[#allocation6_spill] sm:$0xff]  ;;  %v1729_v9 = vsel %vm1004_vm13, %v1713_v14, %v6595_v8  ;;  %v6598_v14 = vld [vmem:[#allocation44_spill] sm:$0xff]  ;;  %v6607_v8 = vld [vmem:[#allocation53_spill] sm:$0xff] }
 0x943   :  { %v2961_v3 = vadd.f32 1e-05, %v2960_v28  ;;  %v6575_v28 = vld [vmem:[#allocation39_spill] sm:$0xff]  ;;  %v1730_v51 = vmax.f32 %v1714_v30, 0.0  ;;  %v1731_v31 = vmax.f32 %v1715_v40, 0.0  ;;  %v1735_v48 = vmax.f32 %v1719_v53, 0.0 }
 0x944   :  { %v1720_v44 = vsel %vm995_vm8, %v1704_v13, %v6575_v28  ;;  %v1725_v13 = vsel %vm6588_vm1, %v1709_v29, %v6586_v45  ;;  %v6589_v28 = vld [vmem:[#allocation41_spill] sm:$0xff]  ;;  %v1733_v29 = vmax.f32 %v1717_v10, 0.0  ;;  %v1734_v45 = vmax.f32 %v1718_v60, 0.0  ;;  %v6600_v10 = vld [vmem:[#allocation46_spill] sm:$0xff]  ;;  %v6601_v53 = vld [vmem:[#allocation47_spill] sm:$0xff] }
 0x945   :  { %3584 = vrsqrt.f32 %v2961_v3  ;;  %v1726_v15 = vsel %vm1001_vm14, %v1710_v0, %v6589_v28  ;;  %v6591_v3 = vld [vmem:[#allocation59_spill] sm:$0xff]  ;;  %v1736_v33 = vmax.f32 %v1720_v44, 0.0  ;;  %v1737_v0 = vmax.f32 %v1721_v22, 0.0  ;;  %v6599_v40 = vld [vmem:[#allocation45_spill] sm:$0xff]  ;;  %v6602_v22 = vld [vmem:[#allocation48_spill] sm:$0xff] }
 0x946   :  { %v1727_v23 = vsel %vm1002_vm15, %v1711_v27, %v6591_v3  ;;  %v1738_v28 = vmax.f32 %v1722_v20, 0.0  ;;  %v1740_v16 = vmax.f32 %v1724_v39, 0.0  ;;  %v1741_v27 = vmax.f32 %v1725_v13, 0.0  ;;  %v6604_v13 = vld [vmem:[#allocation50_spill] sm:$0xff]  ;;  %vm6624_vm1 = vmmov %vm6583_vm11 }
 0x947   :  { %v1742_v3 = vmax.f32 %v1726_v15, 0.0  ;;  %v1743_v17 = vmax.f32 %v1727_v23, 0.0  ;;  %v1745_v26 = vmax.f32 %v1729_v9, 0.0  ;;  %v5939_v54 = vadd.f32 %v1730_v51, %v6597_v19  ;;  %v6608_v51 = vld [vmem:[#allocation54_spill] sm:$0xff] }
 0x948   :  { %v5942_v30 = vadd.f32 %v1731_v31, %v6598_v14  ;;  %v5945_v47 = vadd.f32 %v1732_v57, %v6599_v40  ;;  %v5948_v60 = vadd.f32 %v1733_v29, %v6600_v10  ;;  %v5951_v44 = vadd.f32 %v1734_v45, %v6601_v53  ;;  %v6605_v31 = vld [vmem:[#allocation51_spill] sm:$0xff]  ;;  %v6606_v57 = vld [vmem:[#allocation52_spill] sm:$0xff] }
 0x949   :  { %v5954_v20 = vadd.f32 %v1735_v48, %v6602_v22  ;;  %v5957_v39 = vadd.f32 %v1736_v33, %v6603_v35  ;;  %v5960_v15 = vadd.f32 %v1737_v0, %v6604_v13  ;;  %v5963_v23 = vadd.f32 %v1738_v28, %v6605_v31  ;;  %v6609_v45 = vld [vmem:[#allocation55_spill] sm:$0xff]  ;;  %v6610_v33 = vld [vmem:[#allocation56_spill] sm:$0xff]  ;;  %v6611_v0 = vld [vmem:[#allocation57_spill] sm:$0xff] }
 0x94a   :  { %v5966_v61 = vadd.f32 %v1739_v58, %v6606_v57  ;;  %v5969_v9 = vadd.f32 %v1740_v16, %v6607_v8  ;;  %v5972_v29 = vadd.f32 %v1741_v27, %v6608_v51  ;;  %v5975_v19 = vadd.f32 %v1742_v3, %v6609_v45  ;;  %v6612_v28 = vld [vmem:[#allocation58_spill] sm:$0xff] }
 0x94b   :  { %v5978_v14 = vadd.f32 %v1743_v17, %v6610_v33  ;;  %v5981_v40 = vadd.f32 %v1744_v63, %v6611_v0  ;;  %v5984_v10 = vadd.f32 %v1745_v26, %v6612_v28 }
 0x94f   :  { %v3585_v48 = vpop.eup %3584 }
 0x950   :  { %v2963_v58 = vmul.f32 %v3585_v48, %v5704_v52  ;;  %v2964_v16 = vmul.f32 %v3585_v48, %v5708_v38  ;;  %v2965_v27 = vmul.f32 %v3585_v48, %v5712_v7  ;;  %v2966_v53 = vmul.f32 %v3585_v48, %v5716_v62 }
 0x951   :  { %v2967_v3 = vmul.f32 %v3585_v48, %v5724_v4  ;;  %v2968_v22 = vmul.f32 %v3585_v48, %v5730_v34  ;;  %v2969_v17 = vmul.f32 %v3585_v48, %v5738_v18  ;;  %v2970_v63 = vmul.f32 %v3585_v48, %v5745_v46 }
 0x952   :  { %v2971_v35 = vmul.f32 %v3585_v48, %v5754_v21  ;;  %v2972_v26 = vmul.f32 %v3585_v48, %v5762_v59  ;;  %v2973_v52 = vmul.f32 %v3585_v48, %v5770_v6  ;;  %v2974_v38 = vmul.f32 %v3585_v48, %v5778_v37 }
 0x953   :  { %v2975_v7 = vmul.f32 %v3585_v48, %v5786_v50  ;;  %v2976_v62 = vmul.f32 %v3585_v48, %v5795_v2  ;;  %v2977_v4 = vmul.f32 %v3585_v48, %v5803_v49  ;;  %v2978_v34 = vmul.f32 %v3585_v48, %v5811_v42 }
 0x954   :  { %v2979_v18 = vmul.f32 %v5838_v25, %v2963_v58  ;;  %v2980_v46 = vmul.f32 %v5838_v25, %v2964_v16  ;;  %v2981_v21 = vmul.f32 %v5838_v25, %v2965_v27  ;;  %v2982_v59 = vmul.f32 %v5838_v25, %v2966_v53 }
 0x955   :  { %v2983_v6 = vmul.f32 %v5838_v25, %v2967_v3  ;;  %v2984_v37 = vmul.f32 %v5838_v25, %v2968_v22  ;;  %v2985_v50 = vmul.f32 %v5838_v25, %v2969_v17  ;;  %v2986_v2 = vmul.f32 %v5838_v25, %v2970_v63 }
 0x956   :  { %v2987_v49 = vmul.f32 %v5838_v25, %v2971_v35  ;;  %v2988_v42 = vmul.f32 %v5838_v25, %v2972_v26  ;;  %v2989_v13 = vmul.f32 %v5838_v25, %v2973_v52  ;;  %v2990_v31 = vmul.f32 %v5838_v25, %v2974_v38 }
 0x957   :  { %v2991_v57 = vmul.f32 %v5838_v25, %v2975_v7  ;;  %v2992_v8 = vmul.f32 %v5838_v25, %v2976_v62  ;;  %v2993_v51 = vmul.f32 %v5838_v25, %v2977_v4  ;;  %v2994_v48 = vmul.f32 %v5838_v25, %v2978_v34 }
 0x958   :  { %v2995_v45 = vadd.f32 %v5860_v56, %v2979_v18  ;;  %v2996_v33 = vadd.f32 %v5860_v56, %v2980_v46  ;;  %v2997_v0 = vadd.f32 %v5860_v56, %v2981_v21  ;;  %v2998_v28 = vadd.f32 %v5860_v56, %v2982_v59  ;;  %v6614_v18 = vld [vmem:[#allocation60_spill] sm:$0xff] }
 0x959   :  { %v2999_v58 = vadd.f32 %v5860_v56, %v2983_v6  ;;  %v3000_v16 = vadd.f32 %v5860_v56, %v2984_v37  ;;  %v3001_v27 = vadd.f32 %v5860_v56, %v2985_v50  ;;  %v3002_v53 = vadd.f32 %v5860_v56, %v2986_v2  ;;  %v6625_v50 = vld [vmem:[#allocation63_spill] sm:$0xff] }
 0x95a   :  { %v3003_v3 = vadd.f32 %v5860_v56, %v2987_v49  ;;  %v3004_v25 = vadd.f32 %v5860_v56, %v2988_v42  ;;  %v3005_v22 = vadd.f32 %v5860_v56, %v2989_v13  ;;  %v3006_v17 = vadd.f32 %v5860_v56, %v2990_v31  ;;  %v6627_v42 = vld [vmem:[#allocation65_spill] sm:$0xff]  ;;  %v6628_v13 = vld [vmem:[#allocation34_spill] sm:$0xff]  ;;  %v6637_v6 = vld [vmem:[#allocation71_spill] sm:$0xff] }
 0x95b   :  { %v3007_v63 = vadd.f32 %v5860_v56, %v2991_v57  ;;  %v3008_v35 = vadd.f32 %v5860_v56, %v2992_v8  ;;  %v3009_v26 = vadd.f32 %v5860_v56, %v2993_v51  ;;  %v3010_v52 = vadd.f32 %v5860_v56, %v2994_v48  ;;  %v6630_v57 = vld [vmem:[#allocation67_spill] sm:$0xff]  ;;  %v6632_v48 = vld [vmem:[#allocation20_spill] sm:$0xff]  ;;  %v6648_v8 = vld [vmem:[#allocation81_spill] sm:$0xff] }
 0x95c   :  { %v3011_v38 = vsel %vm989_vm2, %v2995_v45, %v5523_v36  ;;  %v3012_v7 = vsel %vm990_vm3, %v2996_v33, %v5536_v12  ;;  %v3013_v62 = vsel %vm991_vm4, %v2997_v0, %v5520_v11  ;;  %v3014_v4 = vsel %vm992_vm5, %v2998_v28, %v5533_v32  ;;  %v6634_v0 = vld [vmem:[#allocation64_spill] sm:$0xff]  ;;  %v6645_v2 = vld [vmem:[#allocation79_spill] sm:$0xff]  ;;  %v6651_v28 = vld [vmem:[#allocation70_spill] sm:$0xff] }
 0x95d   :  { %v3015_v56 = vsel %vm993_vm6, %v2999_v58, %v5566_v55  ;;  %v3016_v36 = vsel %vm994_vm7, %v3000_v16, %v6614_v18  ;;  %v3017_v12 = vsel %vm995_vm8, %v3001_v27, %v6616_v43  ;;  %v3018_v11 = vsel %vm996_vm9, %v3002_v53, %v6618_v1  ;;  %v6636_v16 = vld [vmem:[#allocation19_spill] sm:$0xff] }
 0x95e   :  { %v3019_v32 = vsel %vm997_vm10, %v3003_v3, %v6620_v5  ;;  %v3020_v55 = vsel %vm6624_vm1, %v3004_v25, %v6622_v41  ;;  %v3021_v49 = vsel %vm999_vm12, %v3005_v22, %v6625_v50  ;;  %vm6629_vm2 = vcmp.eq.s32.totalorder %v6628_v13, 1 }
 0x95f   :  { %v3022_v31 = vsel %vm6629_vm2, %v3006_v17, %v6627_v42  ;;  %v3023_v51 = vsel %vm1001_vm14, %v3007_v63, %v6630_v57  ;;  %v3024_v33 = vsel %vm1002_vm15, %v3008_v35, %v6632_v48  ;;  %v3025_v58 = vsel %vm1003_vm0, %v3009_v26, %v6634_v0  ;;  %v6646_v42 = vld [vmem:[#allocation80_spill] sm:$0xff]  ;;  %v6649_v48 = vld [vmem:[#allocation83_spill] sm:$0xff] }
 0x960   :  { %v3026_v27 = vsel %vm1004_vm13, %v3010_v52, %v6636_v16  ;;  %v3027_v53 = vmax.f32 %v3011_v38, 0.0  ;;  %v3028_v3 = vmax.f32 %v3012_v7, 0.0  ;;  %v3029_v25 = vmax.f32 %v3013_v62, 0.0  ;;  %v6639_v38 = vld [vmem:[#allocation73_spill] sm:$0xff]  ;;  %v6640_v62 = vld [vmem:[#allocation74_spill] sm:$0xff]  ;;  %v6652_v16 = vld [vmem:[#allocation84_spill] sm:$0xff] }
 0x961   :  { %v3030_v22 = vmax.f32 %v3014_v4, 0.0  ;;  %v3031_v17 = vmax.f32 %v3015_v56, 0.0  ;;  %v3032_v34 = vmax.f32 %v3016_v36, 0.0  ;;  %v3033_v18 = vmax.f32 %v3017_v12, 0.0  ;;  %v6641_v56 = vld [vmem:[#allocation75_spill] sm:$0xff]  ;;  %v6642_v12 = vld [vmem:[#allocation76_spill] sm:$0xff] }
 0x962   :  { %v3034_v63 = vmax.f32 %v3018_v11, 0.0  ;;  %v3035_v46 = vmax.f32 %v3019_v32, 0.0  ;;  %v3036_v43 = vmax.f32 %v3020_v55, 0.0  ;;  %v3037_v21 = vmax.f32 %v3021_v49, 0.0  ;;  %v6643_v32 = vld [vmem:[#allocation77_spill] sm:$0xff]  ;;  %v6644_v55 = vld [vmem:[#allocation78_spill] sm:$0xff] }
 0x963   :  { %v3038_v35 = vmax.f32 %v3022_v31, 0.0  ;;  %v3039_v1 = vmax.f32 %v3023_v51, 0.0  ;;  %v3040_v59 = vmax.f32 %v3024_v33, 0.0  ;;  %v3041_v5 = vmax.f32 %v3025_v58, 0.0  ;;  %v6647_v31 = vld [vmem:[#allocation18_spill] sm:$0xff] }
 0x964   :  { %v3042_v26 = vmax.f32 %v3026_v27, 0.0  ;;  %v3043_v41 = vadd.f32 %v3027_v53, %v6637_v6  ;;  %v3044_v52 = vadd.f32 %v3028_v3, %v6638_v24  ;;  %v3045_v7 = vadd.f32 %v3029_v25, %v6639_v38  ;;  %v6650_v33 = vld [vmem:[#allocation82_spill] sm:$0xff] }
 0x965   :  { %v3046_v4 = vadd.f32 %v3030_v22, %v6640_v62  ;;  %v3047_v36 = vadd.f32 %v3031_v17, %v6641_v56  ;;  %v3048_v11 = vadd.f32 %v3032_v34, %v6642_v12  ;;  %v3049_v37 = vadd.f32 %v3033_v18, %v6643_v32 }
 0x966   :  { %v3050_v50 = vadd.f32 %v3034_v63, %v6644_v55  ;;  %v3051_v49 = vadd.f32 %v3035_v46, %v6645_v2  ;;  %v3052_v13 = vadd.f32 %v3036_v43, %v6646_v42  ;;  %v3053_v57 = vadd.f32 %v3037_v21, %v6647_v31 }
 0x967   :  { %v3054_v51 = vadd.f32 %v3038_v35, %v6648_v8  ;;  %v3055_v45 = vadd.f32 %v3039_v1, %v6649_v48  ;;  %v3056_v0 = vadd.f32 %v3040_v59, %v6650_v33  ;;  %v3057_v58 = vadd.f32 %v3041_v5, %v6651_v28 }
 0x968   :  { %v3058_v27 = vadd.f32 %v3042_v26, %v6652_v16  ;;  %v3059_v53 = vadd.f32 %v3043_v41, %v5939_v54  ;;  %v3060_v3 = vadd.f32 %v3044_v52, %v5942_v30  ;;  %v3061_v25 = vadd.f32 %v3045_v7, %v5945_v47 }
 0x969   :  { %v3062_v22 = vadd.f32 %v3046_v4, %v5948_v60  ;;  %v3063_v17 = vadd.f32 %v3047_v36, %v5951_v44  ;;  %v3064_v34 = vadd.f32 %v3048_v11, %v5954_v20  ;;  %v3065_v18 = vadd.f32 %v3049_v37, %v5957_v39 }
 0x96a   :  { %v3066_v63 = vadd.f32 %v3050_v50, %v5960_v15  ;;  %v3067_v46 = vadd.f32 %v3051_v49, %v5963_v23  ;;  %v3068_v43 = vadd.f32 %v3052_v13, %v5966_v61  ;;  %v3069_v54 = vadd.f32 %v3053_v57, %v5969_v9 }
 0x96b   :  { %v3070_v30 = vadd.f32 %v3054_v51, %v5972_v29  ;;  %vm6653_vm3 = vcmask 261120   ;;  %v3071_v47 = vadd.f32 %v3055_v45, %v5975_v19  ;;  %v3072_v60 = vadd.f32 %v3056_v0, %v5978_v14 }
 0x96c   :  { %3075 = vst.msk [vmem:[%s6193_s15] sm:$0xff] %vm6653_vm3, %v3059_v53  ;;  %vm6654_vm4 = vmmov %vm6653_vm3  ;;  %v3073_v44 = vadd.f32 %v3057_v58, %v5981_v40  ;;  %v3074_v20 = vadd.f32 %v3058_v27, %v5984_v10 }
 0x96d   :  { %3076 = vst.msk [vmem:[%s6193_s15 + $0x8] sm:$0xff] %vm6654_vm4, %v3060_v3  ;;  %vm6655_vm5 = vmmov %vm6653_vm3 }
 0x96e   :  { %3077 = vst.msk [vmem:[%s6193_s15 + $0x10] sm:$0xff] %vm6655_vm5, %v3061_v25  ;;  %vm6656_vm6 = vmmov %vm6653_vm3 }
 0x96f   :  { %3078 = vst.msk [vmem:[%s6193_s15 + $0x18] sm:$0xff] %vm6656_vm6, %v3062_v22  ;;  %vm6657_vm7 = vmmov %vm6653_vm3 }
 0x970   :  { %3079 = vst.msk [vmem:[%s6193_s15 + $0x20] sm:$0xff] %vm6657_vm7, %v3063_v17  ;;  %vm6658_vm8 = vmmov %vm6653_vm3 }
 0x971   :  { %3080 = vst.msk [vmem:[%s6193_s15 + $0x28] sm:$0xff] %vm6658_vm8, %v3064_v34  ;;  %vm6659_vm9 = vmmov %vm6653_vm3 }
 0x972   :  { %3081 = vst.msk [vmem:[%s6193_s15 + $0x30] sm:$0xff] %vm6659_vm9, %v3065_v18  ;;  %vm6660_vm10 = vmmov %vm6653_vm3 }
 0x973   :  { %3082 = vst.msk [vmem:[%s6193_s15 + $0x38] sm:$0xff] %vm6660_vm10, %v3066_v63  ;;  %vm6661_vm12 = vmmov %vm6653_vm3 }
 0x974   :  { %3083 = vst.msk [vmem:[%s6193_s15 + $0x40] sm:$0xff] %vm6661_vm12, %v3067_v46  ;;  %vm6662_vm13 = vmmov %vm6653_vm3 }
 0x975   :  { %3084 = vst.msk [vmem:[%s6193_s15 + $0x48] sm:$0xff] %vm6662_vm13, %v3068_v43  ;;  %vm6663_vm14 = vmmov %vm6653_vm3 }
 0x976   :  { %3085 = vst.msk [vmem:[%s6193_s15 + $0x50] sm:$0xff] %vm6663_vm14, %v3069_v54  ;;  %vm6664_vm15 = vmmov %vm6653_vm3 }
 0x977   :  { %3086 = vst.msk [vmem:[%s6193_s15 + $0x58] sm:$0xff] %vm6664_vm15, %v3070_v30  ;;  %vm6665_vm0 = vmmov %vm6653_vm3 }
 0x978   :  { %3087 = vst.msk [vmem:[%s6193_s15 + $0x60] sm:$0xff] %vm6665_vm0, %v3071_v47  ;;  %vm6666_vm11 = vmmov %vm6665_vm0 }
 0x979   :  { %3088 = vst.msk [vmem:[%s6193_s15 + $0x68] sm:$0xff] %vm6666_vm11, %v3072_v60  ;;  %vm6667_vm1 = vmmov %vm6665_vm0 }
 0x97a   :  { %3089 = vst.msk [vmem:[%s6193_s15 + $0x70] sm:$0xff] %vm6667_vm1, %v3073_v44  ;;  %vm6668_vm2 = vmmov %vm6665_vm0 }
 0x97b   :  { %3090 = vst.msk [vmem:[%s6193_s15 + $0x78] sm:$0xff] %vm6668_vm2, %v3074_v20 }

// kernel: signnet_forward.9
= control target key start
LH: loop header
LB: loop body
LE: loop exit
PB: predicated region body
PF: predicated region fallthrough
CT: control target
= control target key end

     0   :  { %v376_v5 = vmov 0.0   ;;  %s496_s0 = inlined_call_operand.vmem [shape: f32[128,32], index: 0, kind: input, shape index: {}]   ;;  %s497_s1 = inlined_call_operand.vmem [shape: f32[16,128], index: 1, kind: input, shape index: {}]   ;;  %s498_s2 = inlined_call_operand.vmem [shape: bf16[32,32], index: 2, kind: input, shape index: {}]   ;;  %s499_s3 = inlined_call_operand.vmem [shape: f32[1,32], index: 3, kind: input, shape index: {}]   ;;  %s500_s4 = inlined_call_operand.vmem [shape: f32[1,32], index: 4, kind: input, shape index: {}]   ;;  %s501_s5 = inlined_call_operand.hbm [shape: f32[16,32], index: 5, kind: output, shape index: {}]  }
   0x1   :  { %v24_v0 = vld [vmem:[%s496_s0] sm:$0xff]  ;;  %v25_v1 = vld [vmem:[%s496_s0 + $0x8] sm:$0xff]  ;;  %v26_v2 = vld [vmem:[%s496_s0 + $0x10] sm:$0xff]  ;;  %303 = vmatprep.subr.bf16.mxu1 %v376_v5 }
   0x2   :  { %v311_v3 = vpack.c.bf16 %v25_v1, %v24_v0  ;;  %v27_v4 = vld [vmem:[%s496_s0 + $0x18] sm:$0xff]  ;;  %v28_v7 = vld [vmem:[%s496_s0 + $0x20] sm:$0xff]  ;;  %v29_v8 = vld [vmem:[%s496_s0 + $0x28] sm:$0xff] }
   0x3   :  { %v315_v6 = vpack.c.bf16 %v27_v4, %v26_v2  ;;  %v319_v9 = vpack.c.bf16 %v29_v8, %v28_v7  ;;  %v30_v10 = vld [vmem:[%s496_s0 + $0x30] sm:$0xff]  ;;  %v31_v11 = vld [vmem:[%s496_s0 + $0x38] sm:$0xff]  ;;  %v22_v12 = vld [vmem:[%s497_s1] sm:$0xff] }
   0x4   :  { %312 = vmatprep.subr.bf16.mxu0 %v311_v3  ;;  %300 = vmatprep.mubr.f32.mxu0 %v22_v12  ;;  %v348_v13 = vld [vmem:[%s498_s2] sm:$0xff]  }
   0x5   :  { %314 = vmatpush3.bf16.msra.mxu0 %v311_v3 }
   0x6   :  { %316 = vmatprep.subr.bf16.mxu0 %v315_v6 }
   0x7   :  { %10 = vsyncpa [#allocation3], 0  ;;  %304 = vmatpush3.bf16.msra.mxu1 %v348_v13  ;;  %v323_v14 = vpack.c.bf16 %v31_v11, %v30_v10  ;;  %v32_v15 = vld [vmem:[%s496_s0 + $0x40] sm:$0xff]  ;;  %v33_v16 = vld [vmem:[%s496_s0 + $0x48] sm:$0xff]  ;;  %vm377_vm0 = vmmov 0   ;;  %vm132_vm1 = vcmask 261120  }
   0x8   :  { %305 = vmatprep.subr.bf16.mxu1 %v376_v5  ;;  %v327_v17 = vpack.c.bf16 %v33_v16, %v32_v15  ;;  %v34_v18 = vld [vmem:[%s496_s0 + $0x50] sm:$0xff]  ;;  %v35_v19 = vld [vmem:[%s496_s0 + $0x58] sm:$0xff]  ;;  %v36_v21 = vld [vmem:[%s496_s0 + $0x60] sm:$0xff]  ;;  %307 = vmatprep.mubr.msk.bf16.mxu1 %vm377_vm0, %v376_v5 }
   0x9   :  { %318 = vmatpush3.bf16.msra.mxu0 %v315_v6  ;;  %v331_v20 = vpack.c.bf16 %v35_v19, %v34_v18  ;;  %v37_v22 = vld [vmem:[%s496_s0 + $0x68] sm:$0xff]  ;;  %v38_v24 = vld [vmem:[%s496_s0 + $0x70] sm:$0xff]  ;;  %v39_v25 = vld [vmem:[%s496_s0 + $0x78] sm:$0xff] }
   0xa   :  { %320 = vmatprep.subr.bf16.mxu0 %v319_v9  ;;  %v335_v23 = vpack.c.bf16 %v37_v22, %v36_v21  ;;  %v339_v26 = vpack.c.bf16 %v39_v25, %v38_v24  ;;  %v23_v27 = vld [vmem:[%s497_s1 + $0x8] sm:$0xff]  ;;  %v245_v62 = vld [vmem:[%s499_s3] ss:$0 sm:$0xff] }
   0xb   :  { %v349_v28 = vld [vmem:[%s498_s2 + $0x8] sm:$0xff]   ;;  %s378_s2 = smov [#allocation2]   ;;  %v246_v1 = vld [vmem:[%s500_s4] ss:$0 sm:$0xff] }
   0xc   :  { %306 = vmatpush3.bf16.msra.mxu1 %v349_v28  ;;  %s231_s8 = sshll.u32 %s378_s2, 4  ;;  %s232_s8 = int_to_ptr.vmem [resolvable:$true] %s231_s8 }
   0xd   :  { %322 = vmatpush3.bf16.msra.mxu0 %v319_v9  ;;  %s352_s11 = scalar_lea.vmem %s232_s8, 256  ;;  %p357_p1 = scmp.lt.s32.totalorder %s232_s8, %s232_s8 }
   0xe   :  { %324 = vmatprep.subr.bf16.mxu0 %v323_v14  ;;  %p353_p0 = scmp.ne.s32.totalorder %s232_s8, %s352_s11  ;;  %p358_p2 = scmp.lt.s32.totalorder %s352_s11, %s352_s11 }
  0x10   :  { %p359_p3 = por %p358_p2, %p357_p1 }
  0x11   :  { %326 = vmatpush3.bf16.msra.mxu0 %v323_v14 }
  0x12   :  { %328 = vmatprep.subr.bf16.mxu0 %v327_v17  ;;  %p360_p4 = pnand %p359_p3, %p353_p0 }
  0x15   :  { %330 = vmatpush3.bf16.msra.mxu0 %v327_v17 }
  0x16   :  { %332 = vmatprep.subr.bf16.mxu0 %v331_v20 }
  0x19   :  { %334 = vmatpush3.bf16.msra.mxu0 %v331_v20 }
  0x1a   :  { %336 = vmatprep.subr.bf16.mxu0 %v335_v23 }
  0x1d   :  { %338 = vmatpush3.bf16.msra.mxu0 %v335_v23 }
  0x1e   :  { %340 = vmatprep.subr.bf16.mxu0 %v339_v26 }
  0x21   :  { %342 = vmatpush3.bf16.msra.mxu0 %v339_v26 }
  0x24   :  { %301 = vmatmul.mubr.f32.vlgmr.msra.gmra.mrb[0].mxu0 %v23_v27 }
  0xf7   :  { %v302_v29 = vpop.f32.mrb[0].mxu0 }
  0xf8   :  { %v106_v30 = vpop.f32.mrb[1].mxu0 }
  0xf9   :  { %v115_v31 = vpack.c.bf16 %v302_v29, %v106_v30 }
  0xfb   :  { %308 = vmatmul.mubr.msk.bf16.vlgmr.msra.gmra.mrb[0].mxu1 %vm132_vm1, %v115_v31 }
 0x1ce   :  { %v170_v32 = vpop.f32.mrb[0].mxu1 }
 0x1cf   :  { %v309_v33 = vpop.f32.mrb[1].mxu1  ;;  %v177_v35 = vsel %vm132_vm1, %v170_v32, 0.0 }
 0x1d0   :  { %v173_v34 = vpop.f32.mrb[2].mxu1 }
 0x1d1   :  { %v178_v36 = vsel %vm132_vm1, %v173_v34, 0.0  ;;  %v310_v37 = vpop.f32.mrb[3].mxu1 }
 0x1d2   :  { %v179_v38 = vadd.f32 %v178_v36, %v177_v35 }
 0x1d4   :  { %v180_v39 = vrot.slane %v179_v38, 4 }
 0x1d6   :  { %v181_v40 = vadd.f32 %v180_v39, %v179_v38 }
 0x1d8   :  { %v182_v41 = vrot.slane %v181_v40, 2 }
 0x1da   :  { %v183_v42 = vadd.f32 %v182_v41, %v181_v40 }
 0x1dc   :  { %v184_v43 = vrot.slane %v183_v42, 1 }
 0x1de   :  { %v185_v44 = vadd.f32 %v184_v43, %v183_v42 }
 0x1e0   :  { %v187_v45 = vmul.f32 0.0625, %v185_v44 }
 0x1e2   :  { %v188_v46 = vsub.f32 %v170_v32, %v187_v45  ;;  %v189_v47 = vsub.f32 %v173_v34, %v187_v45 }
 0x1e4   :  { %v190_v48 = vmul.f32 %v188_v46, %v188_v46  ;;  %v191_v49 = vmul.f32 %v189_v47, %v189_v47 }
 0x1e6   :  { %v192_v50 = vsel %vm132_vm1, %v190_v48, 0.0  ;;  %v193_v51 = vsel %vm132_vm1, %v191_v49, 0.0 }
 0x1e7   :  { %v194_v52 = vadd.f32 %v193_v51, %v192_v50 }
 0x1e9   :  { %v195_v53 = vrot.slane %v194_v52, 4 }
 0x1eb   :  { %v196_v54 = vadd.f32 %v195_v53, %v194_v52 }
 0x1ed   :  { %v197_v55 = vrot.slane %v196_v54, 2 }
 0x1ef   :  { %v198_v56 = vadd.f32 %v197_v55, %v196_v54 }
 0x1f1   :  { %v199_v57 = vrot.slane %v198_v56, 1 }
 0x1f3   :  { %v200_v58 = vadd.f32 %v199_v57, %v198_v56 }
 0x1f5   :  { %v201_v59 = vmul.f32 0.0625, %v200_v58 }
 0x1f7   :  { %v202_v60 = vadd.f32 1e-05, %v201_v59 }
 0x1f9   :  { %350 = vrsqrt.f32 %v202_v60 }
 0x203   :  { %v351_v61 = vpop.eup %350 }
 0x204   :  { %v204_v63 = vmul.f32 %v351_v61, %v188_v46  ;;  %v205_v0 = vmul.f32 %v351_v61, %v189_v47 }
 0x206   :  { %v213_v2 = vmul.f32 %v245_v62, %v204_v63  ;;  %v214_v3 = vmul.f32 %v245_v62, %v205_v0 }
 0x208   :  { %v222_v4 = vadd.f32 %v246_v1, %v213_v2  ;;  %v223_v5 = vadd.f32 %v246_v1, %v214_v3 }
 0x20a   :  { %224 = vst.msk [vmem:[#allocation2] sm:$0xff] %vm132_vm1, %v222_v4  ;;  %225 = vst.msk [vmem:[#allocation2 + $0x8] sm:$0xff] %vm132_vm1, %v223_v5 }
 0x20b   :  { %363 = shalt.err (!%p360_p4)
}
 0x20c   :  { %s364_s4 = scalar_lea.hbm %s501_s5, 256 }
 0x20d   :  { %p365_p5 = scmp.ne.s32.totalorder %s501_s5, %s364_s4  ;;  %p368_p6 = scmp.lt.u32.totalorder %s364_s4, %s501_s5 }
 0x20f   :  { %p370_p7 = pnand %p368_p6, %p365_p5 }
 0x211   :  { %373 = shalt.err (!%p370_p7)
}
 0x212   :  { %s379_s17 = smov 128   ;;  %s380_s18 = smov 8  }
 0x213   :  { %237 = dma.vmem_to_hbm [thread:$0]  %s232_s8, 256, %s501_s5, [#allocation3], %s379_s17, %s379_s17, %s380_s18  }
 0x214   :  { %374 = dma.done.wait [#allocation3], 256  }
 0x215   :  { %375 = vsyncadd [#allocation3], 4294967040 }
 0x216   :  { %241 = vsyncpa [#allocation3], 1 }

// kernel: signnet_forward.7
= control target key start
LH: loop header
LB: loop body
LE: loop exit
PB: predicated region body
PF: predicated region fallthrough
CT: control target
= control target key end

     0   :  { %vm104_vm0 = vcmask 261120   ;;  %vm466_vm1 = vcmask 64512   ;;  %s9346_s3 = inlined_call_operand.vmem [shape: f32[3,4,32,8], index: 3, kind: input, shape index: {}]   ;;  %s9347_s0 = inlined_call_operand.vmem [shape: f32[128,32], index: 0, kind: input, shape index: {}]   ;;  %s9348_s4 = inlined_call_operand.vmem [shape: f32[3,4,1,8], index: 4, kind: input, shape index: {}]   ;;  %s9349_s1 = inlined_call_operand.vmem [shape: f32[128,128], index: 1, kind: input, shape index: {}]   ;;  %s9350_s5 = inlined_call_operand.vmem [shape: f32[4,8,32], index: 5, kind: input, shape index: {}]   ;;  %s9351_s6 = inlined_call_operand.vmem [shape: f32[1,32], index: 6, kind: input, shape index: {}]   ;;  %s9352_s9 = inlined_call_operand.vmem [shape: bf16[32,64], index: 9, kind: input, shape index: {}]   ;;  %s9353_s11 = inlined_call_operand.vmem [shape: bf16[64,32], index: 11, kind: input, shape index: {}]   ;;  %s9354_s7 = inlined_call_operand.vmem [shape: f32[1,32], index: 7, kind: input, shape index: {}]   ;;  %s9355_s8 = inlined_call_operand.vmem [shape: f32[1,32], index: 8, kind: input, shape index: {}]   ;;  %s9356_s2 = inlined_call_operand.vmem [shape: f32[128,1], index: 2, kind: input, shape index: {}]   ;;  %s9357_s10 = inlined_call_operand.vmem [shape: f32[1,64], index: 10, kind: input, shape index: {}]   ;;  %s9358_s12 = inlined_call_operand.vmem [shape: f32[1,32], index: 12, kind: input, shape index: {}]   ;;  %s9359_s13 = inlined_call_operand.vmem [shape: f32[1,32], index: 13, kind: input, shape index: {}]   ;;  %s9360_s14 = inlined_call_operand.vmem [shape: f32[1,32], index: 14, kind: input, shape index: {}]   ;;  %s9361_s15 = inlined_call_operand.vmem [shape: f32[128,32], index: 15, kind: output, shape index: {}]  }
   0x1   :  { %v5128_v0 = vld [vmem:[%s9346_s3 + $0x80] sm:$0xff]  ;;  %v5129_v1 = vld [vmem:[%s9346_s3 + $0x88] sm:$0xff]  ;;  %v5130_v2 = vld [vmem:[%s9346_s3 + $0x90] sm:$0xff] }
   0x2   :  { %v231_v3 = vpack.c.bf16 %v5129_v1, %v5128_v0  ;;  %v5131_v4 = vld [vmem:[%s9346_s3 + $0x98] sm:$0xff]  ;;  %v51_v5 = vld [vmem:[%s9347_s0] sm:$0xff]  ;;  %v52_v6 = vld [vmem:[%s9347_s0 + $0x8] sm:$0xff] }
   0x3   :  { %v232_v7 = vpack.c.bf16 %v5131_v4, %v5130_v2  ;;  %v6916_v8 = vpack.c.bf16 %v52_v6, %v51_v5  ;;  %v53_v9 = vld [vmem:[%s9347_s0 + $0x10] sm:$0xff]  ;;  %v54_v10 = vld [vmem:[%s9347_s0 + $0x18] sm:$0xff]  ;;  %v55_v11 = vld [vmem:[%s9347_s0 + $0x20] sm:$0xff] }
   0x4   :  { %5768 = vmatprep.subr.bf16.mxu1 %v231_v3  ;;  %v56_v12 = vld [vmem:[%s9347_s0 + $0x28] sm:$0xff]  ;;  %v91_v13 = vld [vmem:[%s9346_s3] sm:$0xff]  ;;  %v6937_v14 = vpack.c.bf16 %v54_v10, %v53_v9  ;;  %v93_v16 = vld [vmem:[%s9346_s3 + $0x10] sm:$0xff] }
   0x5   :  { %5769 = vmatpush3.bf16.msra.mxu1 %v231_v3  ;;  %5772 = vmatprep.mubr.msk.bf16.mxu1 %vm104_vm0, %v6916_v8  ;;  %v92_v15 = vld [vmem:[%s9346_s3 + $0x8] sm:$0xff]  ;;  %v94_v17 = vld [vmem:[%s9346_s3 + $0x18] sm:$0xff]  ;;  %v6948_v18 = vpack.c.bf16 %v56_v12, %v55_v11  ;;  %v57_v21 = vld [vmem:[%s9347_s0 + $0x30] sm:$0xff] }
   0x6   :  { %5770 = vmatprep.subr.bf16.mxu1 %v232_v7  ;;  %5752 = vmatprep.mubr.msk.bf16.mxu0 %vm104_vm0, %v6916_v8  ;;  %9391 = vst [vmem:[#allocation2_spill] sm:$0xff] %v6937_v14  ;;  %v95_v19 = vpack.c.bf16 %v92_v15, %v91_v13  ;;  %v96_v20 = vpack.c.bf16 %v94_v17, %v93_v16  ;;  %v58_v22 = vld [vmem:[%s9347_s0 + $0x38] sm:$0xff]  ;;  %v59_v23 = vld [vmem:[%s9347_s0 + $0x40] sm:$0xff]  ;;  %v60_v24 = vld [vmem:[%s9347_s0 + $0x48] sm:$0xff] }
   0x7   :  { %9392 = vst [vmem:[#allocation3_spill] sm:$0xff] %v6948_v18  ;;  %v6966_v25 = vpack.c.bf16 %v58_v22, %v57_v21  ;;  %v6968_v26 = vpack.c.bf16 %v60_v24, %v59_v23  ;;  %v61_v27 = vld [vmem:[%s9347_s0 + $0x50] sm:$0xff]  ;;  %v62_v28 = vld [vmem:[%s9347_s0 + $0x58] sm:$0xff]  ;;  %v63_v29 = vld [vmem:[%s9347_s0 + $0x60] sm:$0xff] }
   0x8   :  { %5748 = vmatprep.subr.bf16.mxu0 %v95_v19  ;;  %v64_v30 = vld [vmem:[%s9347_s0 + $0x68] sm:$0xff]  ;;  %v6990_v31 = vpack.c.bf16 %v62_v28, %v61_v27  ;;  %v65_v33 = vld [vmem:[%s9347_s0 + $0x70] sm:$0xff]  ;;  %v66_v34 = vld [vmem:[%s9347_s0 + $0x78] sm:$0xff] }
   0x9   :  { %5771 = vmatpush3.bf16.msra.mxu1 %v232_v7  ;;  %5749 = vmatpush3.bf16.msra.mxu0 %v95_v19  ;;  %9393 = vst [vmem:[#allocation4_spill] sm:$0xff] %v6966_v25  ;;  %9394 = vst [vmem:[#allocation5_spill] sm:$0xff] %v6968_v26  ;;  %v6992_v32 = vpack.c.bf16 %v64_v30, %v63_v29  ;;  %v7008_v35 = vpack.c.bf16 %v66_v34, %v65_v33  ;;  %v7023_v37 = vld [vmem:[%s9348_s4 + $0x4] ss:$0 sm:$0xff]  ;;  %v7032_v46 = vld [vmem:[%s9348_s4] ss:$0 sm:$0xff] }
   0xa   :  { %5750 = vmatprep.subr.bf16.mxu0 %v96_v20  ;;  %9395 = vst [vmem:[#allocation6_spill] sm:$0xff] %v6990_v31 }
   0xb   :  { %9396 = vst [vmem:[#allocation7_spill] sm:$0xff] %v6992_v32  ;;  %9397 = vst [vmem:[#allocation8_spill] sm:$0xff] %v7008_v35 }
   0xc   :  { %5773 = vmatmul.mubr.msk.bf16.vlgmr.msra.gmra.mrb[0].mxu1 %vm104_vm0, %v6937_v14 }
   0xd   :  { %5776 = vmatprep.mubr.msk.bf16.mxu1 %vm104_vm0, %v6948_v18  ;;  %5751 = vmatpush3.bf16.msra.mxu0 %v96_v20 }
  0x10   :  { %5753 = vmatmul.mubr.msk.bf16.vlgmr.msra.gmra.mrb[0].mxu0 %vm104_vm0, %v6937_v14 }
  0x11   :  { %5756 = vmatprep.mubr.msk.bf16.mxu0 %vm104_vm0, %v6948_v18 }
  0x14   :  { %5777 = vmatmul.mubr.msk.bf16.gmra.mrb[4].mxu1 %vm104_vm0, %v6966_v25 }
  0x15   :  { %5780 = vmatprep.mubr.msk.bf16.mxu1 %vm104_vm0, %v6968_v26 }
  0x18   :  { %5757 = vmatmul.mubr.msk.bf16.gmra.mrb[4].mxu0 %vm104_vm0, %v6966_v25 }
  0x19   :  { %5760 = vmatprep.mubr.msk.bf16.mxu0 %vm104_vm0, %v6968_v26 }
  0x1c   :  { %5781 = vmatmul.mubr.msk.bf16.gmra.mrb[8].mxu1 %vm104_vm0, %v6990_v31 }
  0x1d   :  { %5784 = vmatprep.mubr.msk.bf16.mxu1 %vm104_vm0, %v6992_v32 }
  0x20   :  { %5761 = vmatmul.mubr.msk.bf16.gmra.mrb[8].mxu0 %vm104_vm0, %v6990_v31 }
  0x21   :  { %5764 = vmatprep.mubr.msk.bf16.mxu0 %vm104_vm0, %v6992_v32 }
  0x24   :  { %5785 = vmatmul.mubr.msk.bf16.gmra.mrb[12].mxu1 %vm104_vm0, %v7008_v35 }
  0x28   :  { %5765 = vmatmul.mubr.msk.bf16.gmra.mrb[12].mxu0 %vm104_vm0, %v7008_v35 }
  0x29   :  { %5792 = vmatprep.mubr.msk.bf16.mxu0 %vm104_vm0, %v6916_v8 }
  0xdf   :  { %v5774_v36 = vpop.f32.mrb[0].mxu1 }
  0xe0   :  { %v275_v38 = vpop.f32.mrb[1].mxu1  ;;  %v284_v40 = vadd.f32 %v5774_v36, %v7023_v37 }
  0xe1   :  { %v5775_v39 = vpop.f32.mrb[2].mxu1  ;;  %v276_v43 = vadd.f32 %v7023_v37, %v275_v38 }
  0xe2   :  { %v287_v41 = vadd.f32 %v5775_v39, %v7023_v37  ;;  %v278_v42 = vpop.f32.mrb[3].mxu1 }
  0xe3   :  { %v279_v44 = vadd.f32 %v7023_v37, %v278_v42  ;;  %v5754_v48 = vpop.f32.mrb[0].mxu0 }
  0xe4   :  { %v459_v45 = vpack.c.bf16 %v287_v41, %v284_v40  ;;  %v7037_v51 = vadd.f32 %v5754_v48, %v7032_v46  ;;  %v163_v52 = vpop.f32.mrb[1].mxu0 }
  0xe5   :  { %v458_v47 = vpack.c.bf16 %v279_v44, %v276_v43  ;;  %v164_v55 = vadd.f32 %v7032_v46, %v163_v52  ;;  %v5755_v56 = vpop.f32.mrb[2].mxu0 }
  0xe6   :  { %v7044_v59 = vadd.f32 %v5755_v56, %v7032_v46  ;;  %v166_v60 = vpop.f32.mrb[3].mxu0  ;;  %v495_v6 = vsel %vm466_vm1, %v459_v45, 0 }
  0xe7   :  { %6440 = vmatprep.subr.msk.bf16.mxu1 %vm466_vm1, %v458_v47  ;;  %v492_v49 = vsel %vm466_vm1, %v458_v47, 0  ;;  %v5778_v50 = vpop.f32.mrb[4].mxu1  ;;  %v167_v63 = vadd.f32 %v7032_v46, %v166_v60 }
  0xe8   :  { %5809 = vmatpush3.bf16.xpose.msra.mxu1 %v492_v49  ;;  %v300_v53 = vadd.f32 %v5778_v50, %v7023_v37  ;;  %v291_v54 = vpop.f32.mrb[5].mxu1  ;;  %v451_v1 = vpack.c.bf16 %v7044_v59, %v7037_v51  ;;  %v5143_v51 = vld [vmem:[%s9346_s3 + $0x108] sm:$0xff]  ;;  %v5144_v59 = vld [vmem:[%s9346_s3 + $0x110] sm:$0xff] }
  0xe9   :  { %6441 = vmatprep.subr.msk.bf16.mxu1 %vm466_vm1, %v459_v45  ;;  %v292_v57 = vadd.f32 %v7023_v37, %v291_v54  ;;  %v5779_v58 = vpop.f32.mrb[6].mxu1  ;;  %v450_v3 = vpack.c.bf16 %v167_v63, %v164_v55 }
  0xea   :  { %v303_v61 = vadd.f32 %v5779_v58, %v7023_v37  ;;  %v294_v62 = vpop.f32.mrb[7].mxu1 }
  0xeb   :  { %v295_v0 = vadd.f32 %v7023_v37, %v294_v62  ;;  %5824 = vmatprep.mubr.msk.bf16.mxu1 %vm466_vm1, %v450_v3  ;;  %v5758_v5 = vpop.f32.mrb[4].mxu0 }
  0xec   :  { %v461_v2 = vpack.c.bf16 %v303_v61, %v300_v53  ;;  %v7054_v9 = vadd.f32 %v5758_v5, %v7032_v46  ;;  %v179_v10 = vpop.f32.mrb[5].mxu0 }
  0xed   :  { %v460_v4 = vpack.c.bf16 %v295_v0, %v292_v57  ;;  %v7058_v13 = vadd.f32 %v7032_v46, %v179_v10  ;;  %v5759_v15 = vpop.f32.mrb[6].mxu0 }
  0xee   :  { %v191_v19 = vadd.f32 %v5759_v15, %v7032_v46  ;;  %v182_v20 = vpop.f32.mrb[7].mxu0  ;;  %v501_v60 = vsel %vm466_vm1, %v461_v2, 0  ;;  %v7137_v15 = vld [vmem:[%s9349_s1] sm:$0xff] }
  0xef   :  { %v5782_v7 = vpop.f32.mrb[8].mxu1  ;;  %v183_v23 = vadd.f32 %v7032_v46, %v182_v20  ;;  %v498_v34 = vsel %vm466_vm1, %v460_v4, 0  ;;  %vm628_vm3 = vcmp.gt.f32.partialorder %v7137_v15, 0.0  ;;  %v7144_v20 = vld [vmem:[%s9349_s1 + $0x18] sm:$0xff] }
  0xf0   :  { %5811 = vmatpush3.bf16.xpose.msra.mxu1 %v495_v6  ;;  %v316_v11 = vadd.f32 %v5782_v7, %v7023_v37  ;;  %v307_v12 = vpop.f32.mrb[9].mxu1  ;;  %v453_v27 = vpack.c.bf16 %v191_v19, %v7054_v9  ;;  %vm631_vm4 = vcmp.gt.f32.partialorder %v7144_v20, 0.0 }
  0xf1   :  { %6442 = vmatprep.subr.msk.bf16.mxu1 %vm466_vm1, %v460_v4  ;;  %v308_v16 = vadd.f32 %v7023_v37, %v307_v12  ;;  %v5783_v17 = vpop.f32.mrb[10].mxu1  ;;  %v452_v29 = vpack.c.bf16 %v183_v23, %v7058_v13  ;;  %v7132_v13 = vld [vmem:[%s9349_s1 + $0x10] sm:$0xff]  ;;  %v7149_v23 = vld [vmem:[%s9349_s1 + $0x8] sm:$0xff] }
  0xf2   :  { %v319_v21 = vadd.f32 %v5783_v17, %v7023_v37  ;;  %v310_v22 = vpop.f32.mrb[11].mxu1  ;;  %vm630_vm2 = vcmp.gt.f32.partialorder %v7132_v13, 0.0  ;;  %vm629_vm5 = vcmp.gt.f32.partialorder %v7149_v23, 0.0 }
  0xf3   :  { %v311_v24 = vadd.f32 %v7023_v37, %v310_v22  ;;  %v5762_v33 = vpop.f32.mrb[8].mxu0 }
  0xf4   :  { %v463_v28 = vpack.c.bf16 %v319_v21, %v316_v11  ;;  %v204_v38 = vadd.f32 %v5762_v33, %v7032_v46  ;;  %v195_v39 = vpop.f32.mrb[9].mxu0  ;;  %v5145_v11 = vld [vmem:[%s9346_s3 + $0x118] sm:$0xff]  ;;  %v7166_v33 = vld [vmem:[%s9349_s1 + $0x20] sm:$0xff] }
  0xf5   :  { %v462_v30 = vpack.c.bf16 %v311_v24, %v308_v16  ;;  %v196_v42 = vadd.f32 %v7032_v46, %v195_v39  ;;  %v5763_v43 = vpop.f32.mrb[10].mxu0  ;;  %v344_v12 = vpack.c.bf16 %v5145_v11, %v5144_v59  ;;  %v7180_v39 = vld [vmem:[%s9349_s1 + $0x28] sm:$0xff]  ;;  %vm632_vm6 = vcmp.gt.f32.partialorder %v7166_v33, 0.0  ;;  %v7274_v11 = vld [vmem:[%s9349_s1 + $0x70] sm:$0xff] }
  0xf6   :  { %v207_v47 = vadd.f32 %v5763_v43, %v7032_v46  ;;  %v198_v48 = vpop.f32.mrb[11].mxu0  ;;  %v7187_v43 = vld [vmem:[%s9349_s1 + $0x30] sm:$0xff]  ;;  %vm633_vm7 = vcmp.gt.f32.partialorder %v7180_v39, 0.0  ;;  %9401 = vst [vmem:[#allocation12_spill] sm:$0xff] %v7274_v11 }
  0xf7   :  { %v5786_v36 = vpop.f32.mrb[12].mxu1  ;;  %v199_v52 = vadd.f32 %v7032_v46, %v198_v48  ;;  %v504_v7 = vsel %vm466_vm1, %v462_v30, 0  ;;  %vm9390_vm8 = vcmp.gt.f32.partialorder %v7187_v43, 0.0 }
  0xf8   :  { %5813 = vmatpush3.bf16.xpose.msra.mxu1 %v498_v34  ;;  %v332_v40 = vadd.f32 %v5786_v36, %v7023_v37  ;;  %v323_v41 = vpop.f32.mrb[13].mxu1  ;;  %v455_v54 = vpack.c.bf16 %v207_v47, %v204_v38 }
  0xf9   :  { %6443 = vmatprep.subr.msk.bf16.mxu1 %vm466_vm1, %v461_v2  ;;  %v324_v44 = vadd.f32 %v7023_v37, %v323_v41  ;;  %v5787_v45 = vpop.f32.mrb[14].mxu1  ;;  %v454_v56 = vpack.c.bf16 %v199_v52, %v196_v42  ;;  %v507_v2 = vsel %vm466_vm1, %v463_v28, 0 }
  0xfa   :  { %v335_v49 = vadd.f32 %v5787_v45, %v7023_v37  ;;  %v326_v50 = vpop.f32.mrb[15].mxu1  ;;  %v7193_v45 = vld [vmem:[%s9349_s1 + $0x38] sm:$0xff] }
  0xfb   :  { %v327_v53 = vadd.f32 %v7023_v37, %v326_v50  ;;  %v5766_v58 = vpop.f32.mrb[12].mxu0  ;;  %vm9364_vm9 = vcmp.gt.f32.partialorder %v7193_v45, 0.0 }
  0xfc   :  { %v465_v55 = vpack.c.bf16 %v335_v49, %v332_v40  ;;  %v220_v61 = vadd.f32 %v5766_v58, %v7032_v46  ;;  %v211_v62 = vpop.f32.mrb[13].mxu0 }
  0xfd   :  { %v464_v57 = vpack.c.bf16 %v327_v53, %v324_v44  ;;  %v212_v63 = vadd.f32 %v7032_v46, %v211_v62  ;;  %v5767_v0 = vpop.f32.mrb[14].mxu0  ;;  %v7208_v53 = vld [vmem:[%s9349_s1 + $0x40] sm:$0xff]  ;;  %v7230_v62 = vld [vmem:[%s9349_s1 + $0x50] sm:$0xff] }
  0xfe   :  { %v223_v3 = vadd.f32 %v5767_v0, %v7032_v46  ;;  %v214_v4 = vpop.f32.mrb[15].mxu0  ;;  %v513_v10 = vsel %vm466_vm1, %v465_v55, 0  ;;  %vm9365_vm10 = vcmp.gt.f32.partialorder %v7208_v53, 0.0  ;;  %v7237_v0 = vld [vmem:[%s9349_s1 + $0x58] sm:$0xff]  ;;  %vm9363_vm12 = vcmp.gt.f32.partialorder %v7230_v62, 0.0 }
  0xff   :  { %v215_v37 = vadd.f32 %v7032_v46, %v214_v4  ;;  %v510_v9 = vsel %vm466_vm1, %v464_v57, 0  ;;  %v5142_v46 = vld [vmem:[%s9346_s3 + $0x100] sm:$0xff]  ;;  %9398 = vst [vmem:[#allocation9_spill] sm:$0xff] %v7237_v0  ;;  %vm9362_vm13 = vcmp.gt.f32.partialorder %v7237_v0, 0.0 }
 0x100   :  { %5815 = vmatpush3.bf16.xpose.msra.mxu1 %v501_v60  ;;  %v457_v5 = vpack.c.bf16 %v223_v3, %v220_v61 }
 0x101   :  { %6444 = vmatprep.subr.msk.bf16.mxu1 %vm466_vm1, %v462_v30  ;;  %v456_v6 = vpack.c.bf16 %v215_v37, %v212_v63 }
 0x108   :  { %5817 = vmatpush3.bf16.xpose.msra.mxu1 %v504_v7  ;;  %v7252_v7 = vld [vmem:[%s9349_s1 + $0x60] sm:$0xff] }
 0x109   :  { %6445 = vmatprep.subr.msk.bf16.mxu1 %vm466_vm1, %v463_v28  ;;  %9399 = vst [vmem:[#allocation10_spill] sm:$0xff] %v7252_v7  ;;  %vm640_vm14 = vcmp.gt.f32.partialorder %v7252_v7, 0.0 }
 0x110   :  { %5819 = vmatpush3.bf16.xpose.msra.mxu1 %v507_v2 }
 0x111   :  { %6446 = vmatprep.subr.msk.bf16.mxu1 %vm466_vm1, %v464_v57 }
 0x118   :  { %5821 = vmatpush3.bf16.xpose.msra.mxu1 %v510_v9 }
 0x119   :  { %6447 = vmatprep.subr.msk.bf16.mxu1 %vm466_vm1, %v465_v55 }
 0x120   :  { %5823 = vmatpush3.bf16.xpose.msra.mxu1 %v513_v10  ;;  %v7263_v10 = vld [vmem:[%s9349_s1 + $0x68] sm:$0xff] }
 0x121   :  { %9400 = vst [vmem:[#allocation11_spill] sm:$0xff] %v7263_v10  ;;  %vm641_vm15 = vcmp.gt.f32.partialorder %v7263_v10, 0.0 }
 0x127   :  { %5825 = vmatmul.mubr.msk.bf16.vlgmr.msra.gmra.mrb[16].mxu1 %vm466_vm1, %v451_v1  ;;  %v343_v1 = vpack.c.bf16 %v5143_v51, %v5142_v46 }
 0x128   :  { %5828 = vmatprep.mubr.msk.bf16.mxu1 %vm466_vm1, %v452_v29 }
 0x129   :  { %5788 = vmatprep.subr.bf16.mxu0 %v343_v1 }
 0x12a   :  { %5789 = vmatpush3.bf16.msra.mxu0 %v343_v1 }
 0x12b   :  { %5790 = vmatprep.subr.bf16.mxu0 %v344_v12 }
 0x12e   :  { %5791 = vmatpush3.bf16.msra.mxu0 %v344_v12 }
 0x12f   :  { %5829 = vmatmul.mubr.msk.bf16.gmra.mrb[20].mxu1 %vm466_vm1, %v453_v27 }
 0x130   :  { %5832 = vmatprep.mubr.msk.bf16.mxu1 %vm466_vm1, %v454_v56  ;;  %v7219_v56 = vld [vmem:[%s9349_s1 + $0x48] sm:$0xff] }
 0x131   :  { %5793 = vmatmul.mubr.msk.bf16.vlgmr.msra.gmra.mrb[16].mxu0 %vm104_vm0, %v6937_v14  ;;  %vm637_vm11 = vcmp.gt.f32.partialorder %v7219_v56, 0.0 }
 0x132   :  { %5796 = vmatprep.mubr.msk.bf16.mxu0 %vm104_vm0, %v6948_v18 }
 0x137   :  { %5833 = vmatmul.mubr.msk.bf16.gmra.mrb[24].mxu1 %vm466_vm1, %v455_v54 }
 0x138   :  { %5836 = vmatprep.mubr.msk.bf16.mxu1 %vm466_vm1, %v456_v6 }
 0x139   :  { %5797 = vmatmul.mubr.msk.bf16.gmra.mrb[20].mxu0 %vm104_vm0, %v6966_v25 }
 0x13a   :  { %5800 = vmatprep.mubr.msk.bf16.mxu0 %vm104_vm0, %v6968_v26 }
 0x13f   :  { %5837 = vmatmul.mubr.msk.bf16.gmra.mrb[28].mxu1 %vm466_vm1, %v457_v5 }
 0x140   :  { %5896 = vmatprep.mubr.msk.bf16.mxu1 %vm104_vm0, %v6916_v8 }
 0x141   :  { %5801 = vmatmul.mubr.msk.bf16.gmra.mrb[24].mxu0 %vm104_vm0, %v6990_v31 }
 0x142   :  { %5804 = vmatprep.mubr.msk.bf16.mxu0 %vm104_vm0, %v6992_v32 }
 0x149   :  { %5805 = vmatmul.mubr.msk.bf16.gmra.mrb[28].mxu0 %vm104_vm0, %v7008_v35 }
 0x1fa   :  { %v5826_v16 = vpop.f32.mrb[16].mxu1 }
 0x1fb   :  { %v614_v17 = vmul.f32 0.35355338, %v5826_v16  ;;  %v549_v19 = vpop.f32.mrb[17].mxu1  ;;  %v7281_v16 = vld [vmem:[%s9349_s1 + $0x78] sm:$0xff] }
 0x1fc   :  { %v612_v21 = vmul.f32 0.35355338, %v549_v19  ;;  %v5827_v22 = vpop.f32.mrb[18].mxu1  ;;  %9402 = vst [vmem:[#allocation13_spill] sm:$0xff] %v7281_v16 }
 0x1fd   :  { %v615_v24 = vmul.f32 0.35355338, %v5827_v22  ;;  %v552_v27 = vpop.f32.mrb[19].mxu1  ;;  %v7153_v28 = vsel %vm630_vm2, %v614_v17, -1e+09 }
 0x1fe   :  { %v613_v29 = vmul.f32 0.35355338, %v552_v27  ;;  %664 = vmax.xlane.f32.xlu1 %v7153_v28  ;;  %v7158_v30 = vsel %vm628_vm3, %v612_v21, -1e+09 }
 0x1ff   :  { %660 = vmax.xlane.f32.xlu0 %v7158_v30  ;;  %v7170_v34 = vsel %vm631_vm4, %v615_v24, -1e+09 }
 0x200   :  { %v7175_v38 = vsel %vm629_vm5, %v613_v29, -1e+09 }
 0x202   :  { %666 = vmax.xlane.f32.xlu1 %v7170_v34  ;;  %v5830_v36 = vpop.f32.mrb[20].mxu1 }
 0x203   :  { %662 = vmax.xlane.f32.xlu0 %v7175_v38  ;;  %v565_v40 = vpop.f32.mrb[21].mxu1  ;;  %v618_v47 = vmul.f32 0.35355338, %v5830_v36  ;;  %v5178_v36 = vld [vmem:[%s9346_s3 + $0xa0] sm:$0xff] }
 0x204   :  { %v616_v41 = vmul.f32 0.35355338, %v565_v40  ;;  %v5831_v42 = vpop.f32.mrb[22].mxu1  ;;  %v5179_v40 = vld [vmem:[%s9346_s3 + $0xa8] sm:$0xff] }
 0x205   :  { %v568_v44 = vpop.f32.mrb[23].mxu1  ;;  %v619_v50 = vmul.f32 0.35355338, %v5831_v42  ;;  %v7214_v55 = vsel %vm9390_vm8, %v618_v47, -1e+09  ;;  %v5180_v42 = vld [vmem:[%s9346_s3 + $0xb0] sm:$0xff] }
 0x206   :  { %v617_v48 = vmul.f32 0.35355338, %v568_v44  ;;  %v7197_v49 = vsel %vm632_vm6, %v616_v41, -1e+09  ;;  %v1035_v41 = vpack.c.bf16 %v5179_v40, %v5178_v36  ;;  %v5181_v44 = vld [vmem:[%s9346_s3 + $0xb8] sm:$0xff] }
 0x207   :  { %668 = vmax.xlane.f32.xlu0 %v7197_v49  ;;  %v7225_v61 = vsel %vm9364_vm9, %v619_v50, -1e+09  ;;  %v1036_v47 = vpack.c.bf16 %v5181_v44, %v5180_v42  ;;  %v5794_v50 = vpop.f32.mrb[16].mxu0 }
 0x208   :  { %v7203_v52 = vsel %vm633_vm7, %v617_v48, -1e+09  ;;  %5892 = vmatprep.subr.bf16.mxu1 %v1035_v41  ;;  %v7334_v48 = vld [vmem:[%s9348_s4 + $0x8] ss:$0 sm:$0xff] }
 0x209   :  { %670 = vmax.xlane.f32.xlu1 %v7203_v52  ;;  %5893 = vmatpush3.bf16.msra.mxu1 %v1035_v41 }
 0x20a   :  { %v5834_v54 = vpop.f32.mrb[24].mxu1  ;;  %5894 = vmatprep.subr.bf16.mxu1 %v1036_v47 }
 0x20b   :  { %672 = vmax.xlane.f32.xlu0 %v7214_v55  ;;  %v581_v57 = vpop.f32.mrb[25].mxu1  ;;  %v622_v3 = vmul.f32 0.35355338, %v5834_v54  ;;  %v396_v54 = vadd.f32 %v5794_v50, %v7334_v48 }
 0x20c   :  { %v620_v58 = vmul.f32 0.35355338, %v581_v57  ;;  %v5835_v60 = vpop.f32.mrb[26].mxu1  ;;  %v387_v57 = vpop.f32.mrb[17].mxu0 }
 0x20d   :  { %674 = vmax.xlane.f32.xlu1 %v7225_v61  ;;  %v584_v63 = vpop.f32.mrb[27].mxu1  ;;  %v623_v5 = vmul.f32 0.35355338, %v5835_v60  ;;  %v7258_v9 = vsel %vm9363_vm12, %v622_v3, -1e+09  ;;  %vm643_vm12 = vcmp.gt.f32.partialorder %v7281_v16, 0.0  ;;  %5895 = vmatpush3.bf16.msra.mxu1 %v1036_v47 }
 0x20e   :  { %v621_v4 = vmul.f32 0.35355338, %v584_v63  ;;  %v7241_v37 = vsel %vm9365_vm10, %v620_v58, -1e+09  ;;  %v388_v58 = vadd.f32 %v7334_v48, %v387_v57  ;;  %v5795_v60 = vpop.f32.mrb[18].mxu0 }
 0x20f   :  { %676 = vmax.xlane.f32.xlu0 %v7241_v37  ;;  %v7269_v1 = vsel %vm9362_vm13, %v623_v5, -1e+09  ;;  %vm642_vm13 = vcmp.gt.f32.partialorder %v7274_v11, 0.0  ;;  %v399_v63 = vadd.f32 %v5795_v60, %v7334_v48  ;;  %v390_v3 = vpop.f32.mrb[19].mxu0 }
 0x210   :  { %v7247_v6 = vsel %vm637_vm11, %v621_v4, -1e+09  ;;  %5897 = vmatmul.mubr.msk.bf16.vlgmr.msra.gmra.mrb[32].mxu1 %vm104_vm0, %v6937_v14  ;;  %v391_v4 = vadd.f32 %v7334_v48, %v390_v3 }
 0x211   :  { %678 = vmax.xlane.f32.xlu1 %v7247_v6  ;;  %5900 = vmatprep.mubr.msk.bf16.mxu1 %vm104_vm0, %v6948_v18  ;;  %v813_v5 = vpack.c.bf16 %v399_v63, %v396_v54 }
 0x212   :  { %v5838_v2 = vpop.f32.mrb[28].mxu1 }
 0x213   :  { %680 = vmax.xlane.f32.xlu0 %v7258_v9  ;;  %v597_v46 = vpop.f32.mrb[29].mxu1  ;;  %v626_v17 = vmul.f32 0.35355338, %v5838_v2  ;;  %v812_v2 = vpack.c.bf16 %v391_v4, %v388_v58 }
 0x214   :  { %v624_v51 = vmul.f32 0.35355338, %v597_v46  ;;  %v5839_v59 = vpop.f32.mrb[30].mxu1  ;;  %v5798_v46 = vpop.f32.mrb[20].mxu0 }
 0x215   :  { %682 = vmax.xlane.f32.xlu1 %v7269_v1  ;;  %v600_v12 = vpop.f32.mrb[31].mxu1  ;;  %v627_v22 = vmul.f32 0.35355338, %v5839_v59  ;;  %v7297_v27 = vsel %vm642_vm13, %v626_v17, -1e+09  ;;  %5840 = vmatprep.subr.bf16.mxu0 %v812_v2  ;;  %v403_v59 = vpop.f32.mrb[21].mxu0 }
 0x216   :  { %v625_v19 = vmul.f32 0.35355338, %v600_v12  ;;  %v7285_v21 = vsel %vm640_vm14, %v624_v51, -1e+09  ;;  %v412_v51 = vadd.f32 %v5798_v46, %v7334_v48  ;;  %5841 = vmatpush3.bf16.msra.mxu0 %v812_v2  ;;  %v404_v12 = vadd.f32 %v7334_v48, %v403_v59  ;;  %v5799_v17 = vpop.f32.mrb[22].mxu0 }
 0x217   :  { %684 = vmax.xlane.f32.xlu0 %v7285_v21  ;;  %v7302_v29 = vsel %vm643_vm12, %v627_v22, -1e+09  ;;  %5842 = vmatprep.subr.bf16.mxu0 %v813_v5  ;;  %v406_v22 = vpop.f32.mrb[23].mxu0 }
 0x218   :  { %v7291_v24 = vsel %vm641_vm15, %v625_v19, -1e+09  ;;  %5901 = vmatmul.mubr.msk.bf16.gmra.mrb[36].mxu1 %vm104_vm0, %v6966_v25  ;;  %v415_v19 = vadd.f32 %v5799_v17, %v7334_v48  ;;  %v407_v36 = vadd.f32 %v7334_v48, %v406_v22  ;;  %v5802_v44 = vpop.f32.mrb[24].mxu0 }
 0x219   :  { %686 = vmax.xlane.f32.xlu1 %v7291_v24  ;;  %5904 = vmatprep.mubr.msk.bf16.mxu1 %vm104_vm0, %v6968_v26  ;;  %v428_v54 = vadd.f32 %v5802_v44, %v7334_v48  ;;  %v419_v57 = vpop.f32.mrb[25].mxu0 }
 0x21a   :  { %v815_v40 = vpack.c.bf16 %v415_v19, %v412_v51  ;;  %5843 = vmatpush3.bf16.msra.mxu0 %v813_v5  ;;  %v814_v41 = vpack.c.bf16 %v407_v36, %v404_v12  ;;  %v420_v60 = vadd.f32 %v7334_v48, %v419_v57  ;;  %v5803_v63 = vpop.f32.mrb[26].mxu0 }
 0x21b   :  { %688 = vmax.xlane.f32.xlu0 %v7297_v27  ;;  %v431_v3 = vadd.f32 %v5803_v63, %v7334_v48  ;;  %v422_v4 = vpop.f32.mrb[27].mxu0 }
 0x21c   :  { %5844 = vmatprep.subr.bf16.mxu0 %v814_v41  ;;  %v423_v46 = vadd.f32 %v7334_v48, %v422_v4  ;;  %v7352_v22 = vpop.f32.mrb[28].mxu0 }
 0x21d   :  { %690 = vmax.xlane.f32.xlu1 %v7302_v29  ;;  %v817_v12 = vpack.c.bf16 %v431_v3, %v428_v54 }
 0x21e   :  { %5845 = vmatpush3.bf16.msra.mxu0 %v814_v41  ;;  %v816_v17 = vpack.c.bf16 %v423_v46, %v420_v60 }
 0x21f   :  { %5846 = vmatprep.subr.bf16.mxu0 %v815_v40 }
 0x220   :  { %5905 = vmatmul.mubr.msk.bf16.gmra.mrb[40].mxu1 %vm104_vm0, %v6990_v31 }
 0x221   :  { %5908 = vmatprep.mubr.msk.bf16.mxu1 %vm104_vm0, %v6992_v32 }
 0x222   :  { %5847 = vmatpush3.bf16.msra.mxu0 %v815_v40 }
 0x223   :  { %5848 = vmatprep.subr.bf16.mxu0 %v816_v17 }
 0x226   :  { %5849 = vmatpush3.bf16.msra.mxu0 %v816_v17 }
 0x227   :  { %5850 = vmatprep.subr.bf16.mxu0 %v817_v12 }
 0x228   :  { %5909 = vmatmul.mubr.msk.bf16.gmra.mrb[44].mxu1 %vm104_vm0, %v7008_v35 }
 0x22a   :  { %5851 = vmatpush3.bf16.msra.mxu0 %v817_v12 }
 0x28b   :  { %v665_v42 = vpop.xlane.xlu1 %664 }
 0x28c   :  { %v694_v47 = vsub.f32 %v7153_v28, %v665_v42  ;;  %v661_v50 = vpop.xlane.xlu0 %660 }
 0x28d   :  { %v692_v58 = vsub.f32 %v7158_v30, %v661_v50 }
 0x28e   :  { %v712_v51 = vmul.f32 1.442695, %v694_v47 }
 0x28f   :  { %v708_v5 = vmul.f32 1.442695, %v692_v58  ;;  %v667_v2 = vpop.xlane.xlu1 %666 }
 0x290   :  { %v695_v28 = vsub.f32 %v7170_v34, %v667_v2  ;;  %v663_v59 = vpop.xlane.xlu0 %662 }
 0x291   :  { %6481 = vpow2.f32 %v708_v5  ;;  %v693_v30 = vsub.f32 %v7175_v38, %v663_v59 }
 0x292   :  { %6483 = vpow2.f32 %v712_v51  ;;  %v714_v36 = vmul.f32 1.442695, %v695_v28 }
 0x293   :  { %v710_v19 = vmul.f32 1.442695, %v693_v30 }
 0x294   :  { %v669_v41 = vpop.xlane.xlu0 %668 }
 0x295   :  { %6485 = vpow2.f32 %v710_v19  ;;  %v696_v42 = vsub.f32 %v7197_v49, %v669_v41 }
 0x296   :  { %v671_v34 = vpop.xlane.xlu1 %670  ;;  %6487 = vpow2.f32 %v714_v36 }
 0x297   :  { %v716_v44 = vmul.f32 1.442695, %v696_v42  ;;  %v697_v40 = vsub.f32 %v7203_v52, %v671_v34 }
 0x298   :  { %v673_v47 = vpop.xlane.xlu0 %672 }
 0x299   :  { %6489 = vpow2.f32 %v716_v44  ;;  %v718_v38 = vmul.f32 1.442695, %v697_v40  ;;  %v698_v50 = vsub.f32 %v7214_v55, %v673_v47 }
 0x29a   :  { %v675_v54 = vpop.xlane.xlu1 %674 }
 0x29b   :  { %v7357_v57 = vpop.eup %6481  ;;  %v720_v58 = vmul.f32 1.442695, %v698_v50  ;;  %v699_v60 = vsub.f32 %v7225_v61, %v675_v54  ;;  %6491 = vpow2.f32 %v718_v38  ;;  %v444_v38 = vadd.f32 %v7352_v22, %v7334_v48  ;;  %v435_v50 = vpop.f32.mrb[29].mxu0 }
 0x29c   :  { %v677_v49 = vpop.xlane.xlu0 %676  ;;  %740 = vadd.xlane.f32.xlu0 %v7357_v57  ;;  %v7362_v3 = vpop.eup %6483 }
 0x29d   :  { %6493 = vpow2.f32 %v720_v58  ;;  %v722_v63 = vmul.f32 1.442695, %v699_v60  ;;  %v700_v52 = vsub.f32 %v7241_v37, %v677_v49  ;;  %v436_v60 = vadd.f32 %v7334_v48, %v435_v50  ;;  %v5807_v49 = vpop.f32.mrb[30].mxu0 }
 0x29e   :  { %v679_v4 = vpop.xlane.xlu1 %678 }
 0x29f   :  { %v7364_v5 = vpop.eup %6485  ;;  %v724_v55 = vmul.f32 1.442695, %v700_v52  ;;  %v701_v2 = vsub.f32 %v7247_v6, %v679_v4  ;;  %6495 = vpow2.f32 %v722_v63  ;;  %v438_v63 = vpop.f32.mrb[31].mxu0 }
 0x2a0   :  { %v681_v46 = vpop.xlane.xlu0 %680  ;;  %744 = vadd.xlane.f32.xlu0 %v7362_v3  ;;  %742 = vadd.xlane.f32.xlu1 %v7364_v5  ;;  %v7370_v28 = vpop.eup %6487  ;;  %v439_v22 = vadd.f32 %v7334_v48, %v438_v63 }
 0x2a1   :  { %6497 = vpow2.f32 %v724_v55  ;;  %v726_v61 = vmul.f32 1.442695, %v701_v2  ;;  %v702_v51 = vsub.f32 %v7258_v9, %v681_v46 }
 0x2a2   :  { %v683_v37 = vpop.xlane.xlu1 %682 }
 0x2a3   :  { %v7372_v59 = vpop.eup %6489  ;;  %v728_v12 = vmul.f32 1.442695, %v702_v51  ;;  %v703_v30 = vsub.f32 %v7269_v1, %v683_v37  ;;  %6499 = vpow2.f32 %v726_v61 }
 0x2a4   :  { %748 = vadd.xlane.f32.xlu0 %v7372_v59  ;;  %v685_v6 = vpop.xlane.xlu0 %684  ;;  %746 = vadd.xlane.f32.xlu1 %v7370_v28 }
 0x2a5   :  { %6501 = vpow2.f32 %v728_v12  ;;  %v730_v17 = vmul.f32 1.442695, %v703_v30  ;;  %v704_v19 = vsub.f32 %v7285_v21, %v685_v6  ;;  %v7378_v36 = vpop.eup %6491  ;;  %v5164_v12 = vld [vmem:[%s9346_s3 + $0x20] sm:$0xff]  ;;  %v5165_v30 = vld [vmem:[%s9346_s3 + $0x28] sm:$0xff] }
 0x2a6   :  { %v687_v9 = vpop.xlane.xlu1 %686  ;;  %v7425_v6 = vpack.c.bf16 %v5165_v30, %v5164_v12 }
 0x2a7   :  { %v7380_v41 = vpop.eup %6493  ;;  %v732_v42 = vmul.f32 1.442695, %v704_v19  ;;  %v705_v34 = vsub.f32 %v7291_v24, %v687_v9  ;;  %6503 = vpow2.f32 %v730_v17  ;;  %v7431_v17 = vld [vmem:[%s9348_s4 + $0x5] ss:$0 sm:$0xff] }
 0x2a8   :  { %752 = vadd.xlane.f32.xlu0 %v7380_v41  ;;  %v689_v1 = vpop.xlane.xlu0 %688  ;;  %750 = vadd.xlane.f32.xlu1 %v7378_v36 }
 0x2a9   :  { %6505 = vpow2.f32 %v732_v42  ;;  %v734_v44 = vmul.f32 1.442695, %v705_v34  ;;  %v706_v40 = vsub.f32 %v7297_v27, %v689_v1  ;;  %v7386_v47 = vpop.eup %6495  ;;  %v447_v27 = vadd.f32 %v5807_v49, %v7334_v48 }
 0x2aa   :  { %v691_v21 = vpop.xlane.xlu1 %690 }
 0x2ab   :  { %v7390_v54 = vpop.eup %6497  ;;  %v736_v24 = vmul.f32 1.442695, %v706_v40  ;;  %v707_v58 = vsub.f32 %v7302_v29, %v691_v21  ;;  %6507 = vpow2.f32 %v734_v44  ;;  %v819_v55 = vpack.c.bf16 %v447_v27, %v444_v38 }
 0x2ac   :  { %756 = vadd.xlane.f32.xlu0 %v7390_v54  ;;  %754 = vadd.xlane.f32.xlu1 %v7386_v47  ;;  %v818_v29 = vpack.c.bf16 %v439_v22, %v436_v60 }
 0x2ad   :  { %6509 = vpow2.f32 %v736_v24  ;;  %v738_v52 = vmul.f32 1.442695, %v707_v58  ;;  %v7398_v4 = vpop.eup %6499 }
 0x2ae   :  { %5852 = vmatprep.subr.bf16.mxu0 %v818_v29 }
 0x2af   :  { %v7400_v2 = vpop.eup %6501  ;;  %6511 = vpow2.f32 %v738_v52  ;;  %5853 = vmatpush3.bf16.msra.mxu0 %v818_v29 }
 0x2b0   :  { %760 = vadd.xlane.f32.xlu0 %v7400_v2  ;;  %758 = vadd.xlane.f32.xlu1 %v7398_v4 }
 0x2b1   :  { %v7404_v46 = vpop.eup %6503  ;;  %5854 = vmatprep.subr.bf16.mxu0 %v819_v55 }
 0x2b3   :  { %v7406_v61 = vpop.eup %6505  ;;  %5855 = vmatpush3.bf16.msra.mxu0 %v819_v55 }
 0x2b4   :  { %764 = vadd.xlane.f32.xlu0 %v7406_v61  ;;  %762 = vadd.xlane.f32.xlu1 %v7404_v46 }
 0x2b5   :  { %v7410_v48 = vpop.eup %6507  ;;  %5872 = vmatprep.subr.bf16.mxu0 %v7425_v6 }
 0x2b7   :  { %v7412_v51 = vpop.eup %6509 }
 0x2b8   :  { %768 = vadd.xlane.f32.xlu0 %v7412_v51  ;;  %766 = vadd.xlane.f32.xlu1 %v7410_v48 }
 0x2b9   :  { %v7416_v37 = vpop.eup %6511 }
 0x2bc   :  { %770 = vadd.xlane.f32.xlu1 %v7416_v37 }
 0x2e3   :  { %v5898_v19 = vpop.f32.mrb[32].mxu1 }
 0x2e4   :  { %v1088_v9 = vadd.f32 %v5898_v19, %v7431_v17  ;;  %v1079_v42 = vpop.f32.mrb[33].mxu1 }
 0x2e5   :  { %v1080_v34 = vadd.f32 %v7431_v17, %v1079_v42  ;;  %v5899_v1 = vpop.f32.mrb[34].mxu1 }
 0x2e6   :  { %v1091_v44 = vadd.f32 %v5899_v1, %v7431_v17  ;;  %v1082_v40 = vpop.f32.mrb[35].mxu1 }
 0x2e7   :  { %v1083_v21 = vadd.f32 %v7431_v17, %v1082_v40 }
 0x2e8   :  { %v1263_v38 = vpack.c.bf16 %v1091_v44, %v1088_v9 }
 0x2e9   :  { %v1262_v50 = vpack.c.bf16 %v1083_v21, %v1080_v34 }
 0x2ea   :  { %v1298_v12 = vsel %vm466_vm1, %v1263_v38, 0 }
 0x2eb   :  { %6448 = vmatprep.subr.msk.bf16.mxu1 %vm466_vm1, %v1262_v50  ;;  %v1295_v24 = vsel %vm466_vm1, %v1262_v50, 0  ;;  %v5902_v58 = vpop.f32.mrb[36].mxu1 }
 0x2ec   :  { %5933 = vmatpush3.bf16.xpose.msra.mxu1 %v1295_v24  ;;  %v1104_v60 = vadd.f32 %v5902_v58, %v7431_v17  ;;  %v1095_v49 = vpop.f32.mrb[37].mxu1 }
 0x2ed   :  { %6449 = vmatprep.subr.msk.bf16.mxu1 %vm466_vm1, %v1263_v38  ;;  %v1096_v27 = vadd.f32 %v7431_v17, %v1095_v49  ;;  %v5903_v63 = vpop.f32.mrb[38].mxu1 }
 0x2ee   :  { %v1107_v52 = vadd.f32 %v5903_v63, %v7431_v17  ;;  %v1098_v22 = vpop.f32.mrb[39].mxu1 }
 0x2ef   :  { %v1099_v55 = vadd.f32 %v7431_v17, %v1098_v22 }
 0x2f0   :  { %v1265_v29 = vpack.c.bf16 %v1107_v52, %v1104_v60 }
 0x2f1   :  { %v1264_v30 = vpack.c.bf16 %v1099_v55, %v1096_v27 }
 0x2f3   :  { %v5906_v9 = vpop.f32.mrb[40].mxu1  ;;  %v1301_v60 = vsel %vm466_vm1, %v1264_v30, 0 }
 0x2f4   :  { %5935 = vmatpush3.bf16.xpose.msra.mxu1 %v1298_v12  ;;  %v1120_v42 = vadd.f32 %v5906_v9, %v7431_v17  ;;  %v1111_v34 = vpop.f32.mrb[41].mxu1  ;;  %v1304_v12 = vsel %vm466_vm1, %v1265_v29, 0 }
 0x2f5   :  { %6450 = vmatprep.subr.msk.bf16.mxu1 %vm466_vm1, %v1264_v30  ;;  %v5907_v1 = vpop.f32.mrb[42].mxu1  ;;  %v1112_v21 = vadd.f32 %v7431_v17, %v1111_v34 }
 0x2f6   :  { %v1123_v50 = vadd.f32 %v5907_v1, %v7431_v17  ;;  %v1114_v24 = vpop.f32.mrb[43].mxu1 }
 0x2f7   :  { %v1115_v58 = vadd.f32 %v7431_v17, %v1114_v24 }
 0x2f8   :  { %v7449_v38 = vpack.c.bf16 %v1123_v50, %v1120_v42 }
 0x2f9   :  { %v1266_v63 = vpack.c.bf16 %v1115_v58, %v1112_v21 }
 0x2fc   :  { %5937 = vmatpush3.bf16.xpose.msra.mxu1 %v1301_v60 }
 0x2fd   :  { %6451 = vmatprep.subr.msk.bf16.mxu1 %vm466_vm1, %v1265_v29  ;;  %v5166_v29 = vld [vmem:[%s9346_s3 + $0x30] sm:$0xff] }
 0x304   :  { %5939 = vmatpush3.bf16.xpose.msra.mxu1 %v1304_v12 }
 0x305   :  { %6452 = vmatprep.subr.msk.bf16.mxu1 %vm466_vm1, %v1266_v63 }
 0x329   :  { %v741_v19 = vpop.xlane.xlu0 %740 }
 0x32a   :  { %6513 = vrcp.f32 %v741_v19 }
 0x32d   :  { %v745_v44 = vpop.xlane.xlu0 %744  ;;  %v743_v40 = vpop.xlane.xlu1 %742 }
 0x32e   :  { %6515 = vrcp.f32 %v743_v40 }
 0x32f   :  { %6517 = vrcp.f32 %v745_v44 }
 0x331   :  { %v749_v49 = vpop.xlane.xlu0 %748  ;;  %v747_v27 = vpop.xlane.xlu1 %746 }
 0x332   :  { %6519 = vrcp.f32 %v747_v27  ;;  %v1307_v27 = vsel %vm466_vm1, %v1266_v63, 0 }
 0x333   :  { %6521 = vrcp.f32 %v749_v49  ;;  %5941 = vmatpush3.bf16.xpose.msra.mxu1 %v1307_v27 }
 0x334   :  { %v6514_v55 = vpop.eup %6513  ;;  %6453 = vmatprep.subr.msk.bf16.mxu1 %vm466_vm1, %v7449_v38 }
 0x335   :  { %v753_v52 = vpop.xlane.xlu0 %752  ;;  %v751_v22 = vpop.xlane.xlu1 %750  ;;  %v788_v30 = vmul.f32 %v6514_v55, %v7357_v57  ;;  %v5167_v57 = vld [vmem:[%s9346_s3 + $0x38] sm:$0xff] }
 0x336   :  { %6523 = vrcp.f32 %v751_v22  ;;  %v924_v49 = vpack.c.bf16 %v5167_v57, %v5166_v29 }
 0x337   :  { %6525 = vrcp.f32 %v753_v52 }
 0x338   :  { %v6516_v19 = vpop.eup %6515 }
 0x339   :  { %v757_v9 = vpop.xlane.xlu0 %756  ;;  %v755_v42 = vpop.xlane.xlu1 %754  ;;  %v789_v34 = vmul.f32 %v6516_v19, %v7364_v5 }
 0x33a   :  { %v6518_v1 = vpop.eup %6517  ;;  %6527 = vrcp.f32 %v755_v42 }
 0x33b   :  { %v804_v44 = vpack.c.bf16 %v789_v34, %v788_v30  ;;  %6529 = vrcp.f32 %v757_v9  ;;  %v790_v5 = vmul.f32 %v6518_v1, %v7362_v3 }
 0x33c   :  { %v6520_v40 = vpop.eup %6519 }
 0x33d   :  { %v761_v21 = vpop.xlane.xlu0 %760  ;;  %v759_v50 = vpop.xlane.xlu1 %758  ;;  %v791_v24 = vmul.f32 %v6520_v40, %v7370_v28  ;;  %5856 = vmatprep.mubr.bf16.mxu0 %v804_v44 }
 0x33e   :  { %v6522_v58 = vpop.eup %6521  ;;  %6531 = vrcp.f32 %v759_v50 }
 0x33f   :  { %v805_v60 = vpack.c.bf16 %v791_v24, %v790_v5  ;;  %6533 = vrcp.f32 %v761_v21  ;;  %v792_v12 = vmul.f32 %v6522_v58, %v7372_v59 }
 0x340   :  { %v6524_v52 = vpop.eup %6523 }
 0x341   :  { %v765_v22 = vpop.xlane.xlu0 %764  ;;  %v763_v55 = vpop.xlane.xlu1 %762  ;;  %5857 = vmatmul.mubr.bf16.vlgmr.msra.gmra.mrb[32].mxu0 %v805_v60  ;;  %v793_v19 = vmul.f32 %v6524_v52, %v7378_v36 }
 0x342   :  { %v6526_v9 = vpop.eup %6525  ;;  %6535 = vrcp.f32 %v763_v55  ;;  %5873 = vmatpush3.bf16.msra.mxu0 %v7425_v6 }
 0x343   :  { %v806_v3 = vpack.c.bf16 %v793_v19, %v792_v12  ;;  %5874 = vmatprep.subr.bf16.mxu0 %v924_v49  ;;  %6537 = vrcp.f32 %v765_v22  ;;  %v794_v30 = vmul.f32 %v6526_v9, %v7380_v41 }
 0x344   :  { %v6528_v28 = vpop.eup %6527 }
 0x345   :  { %v769_v63 = vpop.xlane.xlu0 %768  ;;  %v767_v42 = vpop.xlane.xlu1 %766  ;;  %5860 = vmatprep.mubr.bf16.mxu0 %v806_v3  ;;  %v795_v59 = vmul.f32 %v6528_v28, %v7386_v47 }
 0x346   :  { %v6530_v36 = vpop.eup %6529  ;;  %6539 = vrcp.f32 %v767_v42  ;;  %5875 = vmatpush3.bf16.msra.mxu0 %v924_v49 }
 0x347   :  { %6541 = vrcp.f32 %v769_v63  ;;  %v807_v6 = vpack.c.bf16 %v795_v59, %v794_v30  ;;  %v796_v44 = vmul.f32 %v6530_v36, %v7390_v54  ;;  %v5247_v63 = vld [vmem:[%s9346_s3 + $0x40] sm:$0xff] }
 0x348   :  { %v6532_v34 = vpop.eup %6531 }
 0x349   :  { %v771_v1 = vpop.xlane.xlu1 %770  ;;  %5861 = vmatmul.mubr.bf16.gmra.mrb[36].mxu0 %v807_v6  ;;  %v797_v40 = vmul.f32 %v6532_v34, %v7398_v4  ;;  %v6534_v21 = vpop.eup %6533 }
 0x34a   :  { %6543 = vrcp.f32 %v771_v1  ;;  %v798_v41 = vmul.f32 %v6534_v21, %v7400_v2  ;;  %v5910_v2 = vpop.f32.mrb[44].mxu1 }
 0x34b   :  { %v808_v50 = vpack.c.bf16 %v797_v40, %v796_v44 }
 0x34c   :  { %v6536_v29 = vpop.eup %6535 }
 0x34d   :  { %5864 = vmatprep.mubr.bf16.mxu0 %v808_v50  ;;  %v799_v47 = vmul.f32 %v6536_v29, %v7404_v46  ;;  %v6538_v57 = vpop.eup %6537  ;;  %v1310_v46 = vsel %vm466_vm1, %v7449_v38, 0 }
 0x34e   :  { %v800_v60 = vmul.f32 %v6538_v57, %v7406_v61  ;;  %v1127_v61 = vpop.f32.mrb[45].mxu1  ;;  %5943 = vmatpush3.bf16.xpose.msra.mxu1 %v1310_v46  ;;  %v5249_v46 = vld [vmem:[%s9346_s3 + $0x50] sm:$0xff] }
 0x34f   :  { %v809_v5 = vpack.c.bf16 %v799_v47, %v798_v41 }
 0x350   :  { %v6540_v24 = vpop.eup %6539 }
 0x351   :  { %v6542_v58 = vpop.eup %6541  ;;  %5865 = vmatmul.mubr.bf16.gmra.mrb[40].mxu0 %v809_v5  ;;  %v801_v49 = vmul.f32 %v6540_v24, %v7410_v48  ;;  %v1136_v48 = vadd.f32 %v5910_v2, %v7431_v17 }
 0x352   :  { %v802_v4 = vmul.f32 %v6542_v58, %v7412_v51  ;;  %v1128_v51 = vadd.f32 %v7431_v17, %v1127_v61  ;;  %v5250_v61 = vld [vmem:[%s9346_s3 + $0x58] sm:$0xff] }
 0x353   :  { %v810_v27 = vpack.c.bf16 %v801_v49, %v800_v60  ;;  %v5169_v60 = vld [vmem:[%s9348_s4 + $0x1] ss:$0 sm:$0xff] }
 0x354   :  { %v6544_v54 = vpop.eup %6543 }
 0x355   :  { %v803_v52 = vmul.f32 %v6544_v54, %v7416_v37  ;;  %5868 = vmatprep.mubr.bf16.mxu0 %v810_v27  ;;  %v5911_v37 = vpop.f32.mrb[46].mxu1 }
 0x356   :  { %v1139_v55 = vadd.f32 %v5911_v37, %v7431_v17  ;;  %v1130_v12 = vpop.f32.mrb[47].mxu1  ;;  %v2098_v37 = vpack.c.bf16 %v5250_v61, %v5249_v46 }
 0x357   :  { %v811_v22 = vpack.c.bf16 %v803_v52, %v802_v4  ;;  %v1131_v19 = vadd.f32 %v7431_v17, %v1130_v12  ;;  %v5248_v17 = vld [vmem:[%s9346_s3 + $0x48] sm:$0xff]  ;;  %v5261_v12 = vld [vmem:[%s9346_s3 + $0xc0] sm:$0xff] }
 0x358   :  { %v1269_v9 = vpack.c.bf16 %v1139_v55, %v1136_v48  ;;  %v2097_v42 = vpack.c.bf16 %v5248_v17, %v5247_v63 }
 0x359   :  { %5869 = vmatmul.mubr.bf16.gmra.mrb[44].mxu0 %v811_v22  ;;  %v1268_v3 = vpack.c.bf16 %v1131_v19, %v1128_v51  ;;  %v5262_v19 = vld [vmem:[%s9346_s3 + $0xc8] sm:$0xff] }
 0x35a   :  { %5876 = vmatprep.mubr.msk.bf16.mxu0 %vm104_vm0, %v6916_v8  ;;  %v1316_v38 = vsel %vm466_vm1, %v1269_v9, 0  ;;  %v2209_v17 = vpack.c.bf16 %v5262_v19, %v5261_v12 }
 0x35b   :  { %6454 = vmatprep.subr.msk.bf16.mxu1 %vm466_vm1, %v1268_v3  ;;  %v1313_v28 = vsel %vm466_vm1, %v1268_v3, 0 }
 0x35c   :  { %5945 = vmatpush3.bf16.xpose.msra.mxu1 %v1313_v28 }
 0x35d   :  { %6455 = vmatprep.subr.msk.bf16.mxu1 %vm466_vm1, %v1269_v9 }
 0x361   :  { %5877 = vmatmul.mubr.msk.bf16.vlgmr.msra.gmra.mrb[48].mxu0 %vm104_vm0, %v6937_v14 }
 0x362   :  { %5880 = vmatprep.mubr.msk.bf16.mxu0 %vm104_vm0, %v6948_v18 }
 0x364   :  { %5947 = vmatpush3.bf16.xpose.msra.mxu1 %v1316_v38 }
 0x365   :  { %6048 = vmatprep.subr.bf16.mxu1 %v2097_v42 }
 0x369   :  { %5881 = vmatmul.mubr.msk.bf16.gmra.mrb[52].mxu0 %vm104_vm0, %v6966_v25 }
 0x36a   :  { %5884 = vmatprep.mubr.msk.bf16.mxu0 %vm104_vm0, %v6968_v26 }
 0x371   :  { %5885 = vmatmul.mubr.msk.bf16.gmra.mrb[56].mxu0 %vm104_vm0, %v6990_v31 }
 0x372   :  { %5888 = vmatprep.mubr.msk.bf16.mxu0 %vm104_vm0, %v6992_v32 }
 0x379   :  { %5889 = vmatmul.mubr.msk.bf16.gmra.mrb[60].mxu0 %vm104_vm0, %v7008_v35 }
 0x37a   :  { %5916 = vmatprep.mubr.msk.bf16.mxu0 %vm104_vm0, %v6916_v8 }
 0x414   :  { %v7516_v30 = vpop.f32.mrb[32].mxu0 }
 0x415   :  { %9403 = vst [vmem:[#allocation14_spill] sm:$0xff] %v7516_v30  ;;  %v7518_v59 = vpop.f32.mrb[33].mxu0 }
 0x416   :  { %9404 = vst [vmem:[#allocation15_spill] sm:$0xff] %v7518_v59  ;;  %v7520_v36 = vpop.f32.mrb[34].mxu0 }
 0x417   :  { %9405 = vst [vmem:[#allocation16_spill] sm:$0xff] %v7520_v36  ;;  %v7522_v6 = vpop.f32.mrb[35].mxu0 }
 0x418   :  { %9406 = vst [vmem:[#allocation17_spill] sm:$0xff] %v7522_v6 }
 0x41c   :  { %v7524_v34 = vpop.f32.mrb[36].mxu0 }
 0x41d   :  { %9407 = vst [vmem:[#allocation18_spill] sm:$0xff] %v7524_v34  ;;  %v7526_v1 = vpop.f32.mrb[37].mxu0 }
 0x41e   :  { %9408 = vst [vmem:[#allocation19_spill] sm:$0xff] %v7526_v1  ;;  %v7528_v44 = vpop.f32.mrb[38].mxu0 }
 0x41f   :  { %9409 = vst [vmem:[#allocation20_spill] sm:$0xff] %v7528_v44  ;;  %v7530_v40 = vpop.f32.mrb[39].mxu0 }
 0x420   :  { %9410 = vst [vmem:[#allocation21_spill] sm:$0xff] %v7530_v40 }
 0x424   :  { %v7532_v21 = vpop.f32.mrb[40].mxu0 }
 0x425   :  { %9411 = vst [vmem:[#allocation22_spill] sm:$0xff] %v7532_v21  ;;  %v7534_v50 = vpop.f32.mrb[41].mxu0 }
 0x426   :  { %9412 = vst [vmem:[#allocation23_spill] sm:$0xff] %v7534_v50  ;;  %v7536_v29 = vpop.f32.mrb[42].mxu0 }
 0x427   :  { %9413 = vst [vmem:[#allocation24_spill] sm:$0xff] %v7536_v29  ;;  %v7538_v41 = vpop.f32.mrb[43].mxu0 }
 0x428   :  { %9414 = vst [vmem:[#allocation25_spill] sm:$0xff] %v7538_v41 }
 0x42c   :  { %v7540_v47 = vpop.f32.mrb[44].mxu0 }
 0x42d   :  { %9415 = vst [vmem:[#allocation26_spill] sm:$0xff] %v7540_v47  ;;  %v7542_v57 = vpop.f32.mrb[45].mxu0 }
 0x42e   :  { %9416 = vst [vmem:[#allocation27_spill] sm:$0xff] %v7542_v57  ;;  %v7544_v5 = vpop.f32.mrb[46].mxu0 }
 0x42f   :  { %9417 = vst [vmem:[#allocation28_spill] sm:$0xff] %v7544_v5  ;;  %v7546_v24 = vpop.f32.mrb[47].mxu0 }
 0x430   :  { %9418 = vst [vmem:[#allocation29_spill] sm:$0xff] %v7546_v24 }
 0x434   :  { %v5878_v58 = vpop.f32.mrb[48].mxu0 }
 0x435   :  { %v967_v49 = vpop.f32.mrb[49].mxu0  ;;  %v976_v27 = vadd.f32 %v5878_v58, %v5169_v60 }
 0x436   :  { %v5879_v54 = vpop.f32.mrb[50].mxu0  ;;  %v968_v22 = vadd.f32 %v5169_v60, %v967_v49 }
 0x437   :  { %v979_v4 = vadd.f32 %v5879_v54, %v5169_v60  ;;  %v970_v52 = vpop.f32.mrb[51].mxu0 }
 0x438   :  { %v971_v2 = vadd.f32 %v5169_v60, %v970_v52 }
 0x439   :  { %v1255_v48 = vpack.c.bf16 %v979_v4, %v976_v27 }
 0x43a   :  { %v1254_v51 = vpack.c.bf16 %v971_v2, %v968_v22 }
 0x43c   :  { %v5882_v55 = vpop.f32.mrb[52].mxu0  ;;  %5948 = vmatprep.mubr.msk.bf16.mxu1 %vm466_vm1, %v1254_v51 }
 0x43d   :  { %v983_v9 = vpop.f32.mrb[53].mxu0  ;;  %5949 = vmatmul.mubr.msk.bf16.vlgmr.msra.gmra.mrb[48].mxu1 %vm466_vm1, %v1255_v48  ;;  %v992_v28 = vadd.f32 %v5882_v55, %v5169_v60 }
 0x43e   :  { %v5883_v3 = vpop.f32.mrb[54].mxu0  ;;  %6049 = vmatpush3.bf16.msra.mxu1 %v2097_v42  ;;  %v984_v58 = vadd.f32 %v5169_v60, %v983_v9 }
 0x43f   :  { %v995_v38 = vadd.f32 %v5883_v3, %v5169_v60  ;;  %v986_v63 = vpop.f32.mrb[55].mxu0  ;;  %6050 = vmatprep.subr.bf16.mxu1 %v2098_v37 }
 0x440   :  { %v987_v49 = vadd.f32 %v5169_v60, %v986_v63 }
 0x441   :  { %v1257_v54 = vpack.c.bf16 %v995_v38, %v992_v28 }
 0x442   :  { %v1256_v27 = vpack.c.bf16 %v987_v49, %v984_v58  ;;  %6051 = vmatpush3.bf16.msra.mxu1 %v2098_v37 }
 0x443   :  { %6068 = vmatprep.subr.bf16.mxu1 %v2209_v17 }
 0x444   :  { %v5886_v4 = vpop.f32.mrb[56].mxu0  ;;  %5952 = vmatprep.mubr.msk.bf16.mxu1 %vm466_vm1, %v1256_v27  ;;  %v5264_v27 = vld [vmem:[%s9346_s3 + $0xd8] sm:$0xff] }
 0x445   :  { %v999_v52 = vpop.f32.mrb[57].mxu0  ;;  %5953 = vmatmul.mubr.msk.bf16.gmra.mrb[52].mxu1 %vm466_vm1, %v1257_v54  ;;  %v1008_v2 = vadd.f32 %v5886_v4, %v5169_v60  ;;  %v5263_v54 = vld [vmem:[%s9346_s3 + $0xd0] sm:$0xff] }
 0x446   :  { %v5887_v22 = vpop.f32.mrb[58].mxu0  ;;  %v1000_v61 = vadd.f32 %v5169_v60, %v999_v52  ;;  %v2210_v4 = vpack.c.bf16 %v5264_v27, %v5263_v54 }
 0x447   :  { %v1011_v42 = vadd.f32 %v5887_v22, %v5169_v60  ;;  %v1002_v46 = vpop.f32.mrb[59].mxu0  ;;  %v5194_v22 = vld [vmem:[%s9346_s3 + $0x130] sm:$0xff] }
 0x448   :  { %v1003_v48 = vadd.f32 %v5169_v60, %v1002_v46 }
 0x449   :  { %v1259_v51 = vpack.c.bf16 %v1011_v42, %v1008_v2  ;;  %v5195_v2 = vld [vmem:[%s9346_s3 + $0x138] sm:$0xff] }
 0x44a   :  { %v1258_v55 = vpack.c.bf16 %v1003_v48, %v1000_v61  ;;  %v1148_v42 = vpack.c.bf16 %v5195_v2, %v5194_v22 }
 0x44c   :  { %v5890_v12 = vpop.f32.mrb[60].mxu0  ;;  %5956 = vmatprep.mubr.msk.bf16.mxu1 %vm466_vm1, %v1258_v55 }
 0x44d   :  { %v1015_v19 = vpop.f32.mrb[61].mxu0  ;;  %5957 = vmatmul.mubr.msk.bf16.gmra.mrb[56].mxu1 %vm466_vm1, %v1259_v51  ;;  %v1024_v9 = vadd.f32 %v5890_v12, %v5169_v60 }
 0x44e   :  { %v5891_v37 = vpop.f32.mrb[62].mxu0  ;;  %v1016_v38 = vadd.f32 %v5169_v60, %v1015_v19 }
 0x44f   :  { %v1027_v3 = vadd.f32 %v5891_v37, %v5169_v60  ;;  %v1018_v28 = vpop.f32.mrb[63].mxu0 }
 0x450   :  { %v1019_v63 = vadd.f32 %v5169_v60, %v1018_v28  ;;  %v5192_v60 = vld [vmem:[%s9346_s3 + $0x120] sm:$0xff] }
 0x451   :  { %v1261_v58 = vpack.c.bf16 %v1027_v3, %v1024_v9 }
 0x452   :  { %v1260_v49 = vpack.c.bf16 %v1019_v63, %v1016_v38 }
 0x454   :  { %5960 = vmatprep.mubr.msk.bf16.mxu1 %vm466_vm1, %v1260_v49 }
 0x455   :  { %5961 = vmatmul.mubr.msk.bf16.gmra.mrb[60].mxu1 %vm466_vm1, %v1261_v58 }
 0x456   :  { %6052 = vmatprep.mubr.msk.bf16.mxu1 %vm104_vm0, %v6916_v8 }
 0x45d   :  { %6053 = vmatmul.mubr.msk.bf16.vlgmr.msra.gmra.mrb[64].mxu1 %vm104_vm0, %v6937_v14 }
 0x45e   :  { %6056 = vmatprep.mubr.msk.bf16.mxu1 %vm104_vm0, %v6948_v18  ;;  %6069 = vmatpush3.bf16.msra.mxu1 %v2209_v17  ;;  %v5193_v17 = vld [vmem:[%s9346_s3 + $0x128] sm:$0xff] }
 0x45f   :  { %6070 = vmatprep.subr.bf16.mxu1 %v2210_v4  ;;  %v1147_v52 = vpack.c.bf16 %v5193_v17, %v5192_v60 }
 0x461   :  { %5912 = vmatprep.subr.bf16.mxu0 %v1147_v52 }
 0x462   :  { %6071 = vmatpush3.bf16.msra.mxu1 %v2210_v4  ;;  %5913 = vmatpush3.bf16.msra.mxu0 %v1147_v52 }
 0x463   :  { %5914 = vmatprep.subr.bf16.mxu0 %v1148_v42 }
 0x465   :  { %6057 = vmatmul.mubr.msk.bf16.gmra.mrb[68].mxu1 %vm104_vm0, %v6966_v25 }
 0x466   :  { %6060 = vmatprep.mubr.msk.bf16.mxu1 %vm104_vm0, %v6968_v26  ;;  %5915 = vmatpush3.bf16.msra.mxu0 %v1148_v42 }
 0x469   :  { %5917 = vmatmul.mubr.msk.bf16.vlgmr.msra.gmra.mrb[64].mxu0 %vm104_vm0, %v6937_v14 }
 0x46a   :  { %5920 = vmatprep.mubr.msk.bf16.mxu0 %vm104_vm0, %v6948_v18 }
 0x46d   :  { %6061 = vmatmul.mubr.msk.bf16.gmra.mrb[72].mxu1 %vm104_vm0, %v6990_v31 }
 0x46e   :  { %6064 = vmatprep.mubr.msk.bf16.mxu1 %vm104_vm0, %v6992_v32 }
 0x471   :  { %5921 = vmatmul.mubr.msk.bf16.gmra.mrb[68].mxu0 %vm104_vm0, %v6966_v25 }
 0x472   :  { %5924 = vmatprep.mubr.msk.bf16.mxu0 %vm104_vm0, %v6968_v26 }
 0x475   :  { %6065 = vmatmul.mubr.msk.bf16.gmra.mrb[76].mxu1 %vm104_vm0, %v7008_v35 }
 0x476   :  { %6072 = vmatprep.mubr.msk.bf16.mxu1 %vm104_vm0, %v6916_v8 }
 0x479   :  { %5925 = vmatmul.mubr.msk.bf16.gmra.mrb[72].mxu0 %vm104_vm0, %v6990_v31 }
 0x47a   :  { %5928 = vmatprep.mubr.msk.bf16.mxu0 %vm104_vm0, %v6992_v32 }
 0x47d   :  { %6073 = vmatmul.mubr.msk.bf16.vlgmr.msra.gmra.mrb[80].mxu1 %vm104_vm0, %v6937_v14 }
 0x47e   :  { %6076 = vmatprep.mubr.msk.bf16.mxu1 %vm104_vm0, %v6948_v18 }
 0x481   :  { %5929 = vmatmul.mubr.msk.bf16.gmra.mrb[76].mxu0 %vm104_vm0, %v7008_v35 }
 0x485   :  { %6077 = vmatmul.mubr.msk.bf16.gmra.mrb[84].mxu1 %vm104_vm0, %v6966_v25 }
 0x486   :  { %6080 = vmatprep.mubr.msk.bf16.mxu1 %vm104_vm0, %v6968_v26 }
 0x48d   :  { %6081 = vmatmul.mubr.msk.bf16.gmra.mrb[88].mxu1 %vm104_vm0, %v6990_v31 }
 0x48e   :  { %6084 = vmatprep.mubr.msk.bf16.mxu1 %vm104_vm0, %v6992_v32 }
 0x495   :  { %6085 = vmatmul.mubr.msk.bf16.gmra.mrb[92].mxu1 %vm104_vm0, %v7008_v35 }
 0x510   :  { %v5950_v46 = vpop.f32.mrb[48].mxu1 }
 0x511   :  { %v1352_v61 = vpop.f32.mrb[49].mxu1  ;;  %v1417_v12 = vmul.f32 0.35355338, %v5950_v46 }
 0x512   :  { %v1415_v48 = vmul.f32 0.35355338, %v1352_v61  ;;  %v5951_v51 = vpop.f32.mrb[50].mxu1 }
 0x513   :  { %v1355_v55 = vpop.f32.mrb[51].mxu1  ;;  %v1418_v9 = vmul.f32 0.35355338, %v5951_v51  ;;  %v7647_v38 = vsel %vm630_vm2, %v1417_v12, -1e+09 }
 0x514   :  { %v1416_v19 = vmul.f32 0.35355338, %v1355_v55  ;;  %v7637_v37 = vsel %vm628_vm3, %v1415_v48, -1e+09 }
 0x515   :  { %1447 = vmax.xlane.f32.xlu0 %v7637_v37  ;;  %v7652_v54 = vsel %vm631_vm4, %v1418_v9, -1e+09 }
 0x516   :  { %v7642_v3 = vsel %vm629_vm5, %v1416_v19, -1e+09 }
 0x517   :  { %1449 = vmax.xlane.f32.xlu1 %v7642_v3 }
 0x518   :  { %v5954_v28 = vpop.f32.mrb[52].mxu1 }
 0x519   :  { %1451 = vmax.xlane.f32.xlu0 %v7647_v38  ;;  %v1368_v63 = vpop.f32.mrb[53].mxu1  ;;  %v1421_v4 = vmul.f32 0.35355338, %v5954_v28 }
 0x51a   :  { %v1419_v58 = vmul.f32 0.35355338, %v1368_v63  ;;  %v5955_v49 = vpop.f32.mrb[54].mxu1 }
 0x51b   :  { %1453 = vmax.xlane.f32.xlu1 %v7652_v54  ;;  %v1371_v27 = vpop.f32.mrb[55].mxu1  ;;  %v1422_v52 = vmul.f32 0.35355338, %v5955_v49  ;;  %v7667_v42 = vsel %vm9390_vm8, %v1421_v4, -1e+09 }
 0x51c   :  { %v1420_v60 = vmul.f32 0.35355338, %v1371_v27  ;;  %v7657_v17 = vsel %vm632_vm6, %v1419_v58, -1e+09 }
 0x51d   :  { %1455 = vmax.xlane.f32.xlu0 %v7657_v17  ;;  %v7672_v51 = vsel %vm9364_vm9, %v1422_v52, -1e+09  ;;  %vm9419_vm9 = vcmp.gt.f32.partialorder %v7230_v62, 0.0 }
 0x51e   :  { %v7662_v22 = vsel %vm633_vm7, %v1420_v60, -1e+09 }
 0x51f   :  { %1457 = vmax.xlane.f32.xlu1 %v7662_v22 }
 0x520   :  { %v5958_v2 = vpop.f32.mrb[56].mxu1 }
 0x521   :  { %1459 = vmax.xlane.f32.xlu0 %v7667_v42  ;;  %v1384_v46 = vpop.f32.mrb[57].mxu1  ;;  %v1425_v12 = vmul.f32 0.35355338, %v5958_v2 }
 0x522   :  { %v1423_v61 = vmul.f32 0.35355338, %v1384_v46  ;;  %v5959_v48 = vpop.f32.mrb[58].mxu1 }
 0x523   :  { %1461 = vmax.xlane.f32.xlu1 %v7672_v51  ;;  %v1387_v55 = vpop.f32.mrb[59].mxu1  ;;  %v1426_v28 = vmul.f32 0.35355338, %v5959_v48  ;;  %v7687_v49 = vsel %vm9419_vm9, %v1425_v12, -1e+09  ;;  %vm9428_vm9 = vcmp.gt.f32.partialorder %v7193_v45, 0.0 }
 0x524   :  { %v1424_v19 = vmul.f32 0.35355338, %v1387_v55  ;;  %v7677_v9 = vsel %vm9365_vm10, %v1423_v61, -1e+09  ;;  %vm9420_vm10 = vcmp.gt.f32.partialorder %v7237_v0, 0.0 }
 0x525   :  { %1463 = vmax.xlane.f32.xlu0 %v7677_v9  ;;  %v7692_v52 = vsel %vm9420_vm10, %v1426_v28, -1e+09  ;;  %vm9429_vm10 = vcmp.gt.f32.partialorder %v7208_v53, 0.0 }
 0x526   :  { %v7682_v63 = vsel %vm637_vm11, %v1424_v19, -1e+09  ;;  %v5252_v19 = vld [vmem:[%s9348_s4 + $0x2] ss:$0 sm:$0xff] }
 0x527   :  { %1465 = vmax.xlane.f32.xlu1 %v7682_v63 }
 0x528   :  { %v5962_v58 = vpop.f32.mrb[60].mxu1 }
 0x529   :  { %1467 = vmax.xlane.f32.xlu0 %v7687_v49  ;;  %v1400_v27 = vpop.f32.mrb[61].mxu1  ;;  %v1429_v46 = vmul.f32 0.35355338, %v5962_v58 }
 0x52a   :  { %v1427_v4 = vmul.f32 0.35355338, %v1400_v27  ;;  %v5963_v60 = vpop.f32.mrb[62].mxu1 }
 0x52b   :  { %1469 = vmax.xlane.f32.xlu1 %v7692_v52  ;;  %v1403_v2 = vpop.f32.mrb[63].mxu1  ;;  %v1430_v55 = vmul.f32 0.35355338, %v5963_v60  ;;  %v7710_v28 = vsel %vm642_vm13, %v1429_v46, -1e+09 }
 0x52c   :  { %v1428_v61 = vmul.f32 0.35355338, %v1403_v2  ;;  %v7697_v48 = vsel %vm640_vm14, %v1427_v4, -1e+09 }
 0x52d   :  { %1471 = vmax.xlane.f32.xlu0 %v7697_v48  ;;  %v7717_v60 = vsel %vm643_vm12, %v1430_v55, -1e+09 }
 0x52e   :  { %v7702_v12 = vsel %vm641_vm15, %v1428_v61, -1e+09 }
 0x52f   :  { %1473 = vmax.xlane.f32.xlu1 %v7702_v12 }
 0x530   :  { %v6054_v58 = vpop.f32.mrb[64].mxu1 }
 0x531   :  { %1475 = vmax.xlane.f32.xlu0 %v7710_v28  ;;  %v7713_v27 = vadd.f32 %v6054_v58, %v5252_v19  ;;  %v2141_v4 = vpop.f32.mrb[65].mxu1 }
 0x532   :  { %v2142_v2 = vadd.f32 %v5252_v19, %v2141_v4  ;;  %v6055_v61 = vpop.f32.mrb[66].mxu1 }
 0x533   :  { %1477 = vmax.xlane.f32.xlu1 %v7717_v60  ;;  %v7720_v35 = vadd.f32 %v6055_v61, %v5252_v19  ;;  %v2144_v32 = vpop.f32.mrb[67].mxu1 }
 0x534   :  { %v2145_v31 = vadd.f32 %v5252_v19, %v2144_v32 }
 0x536   :  { %v2428_v26 = vpack.c.bf16 %v2145_v31, %v2142_v2 }
 0x538   :  { %v6058_v25 = vpop.f32.mrb[68].mxu1  ;;  %6124 = vmatprep.mubr.msk.bf16.mxu1 %vm466_vm1, %v2428_v26 }
 0x539   :  { %v7725_v58 = vadd.f32 %v6058_v25, %v5252_v19  ;;  %v2157_v18 = vpop.f32.mrb[69].mxu1 }
 0x53a   :  { %v7727_v55 = vadd.f32 %v5252_v19, %v2157_v18  ;;  %v6059_v4 = vpop.f32.mrb[70].mxu1 }
 0x53b   :  { %v7729_v14 = vadd.f32 %v6059_v4, %v5252_v19  ;;  %v2160_v5 = vpop.f32.mrb[71].mxu1 }
 0x53c   :  { %v7731_v61 = vadd.f32 %v5252_v19, %v2160_v5 }
 0x540   :  { %v6062_v2 = vpop.f32.mrb[72].mxu1 }
 0x541   :  { %v7737_v46 = vadd.f32 %v6062_v2, %v5252_v19  ;;  %v2173_v25 = vpop.f32.mrb[73].mxu1 }
 0x542   :  { %v7739_v26 = vadd.f32 %v5252_v19, %v2173_v25  ;;  %v6063_v18 = vpop.f32.mrb[74].mxu1 }
 0x543   :  { %v7741_v47 = vadd.f32 %v6063_v18, %v5252_v19  ;;  %v2176_v4 = vpop.f32.mrb[75].mxu1 }
 0x544   :  { %v7743_v24 = vadd.f32 %v5252_v19, %v2176_v4 }
 0x548   :  { %v6066_v57 = vpop.f32.mrb[76].mxu1 }
 0x549   :  { %v7749_v31 = vadd.f32 %v6066_v57, %v5252_v19  ;;  %v2189_v2 = vpop.f32.mrb[77].mxu1  ;;  %v5266_v57 = vld [vmem:[%s9348_s4 + $0x6] ss:$0 sm:$0xff] }
 0x54a   :  { %v7751_v29 = vadd.f32 %v5252_v19, %v2189_v2  ;;  %v6067_v25 = vpop.f32.mrb[78].mxu1 }
 0x54b   :  { %v7753_v21 = vadd.f32 %v6067_v25, %v5252_v19  ;;  %v2192_v18 = vpop.f32.mrb[79].mxu1 }
 0x54c   :  { %v7755_v41 = vadd.f32 %v5252_v19, %v2192_v18 }
 0x550   :  { %v6074_v32 = vpop.f32.mrb[80].mxu1 }
 0x551   :  { %v2262_v50 = vadd.f32 %v6074_v32, %v5266_v57  ;;  %v2253_v2 = vpop.f32.mrb[81].mxu1 }
 0x552   :  { %v2254_v44 = vadd.f32 %v5266_v57, %v2253_v2  ;;  %v6075_v34 = vpop.f32.mrb[82].mxu1 }
 0x553   :  { %v2265_v25 = vadd.f32 %v6075_v34, %v5266_v57  ;;  %v2256_v40 = vpop.f32.mrb[83].mxu1 }
 0x554   :  { %v2257_v1 = vadd.f32 %v5266_v57, %v2256_v40 }
 0x555   :  { %v2437_v19 = vpack.c.bf16 %v2265_v25, %v2262_v50 }
 0x556   :  { %v2436_v18 = vpack.c.bf16 %v2257_v1, %v2254_v44 }
 0x557   :  { %v2472_v40 = vsel %vm466_vm1, %v2437_v19, 0 }
 0x558   :  { %6456 = vmatprep.subr.msk.bf16.mxu1 %vm466_vm1, %v2436_v18  ;;  %v2469_v4 = vsel %vm466_vm1, %v2436_v18, 0  ;;  %v6078_v36 = vpop.f32.mrb[84].mxu1 }
 0x559   :  { %6109 = vmatpush3.bf16.xpose.msra.mxu1 %v2469_v4  ;;  %v2278_v5 = vadd.f32 %v6078_v36, %v5266_v57  ;;  %v2269_v30 = vpop.f32.mrb[85].mxu1 }
 0x55a   :  { %6457 = vmatprep.subr.msk.bf16.mxu1 %vm466_vm1, %v2437_v19  ;;  %v2270_v6 = vadd.f32 %v5266_v57, %v2269_v30  ;;  %v6079_v32 = vpop.f32.mrb[86].mxu1 }
 0x55b   :  { %v2281_v59 = vadd.f32 %v6079_v32, %v5266_v57  ;;  %v2272_v2 = vpop.f32.mrb[87].mxu1 }
 0x55c   :  { %v2273_v16 = vadd.f32 %v5266_v57, %v2272_v2 }
 0x55d   :  { %v2439_v34 = vpack.c.bf16 %v2281_v59, %v2278_v5 }
 0x55e   :  { %v2438_v50 = vpack.c.bf16 %v2273_v16, %v2270_v6 }
 0x560   :  { %v6082_v1 = vpop.f32.mrb[88].mxu1  ;;  %v2475_v32 = vsel %vm466_vm1, %v2438_v50, 0 }
 0x561   :  { %6111 = vmatpush3.bf16.xpose.msra.mxu1 %v2472_v40  ;;  %v2294_v44 = vadd.f32 %v6082_v1, %v5266_v57  ;;  %v2285_v25 = vpop.f32.mrb[89].mxu1 }
 0x562   :  { %6458 = vmatprep.subr.msk.bf16.mxu1 %vm466_vm1, %v2438_v50  ;;  %v2286_v4 = vadd.f32 %v5266_v57, %v2285_v25  ;;  %v6083_v36 = vpop.f32.mrb[90].mxu1 }
 0x563   :  { %v2297_v18 = vadd.f32 %v6083_v36, %v5266_v57  ;;  %v2288_v11 = vpop.f32.mrb[91].mxu1  ;;  %v2478_v36 = vsel %vm466_vm1, %v2439_v34, 0 }
 0x564   :  { %v2289_v10 = vadd.f32 %v5266_v57, %v2288_v11 }
 0x565   :  { %v2441_v30 = vpack.c.bf16 %v2297_v18, %v2294_v44  ;;  %v5918_v44 = vpop.f32.mrb[64].mxu0 }
 0x566   :  { %v2440_v7 = vpack.c.bf16 %v2289_v10, %v2286_v4  ;;  %v1191_v18 = vpop.f32.mrb[65].mxu0 }
 0x567   :  { %v2484_v11 = vsel %vm466_vm1, %v2441_v30, 0 }
 0x568   :  { %v6086_v2 = vpop.f32.mrb[92].mxu1  ;;  %v2481_v10 = vsel %vm466_vm1, %v2440_v7, 0 }
 0x569   :  { %6113 = vmatpush3.bf16.xpose.msra.mxu1 %v2475_v32  ;;  %v2310_v59 = vadd.f32 %v6086_v2, %v5266_v57  ;;  %v2301_v5 = vpop.f32.mrb[93].mxu1  ;;  %v5919_v32 = vpop.f32.mrb[66].mxu0  ;;  %v9424_v2 = vpack.c.bf16 %v7743_v24, %v7739_v26 }
 0x56a   :  { %6459 = vmatprep.subr.msk.bf16.mxu1 %vm466_vm1, %v2439_v34  ;;  %v2302_v16 = vadd.f32 %v5266_v57, %v2301_v5  ;;  %v6087_v6 = vpop.f32.mrb[94].mxu1  ;;  %v9421_v34 = vpack.c.bf16 %v7720_v35, %v7713_v27  ;;  %v1194_v27 = vpop.f32.mrb[67].mxu0 }
 0x56b   :  { %v2313_v19 = vadd.f32 %v6087_v6, %v5266_v57  ;;  %v2304_v40 = vpop.f32.mrb[95].mxu1 }
 0x56c   :  { %v2305_v1 = vadd.f32 %v5266_v57, %v2304_v40  ;;  %v5922_v40 = vpop.f32.mrb[68].mxu0 }
 0x56d   :  { %v2443_v25 = vpack.c.bf16 %v2313_v19, %v2310_v59 }
 0x56e   :  { %v2442_v0 = vpack.c.bf16 %v2305_v1, %v2302_v16 }
 0x56f   :  { %v2490_v57 = vsel %vm466_vm1, %v2443_v25, 0 }
 0x570   :  { %v2487_v50 = vsel %vm466_vm1, %v2442_v0, 0 }
 0x571   :  { %6115 = vmatpush3.bf16.xpose.msra.mxu1 %v2478_v36 }
 0x572   :  { %6460 = vmatprep.subr.msk.bf16.mxu1 %vm466_vm1, %v2440_v7  ;;  %v9422_v7 = vpack.c.bf16 %v7731_v61, %v7727_v55  ;;  %v9423_v55 = vpack.c.bf16 %v7729_v14, %v7725_v58 }
 0x579   :  { %6117 = vmatpush3.bf16.xpose.msra.mxu1 %v2481_v10 }
 0x57a   :  { %6461 = vmatprep.subr.msk.bf16.mxu1 %vm466_vm1, %v2441_v30 }
 0x581   :  { %6119 = vmatpush3.bf16.xpose.msra.mxu1 %v2484_v11 }
 0x582   :  { %6462 = vmatprep.subr.msk.bf16.mxu1 %vm466_vm1, %v2442_v0  ;;  %v7791_v0 = vld [vmem:[%s9348_s4 + $0x9] ss:$0 sm:$0xff] }
 0x583   :  { %v1200_v4 = vadd.f32 %v5918_v44, %v7791_v0  ;;  %v1192_v30 = vadd.f32 %v7791_v0, %v1191_v18  ;;  %v1203_v35 = vadd.f32 %v5919_v32, %v7791_v0  ;;  %v1195_v61 = vadd.f32 %v7791_v0, %v1194_v27 }
 0x584   :  { %v1216_v58 = vadd.f32 %v5922_v40, %v7791_v0 }
 0x585   :  { %v1600_v59 = vpack.c.bf16 %v1203_v35, %v1200_v4  ;;  %v1599_v16 = vpack.c.bf16 %v1195_v61, %v1192_v30  ;;  %v9426_v4 = vpack.c.bf16 %v7755_v41, %v7751_v29 }
 0x587   :  { %5964 = vmatprep.subr.bf16.mxu0 %v1599_v16 }
 0x588   :  { %5965 = vmatpush3.bf16.msra.mxu0 %v1599_v16 }
 0x589   :  { %6121 = vmatpush3.bf16.xpose.msra.mxu1 %v2487_v50  ;;  %5966 = vmatprep.subr.bf16.mxu0 %v1600_v59 }
 0x58a   :  { %6463 = vmatprep.subr.msk.bf16.mxu1 %vm466_vm1, %v2443_v25  ;;  %v1207_v25 = vpop.f32.mrb[69].mxu0 }
 0x58b   :  { %v1208_v24 = vadd.f32 %v7791_v0, %v1207_v25  ;;  %v5923_v26 = vpop.f32.mrb[70].mxu0 }
 0x58c   :  { %v1210_v50 = vpop.f32.mrb[71].mxu0  ;;  %5967 = vmatpush3.bf16.msra.mxu0 %v1600_v59 }
 0x58d   :  { %v5926_v35 = vpop.f32.mrb[72].mxu0 }
 0x58e   :  { %v1223_v29 = vpop.f32.mrb[73].mxu0 }
 0x58f   :  { %v1224_v61 = vadd.f32 %v7791_v0, %v1223_v29 }
 0x591   :  { %6123 = vmatpush3.bf16.xpose.msra.mxu1 %v2490_v57 }
 0x598   :  { %6125 = vmatmul.mubr.msk.bf16.vlgmr.msra.gmra.mrb[96].mxu1 %vm466_vm1, %v9421_v34  ;;  %v1211_v34 = vadd.f32 %v7791_v0, %v1210_v50 }
 0x599   :  { %6128 = vmatprep.mubr.msk.bf16.mxu1 %vm466_vm1, %v9422_v7 }
 0x59a   :  { %v1601_v30 = vpack.c.bf16 %v1211_v34, %v1208_v24 }
 0x59c   :  { %5968 = vmatprep.subr.bf16.mxu0 %v1601_v30 }
 0x59d   :  { %5969 = vmatpush3.bf16.msra.mxu0 %v1601_v30 }
 0x5a0   :  { %6129 = vmatmul.mubr.msk.bf16.gmra.mrb[100].mxu1 %vm466_vm1, %v9423_v55  ;;  %v1232_v55 = vadd.f32 %v5926_v35, %v7791_v0 }
 0x5a1   :  { %6132 = vmatprep.mubr.msk.bf16.mxu1 %vm466_vm1, %v9424_v2  ;;  %v5927_v2 = vpop.f32.mrb[74].mxu0 }
 0x5a2   :  { %v1448_v5 = vpop.xlane.xlu0 %1447  ;;  %v1226_v16 = vpop.f32.mrb[75].mxu0 }
 0x5a3   :  { %v1479_v6 = vsub.f32 %v7637_v37, %v1448_v5  ;;  %v1219_v37 = vadd.f32 %v5923_v26, %v7791_v0  ;;  %v1235_v5 = vadd.f32 %v5927_v2, %v7791_v0  ;;  %v5930_v26 = vpop.f32.mrb[76].mxu0 }
 0x5a4   :  { %v1450_v19 = vpop.xlane.xlu1 %1449  ;;  %v1239_v50 = vpop.f32.mrb[77].mxu0 }
 0x5a5   :  { %v1495_v1 = vmul.f32 1.442695, %v1479_v6  ;;  %v1480_v14 = vsub.f32 %v7642_v3, %v1450_v19  ;;  %v9425_v3 = vpack.c.bf16 %v7741_v47, %v7737_v46  ;;  %v1227_v19 = vadd.f32 %v7791_v0, %v1226_v16 }
 0x5a6   :  { %v1452_v36 = vpop.xlane.xlu0 %1451 }
 0x5a7   :  { %6545 = vpow2.f32 %v1495_v1  ;;  %v1497_v10 = vmul.f32 1.442695, %v1480_v14  ;;  %v1481_v11 = vsub.f32 %v7647_v38, %v1452_v36  ;;  %v1602_v38 = vpack.c.bf16 %v1219_v37, %v1216_v58 }
 0x5a8   :  { %v1454_v57 = vpop.xlane.xlu1 %1453  ;;  %6133 = vmatmul.mubr.msk.bf16.gmra.mrb[104].mxu1 %vm466_vm1, %v9425_v3  ;;  %v1604_v58 = vpack.c.bf16 %v1235_v5, %v1232_v55  ;;  %v1603_v25 = vpack.c.bf16 %v1227_v19, %v1224_v61  ;;  %v1248_v37 = vadd.f32 %v5930_v26, %v7791_v0  ;;  %v5931_v3 = vpop.f32.mrb[78].mxu0 }
 0x5a9   :  { %6547 = vpow2.f32 %v1497_v10  ;;  %v1499_v7 = vmul.f32 1.442695, %v1481_v11  ;;  %v1482_v44 = vsub.f32 %v7652_v54, %v1454_v57  ;;  %6136 = vmatprep.mubr.msk.bf16.mxu1 %vm466_vm1, %v9426_v4  ;;  %5970 = vmatprep.subr.bf16.mxu0 %v1602_v38 }
 0x5aa   :  { %v1456_v18 = vpop.xlane.xlu0 %1455  ;;  %5971 = vmatpush3.bf16.msra.mxu0 %v1602_v38 }
 0x5ab   :  { %6549 = vpow2.f32 %v1499_v7  ;;  %v1501_v32 = vmul.f32 1.442695, %v1482_v44  ;;  %v1483_v47 = vsub.f32 %v7657_v17, %v1456_v18  ;;  %5972 = vmatprep.subr.bf16.mxu0 %v1603_v25  ;;  %v1251_v44 = vadd.f32 %v5931_v3, %v7791_v0 }
 0x5ac   :  { %v1458_v46 = vpop.xlane.xlu1 %1457 }
 0x5ad   :  { %6551 = vpow2.f32 %v1501_v32  ;;  %v1503_v27 = vmul.f32 1.442695, %v1483_v47  ;;  %v1484_v54 = vsub.f32 %v7662_v22, %v1458_v46  ;;  %v9427_v22 = vpack.c.bf16 %v7753_v21, %v7749_v31 }
 0x5ae   :  { %v1460_v41 = vpop.xlane.xlu0 %1459  ;;  %5973 = vmatpush3.bf16.msra.mxu0 %v1603_v25  ;;  %v1606_v30 = vpack.c.bf16 %v1251_v44, %v1248_v37 }
 0x5af   :  { %6553 = vpow2.f32 %v1503_v27  ;;  %v1505_v59 = vmul.f32 1.442695, %v1484_v54  ;;  %v1485_v17 = vsub.f32 %v7667_v42, %v1460_v41  ;;  %5974 = vmatprep.subr.bf16.mxu0 %v1604_v58 }
 0x5b0   :  { %v1462_v6 = vpop.xlane.xlu1 %1461  ;;  %6137 = vmatmul.mubr.msk.bf16.gmra.mrb[108].mxu1 %vm466_vm1, %v9427_v22 }
 0x5b1   :  { %v7832_v40 = vpop.eup %6545  ;;  %6555 = vpow2.f32 %v1505_v59  ;;  %v1507_v1 = vmul.f32 1.442695, %v1485_v17  ;;  %v1486_v14 = vsub.f32 %v7672_v51, %v1462_v6  ;;  %6202 = vmatprep.mubr.msk.bf16.mxu1 %vm104_vm0, %v6916_v8  ;;  %v1242_v59 = vpop.f32.mrb[79].mxu0 }
 0x5b2   :  { %v1464_v42 = vpop.xlane.xlu0 %1463  ;;  %1527 = vadd.xlane.f32.xlu0 %v7832_v40  ;;  %5975 = vmatpush3.bf16.msra.mxu0 %v1604_v58  ;;  %v1243_v16 = vadd.f32 %v7791_v0, %v1242_v59 }
 0x5b3   :  { %v7838_v21 = vpop.eup %6547  ;;  %6557 = vpow2.f32 %v1507_v1  ;;  %v1509_v31 = vmul.f32 1.442695, %v1486_v14  ;;  %v1487_v36 = vsub.f32 %v7677_v9, %v1464_v42 }
 0x5b4   :  { %v1466_v24 = vpop.xlane.xlu1 %1465  ;;  %1529 = vadd.xlane.f32.xlu1 %v7838_v21 }
 0x5b5   :  { %v7842_v51 = vpop.eup %6549  ;;  %6559 = vpow2.f32 %v1509_v31  ;;  %v1511_v10 = vmul.f32 1.442695, %v1487_v36  ;;  %v1488_v11 = vsub.f32 %v7682_v63, %v1466_v24 }
 0x5b6   :  { %v1468_v57 = vpop.xlane.xlu0 %1467  ;;  %1531 = vadd.xlane.f32.xlu0 %v7842_v51 }
 0x5b7   :  { %v7847_v9 = vpop.eup %6551  ;;  %6561 = vpow2.f32 %v1511_v10  ;;  %v1513_v34 = vmul.f32 1.442695, %v1488_v11  ;;  %v1489_v7 = vsub.f32 %v7687_v49, %v1468_v57 }
 0x5b8   :  { %v1470_v4 = vpop.xlane.xlu1 %1469  ;;  %1533 = vadd.xlane.f32.xlu1 %v7847_v9 }
 0x5b9   :  { %v7852_v63 = vpop.eup %6553  ;;  %6563 = vpow2.f32 %v1513_v34  ;;  %v1515_v38 = vmul.f32 1.442695, %v1489_v7  ;;  %v1490_v18 = vsub.f32 %v7692_v52, %v1470_v4 }
 0x5ba   :  { %1535 = vadd.xlane.f32.xlu0 %v7852_v63  ;;  %v1472_v32 = vpop.xlane.xlu0 %1471 }
 0x5bb   :  { %v7856_v47 = vpop.eup %6555  ;;  %6565 = vpow2.f32 %v1515_v38  ;;  %v1517_v49 = vmul.f32 1.442695, %v1490_v18  ;;  %v1491_v46 = vsub.f32 %v7697_v48, %v1472_v32  ;;  %v1240_v48 = vadd.f32 %v7791_v0, %v1239_v50 }
 0x5bc   :  { %1537 = vadd.xlane.f32.xlu1 %v7856_v47  ;;  %v1474_v35 = vpop.xlane.xlu1 %1473 }
 0x5bd   :  { %v7860_v27 = vpop.eup %6557  ;;  %6567 = vpow2.f32 %v1517_v49  ;;  %v1519_v54 = vmul.f32 1.442695, %v1491_v46  ;;  %v1492_v52 = vsub.f32 %v7702_v12, %v1474_v35  ;;  %v1605_v22 = vpack.c.bf16 %v1243_v16, %v1240_v48 }
 0x5be   :  { %1539 = vadd.xlane.f32.xlu0 %v7860_v27  ;;  %v1476_v55 = vpop.xlane.xlu0 %1475 }
 0x5bf   :  { %v7864_v29 = vpop.eup %6559  ;;  %6569 = vpow2.f32 %v1519_v54  ;;  %v1521_v41 = vmul.f32 1.442695, %v1492_v52  ;;  %v1493_v61 = vsub.f32 %v7710_v28, %v1476_v55  ;;  %5976 = vmatprep.subr.bf16.mxu0 %v1605_v22 }
 0x5c0   :  { %1541 = vadd.xlane.f32.xlu1 %v7864_v29  ;;  %v1478_v2 = vpop.xlane.xlu1 %1477  ;;  %5977 = vmatpush3.bf16.msra.mxu0 %v1605_v22 }
 0x5c1   :  { %v7869_v17 = vpop.eup %6561  ;;  %6571 = vpow2.f32 %v1521_v41  ;;  %v1523_v5 = vmul.f32 1.442695, %v1493_v61  ;;  %v1494_v12 = vsub.f32 %v7717_v60, %v1478_v2  ;;  %5978 = vmatprep.subr.bf16.mxu0 %v1606_v30 }
 0x5c2   :  { %1543 = vadd.xlane.f32.xlu0 %v7869_v17 }
 0x5c3   :  { %v7874_v6 = vpop.eup %6563  ;;  %6573 = vpow2.f32 %v1523_v5  ;;  %v1525_v28 = vmul.f32 1.442695, %v1494_v12 }
 0x5c4   :  { %1545 = vadd.xlane.f32.xlu1 %v7874_v6  ;;  %5979 = vmatpush3.bf16.msra.mxu0 %v1606_v30 }
 0x5c5   :  { %v7877_v19 = vpop.eup %6565  ;;  %6575 = vpow2.f32 %v1525_v28 }
 0x5c6   :  { %1547 = vadd.xlane.f32.xlu0 %v7877_v19 }
 0x5c7   :  { %v7880_v1 = vpop.eup %6567 }
 0x5c8   :  { %1549 = vadd.xlane.f32.xlu1 %v7880_v1 }
 0x5c9   :  { %v7883_v60 = vpop.eup %6569 }
 0x5ca   :  { %1551 = vadd.xlane.f32.xlu0 %v7883_v60 }
 0x5cb   :  { %v7886_v0 = vpop.eup %6571 }
 0x5cc   :  { %1553 = vadd.xlane.f32.xlu1 %v7886_v0 }
 0x5cd   :  { %v7889_v14 = vpop.eup %6573 }
 0x5ce   :  { %1555 = vadd.xlane.f32.xlu0 %v7889_v14 }
 0x5cf   :  { %v7892_v58 = vpop.eup %6575 }
 0x5d0   :  { %1557 = vadd.xlane.f32.xlu1 %v7892_v58 }
 0x63f   :  { %v1528_v42 = vpop.xlane.xlu0 %1527 }
 0x640   :  { %6577 = vrcp.f32 %v1528_v42 }
 0x641   :  { %v1530_v25 = vpop.xlane.xlu1 %1529 }
 0x642   :  { %6579 = vrcp.f32 %v1530_v25 }
 0x643   :  { %v1532_v31 = vpop.xlane.xlu0 %1531 }
 0x644   :  { %6581 = vrcp.f32 %v1532_v31 }
 0x645   :  { %v1534_v36 = vpop.xlane.xlu1 %1533 }
 0x646   :  { %6583 = vrcp.f32 %v1534_v36 }
 0x647   :  { %v1536_v24 = vpop.xlane.xlu0 %1535 }
 0x648   :  { %6585 = vrcp.f32 %v1536_v24 }
 0x649   :  { %v1538_v26 = vpop.xlane.xlu1 %1537 }
 0x64a   :  { %v6578_v10 = vpop.eup %6577  ;;  %6587 = vrcp.f32 %v1538_v26 }
 0x64b   :  { %v1540_v11 = vpop.xlane.xlu0 %1539  ;;  %v1575_v57 = vmul.f32 %v6578_v10, %v7832_v40 }
 0x64c   :  { %v6580_v37 = vpop.eup %6579  ;;  %6589 = vrcp.f32 %v1540_v11 }
 0x64d   :  { %v1542_v50 = vpop.xlane.xlu1 %1541  ;;  %v1576_v3 = vmul.f32 %v6580_v37, %v7838_v21 }
 0x64e   :  { %v6582_v34 = vpop.eup %6581  ;;  %6591 = vrcp.f32 %v1542_v50 }
 0x64f   :  { %v1544_v7 = vpop.xlane.xlu0 %1543  ;;  %v1591_v44 = vpack.c.bf16 %v1576_v3, %v1575_v57  ;;  %v1577_v38 = vmul.f32 %v6582_v34, %v7842_v51 }
 0x650   :  { %v6584_v4 = vpop.eup %6583  ;;  %6593 = vrcp.f32 %v1544_v7 }
 0x651   :  { %v1578_v18 = vmul.f32 %v6584_v4, %v7847_v9  ;;  %5980 = vmatprep.mubr.bf16.mxu0 %v1591_v44  ;;  %v1546_v30 = vpop.xlane.xlu1 %1545 }
 0x652   :  { %v6586_v32 = vpop.eup %6585  ;;  %6595 = vrcp.f32 %v1546_v30 }
 0x653   :  { %v1548_v49 = vpop.xlane.xlu0 %1547  ;;  %v1592_v46 = vpack.c.bf16 %v1578_v18, %v1577_v38  ;;  %v1579_v21 = vmul.f32 %v6586_v32, %v7852_v63 }
 0x654   :  { %v6588_v35 = vpop.eup %6587  ;;  %6597 = vrcp.f32 %v1548_v49 }
 0x655   :  { %5981 = vmatmul.mubr.bf16.vlgmr.msra.gmra.mrb[80].mxu0 %v1592_v46  ;;  %v1550_v40 = vpop.xlane.xlu1 %1549  ;;  %v1580_v54 = vmul.f32 %v6588_v35, %v7856_v47 }
 0x656   :  { %v6590_v52 = vpop.eup %6589  ;;  %6599 = vrcp.f32 %v1550_v40 }
 0x657   :  { %v1552_v55 = vpop.xlane.xlu0 %1551  ;;  %v1593_v51 = vpack.c.bf16 %v1580_v54, %v1579_v21  ;;  %v1581_v61 = vmul.f32 %v6590_v52, %v7860_v27 }
 0x658   :  { %v6592_v41 = vpop.eup %6591  ;;  %6601 = vrcp.f32 %v1552_v55 }
 0x659   :  { %5984 = vmatprep.mubr.bf16.mxu0 %v1593_v51  ;;  %v1554_v9 = vpop.xlane.xlu1 %1553  ;;  %v1582_v48 = vmul.f32 %v6592_v41, %v7864_v29 }
 0x65a   :  { %v6594_v2 = vpop.eup %6593  ;;  %6603 = vrcp.f32 %v1554_v9 }
 0x65b   :  { %v1556_v59 = vpop.xlane.xlu0 %1555  ;;  %v1594_v5 = vpack.c.bf16 %v1582_v48, %v1581_v61  ;;  %v1583_v47 = vmul.f32 %v6594_v2, %v7869_v17 }
 0x65c   :  { %v6596_v12 = vpop.eup %6595  ;;  %6605 = vrcp.f32 %v1556_v59 }
 0x65d   :  { %5985 = vmatmul.mubr.bf16.gmra.mrb[84].mxu0 %v1594_v5  ;;  %v1558_v63 = vpop.xlane.xlu1 %1557  ;;  %v1584_v16 = vmul.f32 %v6596_v12, %v7874_v6 }
 0x65e   :  { %v6598_v28 = vpop.eup %6597  ;;  %6607 = vrcp.f32 %v1558_v63 }
 0x65f   :  { %v1595_v22 = vpack.c.bf16 %v1584_v16, %v1583_v47  ;;  %v1585_v27 = vmul.f32 %v6598_v28, %v7877_v19  ;;  %v9431_v28 = vld [vmem:[#allocation9_spill] sm:$0xff] }
 0x660   :  { %v6600_v42 = vpop.eup %6599 }
 0x661   :  { %5988 = vmatprep.mubr.bf16.mxu0 %v1595_v22  ;;  %v1586_v29 = vmul.f32 %v6600_v42, %v7880_v1 }
 0x662   :  { %v6602_v25 = vpop.eup %6601 }
 0x663   :  { %v1596_v31 = vpack.c.bf16 %v1586_v29, %v1585_v27  ;;  %v1587_v24 = vmul.f32 %v6602_v25, %v7883_v60 }
 0x664   :  { %v6604_v36 = vpop.eup %6603 }
 0x665   :  { %5989 = vmatmul.mubr.bf16.gmra.mrb[88].mxu0 %v1596_v31  ;;  %v1588_v26 = vmul.f32 %v6604_v36, %v7886_v0 }
 0x666   :  { %v6606_v17 = vpop.eup %6605 }
 0x667   :  { %v1597_v10 = vpack.c.bf16 %v1588_v26, %v1587_v24  ;;  %v1589_v11 = vmul.f32 %v6606_v17, %v7889_v14 }
 0x668   :  { %v6608_v6 = vpop.eup %6607 }
 0x669   :  { %5992 = vmatprep.mubr.bf16.mxu0 %v1597_v10  ;;  %v1590_v37 = vmul.f32 %v6608_v6, %v7892_v58  ;;  %v8437_v10 = vld [vmem:[%s9348_s4 + $0xb] ss:$0 sm:$0xff] }
 0x66b   :  { %v6126_v50 = vpop.f32.mrb[96].mxu1  ;;  %v1598_v19 = vpack.c.bf16 %v1590_v37, %v1589_v11 }
 0x66c   :  { %v2526_v57 = vpop.f32.mrb[97].mxu1  ;;  %v2591_v1 = vmul.f32 0.35355338, %v6126_v50 }
 0x66d   :  { %v2589_v3 = vmul.f32 0.35355338, %v2526_v57  ;;  %5993 = vmatmul.mubr.bf16.gmra.mrb[92].mxu0 %v1598_v19  ;;  %v6127_v34 = vpop.f32.mrb[98].mxu1  ;;  %v5214_v57 = vld [vmem:[%s9350_s5 + $0x8] sm:$0xff] }
 0x66e   :  { %v2529_v7 = vpop.f32.mrb[99].mxu1  ;;  %v2592_v44 = vmul.f32 0.35355338, %v6127_v34  ;;  %v7922_v58 = vsel %vm630_vm2, %v2591_v1, -1e+09  ;;  %5996 = vmatprep.subr.mxu0 %v5214_v57  ;;  %v7997_v1 = vld [vmem:[%s9350_s5] sm:$0xff] }
 0x66f   :  { %v2590_v60 = vmul.f32 0.35355338, %v2529_v7  ;;  %v7913_v0 = vsel %vm628_vm3, %v2589_v3, -1e+09  ;;  %5997 = vmatpush3.msra.mxu0 %v5214_v57 }
 0x670   :  { %2621 = vmax.xlane.f32.xlu0 %v7913_v0  ;;  %v7927_v38 = vsel %vm631_vm4, %v2592_v44, -1e+09  ;;  %6022 = vmatprep.subr.mxu0 %v7997_v1 }
 0x671   :  { %v7918_v14 = vsel %vm629_vm5, %v2590_v60, -1e+09 }
 0x672   :  { %2623 = vmax.xlane.f32.xlu1 %v7918_v14 }
 0x673   :  { %v6130_v4 = vpop.f32.mrb[100].mxu1 }
 0x674   :  { %2625 = vmax.xlane.f32.xlu0 %v7922_v58  ;;  %v2542_v18 = vpop.f32.mrb[101].mxu1  ;;  %v2595_v30 = vmul.f32 0.35355338, %v6130_v4 }
 0x675   :  { %v2593_v32 = vmul.f32 0.35355338, %v2542_v18  ;;  %v6131_v49 = vpop.f32.mrb[102].mxu1 }
 0x676   :  { %v2545_v46 = vpop.f32.mrb[103].mxu1  ;;  %2627 = vmax.xlane.f32.xlu1 %v7927_v38  ;;  %v2596_v35 = vmul.f32 0.35355338, %v6131_v49  ;;  %v7942_v52 = vsel %vm9390_vm8, %v2595_v30, -1e+09  ;;  %vm9432_vm8 = vcmp.gt.f32.partialorder %v9431_v28, 0.0 }
 0x677   :  { %v2594_v40 = vmul.f32 0.35355338, %v2545_v46  ;;  %v7933_v21 = vsel %vm632_vm6, %v2593_v32, -1e+09 }
 0x678   :  { %2629 = vmax.xlane.f32.xlu0 %v7933_v21  ;;  %v7947_v51 = vsel %vm9428_vm9, %v2596_v35, -1e+09  ;;  %vm9430_vm9 = vcmp.gt.f32.partialorder %v7230_v62, 0.0 }
 0x679   :  { %v7938_v54 = vsel %vm633_vm7, %v2594_v40, -1e+09 }
 0x67a   :  { %2631 = vmax.xlane.f32.xlu1 %v7938_v54 }
 0x67b   :  { %v6134_v55 = vpop.f32.mrb[104].mxu1 }
 0x67c   :  { %2633 = vmax.xlane.f32.xlu0 %v7942_v52  ;;  %v2558_v41 = vpop.f32.mrb[105].mxu1  ;;  %v2599_v9 = vmul.f32 0.35355338, %v6134_v55 }
 0x67d   :  { %v2597_v61 = vmul.f32 0.35355338, %v2558_v41  ;;  %v6135_v48 = vpop.f32.mrb[106].mxu1 }
 0x67e   :  { %v2561_v2 = vpop.f32.mrb[107].mxu1  ;;  %2635 = vmax.xlane.f32.xlu1 %v7947_v51  ;;  %v2600_v59 = vmul.f32 0.35355338, %v6135_v48  ;;  %v7962_v47 = vsel %vm9430_vm9, %v2599_v9, -1e+09 }
 0x67f   :  { %v2598_v5 = vmul.f32 0.35355338, %v2561_v2  ;;  %v7953_v12 = vsel %vm9429_vm10, %v2597_v61, -1e+09 }
 0x680   :  { %2637 = vmax.xlane.f32.xlu0 %v7953_v12  ;;  %v7967_v22 = vsel %vm9432_vm8, %v2600_v59, -1e+09 }
 0x681   :  { %v7958_v63 = vsel %vm637_vm11, %v2598_v5, -1e+09 }
 0x682   :  { %2639 = vmax.xlane.f32.xlu1 %v7958_v63 }
 0x683   :  { %v6138_v16 = vpop.f32.mrb[108].mxu1 }
 0x684   :  { %2641 = vmax.xlane.f32.xlu0 %v7962_v47  ;;  %v2574_v42 = vpop.f32.mrb[109].mxu1  ;;  %v2603_v27 = vmul.f32 0.35355338, %v6138_v16 }
 0x685   :  { %v2601_v29 = vmul.f32 0.35355338, %v2574_v42  ;;  %v6139_v25 = vpop.f32.mrb[110].mxu1 }
 0x686   :  { %v2577_v31 = vpop.f32.mrb[111].mxu1  ;;  %2643 = vmax.xlane.f32.xlu1 %v7967_v22  ;;  %v2604_v36 = vmul.f32 0.35355338, %v6139_v25  ;;  %v7982_v37 = vsel %vm642_vm13, %v2603_v27, -1e+09 }
 0x687   :  { %v2602_v24 = vmul.f32 0.35355338, %v2577_v31  ;;  %v7973_v17 = vsel %vm640_vm14, %v2601_v29, -1e+09 }
 0x688   :  { %2645 = vmax.xlane.f32.xlu0 %v7973_v17  ;;  %v7987_v19 = vsel %vm643_vm12, %v2604_v36, -1e+09 }
 0x689   :  { %v7978_v6 = vsel %vm641_vm15, %v2602_v24, -1e+09 }
 0x68a   :  { %2647 = vmax.xlane.f32.xlu1 %v7978_v6 }
 0x68c   :  { %2649 = vmax.xlane.f32.xlu0 %v7982_v37 }
 0x68e   :  { %2651 = vmax.xlane.f32.xlu1 %v7987_v19 }
 0x6fd   :  { %v2622_v3 = vpop.xlane.xlu0 %2621 }
 0x6fe   :  { %v2653_v34 = vsub.f32 %v7913_v0, %v2622_v3 }
 0x6ff   :  { %v2624_v7 = vpop.xlane.xlu1 %2623 }
 0x700   :  { %v2669_v44 = vmul.f32 1.442695, %v2653_v34  ;;  %v2654_v60 = vsub.f32 %v7918_v14, %v2624_v7 }
 0x701   :  { %v2626_v4 = vpop.xlane.xlu0 %2625 }
 0x702   :  { %6609 = vpow2.f32 %v2669_v44  ;;  %v2671_v18 = vmul.f32 1.442695, %v2654_v60  ;;  %v2655_v30 = vsub.f32 %v7922_v58, %v2626_v4 }
 0x703   :  { %v2628_v32 = vpop.xlane.xlu1 %2627 }
 0x704   :  { %6611 = vpow2.f32 %v2671_v18  ;;  %v2673_v49 = vmul.f32 1.442695, %v2655_v30  ;;  %v2656_v46 = vsub.f32 %v7927_v38, %v2628_v32 }
 0x705   :  { %v2630_v35 = vpop.xlane.xlu0 %2629 }
 0x706   :  { %6613 = vpow2.f32 %v2673_v49  ;;  %v2675_v40 = vmul.f32 1.442695, %v2656_v46  ;;  %v2657_v55 = vsub.f32 %v7933_v21, %v2630_v35 }
 0x707   :  { %v2632_v0 = vpop.xlane.xlu1 %2631 }
 0x708   :  { %6615 = vpow2.f32 %v2675_v40  ;;  %v2677_v41 = vmul.f32 1.442695, %v2657_v55  ;;  %v2658_v14 = vsub.f32 %v7938_v54, %v2632_v0 }
 0x709   :  { %v2634_v9 = vpop.xlane.xlu0 %2633 }
 0x70a   :  { %6617 = vpow2.f32 %v2677_v41  ;;  %v2679_v61 = vmul.f32 1.442695, %v2658_v14  ;;  %v2659_v58 = vsub.f32 %v7942_v52, %v2634_v9  ;;  %v5275_v14 = vld [vmem:[%s9346_s3 + $0x140] sm:$0xff]  ;;  %v5276_v9 = vld [vmem:[%s9346_s3 + $0x148] sm:$0xff] }
 0x70b   :  { %v2636_v48 = vpop.xlane.xlu1 %2635 }
 0x70c   :  { %v8007_v2 = vpop.eup %6609  ;;  %6619 = vpow2.f32 %v2679_v61  ;;  %v2681_v38 = vmul.f32 1.442695, %v2659_v58  ;;  %v2660_v59 = vsub.f32 %v7947_v51, %v2636_v48 }
 0x70d   :  { %v2638_v5 = vpop.xlane.xlu0 %2637  ;;  %2701 = vadd.xlane.f32.xlu0 %v8007_v2 }
 0x70e   :  { %v8011_v21 = vpop.eup %6611  ;;  %6621 = vpow2.f32 %v2681_v38  ;;  %v2683_v16 = vmul.f32 1.442695, %v2660_v59  ;;  %v2661_v54 = vsub.f32 %v7953_v12, %v2638_v5  ;;  %v2321_v5 = vpack.c.bf16 %v5276_v9, %v5275_v14  ;;  %v9446_v14 = vld [vmem:[#allocation25_spill] sm:$0xff]  ;;  %v9447_v9 = vld [vmem:[#allocation22_spill] sm:$0xff] }
 0x70f   :  { %2703 = vadd.xlane.f32.xlu1 %v8011_v21  ;;  %v2640_v42 = vpop.xlane.xlu1 %2639 }
 0x710   :  { %v8015_v52 = vpop.eup %6613  ;;  %6623 = vpow2.f32 %v2683_v16  ;;  %v2685_v27 = vmul.f32 1.442695, %v2661_v54  ;;  %v2662_v29 = vsub.f32 %v7958_v63, %v2640_v42 }
 0x711   :  { %v2642_v25 = vpop.xlane.xlu0 %2641  ;;  %2705 = vadd.xlane.f32.xlu0 %v8015_v52 }
 0x712   :  { %v8019_v51 = vpop.eup %6615  ;;  %6625 = vpow2.f32 %v2685_v27  ;;  %v2687_v31 = vmul.f32 1.442695, %v2662_v29  ;;  %v2663_v36 = vsub.f32 %v7962_v47, %v2642_v25 }
 0x713   :  { %2707 = vadd.xlane.f32.xlu1 %v8019_v51  ;;  %v2644_v12 = vpop.xlane.xlu1 %2643 }
 0x714   :  { %v8023_v24 = vpop.eup %6617  ;;  %6627 = vpow2.f32 %v2687_v31  ;;  %v2689_v57 = vmul.f32 1.442695, %v2663_v36  ;;  %v2664_v3 = vsub.f32 %v7967_v22, %v2644_v12 }
 0x715   :  { %2709 = vadd.xlane.f32.xlu0 %v8023_v24  ;;  %v2646_v63 = vpop.xlane.xlu0 %2645 }
 0x716   :  { %v8027_v34 = vpop.eup %6619  ;;  %6629 = vpow2.f32 %v2689_v57  ;;  %v2691_v7 = vmul.f32 1.442695, %v2664_v3  ;;  %v2665_v44 = vsub.f32 %v7973_v17, %v2646_v63 }
 0x717   :  { %2711 = vadd.xlane.f32.xlu1 %v8027_v34  ;;  %v2648_v47 = vpop.xlane.xlu1 %2647 }
 0x718   :  { %v8031_v60 = vpop.eup %6621  ;;  %6631 = vpow2.f32 %v2691_v7  ;;  %v2693_v4 = vmul.f32 1.442695, %v2665_v44  ;;  %v2666_v18 = vsub.f32 %v7978_v6, %v2648_v47  ;;  %v5277_v7 = vld [vmem:[%s9346_s3 + $0x150] sm:$0xff]  ;;  %v5278_v44 = vld [vmem:[%s9346_s3 + $0x158] sm:$0xff]  ;;  %v9437_v47 = vld [vmem:[#allocation15_spill] sm:$0xff] }
 0x719   :  { %2713 = vadd.xlane.f32.xlu0 %v8031_v60  ;;  %v2650_v22 = vpop.xlane.xlu0 %2649 }
 0x71a   :  { %v8035_v30 = vpop.eup %6623  ;;  %6633 = vpow2.f32 %v2693_v4  ;;  %v2695_v32 = vmul.f32 1.442695, %v2666_v18  ;;  %v2667_v49 = vsub.f32 %v7982_v37, %v2650_v22  ;;  %v2322_v4 = vpack.c.bf16 %v5278_v44, %v5277_v7  ;;  %v9438_v18 = vld [vmem:[#allocation17_spill] sm:$0xff]  ;;  %v9439_v22 = vld [vmem:[#allocation14_spill] sm:$0xff] }
 0x71b   :  { %2715 = vadd.xlane.f32.xlu1 %v8035_v30  ;;  %v2652_v17 = vpop.xlane.xlu1 %2651 }
 0x71c   :  { %v8039_v46 = vpop.eup %6625  ;;  %6635 = vpow2.f32 %v2695_v32  ;;  %v2697_v35 = vmul.f32 1.442695, %v2667_v49  ;;  %v2668_v40 = vsub.f32 %v7987_v19, %v2652_v17  ;;  %v9440_v32 = vld [vmem:[#allocation16_spill] sm:$0xff]  ;;  %v9441_v49 = vld [vmem:[#allocation19_spill] sm:$0xff]  ;;  %v9442_v17 = vld [vmem:[#allocation21_spill] sm:$0xff] }
 0x71d   :  { %2717 = vadd.xlane.f32.xlu0 %v8039_v46 }
 0x71e   :  { %v8043_v6 = vpop.eup %6627  ;;  %6637 = vpow2.f32 %v2697_v35  ;;  %v2699_v55 = vmul.f32 1.442695, %v2668_v40  ;;  %v9443_v35 = vld [vmem:[#allocation18_spill] sm:$0xff]  ;;  %v9444_v40 = vld [vmem:[#allocation20_spill] sm:$0xff] }
 0x71f   :  { %2719 = vadd.xlane.f32.xlu1 %v8043_v6 }
 0x720   :  { %v8046_v0 = vpop.eup %6629  ;;  %6639 = vpow2.f32 %v2699_v55  ;;  %v9445_v55 = vld [vmem:[#allocation23_spill] sm:$0xff] }
 0x721   :  { %2721 = vadd.xlane.f32.xlu0 %v8046_v0 }
 0x722   :  { %v8049_v37 = vpop.eup %6631 }
 0x723   :  { %2723 = vadd.xlane.f32.xlu1 %v8049_v37 }
 0x724   :  { %v8052_v41 = vpop.eup %6633 }
 0x725   :  { %2725 = vadd.xlane.f32.xlu0 %v8052_v41 }
 0x726   :  { %v8055_v19 = vpop.eup %6635 }
 0x727   :  { %2727 = vadd.xlane.f32.xlu1 %v8055_v19 }
 0x728   :  { %v8064_v61 = vpop.eup %6637  ;;  %v5982_v58 = vpop.f32.mrb[80].mxu0 }
 0x729   :  { %2729 = vadd.xlane.f32.xlu0 %v8064_v61  ;;  %v1641_v48 = vpop.f32.mrb[81].mxu0 }
 0x72a   :  { %v8067_v38 = vpop.eup %6639  ;;  %v5983_v59 = vpop.f32.mrb[82].mxu0  ;;  %5998 = vmatprep.mubr.msk.f32.mxu0 %vm466_vm1, %v1641_v48  ;;  %v9449_v48 = vld [vmem:[#allocation27_spill] sm:$0xff] }
 0x72b   :  { %v1644_v16 = vpop.f32.mrb[83].mxu0  ;;  %2731 = vadd.xlane.f32.xlu1 %v8067_v38 }
 0x72c   :  { %5999 = vmatmul.mubr.msk.f32.vlgmr.msra.gmra.mrb[96].mxu0 %vm466_vm1, %v1644_v16  ;;  %v9452_v16 = vld [vmem:[#allocation28_spill] sm:$0xff] }
 0x72d   :  { %6001 = vmatprep.mubr.msk.f32.mxu0 %vm466_vm1, %v5982_v58  ;;  %6023 = vmatpush3.msra.mxu0 %v7997_v1  ;;  %v9448_v58 = vld [vmem:[#allocation24_spill] sm:$0xff] }
 0x72e   :  { %6088 = vmatprep.subr.bf16.mxu0 %v2321_v5 }
 0x730   :  { %v5986_v54 = vpop.f32.mrb[84].mxu0  ;;  %6002 = vmatmul.mubr.msk.f32.gmra.mrb[98].mxu0 %vm466_vm1, %v5983_v59  ;;  %v9450_v59 = vld [vmem:[#allocation29_spill] sm:$0xff] }
 0x731   :  { %v1657_v42 = vpop.f32.mrb[85].mxu0 }
 0x732   :  { %v5987_v27 = vpop.f32.mrb[86].mxu0  ;;  %6004 = vmatprep.mubr.msk.f32.mxu0 %vm466_vm1, %v1657_v42  ;;  %v9454_v42 = vld [vmem:[#allocation3_spill] sm:$0xff] }
 0x733   :  { %v1660_v29 = vpop.f32.mrb[87].mxu0 }
 0x734   :  { %6005 = vmatmul.mubr.msk.f32.gmra.mrb[100].mxu0 %vm466_vm1, %v1660_v29  ;;  %v9456_v29 = vld [vmem:[#allocation5_spill] sm:$0xff] }
 0x735   :  { %6007 = vmatprep.mubr.msk.f32.mxu0 %vm466_vm1, %v5986_v54  ;;  %v9453_v54 = vld [vmem:[#allocation2_spill] sm:$0xff] }
 0x738   :  { %v5990_v25 = vpop.f32.mrb[88].mxu0  ;;  %6008 = vmatmul.mubr.msk.f32.gmra.mrb[102].mxu0 %vm466_vm1, %v5987_v27  ;;  %v9455_v27 = vld [vmem:[#allocation4_spill] sm:$0xff] }
 0x739   :  { %v1673_v31 = vpop.f32.mrb[89].mxu0 }
 0x73a   :  { %v5991_v36 = vpop.f32.mrb[90].mxu0  ;;  %6010 = vmatprep.mubr.msk.f32.mxu0 %vm466_vm1, %v1673_v31  ;;  %v9458_v31 = vld [vmem:[#allocation7_spill] sm:$0xff] }
 0x73b   :  { %v1676_v1 = vpop.f32.mrb[91].mxu0 }
 0x73c   :  { %6011 = vmatmul.mubr.msk.f32.gmra.mrb[104].mxu0 %vm466_vm1, %v1676_v1 }
 0x73d   :  { %6013 = vmatprep.mubr.msk.f32.mxu0 %vm466_vm1, %v5990_v25  ;;  %v9457_v25 = vld [vmem:[#allocation6_spill] sm:$0xff] }
 0x740   :  { %v5994_v12 = vpop.f32.mrb[92].mxu0  ;;  %6014 = vmatmul.mubr.msk.f32.gmra.mrb[106].mxu0 %vm466_vm1, %v5991_v36  ;;  %v9459_v36 = vld [vmem:[#allocation8_spill] sm:$0xff] }
 0x741   :  { %v1689_v57 = vpop.f32.mrb[93].mxu0 }
 0x742   :  { %v5995_v3 = vpop.f32.mrb[94].mxu0  ;;  %6016 = vmatprep.mubr.msk.f32.mxu0 %vm466_vm1, %v1689_v57 }
 0x743   :  { %v1692_v63 = vpop.f32.mrb[95].mxu0 }
 0x744   :  { %6017 = vmatmul.mubr.msk.f32.gmra.mrb[108].mxu0 %vm466_vm1, %v1692_v63 }
 0x745   :  { %6019 = vmatprep.mubr.msk.f32.mxu0 %vm466_vm1, %v5994_v12 }
 0x748   :  { %6020 = vmatmul.mubr.msk.f32.gmra.mrb[110].mxu0 %vm466_vm1, %v5995_v3 }
 0x749   :  { %6024 = vmatprep.mubr.msk.f32.mxu0 %vm466_vm1, %v9437_v47 }
 0x74c   :  { %6025 = vmatmul.mubr.msk.f32.vlgmr.msra.gmra.mrb[96].mxu0 %vm466_vm1, %v9438_v18 }
 0x74d   :  { %6027 = vmatprep.mubr.msk.f32.mxu0 %vm466_vm1, %v9439_v22  ;;  %6089 = vmatpush3.bf16.msra.mxu0 %v2321_v5  ;;  %v9451_v5 = vld [vmem:[#allocation26_spill] sm:$0xff] }
 0x74e   :  { %6090 = vmatprep.subr.bf16.mxu0 %v2322_v4 }
 0x750   :  { %6028 = vmatmul.mubr.msk.f32.gmra.mrb[98].mxu0 %vm466_vm1, %v9440_v32 }
 0x751   :  { %6030 = vmatprep.mubr.msk.f32.mxu0 %vm466_vm1, %v9441_v49  ;;  %6091 = vmatpush3.bf16.msra.mxu0 %v2322_v4  ;;  %v5280_v4 = vld [vmem:[%s9348_s4 + $0xa] ss:$0 sm:$0xff] }
 0x754   :  { %6031 = vmatmul.mubr.msk.f32.gmra.mrb[100].mxu0 %vm466_vm1, %v9442_v17 }
 0x755   :  { %6033 = vmatprep.mubr.msk.f32.mxu0 %vm466_vm1, %v9443_v35 }
 0x758   :  { %6034 = vmatmul.mubr.msk.f32.gmra.mrb[102].mxu0 %vm466_vm1, %v9444_v40 }
 0x759   :  { %6036 = vmatprep.mubr.msk.f32.mxu0 %vm466_vm1, %v9445_v55 }
 0x75c   :  { %6037 = vmatmul.mubr.msk.f32.gmra.mrb[104].mxu0 %vm466_vm1, %v9446_v14 }
 0x75d   :  { %6039 = vmatprep.mubr.msk.f32.mxu0 %vm466_vm1, %v9447_v9 }
 0x760   :  { %6040 = vmatmul.mubr.msk.f32.gmra.mrb[106].mxu0 %vm466_vm1, %v9448_v58 }
 0x761   :  { %6042 = vmatprep.mubr.msk.f32.mxu0 %vm466_vm1, %v9449_v48 }
 0x764   :  { %6043 = vmatmul.mubr.msk.f32.gmra.mrb[108].mxu0 %vm466_vm1, %v9450_v59 }
 0x765   :  { %6045 = vmatprep.mubr.msk.f32.mxu0 %vm466_vm1, %v9451_v5 }
 0x768   :  { %6046 = vmatmul.mubr.msk.f32.gmra.mrb[110].mxu0 %vm466_vm1, %v9452_v16 }
 0x769   :  { %6092 = vmatprep.mubr.msk.bf16.mxu0 %vm104_vm0, %v6916_v8 }
 0x76c   :  { %6093 = vmatmul.mubr.msk.bf16.vlgmr.msra.gmra.mrb[112].mxu0 %vm104_vm0, %v9453_v54 }
 0x76d   :  { %6096 = vmatprep.mubr.msk.bf16.mxu0 %vm104_vm0, %v9454_v42 }
 0x774   :  { %6097 = vmatmul.mubr.msk.bf16.gmra.mrb[116].mxu0 %vm104_vm0, %v9455_v27 }
 0x775   :  { %6100 = vmatprep.mubr.msk.bf16.mxu0 %vm104_vm0, %v9456_v29 }
 0x77c   :  { %6101 = vmatmul.mubr.msk.bf16.gmra.mrb[120].mxu0 %vm104_vm0, %v9457_v25 }
 0x77d   :  { %6104 = vmatprep.mubr.msk.bf16.mxu0 %vm104_vm0, %v9458_v31 }
 0x784   :  { %6105 = vmatmul.mubr.msk.bf16.gmra.mrb[124].mxu0 %vm104_vm0, %v9459_v36 }
 0x79a   :  { %v2702_v1 = vpop.xlane.xlu0 %2701 }
 0x79b   :  { %6641 = vrcp.f32 %v2702_v1 }
 0x79c   :  { %v2704_v12 = vpop.xlane.xlu1 %2703 }
 0x79d   :  { %6643 = vrcp.f32 %v2704_v12 }
 0x7a0   :  { %v2708_v55 = vpop.xlane.xlu1 %2707 }
 0x7a1   :  { %6645 = vrcp.f32 %v2708_v55 }
 0x7a4   :  { %v2712_v59 = vpop.xlane.xlu1 %2711 }
 0x7a5   :  { %v6642_v57 = vpop.eup %6641  ;;  %6647 = vrcp.f32 %v2712_v59 }
 0x7a6   :  { %v2749_v63 = vmul.f32 %v6642_v57, %v8007_v2  ;;  %v2706_v2 = vpop.xlane.xlu0 %2705 }
 0x7a7   :  { %v6644_v3 = vpop.eup %6643  ;;  %6649 = vrcp.f32 %v2706_v2 }
 0x7a8   :  { %v2750_v7 = vmul.f32 %v6644_v3, %v8011_v21 }
 0x7aa   :  { %v2765_v44 = vpack.c.bf16 %v2750_v7, %v2749_v63  ;;  %v2710_v3 = vpop.xlane.xlu0 %2709 }
 0x7ab   :  { %6651 = vrcp.f32 %v2710_v3  ;;  %v6646_v59 = vpop.eup %6645 }
 0x7ac   :  { %6156 = vmatprep.mubr.bf16.mxu0 %v2765_v44 }
 0x83f   :  { %v6094_v47 = vpop.f32.mrb[112].mxu0 }
 0x840   :  { %v2365_v18 = vpop.f32.mrb[113].mxu0  ;;  %v2374_v32 = vadd.f32 %v6094_v47, %v5280_v4  ;;  %v2716_v47 = vpop.xlane.xlu1 %2715 }
 0x841   :  { %v6095_v22 = vpop.f32.mrb[114].mxu0  ;;  %v2366_v35 = vadd.f32 %v5280_v4, %v2365_v18  ;;  %6653 = vrcp.f32 %v2716_v47  ;;  %v5297_v47 = vld [vmem:[%s9350_s5 + $0x10] sm:$0xff] }
 0x842   :  { %v2377_v49 = vadd.f32 %v6095_v22, %v5280_v4  ;;  %v2368_v17 = vpop.f32.mrb[115].mxu0 }
 0x843   :  { %v2369_v40 = vadd.f32 %v5280_v4, %v2368_v17 }
 0x844   :  { %v2774_v14 = vpack.c.bf16 %v2377_v49, %v2374_v32  ;;  %v2714_v32 = vpop.xlane.xlu0 %2713 }
 0x845   :  { %v2773_v9 = vpack.c.bf16 %v2369_v40, %v2366_v35 }
 0x847   :  { %v6098_v58 = vpop.f32.mrb[116].mxu0  ;;  %6140 = vmatprep.subr.bf16.mxu0 %v2773_v9 }
 0x848   :  { %v2381_v21 = vpop.f32.mrb[117].mxu0  ;;  %6141 = vmatpush3.bf16.msra.mxu0 %v2773_v9  ;;  %v2390_v5 = vadd.f32 %v6098_v58, %v5280_v4 }
 0x849   :  { %v6099_v48 = vpop.f32.mrb[118].mxu0  ;;  %6142 = vmatprep.subr.bf16.mxu0 %v2774_v14  ;;  %v2382_v12 = vadd.f32 %v5280_v4, %v2381_v21 }
 0x84a   :  { %v2393_v16 = vadd.f32 %v6099_v48, %v5280_v4  ;;  %v2384_v1 = vpop.f32.mrb[119].mxu0 }
 0x84b   :  { %v2385_v57 = vadd.f32 %v5280_v4, %v2384_v1 }
 0x84c   :  { %v2776_v63 = vpack.c.bf16 %v2393_v16, %v2390_v5  ;;  %6143 = vmatpush3.bf16.msra.mxu0 %v2774_v14  ;;  %v2720_v14 = vpop.xlane.xlu1 %2719  ;;  %v2718_v5 = vpop.xlane.xlu0 %2717 }
 0x84d   :  { %v2775_v7 = vpack.c.bf16 %v2385_v57, %v2382_v12  ;;  %6655 = vrcp.f32 %v2720_v14 }
 0x84e   :  { %6657 = vrcp.f32 %v2714_v32 }
 0x84f   :  { %v6102_v44 = vpop.f32.mrb[120].mxu0  ;;  %6144 = vmatprep.subr.bf16.mxu0 %v2775_v7  ;;  %6659 = vrcp.f32 %v2718_v5 }
 0x850   :  { %v2397_v18 = vpop.f32.mrb[121].mxu0  ;;  %6145 = vmatpush3.bf16.msra.mxu0 %v2775_v7  ;;  %v2406_v49 = vadd.f32 %v6102_v44, %v5280_v4  ;;  %v2724_v55 = vpop.xlane.xlu1 %2723 }
 0x851   :  { %v6103_v22 = vpop.f32.mrb[122].mxu0  ;;  %6146 = vmatprep.subr.bf16.mxu0 %v2776_v63  ;;  %v2398_v40 = vadd.f32 %v5280_v4, %v2397_v18  ;;  %v2722_v3 = vpop.xlane.xlu0 %2721  ;;  %6661 = vrcp.f32 %v2724_v55 }
 0x852   :  { %v2409_v17 = vadd.f32 %v6103_v22, %v5280_v4  ;;  %v2400_v35 = vpop.f32.mrb[123].mxu0  ;;  %v6648_v22 = vpop.eup %6647 }
 0x853   :  { %v2401_v9 = vadd.f32 %v5280_v4, %v2400_v35  ;;  %v2752_v35 = vmul.f32 %v6646_v59, %v8019_v51 }
 0x854   :  { %v2778_v58 = vpack.c.bf16 %v2409_v17, %v2406_v49  ;;  %6147 = vmatpush3.bf16.msra.mxu0 %v2776_v63  ;;  %v6650_v49 = vpop.eup %6649 }
 0x855   :  { %v2777_v21 = vpack.c.bf16 %v2401_v9, %v2398_v40  ;;  %v6652_v17 = vpop.eup %6651  ;;  %v2728_v40 = vpop.xlane.xlu1 %2727  ;;  %v2751_v9 = vmul.f32 %v6650_v49, %v8015_v52 }
 0x856   :  { %v2726_v32 = vpop.xlane.xlu0 %2725  ;;  %6663 = vrcp.f32 %v2728_v40  ;;  %v6654_v14 = vpop.eup %6653 }
 0x857   :  { %v6106_v48 = vpop.f32.mrb[124].mxu0  ;;  %6148 = vmatprep.subr.bf16.mxu0 %v2777_v21  ;;  %6665 = vrcp.f32 %v2722_v3  ;;  %v2756_v52 = vmul.f32 %v6654_v14, %v8035_v30 }
 0x858   :  { %v2413_v16 = vpop.f32.mrb[125].mxu0  ;;  %6149 = vmatpush3.bf16.msra.mxu0 %v2777_v21  ;;  %v2422_v12 = vadd.f32 %v6106_v48, %v5280_v4  ;;  %v2766_v21 = vpack.c.bf16 %v2752_v35, %v2751_v9  ;;  %v6656_v48 = vpop.eup %6655  ;;  %6667 = vrcp.f32 %v2726_v32  ;;  %v5330_v32 = vld [vmem:[%s9346_s3 + $0xf0] sm:$0xff] }
 0x859   :  { %v6107_v1 = vpop.f32.mrb[126].mxu0  ;;  %6150 = vmatprep.subr.bf16.mxu0 %v2778_v58  ;;  %v2414_v44 = vadd.f32 %v5280_v4, %v2413_v16  ;;  %v2732_v16 = vpop.xlane.xlu1 %2731 }
 0x85a   :  { %v2425_v57 = vadd.f32 %v6107_v1, %v5280_v4  ;;  %v2416_v7 = vpop.f32.mrb[127].mxu0  ;;  %v2758_v1 = vmul.f32 %v6656_v48, %v8043_v6  ;;  %6669 = vrcp.f32 %v2732_v16 }
 0x85b   :  { %v2417_v18 = vadd.f32 %v5280_v4, %v2416_v7  ;;  %v2754_v4 = vmul.f32 %v6648_v22, %v8027_v34  ;;  %v6658_v34 = vpop.eup %6657 }
 0x85c   :  { %v2780_v63 = vpack.c.bf16 %v2425_v57, %v2422_v12  ;;  %6151 = vmatpush3.bf16.msra.mxu0 %v2778_v58  ;;  %v2753_v58 = vmul.f32 %v6652_v17, %v8023_v24  ;;  %v6660_v5 = vpop.eup %6659  ;;  %v2730_v12 = vpop.xlane.xlu0 %2729  ;;  %v2755_v24 = vmul.f32 %v6658_v34, %v8031_v60 }
 0x85d   :  { %v2779_v2 = vpack.c.bf16 %v2417_v18, %v2414_v44  ;;  %v2757_v57 = vmul.f32 %v6660_v5, %v8039_v46  ;;  %v6662_v44 = vpop.eup %6661  ;;  %6671 = vrcp.f32 %v2730_v12 }
 0x85e   :  { %v2767_v51 = vpack.c.bf16 %v2754_v4, %v2753_v58  ;;  %v2768_v7 = vpack.c.bf16 %v2756_v52, %v2755_v24  ;;  %v2760_v59 = vmul.f32 %v6662_v44, %v8049_v37  ;;  %v5328_v37 = vld [vmem:[%s9346_s3 + $0xe0] sm:$0xff]  ;;  %v5316_v4 = vld [vmem:[%s9346_s3 + $0x70] sm:$0xff]  ;;  %v5331_v58 = vld [vmem:[%s9346_s3 + $0xf8] sm:$0xff] }
 0x85f   :  { %6152 = vmatprep.subr.bf16.mxu0 %v2779_v2  ;;  %v2769_v18 = vpack.c.bf16 %v2758_v1, %v2757_v57  ;;  %v3207_v48 = vpack.c.bf16 %v5331_v58, %v5330_v32 }
 0x860   :  { %6153 = vmatpush3.bf16.msra.mxu0 %v2779_v2  ;;  %v6664_v55 = vpop.eup %6663 }
 0x861   :  { %6154 = vmatprep.subr.bf16.mxu0 %v2780_v63  ;;  %v2762_v30 = vmul.f32 %v6664_v55, %v8055_v19  ;;  %v5314_v19 = vld [vmem:[%s9346_s3 + $0x60] sm:$0xff] }
 0x864   :  { %6155 = vmatpush3.bf16.msra.mxu0 %v2780_v63  ;;  %v6666_v63 = vpop.eup %6665 }
 0x865   :  { %6172 = vmatprep.subr.mxu0 %v5297_v47  ;;  %v6668_v2 = vpop.eup %6667  ;;  %v2759_v6 = vmul.f32 %v6666_v63, %v8046_v0  ;;  %v5329_v0 = vld [vmem:[%s9346_s3 + $0xe8] sm:$0xff] }
 0x866   :  { %v2761_v60 = vmul.f32 %v6668_v2, %v8052_v41  ;;  %v6670_v22 = vpop.eup %6669  ;;  %v3206_v41 = vpack.c.bf16 %v5329_v0, %v5328_v37  ;;  %v5319_v2 = vld [vmem:[%s9348_s4 + $0x3] ss:$0 sm:$0xff] }
 0x867   :  { %6157 = vmatmul.mubr.bf16.vlgmr.msra.gmra.mrb[128].mxu0 %v2766_v21  ;;  %v2770_v3 = vpack.c.bf16 %v2760_v59, %v2759_v6  ;;  %v6672_v49 = vpop.eup %6671  ;;  %v2764_v17 = vmul.f32 %v6670_v22, %v8067_v38 }
 0x868   :  { %6160 = vmatprep.mubr.bf16.mxu0 %v2767_v51  ;;  %6173 = vmatpush3.msra.mxu0 %v5297_v47  ;;  %v2771_v46 = vpack.c.bf16 %v2762_v30, %v2761_v60  ;;  %v2763_v35 = vmul.f32 %v6672_v49, %v8064_v61  ;;  %v5315_v61 = vld [vmem:[%s9346_s3 + $0x68] sm:$0xff]  ;;  %v5317_v47 = vld [vmem:[%s9346_s3 + $0x78] sm:$0xff] }
 0x869   :  { %6218 = vmatprep.subr.bf16.mxu0 %v3206_v41  ;;  %v3094_v38 = vpack.c.bf16 %v5315_v61, %v5314_v19  ;;  %v3095_v9 = vpack.c.bf16 %v5317_v47, %v5316_v4 }
 0x86a   :  { %v2772_v40 = vpack.c.bf16 %v2764_v17, %v2763_v35 }
 0x86b   :  { %6198 = vmatprep.subr.bf16.mxu1 %v3094_v38 }
 0x86c   :  { %6199 = vmatpush3.bf16.msra.mxu1 %v3094_v38 }
 0x86d   :  { %6200 = vmatprep.subr.bf16.mxu1 %v3095_v9 }
 0x86f   :  { %6161 = vmatmul.mubr.bf16.gmra.mrb[132].mxu0 %v2768_v7 }
 0x870   :  { %6164 = vmatprep.mubr.bf16.mxu0 %v2769_v18  ;;  %6201 = vmatpush3.bf16.msra.mxu1 %v3095_v9 }
 0x873   :  { %6203 = vmatmul.mubr.msk.bf16.vlgmr.msra.gmra.mrb[112].mxu1 %vm104_vm0, %v9453_v54 }
 0x874   :  { %6206 = vmatprep.mubr.msk.bf16.mxu1 %vm104_vm0, %v9454_v42 }
 0x877   :  { %6165 = vmatmul.mubr.bf16.gmra.mrb[136].mxu0 %v2770_v3 }
 0x878   :  { %6168 = vmatprep.mubr.bf16.mxu0 %v2771_v46 }
 0x87b   :  { %6207 = vmatmul.mubr.msk.bf16.gmra.mrb[116].mxu1 %vm104_vm0, %v9455_v27 }
 0x87c   :  { %6210 = vmatprep.mubr.msk.bf16.mxu1 %vm104_vm0, %v9456_v29 }
 0x87f   :  { %6169 = vmatmul.mubr.bf16.gmra.mrb[140].mxu0 %v2772_v40 }
 0x883   :  { %6211 = vmatmul.mubr.msk.bf16.gmra.mrb[120].mxu1 %vm104_vm0, %v9457_v25 }
 0x884   :  { %6214 = vmatprep.mubr.msk.bf16.mxu1 %vm104_vm0, %v9458_v31 }
 0x88b   :  { %6215 = vmatmul.mubr.msk.bf16.gmra.mrb[124].mxu1 %vm104_vm0, %v9459_v36 }
 0x88c   :  { %6242 = vmatprep.mubr.msk.bf16.mxu1 %vm104_vm0, %v6916_v8 }
 0x93a   :  { %v6158_v21 = vpop.f32.mrb[128].mxu0 }
 0x93b   :  { %v2815_v14 = vpop.f32.mrb[129].mxu0 }
 0x93c   :  { %v6159_v51 = vpop.f32.mrb[130].mxu0  ;;  %6174 = vmatprep.mubr.msk.f32.mxu0 %vm466_vm1, %v2815_v14 }
 0x93d   :  { %v2818_v34 = vpop.f32.mrb[131].mxu0 }
 0x93e   :  { %6175 = vmatmul.mubr.msk.f32.vlgmr.msra.gmra.mrb[96].mxu0 %vm466_vm1, %v2818_v34 }
 0x93f   :  { %6177 = vmatprep.mubr.msk.f32.mxu0 %vm466_vm1, %v6158_v21  ;;  %6219 = vmatpush3.bf16.msra.mxu0 %v3206_v41 }
 0x940   :  { %6220 = vmatprep.subr.bf16.mxu0 %v3207_v48 }
 0x942   :  { %v6162_v5 = vpop.f32.mrb[132].mxu0  ;;  %6178 = vmatmul.mubr.msk.f32.gmra.mrb[98].mxu0 %vm466_vm1, %v6159_v51 }
 0x943   :  { %v2831_v16 = vpop.f32.mrb[133].mxu0  ;;  %6221 = vmatpush3.bf16.msra.mxu0 %v3207_v48 }
 0x944   :  { %v6163_v52 = vpop.f32.mrb[134].mxu0  ;;  %6180 = vmatprep.mubr.msk.f32.mxu0 %vm466_vm1, %v2831_v16 }
 0x945   :  { %v2834_v1 = vpop.f32.mrb[135].mxu0 }
 0x946   :  { %6181 = vmatmul.mubr.msk.f32.gmra.mrb[100].mxu0 %vm466_vm1, %v2834_v1 }
 0x947   :  { %6183 = vmatprep.mubr.msk.f32.mxu0 %vm466_vm1, %v6162_v5 }
 0x94a   :  { %v6166_v12 = vpop.f32.mrb[136].mxu0  ;;  %6184 = vmatmul.mubr.msk.f32.gmra.mrb[102].mxu0 %vm466_vm1, %v6163_v52 }
 0x94b   :  { %v2847_v24 = vpop.f32.mrb[137].mxu0 }
 0x94c   :  { %v6167_v57 = vpop.f32.mrb[138].mxu0  ;;  %6186 = vmatprep.mubr.msk.f32.mxu0 %vm466_vm1, %v2847_v24 }
 0x94d   :  { %v2850_v7 = vpop.f32.mrb[139].mxu0 }
 0x94e   :  { %6187 = vmatmul.mubr.msk.f32.gmra.mrb[104].mxu0 %vm466_vm1, %v2850_v7 }
 0x94f   :  { %6189 = vmatprep.mubr.msk.f32.mxu0 %vm466_vm1, %v6166_v12 }
 0x952   :  { %v6170_v44 = vpop.f32.mrb[140].mxu0  ;;  %6190 = vmatmul.mubr.msk.f32.gmra.mrb[106].mxu0 %vm466_vm1, %v6167_v57 }
 0x953   :  { %v2863_v18 = vpop.f32.mrb[141].mxu0 }
 0x954   :  { %v6171_v55 = vpop.f32.mrb[142].mxu0  ;;  %6192 = vmatprep.mubr.msk.f32.mxu0 %vm466_vm1, %v2863_v18 }
 0x955   :  { %v2866_v63 = vpop.f32.mrb[143].mxu0 }
 0x956   :  { %6193 = vmatmul.mubr.msk.f32.gmra.mrb[108].mxu0 %vm466_vm1, %v2866_v63 }
 0x957   :  { %6195 = vmatprep.mubr.msk.f32.mxu0 %vm466_vm1, %v6170_v44 }
 0x95a   :  { %6196 = vmatmul.mubr.msk.f32.gmra.mrb[110].mxu0 %vm466_vm1, %v6171_v55 }
 0x95b   :  { %6222 = vmatprep.mubr.msk.bf16.mxu0 %vm104_vm0, %v6916_v8  ;;  %v6204_v8 = vpop.f32.mrb[112].mxu1 }
 0x95c   :  { %v8238_v59 = vadd.f32 %v6204_v8, %v5319_v2  ;;  %v3138_v30 = vpop.f32.mrb[113].mxu1 }
 0x95d   :  { %v3139_v6 = vadd.f32 %v5319_v2, %v3138_v30  ;;  %v6205_v60 = vpop.f32.mrb[114].mxu1  ;;  %v5333_v30 = vld [vmem:[%s9348_s4 + $0x7] ss:$0 sm:$0xff] }
 0x95e   :  { %6223 = vmatmul.mubr.msk.bf16.vlgmr.msra.gmra.mrb[144].mxu0 %vm104_vm0, %v9453_v54  ;;  %v8240_v3 = vadd.f32 %v6205_v60, %v5319_v2  ;;  %v3141_v22 = vpop.f32.mrb[115].mxu1 }
 0x95f   :  { %6226 = vmatprep.mubr.msk.bf16.mxu0 %vm104_vm0, %v9454_v42  ;;  %v3142_v46 = vadd.f32 %v5319_v2, %v3141_v22  ;;  %v6208_v35 = vpop.f32.mrb[116].mxu1 }
 0x960   :  { %v3426_v49 = vpack.c.bf16 %v8240_v3, %v8238_v59  ;;  %v8244_v40 = vadd.f32 %v6208_v35, %v5319_v2  ;;  %v3154_v37 = vpop.f32.mrb[117].mxu1 }
 0x961   :  { %v3425_v17 = vpack.c.bf16 %v3142_v46, %v3139_v6  ;;  %v8247_v0 = vadd.f32 %v5319_v2, %v3154_v37  ;;  %v6209_v41 = vpop.f32.mrb[118].mxu1 }
 0x962   :  { %v8249_v19 = vadd.f32 %v6209_v41, %v5319_v2  ;;  %v3157_v61 = vpop.f32.mrb[119].mxu1 }
 0x963   :  { %v8251_v38 = vadd.f32 %v5319_v2, %v3157_v61  ;;  %v6212_v9 = vpop.f32.mrb[120].mxu1 }
 0x964   :  { %v3428_v4 = vpack.c.bf16 %v8249_v19, %v8244_v40  ;;  %v8257_v32 = vadd.f32 %v6212_v9, %v5319_v2  ;;  %v3170_v58 = vpop.f32.mrb[121].mxu1  ;;  %v5343_v40 = vld [vmem:[%s9346_s3 + $0x168] sm:$0xff] }
 0x965   :  { %v3427_v47 = vpack.c.bf16 %v8251_v38, %v8247_v0  ;;  %v8259_v21 = vadd.f32 %v5319_v2, %v3170_v58  ;;  %v6213_v14 = vpop.f32.mrb[122].mxu1  ;;  %v5344_v0 = vld [vmem:[%s9346_s3 + $0x170] sm:$0xff]  ;;  %v5345_v38 = vld [vmem:[%s9346_s3 + $0x178] sm:$0xff] }
 0x966   :  { %6227 = vmatmul.mubr.msk.bf16.gmra.mrb[148].mxu0 %vm104_vm0, %v9455_v27  ;;  %v8261_v51 = vadd.f32 %v6213_v14, %v5319_v2  ;;  %v3173_v48 = vpop.f32.mrb[123].mxu1 }
 0x967   :  { %6230 = vmatprep.mubr.msk.bf16.mxu0 %vm104_vm0, %v9456_v29  ;;  %v8263_v34 = vadd.f32 %v5319_v2, %v3173_v48  ;;  %v6216_v52 = vpop.f32.mrb[124].mxu1 }
 0x968   :  { %v3430_v5 = vpack.c.bf16 %v8261_v51, %v8257_v32  ;;  %v8269_v1 = vadd.f32 %v6216_v52, %v5319_v2  ;;  %v3186_v12 = vpop.f32.mrb[125].mxu1 }
 0x969   :  { %v3429_v16 = vpack.c.bf16 %v8263_v34, %v8259_v21  ;;  %v8271_v24 = vadd.f32 %v5319_v2, %v3186_v12  ;;  %v6217_v57 = vpop.f32.mrb[126].mxu1 }
 0x96a   :  { %v8273_v7 = vadd.f32 %v6217_v57, %v5319_v2  ;;  %v3189_v44 = vpop.f32.mrb[127].mxu1 }
 0x96b   :  { %v8275_v18 = vadd.f32 %v5319_v2, %v3189_v44 }
 0x96c   :  { %v9461_v3 = vpack.c.bf16 %v8273_v7, %v8269_v1 }
 0x96d   :  { %v9460_v59 = vpack.c.bf16 %v8275_v18, %v8271_v24 }
 0x96e   :  { %6231 = vmatmul.mubr.msk.bf16.gmra.mrb[152].mxu0 %vm104_vm0, %v9457_v25 }
 0x96f   :  { %6234 = vmatprep.mubr.msk.bf16.mxu0 %vm104_vm0, %v9458_v31 }
 0x976   :  { %6235 = vmatmul.mubr.msk.bf16.gmra.mrb[156].mxu0 %vm104_vm0, %v9459_v36 }
 0x977   :  { %6274 = vmatprep.mubr.msk.bf16.mxu0 %vm466_vm1, %v3425_v17 }
 0xa31   :  { %v6224_v8 = vpop.f32.mrb[144].mxu0 }
 0xa32   :  { %v3250_v6 = vpop.f32.mrb[145].mxu0  ;;  %v3259_v22 = vadd.f32 %v6224_v8, %v5333_v30 }
 0xa33   :  { %v6225_v60 = vpop.f32.mrb[146].mxu0  ;;  %v3251_v35 = vadd.f32 %v5333_v30, %v3250_v6 }
 0xa34   :  { %v3262_v46 = vadd.f32 %v6225_v60, %v5333_v30  ;;  %v3253_v17 = vpop.f32.mrb[147].mxu0 }
 0xa35   :  { %v3254_v37 = vadd.f32 %v5333_v30, %v3253_v17 }
 0xa36   :  { %v3434_v2 = vpack.c.bf16 %v3262_v46, %v3259_v22 }
 0xa37   :  { %v3433_v41 = vpack.c.bf16 %v3254_v37, %v3251_v35 }
 0xa38   :  { %v3469_v60 = vsel %vm466_vm1, %v3434_v2, 0 }
 0xa39   :  { %6464 = vmatprep.subr.msk.bf16.mxu0 %vm466_vm1, %v3433_v41  ;;  %v3466_v61 = vsel %vm466_vm1, %v3433_v41, 0  ;;  %v6228_v9 = vpop.f32.mrb[148].mxu0 }
 0xa3a   :  { %6259 = vmatpush3.bf16.xpose.msra.mxu0 %v3466_v61  ;;  %v3275_v58 = vadd.f32 %v6228_v9, %v5333_v30  ;;  %v3266_v14 = vpop.f32.mrb[149].mxu0 }
 0xa3b   :  { %6465 = vmatprep.subr.msk.bf16.mxu0 %vm466_vm1, %v3434_v2  ;;  %v3267_v48 = vadd.f32 %v5333_v30, %v3266_v14  ;;  %v6229_v52 = vpop.f32.mrb[150].mxu0 }
 0xa3c   :  { %v3278_v12 = vadd.f32 %v6229_v52, %v5333_v30  ;;  %v3269_v57 = vpop.f32.mrb[151].mxu0 }
 0xa3d   :  { %v3270_v44 = vadd.f32 %v5333_v30, %v3269_v57 }
 0xa3e   :  { %v3436_v8 = vpack.c.bf16 %v3278_v12, %v3275_v58 }
 0xa3f   :  { %v3435_v6 = vpack.c.bf16 %v3270_v44, %v3267_v48 }
 0xa41   :  { %v6232_v22 = vpop.f32.mrb[152].mxu0  ;;  %v3472_v52 = vsel %vm466_vm1, %v3435_v6, 0 }
 0xa42   :  { %6261 = vmatpush3.bf16.xpose.msra.mxu0 %v3469_v60  ;;  %v3291_v46 = vadd.f32 %v6232_v22, %v5333_v30  ;;  %v3282_v17 = vpop.f32.mrb[153].mxu0 }
 0xa43   :  { %6466 = vmatprep.subr.msk.bf16.mxu0 %vm466_vm1, %v3435_v6  ;;  %v3283_v35 = vadd.f32 %v5333_v30, %v3282_v17  ;;  %v6233_v37 = vpop.f32.mrb[154].mxu0 }
 0xa44   :  { %v3294_v41 = vadd.f32 %v6233_v37, %v5333_v30  ;;  %v3285_v61 = vpop.f32.mrb[155].mxu0  ;;  %v3475_v37 = vsel %vm466_vm1, %v3436_v8, 0 }
 0xa45   :  { %v3286_v9 = vadd.f32 %v5333_v30, %v3285_v61 }
 0xa46   :  { %v3438_v14 = vpack.c.bf16 %v3294_v41, %v3291_v46 }
 0xa47   :  { %v3437_v55 = vpack.c.bf16 %v3286_v9, %v3283_v35 }
 0xa48   :  { %v3481_v46 = vsel %vm466_vm1, %v3438_v14, 0 }
 0xa49   :  { %v6236_v57 = vpop.f32.mrb[156].mxu0  ;;  %v3478_v6 = vsel %vm466_vm1, %v3437_v55, 0 }
 0xa4a   :  { %6263 = vmatpush3.bf16.xpose.msra.mxu0 %v3472_v52  ;;  %v3307_v58 = vadd.f32 %v6236_v57, %v5333_v30  ;;  %v3298_v48 = vpop.f32.mrb[157].mxu0 }
 0xa4b   :  { %6467 = vmatprep.subr.msk.bf16.mxu0 %vm466_vm1, %v3436_v8  ;;  %v3299_v2 = vadd.f32 %v5333_v30, %v3298_v48  ;;  %v6237_v12 = vpop.f32.mrb[158].mxu0 }
 0xa4c   :  { %v3310_v44 = vadd.f32 %v6237_v12, %v5333_v30  ;;  %v3301_v60 = vpop.f32.mrb[159].mxu0 }
 0xa4d   :  { %v3302_v22 = vadd.f32 %v5333_v30, %v3301_v60 }
 0xa4e   :  { %v3440_v17 = vpack.c.bf16 %v3310_v44, %v3307_v58 }
 0xa4f   :  { %v3439_v63 = vpack.c.bf16 %v3302_v22, %v3299_v2 }
 0xa50   :  { %v3487_v30 = vsel %vm466_vm1, %v3440_v17, 0 }
 0xa51   :  { %v3484_v35 = vsel %vm466_vm1, %v3439_v63, 0 }
 0xa52   :  { %6265 = vmatpush3.bf16.xpose.msra.mxu0 %v3475_v37 }
 0xa53   :  { %6468 = vmatprep.subr.msk.bf16.mxu0 %vm466_vm1, %v3437_v55 }
 0xa5a   :  { %6267 = vmatpush3.bf16.xpose.msra.mxu0 %v3478_v6 }
 0xa5b   :  { %6469 = vmatprep.subr.msk.bf16.mxu0 %vm466_vm1, %v3438_v14 }
 0xa62   :  { %6269 = vmatpush3.bf16.xpose.msra.mxu0 %v3481_v46 }
 0xa63   :  { %6470 = vmatprep.subr.msk.bf16.mxu0 %vm466_vm1, %v3439_v63 }
 0xa6a   :  { %6271 = vmatpush3.bf16.xpose.msra.mxu0 %v3484_v35 }
 0xa6b   :  { %6471 = vmatprep.subr.msk.bf16.mxu0 %vm466_vm1, %v3440_v17 }
 0xa72   :  { %6273 = vmatpush3.bf16.xpose.msra.mxu0 %v3487_v30 }
 0xa79   :  { %6275 = vmatmul.mubr.msk.bf16.vlgmr.msra.gmra.mrb[160].mxu0 %vm466_vm1, %v3426_v49  ;;  %v5342_v49 = vld [vmem:[%s9346_s3 + $0x160] sm:$0xff] }
 0xa7a   :  { %6278 = vmatprep.mubr.msk.bf16.mxu0 %vm466_vm1, %v3427_v47  ;;  %v3318_v19 = vpack.c.bf16 %v5343_v40, %v5342_v49 }
 0xa7c   :  { %6238 = vmatprep.subr.bf16.mxu1 %v3318_v19 }
 0xa7d   :  { %6239 = vmatpush3.bf16.msra.mxu1 %v3318_v19 }
 0xa81   :  { %6279 = vmatmul.mubr.msk.bf16.gmra.mrb[164].mxu0 %vm466_vm1, %v3428_v4  ;;  %v3319_v4 = vpack.c.bf16 %v5345_v38, %v5344_v0 }
 0xa82   :  { %6282 = vmatprep.mubr.msk.bf16.mxu0 %vm466_vm1, %v3429_v16 }
 0xa83   :  { %6240 = vmatprep.subr.bf16.mxu1 %v3319_v4 }
 0xa84   :  { %6241 = vmatpush3.bf16.msra.mxu1 %v3319_v4 }
 0xa87   :  { %6243 = vmatmul.mubr.msk.bf16.vlgmr.msra.gmra.mrb[128].mxu1 %vm104_vm0, %v9453_v54 }
 0xa88   :  { %6246 = vmatprep.mubr.msk.bf16.mxu1 %vm104_vm0, %v9454_v42 }
 0xa89   :  { %6283 = vmatmul.mubr.msk.bf16.gmra.mrb[168].mxu0 %vm466_vm1, %v3430_v5 }
 0xa8a   :  { %6286 = vmatprep.mubr.msk.bf16.mxu0 %vm466_vm1, %v9460_v59 }
 0xa8f   :  { %6247 = vmatmul.mubr.msk.bf16.gmra.mrb[132].mxu1 %vm104_vm0, %v9455_v27 }
 0xa90   :  { %6250 = vmatprep.mubr.msk.bf16.mxu1 %vm104_vm0, %v9456_v29 }
 0xa91   :  { %6287 = vmatmul.mubr.msk.bf16.gmra.mrb[172].mxu0 %vm466_vm1, %v9461_v3 }
 0xa97   :  { %6251 = vmatmul.mubr.msk.bf16.gmra.mrb[136].mxu1 %vm104_vm0, %v9457_v25 }
 0xa98   :  { %6254 = vmatprep.mubr.msk.bf16.mxu1 %vm104_vm0, %v9458_v31 }
 0xa9f   :  { %6255 = vmatmul.mubr.msk.bf16.gmra.mrb[140].mxu1 %vm104_vm0, %v9459_v36 }
 0xb4c   :  { %v6276_v47 = vpop.f32.mrb[160].mxu0 }
 0xb4d   :  { %v3523_v54 = vpop.f32.mrb[161].mxu0  ;;  %v3588_v51 = vmul.f32 0.35355338, %v6276_v47 }
 0xb4e   :  { %v3586_v32 = vmul.f32 0.35355338, %v3523_v54  ;;  %v6277_v21 = vpop.f32.mrb[162].mxu0 }
 0xb4f   :  { %v3526_v42 = vpop.f32.mrb[163].mxu0  ;;  %v3589_v29 = vmul.f32 0.35355338, %v6277_v21  ;;  %v8366_v36 = vsel %vm630_vm2, %v3588_v51, -1e+09  ;;  %vm9462_vm2 = vcmp.gt.f32.partialorder %v7187_v43, 0.0 }
 0xb50   :  { %v3587_v34 = vmul.f32 0.35355338, %v3526_v42  ;;  %v8356_v27 = vsel %vm628_vm3, %v3586_v32, -1e+09  ;;  %vm9463_vm3 = vcmp.gt.f32.partialorder %v7193_v45, 0.0 }
 0xb51   :  { %3618 = vmax.xlane.f32.xlu0 %v8356_v27  ;;  %v8371_v1 = vsel %vm631_vm4, %v3589_v29, -1e+09  ;;  %vm9464_vm4 = vmmov %vm9429_vm10 }
 0xb52   :  { %v8361_v25 = vsel %vm629_vm5, %v3587_v34, -1e+09  ;;  %vm9465_vm5 = vmmov %vm9430_vm9 }
 0xb53   :  { %3620 = vmax.xlane.f32.xlu1 %v8361_v25 }
 0xb54   :  { %v6280_v31 = vpop.f32.mrb[164].mxu0 }
 0xb55   :  { %3622 = vmax.xlane.f32.xlu0 %v8366_v36  ;;  %v3539_v5 = vpop.f32.mrb[165].mxu0  ;;  %v3592_v24 = vmul.f32 0.35355338, %v6280_v31 }
 0xb56   :  { %v3590_v15 = vmul.f32 0.35355338, %v3539_v5  ;;  %v6281_v16 = vpop.f32.mrb[166].mxu0 }
 0xb57   :  { %3624 = vmax.xlane.f32.xlu1 %v8371_v1  ;;  %v3542_v23 = vpop.f32.mrb[167].mxu0  ;;  %v3593_v13 = vmul.f32 0.35355338, %v6281_v16  ;;  %v8386_v63 = vsel %vm9462_vm2, %v3592_v24, -1e+09 }
 0xb58   :  { %v3591_v7 = vmul.f32 0.35355338, %v3542_v23  ;;  %v8376_v18 = vsel %vm632_vm6, %v3590_v15, -1e+09  ;;  %vm9466_vm6 = vmmov %vm9432_vm8 }
 0xb59   :  { %3626 = vmax.xlane.f32.xlu0 %v8376_v18  ;;  %v8391_v61 = vsel %vm9463_vm3, %v3593_v13, -1e+09 }
 0xb5a   :  { %v8381_v55 = vsel %vm633_vm7, %v3591_v7, -1e+09  ;;  %v6244_v37 = vpop.f32.mrb[128].mxu1 }
 0xb5b   :  { %3628 = vmax.xlane.f32.xlu1 %v8381_v55  ;;  %v3371_v6 = vadd.f32 %v6244_v37, %v8437_v10  ;;  %v3362_v46 = vpop.f32.mrb[129].mxu1 }
 0xb5c   :  { %v6284_v20 = vpop.f32.mrb[168].mxu0  ;;  %v3363_v11 = vadd.f32 %v8437_v10, %v3362_v46  ;;  %v6245_v35 = vpop.f32.mrb[130].mxu1 }
 0xb5d   :  { %3630 = vmax.xlane.f32.xlu0 %v8386_v63  ;;  %v3555_v8 = vpop.f32.mrb[169].mxu0  ;;  %v3596_v9 = vmul.f32 0.35355338, %v6284_v20  ;;  %v3374_v30 = vadd.f32 %v6245_v35, %v8437_v10  ;;  %v3365_v59 = vpop.f32.mrb[131].mxu1 }
 0xb5e   :  { %v3594_v33 = vmul.f32 0.35355338, %v3555_v8  ;;  %v6285_v41 = vpop.f32.mrb[170].mxu0  ;;  %v3366_v50 = vadd.f32 %v8437_v10, %v3365_v59 }
 0xb5f   :  { %3632 = vmax.xlane.f32.xlu1 %v8391_v61  ;;  %v3558_v39 = vpop.f32.mrb[171].mxu0  ;;  %v3597_v43 = vmul.f32 0.35355338, %v6285_v41  ;;  %v8406_v58 = vsel %vm9465_vm5, %v3596_v9, -1e+09  ;;  %v3771_v3 = vpack.c.bf16 %v3374_v30, %v3371_v6 }
 0xb60   :  { %v3595_v14 = vmul.f32 0.35355338, %v3558_v39  ;;  %v8396_v52 = vsel %vm9464_vm4, %v3594_v33, -1e+09  ;;  %v3770_v49 = vpack.c.bf16 %v3366_v50, %v3363_v11 }
 0xb61   :  { %3634 = vmax.xlane.f32.xlu0 %v8396_v52  ;;  %v8411_v12 = vsel %vm9466_vm6, %v3597_v43, -1e+09 }
 0xb62   :  { %v8401_v57 = vsel %vm637_vm11, %v3595_v14, -1e+09  ;;  %v6248_v40 = vpop.f32.mrb[132].mxu1  ;;  %6290 = vmatprep.subr.bf16.mxu1 %v3770_v49 }
 0xb63   :  { %3636 = vmax.xlane.f32.xlu1 %v8401_v57  ;;  %v3387_v0 = vadd.f32 %v6248_v40, %v8437_v10  ;;  %v3378_v19 = vpop.f32.mrb[133].mxu1  ;;  %6291 = vmatpush3.bf16.msra.mxu1 %v3770_v49 }
 0xb64   :  { %v6288_v45 = vpop.f32.mrb[172].mxu0  ;;  %v3379_v38 = vadd.f32 %v8437_v10, %v3378_v19  ;;  %v6249_v4 = vpop.f32.mrb[134].mxu1  ;;  %6292 = vmatprep.subr.bf16.mxu1 %v3771_v3 }
 0xb65   :  { %3638 = vmax.xlane.f32.xlu0 %v8406_v58  ;;  %v3571_v48 = vpop.f32.mrb[173].mxu0  ;;  %v3600_v44 = vmul.f32 0.35355338, %v6288_v45  ;;  %v3390_v47 = vadd.f32 %v6249_v4, %v8437_v10  ;;  %v3381_v54 = vpop.f32.mrb[135].mxu1 }
 0xb66   :  { %v3598_v53 = vmul.f32 0.35355338, %v3571_v48  ;;  %v6289_v2 = vpop.f32.mrb[174].mxu0  ;;  %v3382_v32 = vadd.f32 %v8437_v10, %v3381_v54 }
 0xb67   :  { %3640 = vmax.xlane.f32.xlu1 %v8411_v12  ;;  %v3574_v56 = vpop.f32.mrb[175].mxu0  ;;  %v3601_v62 = vmul.f32 0.35355338, %v6289_v2  ;;  %v8426_v28 = vsel %vm642_vm13, %v3600_v44, -1e+09  ;;  %v3773_v21 = vpack.c.bf16 %v3390_v47, %v3387_v0  ;;  %6293 = vmatpush3.bf16.msra.mxu1 %v3771_v3 }
 0xb68   :  { %v3599_v60 = vmul.f32 0.35355338, %v3574_v56  ;;  %v8416_v22 = vsel %vm640_vm14, %v3598_v53, -1e+09  ;;  %v3772_v42 = vpack.c.bf16 %v3382_v32, %v3379_v38 }
 0xb69   :  { %3642 = vmax.xlane.f32.xlu0 %v8416_v22  ;;  %v8431_v26 = vsel %vm643_vm12, %v3601_v62, -1e+09 }
 0xb6a   :  { %v8421_v17 = vsel %vm641_vm15, %v3599_v60, -1e+09  ;;  %v6252_v51 = vpop.f32.mrb[136].mxu1  ;;  %6294 = vmatprep.subr.bf16.mxu1 %v3772_v42 }
 0xb6b   :  { %3644 = vmax.xlane.f32.xlu1 %v8421_v17  ;;  %v3403_v29 = vadd.f32 %v6252_v51, %v8437_v10  ;;  %v3394_v31 = vpop.f32.mrb[137].mxu1  ;;  %6295 = vmatpush3.bf16.msra.mxu1 %v3772_v42 }
 0xb6c   :  { %v3395_v15 = vadd.f32 %v8437_v10, %v3394_v31  ;;  %v6253_v16 = vpop.f32.mrb[138].mxu1  ;;  %6296 = vmatprep.subr.bf16.mxu1 %v3773_v21 }
 0xb6d   :  { %3646 = vmax.xlane.f32.xlu0 %v8426_v28  ;;  %v3406_v24 = vadd.f32 %v6253_v16, %v8437_v10  ;;  %v3397_v7 = vpop.f32.mrb[139].mxu1 }
 0xb6e   :  { %v3398_v8 = vadd.f32 %v8437_v10, %v3397_v7 }
 0xb6f   :  { %3648 = vmax.xlane.f32.xlu1 %v8431_v26  ;;  %v3775_v41 = vpack.c.bf16 %v3406_v24, %v3403_v29  ;;  %6297 = vmatpush3.bf16.msra.mxu1 %v3773_v21 }
 0xb70   :  { %v3774_v9 = vpack.c.bf16 %v3398_v8, %v3395_v15 }
 0xb72   :  { %v6256_v48 = vpop.f32.mrb[140].mxu1  ;;  %6298 = vmatprep.subr.bf16.mxu1 %v3774_v9 }
 0xb73   :  { %v8456_v2 = vpop.f32.mrb[141].mxu1  ;;  %6299 = vmatpush3.bf16.msra.mxu1 %v3774_v9 }
 0xb74   :  { %v6257_v60 = vpop.f32.mrb[142].mxu1  ;;  %6300 = vmatprep.subr.bf16.mxu1 %v3775_v41 }
 0xb75   :  { %v3422_v62 = vadd.f32 %v6257_v60, %v8437_v10 }
 0xb77   :  { %6301 = vmatpush3.bf16.msra.mxu1 %v3775_v41 }
 0xbde   :  { %v3619_v34 = vpop.xlane.xlu0 %3618 }
 0xbdf   :  { %v3650_v5 = vsub.f32 %v8356_v27, %v3619_v34 }
 0xbe0   :  { %v3621_v23 = vpop.xlane.xlu1 %3620 }
 0xbe1   :  { %v3666_v13 = vmul.f32 1.442695, %v3650_v5  ;;  %v3651_v20 = vsub.f32 %v8361_v25, %v3621_v23  ;;  %v3419_v25 = vadd.f32 %v6256_v48, %v8437_v10 }
 0xbe2   :  { %v3623_v33 = vpop.xlane.xlu0 %3622 }
 0xbe3   :  { %6673 = vpow2.f32 %v3666_v13  ;;  %v3668_v39 = vmul.f32 1.442695, %v3651_v20  ;;  %v3652_v27 = vsub.f32 %v8366_v36, %v3623_v33  ;;  %v8461_v46 = vpack.c.bf16 %v3422_v62, %v3419_v25  ;;  %v3413_v13 = vpop.f32.mrb[143].mxu1 }
 0xbe4   :  { %v3625_v14 = vpop.xlane.xlu1 %3624  ;;  %v3414_v33 = vadd.f32 %v8437_v10, %v3413_v13 }
 0xbe5   :  { %6675 = vpow2.f32 %v3668_v39  ;;  %v3670_v43 = vmul.f32 1.442695, %v3652_v27  ;;  %v3653_v45 = vsub.f32 %v8371_v1, %v3625_v14 }
 0xbe6   :  { %v3627_v53 = vpop.xlane.xlu0 %3626 }
 0xbe7   :  { %6677 = vpow2.f32 %v3670_v43  ;;  %v3672_v56 = vmul.f32 1.442695, %v3653_v45  ;;  %v3654_v44 = vsub.f32 %v8376_v18, %v3627_v53  ;;  %v5364_v45 = vld [vmem:[%s9350_s5 + $0x18] sm:$0xff] }
 0xbe8   :  { %v3629_v36 = vpop.xlane.xlu1 %3628  ;;  %6322 = vmatprep.subr.mxu0 %v5364_v45 }
 0xbe9   :  { %6679 = vpow2.f32 %v3672_v56  ;;  %v3674_v37 = vmul.f32 1.442695, %v3654_v44  ;;  %v3655_v1 = vsub.f32 %v8381_v55, %v3629_v36  ;;  %6323 = vmatpush3.msra.mxu0 %v5364_v45 }
 0xbea   :  { %v3631_v6 = vpop.xlane.xlu0 %3630 }
 0xbeb   :  { %6681 = vpow2.f32 %v3674_v37  ;;  %v3676_v11 = vmul.f32 1.442695, %v3655_v1  ;;  %v3656_v35 = vsub.f32 %v8386_v63, %v3631_v6 }
 0xbec   :  { %v3633_v30 = vpop.xlane.xlu1 %3632 }
 0xbed   :  { %v8464_v59 = vpop.eup %6673  ;;  %6683 = vpow2.f32 %v3676_v11  ;;  %v3678_v18 = vmul.f32 1.442695, %v3656_v35  ;;  %v3657_v50 = vsub.f32 %v8391_v61, %v3633_v30 }
 0xbee   :  { %v3635_v3 = vpop.xlane.xlu0 %3634  ;;  %3698 = vadd.xlane.f32.xlu0 %v8464_v59 }
 0xbef   :  { %v8468_v49 = vpop.eup %6675  ;;  %6685 = vpow2.f32 %v3678_v18  ;;  %v3680_v55 = vmul.f32 1.442695, %v3657_v50  ;;  %v3658_v40 = vsub.f32 %v8396_v52, %v3635_v3 }
 0xbf0   :  { %v3637_v0 = vpop.xlane.xlu1 %3636  ;;  %3700 = vadd.xlane.f32.xlu1 %v8468_v49 }
 0xbf1   :  { %v8472_v63 = vpop.eup %6677  ;;  %6687 = vpow2.f32 %v3680_v55  ;;  %v3682_v19 = vmul.f32 1.442695, %v3658_v40  ;;  %v3659_v38 = vsub.f32 %v8401_v57, %v3637_v0 }
 0xbf2   :  { %v3639_v4 = vpop.xlane.xlu0 %3638  ;;  %3702 = vadd.xlane.f32.xlu0 %v8472_v63 }
 0xbf3   :  { %v8476_v61 = vpop.eup %6679  ;;  %6689 = vpow2.f32 %v3682_v19  ;;  %v3684_v47 = vmul.f32 1.442695, %v3659_v38  ;;  %v3660_v54 = vsub.f32 %v8406_v58, %v3639_v4 }
 0xbf4   :  { %v3641_v32 = vpop.xlane.xlu1 %3640  ;;  %3704 = vadd.xlane.f32.xlu1 %v8476_v61 }
 0xbf5   :  { %v8480_v52 = vpop.eup %6681  ;;  %6691 = vpow2.f32 %v3684_v47  ;;  %v3686_v21 = vmul.f32 1.442695, %v3660_v54  ;;  %v3661_v42 = vsub.f32 %v8411_v12, %v3641_v32 }
 0xbf6   :  { %3706 = vadd.xlane.f32.xlu0 %v8480_v52  ;;  %v3643_v57 = vpop.xlane.xlu0 %3642 }
 0xbf7   :  { %v8484_v51 = vpop.eup %6683  ;;  %6693 = vpow2.f32 %v3686_v21  ;;  %v3688_v34 = vmul.f32 1.442695, %v3661_v42  ;;  %v3662_v29 = vsub.f32 %v8416_v22, %v3643_v57  ;;  %v3411_v22 = vadd.f32 %v8437_v10, %v8456_v2 }
 0xbf8   :  { %3708 = vadd.xlane.f32.xlu1 %v8484_v51  ;;  %v3645_v58 = vpop.xlane.xlu1 %3644 }
 0xbf9   :  { %v8488_v31 = vpop.eup %6685  ;;  %6695 = vpow2.f32 %v3688_v34  ;;  %v3690_v5 = vmul.f32 1.442695, %v3662_v29  ;;  %v3663_v15 = vsub.f32 %v8421_v17, %v3645_v58  ;;  %v3776_v39 = vpack.c.bf16 %v3414_v33, %v3411_v22 }
 0xbfa   :  { %3710 = vadd.xlane.f32.xlu0 %v8488_v31  ;;  %v3647_v12 = vpop.xlane.xlu0 %3646 }
 0xbfb   :  { %v8492_v16 = vpop.eup %6687  ;;  %6697 = vpow2.f32 %v3690_v5  ;;  %v3692_v23 = vmul.f32 1.442695, %v3663_v15  ;;  %v3664_v24 = vsub.f32 %v8426_v28, %v3647_v12  ;;  %6302 = vmatprep.subr.bf16.mxu1 %v3776_v39 }
 0xbfc   :  { %3712 = vadd.xlane.f32.xlu1 %v8492_v16  ;;  %v3649_v7 = vpop.xlane.xlu1 %3648  ;;  %6303 = vmatpush3.bf16.msra.mxu1 %v3776_v39 }
 0xbfd   :  { %v8498_v20 = vpop.eup %6689  ;;  %6699 = vpow2.f32 %v3692_v23  ;;  %v3694_v17 = vmul.f32 1.442695, %v3664_v24  ;;  %v3665_v8 = vsub.f32 %v8431_v26, %v3649_v7  ;;  %6304 = vmatprep.subr.bf16.mxu1 %v8461_v46 }
 0xbfe   :  { %3714 = vadd.xlane.f32.xlu0 %v8498_v20 }
 0xbff   :  { %v8503_v41 = vpop.eup %6691  ;;  %6701 = vpow2.f32 %v3694_v17  ;;  %v3696_v28 = vmul.f32 1.442695, %v3665_v8 }
 0xc00   :  { %3716 = vadd.xlane.f32.xlu1 %v8503_v41  ;;  %6305 = vmatpush3.bf16.msra.mxu1 %v8461_v46 }
 0xc01   :  { %v8506_v27 = vpop.eup %6693  ;;  %6703 = vpow2.f32 %v3696_v28 }
 0xc02   :  { %3718 = vadd.xlane.f32.xlu0 %v8506_v27 }
 0xc03   :  { %v8509_v9 = vpop.eup %6695 }
 0xc04   :  { %3720 = vadd.xlane.f32.xlu1 %v8509_v9 }
 0xc05   :  { %v8513_v26 = vpop.eup %6697 }
 0xc06   :  { %3722 = vadd.xlane.f32.xlu0 %v8513_v26 }
 0xc07   :  { %v8517_v10 = vpop.eup %6699 }
 0xc08   :  { %3724 = vadd.xlane.f32.xlu1 %v8517_v10 }
 0xc09   :  { %v8520_v14 = vpop.eup %6701 }
 0xc0a   :  { %3726 = vadd.xlane.f32.xlu0 %v8520_v14 }
 0xc0b   :  { %v8523_v43 = vpop.eup %6703 }
 0xc0c   :  { %3728 = vadd.xlane.f32.xlu1 %v8523_v43 }
 0xc7b   :  { %v3699_v48 = vpop.xlane.xlu0 %3698 }
 0xc7c   :  { %6705 = vrcp.f32 %v3699_v48 }
 0xc7d   :  { %v3701_v53 = vpop.xlane.xlu1 %3700 }
 0xc7e   :  { %6707 = vrcp.f32 %v3701_v53 }
 0xc7f   :  { %v3703_v25 = vpop.xlane.xlu0 %3702 }
 0xc80   :  { %6709 = vrcp.f32 %v3703_v25 }
 0xc81   :  { %v3705_v2 = vpop.xlane.xlu1 %3704 }
 0xc82   :  { %6711 = vrcp.f32 %v3705_v2 }
 0xc83   :  { %v3707_v56 = vpop.xlane.xlu0 %3706 }
 0xc84   :  { %6713 = vrcp.f32 %v3707_v56 }
 0xc85   :  { %v3709_v44 = vpop.xlane.xlu1 %3708 }
 0xc86   :  { %v6706_v60 = vpop.eup %6705  ;;  %6715 = vrcp.f32 %v3709_v44 }
 0xc87   :  { %v3711_v36 = vpop.xlane.xlu0 %3710  ;;  %v3746_v1 = vmul.f32 %v6706_v60, %v8464_v59 }
 0xc88   :  { %v6708_v62 = vpop.eup %6707  ;;  %6717 = vrcp.f32 %v3711_v36 }
 0xc89   :  { %v3713_v37 = vpop.xlane.xlu1 %3712  ;;  %v3747_v6 = vmul.f32 %v6708_v62, %v8468_v49  ;;  %v8564_v62 = vld [vmem:[%s9351_s6] ss:$0 sm:$0xff] }
 0xc8a   :  { %v6710_v46 = vpop.eup %6709  ;;  %6719 = vrcp.f32 %v3713_v37 }
 0xc8b   :  { %v3715_v11 = vpop.xlane.xlu0 %3714  ;;  %v3762_v35 = vpack.c.bf16 %v3747_v6, %v3746_v1  ;;  %v3748_v18 = vmul.f32 %v6710_v46, %v8472_v63 }
 0xc8c   :  { %v6712_v30 = vpop.eup %6711  ;;  %6721 = vrcp.f32 %v3715_v11  ;;  %v6801_v11 = vld [vmem:[%s9347_s0 + $0x8] sm:$0xff] }
 0xc8d   :  { %v3749_v50 = vmul.f32 %v6712_v30, %v8476_v61  ;;  %6306 = vmatprep.mubr.bf16.mxu1 %v3762_v35  ;;  %v3717_v3 = vpop.xlane.xlu1 %3716  ;;  %v6802_v30 = vld [vmem:[%s9347_s0] sm:$0xff] }
 0xc8e   :  { %v6714_v55 = vpop.eup %6713  ;;  %6723 = vrcp.f32 %v3717_v3 }
 0xc8f   :  { %v3719_v40 = vpop.xlane.xlu0 %3718  ;;  %v3763_v0 = vpack.c.bf16 %v3749_v50, %v3748_v18  ;;  %v3750_v49 = vmul.f32 %v6714_v55, %v8480_v52 }
 0xc90   :  { %v6716_v19 = vpop.eup %6715  ;;  %6725 = vrcp.f32 %v3719_v40 }
 0xc91   :  { %6307 = vmatmul.mubr.bf16.vlgmr.msra.gmra.mrb[144].mxu1 %v3763_v0  ;;  %v3721_v59 = vpop.xlane.xlu1 %3720  ;;  %v3751_v38 = vmul.f32 %v6716_v19, %v8484_v51 }
 0xc92   :  { %v6718_v4 = vpop.eup %6717  ;;  %6727 = vrcp.f32 %v3721_v59  ;;  %v6803_v59 = vld [vmem:[%s9347_s0 + $0x18] sm:$0xff] }
 0xc93   :  { %v3723_v47 = vpop.xlane.xlu0 %3722  ;;  %v3764_v63 = vpack.c.bf16 %v3751_v38, %v3750_v49  ;;  %v3752_v32 = vmul.f32 %v6718_v4, %v8488_v31  ;;  %v6804_v38 = vld [vmem:[%s9347_s0 + $0x10] sm:$0xff] }
 0xc94   :  { %v6720_v54 = vpop.eup %6719  ;;  %6729 = vrcp.f32 %v3723_v47 }
 0xc95   :  { %6310 = vmatprep.mubr.bf16.mxu1 %v3764_v63  ;;  %v3725_v61 = vpop.xlane.xlu1 %3724  ;;  %v3753_v21 = vmul.f32 %v6720_v54, %v8492_v16 }
 0xc96   :  { %v6722_v42 = vpop.eup %6721  ;;  %6731 = vrcp.f32 %v3725_v61 }
 0xc97   :  { %v3727_v57 = vpop.xlane.xlu0 %3726  ;;  %v3765_v34 = vpack.c.bf16 %v3753_v21, %v3752_v32  ;;  %v3754_v51 = vmul.f32 %v6722_v42, %v8498_v20  ;;  %v6805_v42 = vld [vmem:[%s9347_s0 + $0x28] sm:$0xff] }
 0xc98   :  { %v6724_v29 = vpop.eup %6723  ;;  %6733 = vrcp.f32 %v3727_v57 }
 0xc99   :  { %6311 = vmatmul.mubr.bf16.gmra.mrb[148].mxu1 %v3765_v34  ;;  %v3729_v52 = vpop.xlane.xlu1 %3728  ;;  %v3755_v58 = vmul.f32 %v6724_v29, %v8503_v41  ;;  %v6806_v34 = vld [vmem:[%s9347_s0 + $0x20] sm:$0xff] }
 0xc9a   :  { %v6726_v5 = vpop.eup %6725  ;;  %6735 = vrcp.f32 %v3729_v52 }
 0xc9b   :  { %v3766_v15 = vpack.c.bf16 %v3755_v58, %v3754_v51  ;;  %v3756_v31 = vmul.f32 %v6726_v5, %v8506_v27 }
 0xc9c   :  { %v6728_v12 = vpop.eup %6727 }
 0xc9d   :  { %6314 = vmatprep.mubr.bf16.mxu1 %v3766_v15  ;;  %v3757_v16 = vmul.f32 %v6728_v12, %v8509_v9 }
 0xc9e   :  { %v6730_v23 = vpop.eup %6729 }
 0xc9f   :  { %v3767_v24 = vpack.c.bf16 %v3757_v16, %v3756_v31  ;;  %v3758_v7 = vmul.f32 %v6730_v23, %v8513_v26  ;;  %v6807_v31 = vld [vmem:[%s9347_s0 + $0x38] sm:$0xff]  ;;  %v6808_v23 = vld [vmem:[%s9347_s0 + $0x30] sm:$0xff] }
 0xca0   :  { %v6732_v22 = vpop.eup %6731 }
 0xca1   :  { %6315 = vmatmul.mubr.bf16.gmra.mrb[152].mxu1 %v3767_v24  ;;  %v3759_v13 = vmul.f32 %v6732_v22, %v8517_v10 }
 0xca2   :  { %v6734_v20 = vpop.eup %6733 }
 0xca3   :  { %v3768_v17 = vpack.c.bf16 %v3759_v13, %v3758_v7  ;;  %v3760_v33 = vmul.f32 %v6734_v20, %v8520_v14 }
 0xca4   :  { %v6736_v8 = vpop.eup %6735 }
 0xca5   :  { %6318 = vmatprep.mubr.bf16.mxu1 %v3768_v17  ;;  %v3761_v41 = vmul.f32 %v6736_v8, %v8523_v43 }
 0xca7   :  { %v3769_v28 = vpack.c.bf16 %v3761_v41, %v3760_v33  ;;  %v6809_v33 = vld [vmem:[%s9347_s0 + $0x48] sm:$0xff] }
 0xca9   :  { %6319 = vmatmul.mubr.bf16.gmra.mrb[156].mxu1 %v3769_v28  ;;  %v6810_v28 = vld [vmem:[%s9347_s0 + $0x40] sm:$0xff] }
 0xd64   :  { %v6308_v39 = vpop.f32.mrb[144].mxu1 }
 0xd65   :  { %v3812_v27 = vpop.f32.mrb[145].mxu1 }
 0xd66   :  { %v6309_v9 = vpop.f32.mrb[146].mxu1  ;;  %6324 = vmatprep.mubr.msk.f32.mxu0 %vm466_vm1, %v3812_v27 }
 0xd67   :  { %v3815_v45 = vpop.f32.mrb[147].mxu1 }
 0xd68   :  { %6325 = vmatmul.mubr.msk.f32.vlgmr.msra.gmra.mrb[96].mxu0 %vm466_vm1, %v3815_v45 }
 0xd69   :  { %6327 = vmatprep.mubr.msk.f32.mxu0 %vm466_vm1, %v6308_v39 }
 0xd6c   :  { %v6312_v26 = vpop.f32.mrb[148].mxu1  ;;  %6328 = vmatmul.mubr.msk.f32.gmra.mrb[98].mxu0 %vm466_vm1, %v6309_v9 }
 0xd6d   :  { %v3828_v10 = vpop.f32.mrb[149].mxu1 }
 0xd6e   :  { %v6313_v48 = vpop.f32.mrb[150].mxu1  ;;  %6330 = vmatprep.mubr.msk.f32.mxu0 %vm466_vm1, %v3828_v10 }
 0xd6f   :  { %v3831_v14 = vpop.f32.mrb[151].mxu1 }
 0xd70   :  { %6331 = vmatmul.mubr.msk.f32.gmra.mrb[100].mxu0 %vm466_vm1, %v3831_v14  ;;  %v6811_v14 = vld [vmem:[%s9347_s0 + $0x58] sm:$0xff] }
 0xd71   :  { %6333 = vmatprep.mubr.msk.f32.mxu0 %vm466_vm1, %v6312_v26 }
 0xd74   :  { %v6316_v43 = vpop.f32.mrb[152].mxu1  ;;  %6334 = vmatmul.mubr.msk.f32.gmra.mrb[102].mxu0 %vm466_vm1, %v6313_v48 }
 0xd75   :  { %v3844_v53 = vpop.f32.mrb[153].mxu1 }
 0xd76   :  { %v6317_v25 = vpop.f32.mrb[154].mxu1  ;;  %6336 = vmatprep.mubr.msk.f32.mxu0 %vm466_vm1, %v3844_v53  ;;  %v6812_v53 = vld [vmem:[%s9347_s0 + $0x50] sm:$0xff] }
 0xd77   :  { %v3847_v2 = vpop.f32.mrb[155].mxu1 }
 0xd78   :  { %6337 = vmatmul.mubr.msk.f32.gmra.mrb[104].mxu0 %vm466_vm1, %v3847_v2 }
 0xd79   :  { %6339 = vmatprep.mubr.msk.f32.mxu0 %vm466_vm1, %v6316_v43 }
 0xd7c   :  { %v6320_v56 = vpop.f32.mrb[156].mxu1  ;;  %6340 = vmatmul.mubr.msk.f32.gmra.mrb[106].mxu0 %vm466_vm1, %v6317_v25 }
 0xd7d   :  { %v3860_v44 = vpop.f32.mrb[157].mxu1 }
 0xd7e   :  { %v6321_v60 = vpop.f32.mrb[158].mxu1  ;;  %6342 = vmatprep.mubr.msk.f32.mxu0 %vm466_vm1, %v3860_v44 }
 0xd7f   :  { %v3863_v36 = vpop.f32.mrb[159].mxu1 }
 0xd80   :  { %6343 = vmatmul.mubr.msk.f32.gmra.mrb[108].mxu0 %vm466_vm1, %v3863_v36 }
 0xd81   :  { %6345 = vmatprep.mubr.msk.f32.mxu0 %vm466_vm1, %v6320_v56 }
 0xd84   :  { %6346 = vmatmul.mubr.msk.f32.gmra.mrb[110].mxu0 %vm466_vm1, %v6321_v60  ;;  %vm4595_vm1 = vcmask 523264  }
 0xe3b   :  { %v6326_v37 = vpop.f32.mrb[96].mxu0 }
 0xe3c   :  { %v4094_v1 = vadd.f32 %v6326_v37, %v8564_v62  ;;  %v3991_v6 = vpop.f32.mrb[97].mxu0 }
 0xe3d   :  { %v4093_v46 = vadd.f32 %v8564_v62, %v3991_v6 }
 0xe3e   :  { %v8571_v35 = vadd.f32 %v6801_v11, %v4094_v1  ;;  %v6813_v1 = vld [vmem:[%s9347_s0 + $0x68] sm:$0xff] }
 0xe3f   :  { %v8576_v18 = vadd.f32 %v6802_v30, %v4093_v46  ;;  %v6329_v50 = vpop.f32.mrb[98].mxu0  ;;  %v6814_v46 = vld [vmem:[%s9347_s0 + $0x60] sm:$0xff] }
 0xe40   :  { %v4096_v3 = vadd.f32 %v6329_v50, %v8564_v62  ;;  %v4001_v55 = vpop.f32.mrb[99].mxu0  ;;  %v4130_v40 = vsel %vm104_vm0, %v8571_v35, 0.0 }
 0xe41   :  { %v4095_v0 = vadd.f32 %v8564_v62, %v4001_v55  ;;  %4131 = vadd.xlane.f32.xlu1 %v4130_v40  ;;  %v4127_v19 = vsel %vm104_vm0, %v8576_v18, 0.0 }
 0xe42   :  { %v8587_v49 = vadd.f32 %v6803_v59, %v4096_v3  ;;  %4128 = vadd.xlane.f32.xlu0 %v4127_v19  ;;  %v6815_v19 = vld [vmem:[%s9347_s0 + $0x78] sm:$0xff] }
 0xe43   :  { %v8592_v4 = vadd.f32 %v6804_v38, %v4095_v0  ;;  %v6332_v47 = vpop.f32.mrb[100].mxu0  ;;  %v6816_v38 = vld [vmem:[%s9347_s0 + $0x70] sm:$0xff] }
 0xe44   :  { %v4098_v63 = vadd.f32 %v6332_v47, %v8564_v62  ;;  %v4011_v54 = vpop.f32.mrb[101].mxu0  ;;  %v4136_v61 = vsel %vm104_vm0, %v8587_v49, 0.0 }
 0xe45   :  { %v4097_v32 = vadd.f32 %v8564_v62, %v4011_v54  ;;  %4137 = vadd.xlane.f32.xlu1 %v4136_v61  ;;  %v4133_v21 = vsel %vm104_vm0, %v8592_v4, 0.0  ;;  %v6475_v54 = vld [vmem:[%s9352_s9] sm:$0xff]  }
 0xe46   :  { %v8603_v57 = vadd.f32 %v6805_v42, %v4098_v63  ;;  %4134 = vadd.xlane.f32.xlu0 %v4133_v21  ;;  %6348 = vmatprep.subr.bf16.mxu1 %v6475_v54 }
 0xe47   :  { %v8608_v29 = vadd.f32 %v6806_v34, %v4097_v32  ;;  %v6335_v52 = vpop.f32.mrb[102].mxu0  ;;  %6349 = vmatpush3.bf16.msra.mxu1 %v6475_v54 }
 0xe48   :  { %v4100_v51 = vadd.f32 %v6335_v52, %v8564_v62  ;;  %v4021_v58 = vpop.f32.mrb[103].mxu0  ;;  %v4142_v5 = vsel %vm104_vm0, %v8603_v57, 0.0 }
 0xe49   :  { %v4099_v15 = vadd.f32 %v8564_v62, %v4021_v58  ;;  %4143 = vadd.xlane.f32.xlu1 %v4142_v5  ;;  %v4139_v12 = vsel %vm104_vm0, %v8608_v29, 0.0 }
 0xe4a   :  { %v8619_v16 = vadd.f32 %v6807_v31, %v4100_v51  ;;  %4140 = vadd.xlane.f32.xlu0 %v4139_v12 }
 0xe4b   :  { %v8624_v24 = vadd.f32 %v6808_v23, %v4099_v15  ;;  %v6338_v22 = vpop.f32.mrb[104].mxu0 }
 0xe4c   :  { %v4102_v7 = vadd.f32 %v6338_v22, %v8564_v62  ;;  %v4031_v13 = vpop.f32.mrb[105].mxu0  ;;  %v4148_v20 = vsel %vm104_vm0, %v8619_v16, 0.0 }
 0xe4d   :  { %v4101_v17 = vadd.f32 %v8564_v62, %v4031_v13  ;;  %4149 = vadd.xlane.f32.xlu1 %v4148_v20  ;;  %v4145_v8 = vsel %vm104_vm0, %v8624_v24, 0.0 }
 0xe4e   :  { %v8635_v41 = vadd.f32 %v6809_v33, %v4102_v7  ;;  %4146 = vadd.xlane.f32.xlu0 %v4145_v8 }
 0xe4f   :  { %v8640_v39 = vadd.f32 %v6810_v28, %v4101_v17  ;;  %v6341_v27 = vpop.f32.mrb[106].mxu0 }
 0xe50   :  { %v4104_v9 = vadd.f32 %v6341_v27, %v8564_v62  ;;  %v4041_v45 = vpop.f32.mrb[107].mxu0  ;;  %v4154_v26 = vsel %vm104_vm0, %v8635_v41, 0.0 }
 0xe51   :  { %v4103_v10 = vadd.f32 %v8564_v62, %v4041_v45  ;;  %4155 = vadd.xlane.f32.xlu1 %v4154_v26  ;;  %v4151_v48 = vsel %vm104_vm0, %v8640_v39, 0.0 }
 0xe52   :  { %v8651_v43 = vadd.f32 %v6811_v14, %v4104_v9  ;;  %4152 = vadd.xlane.f32.xlu0 %v4151_v48 }
 0xe53   :  { %v8656_v25 = vadd.f32 %v6812_v53, %v4103_v10  ;;  %v6344_v2 = vpop.f32.mrb[108].mxu0 }
 0xe54   :  { %v4106_v56 = vadd.f32 %v6344_v2, %v8564_v62  ;;  %v4051_v44 = vpop.f32.mrb[109].mxu0  ;;  %v4160_v60 = vsel %vm104_vm0, %v8651_v43, 0.0 }
 0xe55   :  { %v4105_v36 = vadd.f32 %v8564_v62, %v4051_v44  ;;  %4161 = vadd.xlane.f32.xlu1 %v4160_v60  ;;  %v4157_v37 = vsel %vm104_vm0, %v8656_v25, 0.0 }
 0xe56   :  { %v8667_v6 = vadd.f32 %v6813_v1, %v4106_v56  ;;  %4158 = vadd.xlane.f32.xlu0 %v4157_v37 }
 0xe57   :  { %v8672_v11 = vadd.f32 %v6814_v46, %v4105_v36  ;;  %v6347_v30 = vpop.f32.mrb[110].mxu0 }
 0xe58   :  { %v4108_v50 = vadd.f32 %v6347_v30, %v8564_v62  ;;  %v4061_v3 = vpop.f32.mrb[111].mxu0  ;;  %v4166_v55 = vsel %vm104_vm0, %v8667_v6, 0.0 }
 0xe59   :  { %v4107_v40 = vadd.f32 %v8564_v62, %v4061_v3  ;;  %4167 = vadd.xlane.f32.xlu1 %v4166_v55  ;;  %v4163_v0 = vsel %vm104_vm0, %v8672_v11, 0.0 }
 0xe5a   :  { %v8683_v59 = vadd.f32 %v6815_v19, %v4108_v50  ;;  %4164 = vadd.xlane.f32.xlu0 %v4163_v0 }
 0xe5b   :  { %v8688_v47 = vadd.f32 %v6816_v38, %v4107_v40 }
 0xe5c   :  { %v4172_v62 = vsel %vm104_vm0, %v8683_v59, 0.0 }
 0xe5d   :  { %4173 = vadd.xlane.f32.xlu1 %v4172_v62  ;;  %v4169_v63 = vsel %vm104_vm0, %v8688_v47, 0.0 }
 0xe5e   :  { %4170 = vadd.xlane.f32.xlu0 %v4169_v63 }
 0xece   :  { %v4132_v61 = vpop.xlane.xlu1 %4131 }
 0xecf   :  { %v4177_v32 = vmul.f32 0.03125, %v4132_v61  ;;  %v4129_v21 = vpop.xlane.xlu0 %4128 }
 0xed0   :  { %v4176_v42 = vmul.f32 0.03125, %v4129_v21 }
 0xed1   :  { %v8698_v34 = vsub.f32 %v8571_v35, %v4177_v32 }
 0xed2   :  { %v8701_v52 = vsub.f32 %v8576_v18, %v4176_v42  ;;  %v4138_v51 = vpop.xlane.xlu1 %4137 }
 0xed3   :  { %v4179_v58 = vmul.f32 0.03125, %v4138_v51  ;;  %v4135_v5 = vpop.xlane.xlu0 %4134  ;;  %v4209_v15 = vmul.f32 %v8698_v34, %v8698_v34 }
 0xed4   :  { %v4178_v12 = vmul.f32 0.03125, %v4135_v5  ;;  %v4208_v31 = vmul.f32 %v8701_v52, %v8701_v52 }
 0xed5   :  { %v8708_v23 = vsub.f32 %v8587_v49, %v4179_v58  ;;  %v4227_v22 = vsel %vm104_vm0, %v4209_v15, 0.0 }
 0xed6   :  { %v8712_v35 = vsub.f32 %v8592_v4, %v4178_v12  ;;  %4228 = vadd.xlane.f32.xlu1 %v4227_v22  ;;  %v4144_v18 = vpop.xlane.xlu1 %4143  ;;  %v4224_v7 = vsel %vm104_vm0, %v4208_v31, 0.0 }
 0xed7   :  { %v4181_v13 = vmul.f32 0.03125, %v4144_v18  ;;  %v4141_v20 = vpop.xlane.xlu0 %4140  ;;  %4225 = vadd.xlane.f32.xlu0 %v4224_v7  ;;  %v4211_v17 = vmul.f32 %v8708_v23, %v8708_v23 }
 0xed8   :  { %v4180_v8 = vmul.f32 0.03125, %v4141_v20  ;;  %v4210_v49 = vmul.f32 %v8712_v35, %v8712_v35 }
 0xed9   :  { %v8720_v33 = vsub.f32 %v8603_v57, %v4181_v13  ;;  %v4233_v4 = vsel %vm104_vm0, %v4211_v17, 0.0 }
 0xeda   :  { %v8724_v28 = vsub.f32 %v8608_v29, %v4180_v8  ;;  %4234 = vadd.xlane.f32.xlu1 %v4233_v4  ;;  %v4150_v27 = vpop.xlane.xlu1 %4149  ;;  %v4230_v9 = vsel %vm104_vm0, %v4210_v49, 0.0  ;;  %v8799_v49 = vld [vmem:[%s9353_s11] sm:$0xff]  }
 0xedb   :  { %v4183_v45 = vmul.f32 0.03125, %v4150_v27  ;;  %v4147_v26 = vpop.xlane.xlu0 %4146  ;;  %4231 = vadd.xlane.f32.xlu0 %v4230_v9  ;;  %v4213_v10 = vmul.f32 %v8720_v33, %v8720_v33 }
 0xedc   :  { %v4182_v48 = vmul.f32 0.03125, %v4147_v26  ;;  %v4212_v57 = vmul.f32 %v8724_v28, %v8724_v28 }
 0xedd   :  { %v8732_v14 = vsub.f32 %v8619_v16, %v4183_v45  ;;  %v4239_v29 = vsel %vm104_vm0, %v4213_v10, 0.0 }
 0xede   :  { %v8736_v53 = vsub.f32 %v8624_v24, %v4182_v48  ;;  %4240 = vadd.xlane.f32.xlu1 %v4239_v29  ;;  %v4156_v2 = vpop.xlane.xlu1 %4155  ;;  %v4236_v56 = vsel %vm104_vm0, %v4212_v57, 0.0 }
 0xedf   :  { %v4185_v44 = vmul.f32 0.03125, %v4156_v2  ;;  %v4153_v60 = vpop.xlane.xlu0 %4152  ;;  %4237 = vadd.xlane.f32.xlu0 %v4236_v56  ;;  %v4215_v36 = vmul.f32 %v8732_v14, %v8732_v14 }
 0xee0   :  { %v4184_v37 = vmul.f32 0.03125, %v4153_v60  ;;  %v4214_v16 = vmul.f32 %v8736_v53, %v8736_v53 }
 0xee1   :  { %v8744_v1 = vsub.f32 %v8635_v41, %v4185_v44  ;;  %v4245_v24 = vsel %vm104_vm0, %v4215_v36, 0.0 }
 0xee2   :  { %v8748_v46 = vsub.f32 %v8640_v39, %v4184_v37  ;;  %4246 = vadd.xlane.f32.xlu1 %v4245_v24  ;;  %v4162_v30 = vpop.xlane.xlu1 %4161  ;;  %v4242_v50 = vsel %vm104_vm0, %v4214_v16, 0.0 }
 0xee3   :  { %v4187_v3 = vmul.f32 0.03125, %v4162_v30  ;;  %v4159_v55 = vpop.xlane.xlu0 %4158  ;;  %4243 = vadd.xlane.f32.xlu0 %v4242_v50  ;;  %v4217_v40 = vmul.f32 %v8744_v1, %v8744_v1 }
 0xee4   :  { %v4186_v0 = vmul.f32 0.03125, %v4159_v55  ;;  %v4216_v41 = vmul.f32 %v8748_v46, %v8748_v46 }
 0xee5   :  { %v8756_v19 = vsub.f32 %v8651_v43, %v4187_v3  ;;  %v4251_v39 = vsel %vm104_vm0, %v4217_v40, 0.0 }
 0xee6   :  { %v8760_v38 = vsub.f32 %v8656_v25, %v4186_v0  ;;  %4252 = vadd.xlane.f32.xlu1 %v4251_v39  ;;  %v4168_v62 = vpop.xlane.xlu1 %4167  ;;  %v4248_v63 = vsel %vm104_vm0, %v4216_v41, 0.0  ;;  %v8805_v41 = vld [vmem:[%s9354_s7] ss:$0 sm:$0xff] }
 0xee7   :  { %v4189_v54 = vmul.f32 0.03125, %v4168_v62  ;;  %v4165_v61 = vpop.xlane.xlu0 %4164  ;;  %4249 = vadd.xlane.f32.xlu0 %v4248_v63  ;;  %v4219_v32 = vmul.f32 %v8756_v19, %v8756_v19 }
 0xee8   :  { %v4188_v21 = vmul.f32 0.03125, %v4165_v61  ;;  %v4218_v43 = vmul.f32 %v8760_v38, %v8760_v38 }
 0xee9   :  { %v8768_v42 = vsub.f32 %v8667_v6, %v4189_v54  ;;  %v4257_v25 = vsel %vm104_vm0, %v4219_v32, 0.0 }
 0xeea   :  { %v8772_v51 = vsub.f32 %v8672_v11, %v4188_v21  ;;  %4258 = vadd.xlane.f32.xlu1 %v4257_v25  ;;  %v4174_v58 = vpop.xlane.xlu1 %4173  ;;  %v4254_v5 = vsel %vm104_vm0, %v4218_v43, 0.0  ;;  %v8812_v21 = vld [vmem:[%s9355_s8] ss:$0 sm:$0xff] }
 0xeeb   :  { %v4191_v15 = vmul.f32 0.03125, %v4174_v58  ;;  %4255 = vadd.xlane.f32.xlu0 %v4254_v5  ;;  %v4171_v12 = vpop.xlane.xlu0 %4170  ;;  %v4221_v31 = vmul.f32 %v8768_v42, %v8768_v42 }
 0xeec   :  { %v4190_v22 = vmul.f32 0.03125, %v4171_v12  ;;  %v4220_v6 = vmul.f32 %v8772_v51, %v8772_v51 }
 0xeed   :  { %v8780_v18 = vsub.f32 %v8683_v59, %v4191_v15  ;;  %v4263_v11 = vsel %vm104_vm0, %v4221_v31, 0.0 }
 0xeee   :  { %v8784_v7 = vsub.f32 %v8688_v47, %v4190_v22  ;;  %4264 = vadd.xlane.f32.xlu1 %v4263_v11  ;;  %v4260_v13 = vsel %vm104_vm0, %v4220_v6, 0.0  ;;  %v6476_v47 = vld [vmem:[%s9352_s9 + $0x8] sm:$0xff]  }
 0xeef   :  { %4261 = vadd.xlane.f32.xlu0 %v4260_v13  ;;  %v4223_v20 = vmul.f32 %v8780_v18, %v8780_v18  ;;  %6350 = vmatprep.subr.bf16.mxu1 %v6476_v47 }
 0xef0   :  { %v4222_v17 = vmul.f32 %v8784_v7, %v8784_v7  ;;  %6351 = vmatpush3.bf16.msra.mxu1 %v6476_v47 }
 0xef1   :  { %v4269_v8 = vsel %vm104_vm0, %v4223_v20, 0.0  ;;  %6368 = vmatprep.subr.bf16.mxu1 %v8799_v49 }
 0xef2   :  { %4270 = vadd.xlane.f32.xlu1 %v4269_v8  ;;  %v4266_v59 = vsel %vm104_vm0, %v4222_v17, 0.0 }
 0xef3   :  { %4267 = vadd.xlane.f32.xlu0 %v4266_v59 }
 0xf63   :  { %v4229_v4 = vpop.xlane.xlu1 %4228 }
 0xf64   :  { %v4273_v27 = vmul.f32 0.03125, %v4229_v4  ;;  %v4226_v9 = vpop.xlane.xlu0 %4225 }
 0xf65   :  { %v4272_v45 = vmul.f32 0.03125, %v4226_v9 }
 0xf66   :  { %v4289_v26 = vadd.f32 1e-05, %v4273_v27 }
 0xf67   :  { %v4288_v10 = vadd.f32 1e-05, %v4272_v45  ;;  %v4235_v48 = vpop.xlane.xlu1 %4234 }
 0xf68   :  { %6737 = vrsqrt.f32 %v4289_v26  ;;  %v4275_v57 = vmul.f32 0.03125, %v4235_v48  ;;  %v4232_v29 = vpop.xlane.xlu0 %4231 }
 0xf69   :  { %6739 = vrsqrt.f32 %v4288_v10  ;;  %v4274_v2 = vmul.f32 0.03125, %v4232_v29 }
 0xf6a   :  { %v4291_v56 = vadd.f32 1e-05, %v4275_v57 }
 0xf6b   :  { %v4290_v44 = vadd.f32 1e-05, %v4274_v2  ;;  %v4241_v60 = vpop.xlane.xlu1 %4240 }
 0xf6c   :  { %6741 = vrsqrt.f32 %v4291_v56  ;;  %v4277_v36 = vmul.f32 0.03125, %v4241_v60  ;;  %v4238_v37 = vpop.xlane.xlu0 %4237 }
 0xf6d   :  { %6743 = vrsqrt.f32 %v4290_v44  ;;  %v4276_v16 = vmul.f32 0.03125, %v4238_v37 }
 0xf6e   :  { %v4293_v24 = vadd.f32 1e-05, %v4277_v36 }
 0xf6f   :  { %v4292_v30 = vadd.f32 1e-05, %v4276_v16  ;;  %v4247_v50 = vpop.xlane.xlu1 %4246 }
 0xf70   :  { %6745 = vrsqrt.f32 %v4293_v24  ;;  %v4279_v3 = vmul.f32 0.03125, %v4247_v50  ;;  %v4244_v55 = vpop.xlane.xlu0 %4243 }
 0xf71   :  { %6747 = vrsqrt.f32 %v4292_v30  ;;  %v4278_v40 = vmul.f32 0.03125, %v4244_v55 }
 0xf72   :  { %v6738_v0 = vpop.eup %6737  ;;  %v4295_v39 = vadd.f32 1e-05, %v4279_v3 }
 0xf73   :  { %v6740_v62 = vpop.eup %6739  ;;  %v4321_v63 = vmul.f32 %v6738_v0, %v8698_v34  ;;  %v4294_v54 = vadd.f32 1e-05, %v4278_v40  ;;  %v4253_v61 = vpop.xlane.xlu1 %4252 }
 0xf74   :  { %v4320_v32 = vmul.f32 %v6740_v62, %v8701_v52  ;;  %6749 = vrsqrt.f32 %v4295_v39  ;;  %v4281_v43 = vmul.f32 0.03125, %v4253_v61  ;;  %v4250_v25 = vpop.xlane.xlu0 %4249 }
 0xf75   :  { %6751 = vrsqrt.f32 %v4294_v54  ;;  %v4280_v58 = vmul.f32 0.03125, %v4250_v25  ;;  %v4343_v5 = vmul.f32 %v8805_v41, %v4321_v63 }
 0xf76   :  { %v6742_v15 = vpop.eup %6741  ;;  %v4297_v12 = vadd.f32 1e-05, %v4281_v43  ;;  %v4342_v34 = vmul.f32 %v8805_v41, %v4320_v32  ;;  %v6479_v43 = vld [vmem:[%s9353_s11 + $0x10] sm:$0xff]  }
 0xf77   :  { %v6744_v31 = vpop.eup %6743  ;;  %v4323_v22 = vmul.f32 %v6742_v15, %v8708_v23  ;;  %v4296_v52 = vadd.f32 1e-05, %v4280_v58  ;;  %v4259_v6 = vpop.xlane.xlu1 %4258  ;;  %v8818_v11 = vadd.f32 %v8812_v21, %v4343_v5 }
 0xf78   :  { %v4322_v13 = vmul.f32 %v6744_v31, %v8712_v35  ;;  %6753 = vrsqrt.f32 %v4297_v12  ;;  %v4283_v20 = vmul.f32 0.03125, %v4259_v6  ;;  %v4256_v17 = vpop.xlane.xlu0 %4255  ;;  %v8822_v8 = vadd.f32 %v8812_v21, %v4342_v34 }
 0xf79   :  { %v4345_v59 = vmul.f32 %v8805_v41, %v4323_v22  ;;  %6755 = vrsqrt.f32 %v4296_v52  ;;  %v4282_v47 = vmul.f32 0.03125, %v4256_v17 }
 0xf7a   :  { %v6746_v4 = vpop.eup %6745  ;;  %v4344_v23 = vmul.f32 %v8805_v41, %v4322_v13  ;;  %v4299_v27 = vadd.f32 1e-05, %v4283_v20  ;;  %v4380_v9 = vpack.c.bf16 %v8818_v11, %v8822_v8 }
 0xf7b   :  { %v6748_v45 = vpop.eup %6747  ;;  %v8829_v35 = vadd.f32 %v8812_v21, %v4345_v59  ;;  %v4325_v26 = vmul.f32 %v6746_v4, %v8720_v33  ;;  %v4298_v10 = vadd.f32 1e-05, %v4282_v47  ;;  %v4265_v48 = vpop.xlane.xlu1 %4264 }
 0xf7c   :  { %v8833_v57 = vadd.f32 %v8812_v21, %v4344_v23  ;;  %v4324_v29 = vmul.f32 %v6748_v45, %v8724_v28  ;;  %6757 = vrsqrt.f32 %v4299_v27  ;;  %v4285_v2 = vmul.f32 0.03125, %v4265_v48  ;;  %v4262_v56 = vpop.xlane.xlu0 %4261  ;;  %6352 = vmatprep.mubr.msk.bf16.mxu1 %vm104_vm0, %v4380_v9  ;;  %v6478_v28 = vld [vmem:[%s9353_s11 + $0x8] sm:$0xff]  }
 0xf7d   :  { %6759 = vrsqrt.f32 %v4298_v10  ;;  %v4284_v44 = vmul.f32 0.03125, %v4262_v56  ;;  %v4347_v60 = vmul.f32 %v8805_v41, %v4325_v26 }
 0xf7e   :  { %v6750_v36 = vpop.eup %6749  ;;  %v4301_v37 = vadd.f32 1e-05, %v4285_v2  ;;  %v4381_v33 = vpack.c.bf16 %v8829_v35, %v8833_v57  ;;  %v4346_v16 = vmul.f32 %v8805_v41, %v4324_v29 }
 0xf7f   :  { %v6752_v24 = vpop.eup %6751  ;;  %v4327_v30 = vmul.f32 %v6750_v36, %v8732_v14  ;;  %v4300_v50 = vadd.f32 1e-05, %v4284_v44  ;;  %v4271_v3 = vpop.xlane.xlu1 %4270  ;;  %v8846_v55 = vadd.f32 %v8812_v21, %v4347_v60 }
 0xf80   :  { %v4326_v40 = vmul.f32 %v6752_v24, %v8736_v53  ;;  %6761 = vrsqrt.f32 %v4301_v37  ;;  %v4287_v0 = vmul.f32 0.03125, %v4271_v3  ;;  %v4268_v39 = vpop.xlane.xlu0 %4267  ;;  %6353 = vmatmul.mubr.msk.bf16.vlgmr.msra.gmra.mrb[160].mxu1 %vm104_vm0, %v4381_v33  ;;  %v8851_v62 = vadd.f32 %v8812_v21, %v4346_v16  ;;  %v6480_v33 = vld [vmem:[%s9353_s11 + $0x18] sm:$0xff]   ;;  %v4988_v16 = vld [vmem:[%s9356_s2 + $0x8] sm:$0xff]  ;;  %v4991_v3 = vld [vmem:[%s9356_s2 + $0x20] sm:$0xff] }
 0xf81   :  { %6763 = vrsqrt.f32 %v4300_v50  ;;  %v4286_v63 = vmul.f32 0.03125, %v4268_v39  ;;  %v4349_v54 = vmul.f32 %v8805_v41, %v4327_v30  ;;  %6369 = vmatpush3.bf16.msra.mxu1 %v8799_v49  ;;  %v4996_v24 = vld [vmem:[%s9356_s2 + $0x48] sm:$0xff]  ;;  %v4990_v30 = vld [vmem:[%s9356_s2 + $0x18] sm:$0xff] }
 0xf82   :  { %v6754_v14 = vpop.eup %6753  ;;  %v4303_v61 = vadd.f32 1e-05, %v4287_v0  ;;  %v4382_v32 = vpack.c.bf16 %v8846_v55, %v8851_v62  ;;  %v4348_v53 = vmul.f32 %v8805_v41, %v4326_v40  ;;  %6370 = vmatprep.subr.bf16.mxu1 %v6478_v28  ;;  %v4998_v50 = vld [vmem:[%s9356_s2 + $0x58] sm:$0xff]  ;;  %v4992_v40 = vld [vmem:[%s9356_s2 + $0x28] sm:$0xff]  ;;  %v4993_v0 = vld [vmem:[%s9356_s2 + $0x30] sm:$0xff] }
 0xf83   :  { %v6756_v25 = vpop.eup %6755  ;;  %v4329_v58 = vmul.f32 %v6754_v14, %v8744_v1  ;;  %v4302_v5 = vadd.f32 1e-05, %v4286_v63  ;;  %v8863_v15 = vadd.f32 %v8812_v21, %v4349_v54  ;;  %v4994_v39 = vld [vmem:[%s9356_s2 + $0x38] sm:$0xff]  ;;  %v4995_v63 = vld [vmem:[%s9356_s2 + $0x40] sm:$0xff]  ;;  %v4997_v54 = vld [vmem:[%s9356_s2 + $0x50] sm:$0xff] }
 0xf84   :  { %v4328_v49 = vmul.f32 %v6756_v25, %v8748_v46  ;;  %6765 = vrsqrt.f32 %v4303_v61  ;;  %6356 = vmatprep.mubr.msk.bf16.mxu1 %vm104_vm0, %v4382_v32  ;;  %v8868_v12 = vadd.f32 %v8812_v21, %v4348_v53  ;;  %v5384_v14 = vld [vmem:[%s9357_s10] ss:$0 sm:$0xff] }
 0xf85   :  { %6767 = vrsqrt.f32 %v4302_v5  ;;  %v4351_v34 = vmul.f32 %v8805_v41, %v4329_v58  ;;  %6371 = vmatpush3.bf16.msra.mxu1 %v6478_v28  ;;  %v4987_v28 = vld [vmem:[%s9356_s2] sm:$0xff] }
 0xf86   :  { %v6758_v31 = vpop.eup %6757  ;;  %v4383_v1 = vpack.c.bf16 %v8863_v15, %v8868_v12  ;;  %v4350_v22 = vmul.f32 %v8805_v41, %v4328_v49  ;;  %6372 = vmatprep.subr.bf16.mxu1 %v6479_v43 }
 0xf87   :  { %v6760_v52 = vpop.eup %6759  ;;  %v4331_v46 = vmul.f32 %v6758_v31, %v8756_v19  ;;  %v8876_v6 = vadd.f32 %v8812_v21, %v4351_v34 }
 0xf88   :  { %v4330_v13 = vmul.f32 %v6760_v52, %v8760_v38  ;;  %6357 = vmatmul.mubr.msk.bf16.gmra.mrb[164].mxu1 %vm104_vm0, %v4383_v1  ;;  %v8881_v20 = vadd.f32 %v8812_v21, %v4350_v22 }
 0xf89   :  { %v4353_v17 = vmul.f32 %v8805_v41, %v4331_v46  ;;  %6373 = vmatpush3.bf16.msra.mxu1 %v6479_v43 }
 0xf8a   :  { %v6762_v59 = vpop.eup %6761  ;;  %v4384_v47 = vpack.c.bf16 %v8876_v6, %v8881_v20  ;;  %v4352_v4 = vmul.f32 %v8805_v41, %v4330_v13  ;;  %6374 = vmatprep.subr.bf16.mxu1 %v6480_v33 }
 0xf8b   :  { %v6764_v19 = vpop.eup %6763  ;;  %v4333_v23 = vmul.f32 %v6762_v59, %v8768_v42  ;;  %v8889_v27 = vadd.f32 %v8812_v21, %v4353_v17 }
 0xf8c   :  { %v4332_v38 = vmul.f32 %v6764_v19, %v8772_v51  ;;  %6360 = vmatprep.mubr.msk.bf16.mxu1 %vm104_vm0, %v4384_v47  ;;  %v8894_v9 = vadd.f32 %v8812_v21, %v4352_v4 }
 0xf8d   :  { %v4355_v45 = vmul.f32 %v8805_v41, %v4333_v23  ;;  %6375 = vmatpush3.bf16.msra.mxu1 %v6480_v33 }
 0xf8e   :  { %v6766_v26 = vpop.eup %6765  ;;  %v4385_v10 = vpack.c.bf16 %v8889_v27, %v8894_v9  ;;  %v4354_v48 = vmul.f32 %v8805_v41, %v4332_v38 }
 0xf8f   :  { %v6768_v29 = vpop.eup %6767  ;;  %v4335_v42 = vmul.f32 %v6766_v26, %v8780_v18  ;;  %v8902_v2 = vadd.f32 %v8812_v21, %v4355_v45 }
 0xf90   :  { %v4334_v51 = vmul.f32 %v6768_v29, %v8784_v7  ;;  %6361 = vmatmul.mubr.msk.bf16.gmra.mrb[168].mxu1 %vm104_vm0, %v4385_v10  ;;  %v8907_v56 = vadd.f32 %v8812_v21, %v4354_v48 }
 0xf91   :  { %v4357_v44 = vmul.f32 %v8805_v41, %v4335_v42 }
 0xf92   :  { %v4386_v60 = vpack.c.bf16 %v8902_v2, %v8907_v56  ;;  %v4356_v36 = vmul.f32 %v8805_v41, %v4334_v51  ;;  %v6817_v41 = vmov 0  }
 0xf93   :  { %v8914_v37 = vadd.f32 %v8812_v21, %v4357_v44  ;;  %6474 = vset.pattern.permute.xlu1 %v6817_v41  ;;  %6473 = vset.pattern.permute.xlu0 %v6817_v41 }
 0xf94   :  { %6364 = vmatprep.mubr.msk.bf16.mxu1 %vm104_vm0, %v4386_v60  ;;  %v8918_v18 = vadd.f32 %v8812_v21, %v4356_v36  ;;  %5010 = vperm.xlu1 %6474, %v4988_v16   ;;  %v4989_v21 = vld [vmem:[%s9356_s2 + $0x10] sm:$0xff] }
 0xf95   :  { %5005 = vperm.xlu0 %6473, %v4987_v28  }
 0xf96   :  { %v4387_v7 = vpack.c.bf16 %v8914_v37, %v8918_v18 }
 0xf98   :  { %6365 = vmatmul.mubr.msk.bf16.gmra.mrb[172].mxu1 %vm104_vm0, %v4387_v7  ;;  %5015 = vperm.xlu1 %6474, %v4989_v21  }
 0xf99   :  { %5050 = vperm.xlu0 %6473, %v4996_v24  }
 0xf9c   :  { %5020 = vperm.xlu1 %6474, %v4990_v30  }
 0xf9d   :  { %5060 = vperm.xlu0 %6473, %v4998_v50  }
 0xfa0   :  { %5025 = vperm.xlu1 %6474, %v4991_v3  }
 0xfa4   :  { %5030 = vperm.xlu1 %6474, %v4992_v40  }
 0xfa8   :  { %5035 = vperm.xlu1 %6474, %v4993_v0  }
 0xfac   :  { %5040 = vperm.xlu1 %6474, %v4994_v39  }
 0xfb0   :  { %5045 = vperm.xlu1 %6474, %v4995_v63  }
 0xfb4   :  { %5055 = vperm.xlu1 %6474, %v4997_v54  }
0x1053   :  { %v6354_v61 = vpop.f32.mrb[160].mxu1 }
0x1054   :  { %v4478_v32 = vadd.f32 %v6354_v61, %v5384_v14  ;;  %v4469_v53 = vpop.f32.mrb[161].mxu1 }
0x1055   :  { %v4470_v43 = vadd.f32 %v5384_v14, %v4469_v53  ;;  %v6355_v25 = vpop.f32.mrb[162].mxu1 }
0x1056   :  { %v4481_v58 = vadd.f32 %v6355_v25, %v5384_v14  ;;  %v4472_v5 = vpop.f32.mrb[163].mxu1  ;;  %v4534_v34 = vmax.f32 %v4478_v32, 0.0 }
0x1057   :  { %v4473_v49 = vadd.f32 %v5384_v14, %v4472_v5  ;;  %v4532_v1 = vmax.f32 %v4470_v43, 0.0 }
0x1058   :  { %v4535_v31 = vmax.f32 %v4481_v58, 0.0 }
0x1059   :  { %v4533_v22 = vmax.f32 %v4473_v49, 0.0 }
0x105a   :  { %v4549_v52 = vpack.c.bf16 %v4535_v31, %v4534_v34  ;;  %v8976_v31 = vld [vmem:[%s9358_s12] ss:$0 sm:$0xff] }
0x105b   :  { %v4548_v46 = vpack.c.bf16 %v4533_v22, %v4532_v1  ;;  %v6358_v13 = vpop.f32.mrb[164].mxu1 }
0x105c   :  { %v4494_v17 = vadd.f32 %v6358_v13, %v5384_v14  ;;  %v4485_v59 = vpop.f32.mrb[165].mxu1 }
0x105d   :  { %v4486_v47 = vadd.f32 %v5384_v14, %v4485_v59  ;;  %v6359_v4 = vpop.f32.mrb[166].mxu1  ;;  %6376 = vmatprep.mubr.msk.bf16.mxu1 %vm4595_vm1, %v4548_v46 }
0x105e   :  { %v4497_v19 = vadd.f32 %v6359_v4, %v5384_v14  ;;  %v4488_v23 = vpop.f32.mrb[167].mxu1  ;;  %6377 = vmatmul.mubr.msk.bf16.vlgmr.msra.gmra.mrb[176].mxu1 %vm4595_vm1, %v4549_v52  ;;  %v4538_v45 = vmax.f32 %v4494_v17, 0.0 }
0x105f   :  { %v4489_v38 = vadd.f32 %v5384_v14, %v4488_v23  ;;  %v4536_v10 = vmax.f32 %v4486_v47, 0.0 }
0x1060   :  { %v4539_v26 = vmax.f32 %v4497_v19, 0.0 }
0x1061   :  { %v4537_v48 = vmax.f32 %v4489_v38, 0.0 }
0x1062   :  { %v4551_v29 = vpack.c.bf16 %v4539_v26, %v4538_v45 }
0x1063   :  { %v4550_v42 = vpack.c.bf16 %v4537_v48, %v4536_v10  ;;  %v6362_v51 = vpop.f32.mrb[168].mxu1 }
0x1064   :  { %v4510_v44 = vadd.f32 %v6362_v51, %v5384_v14  ;;  %v4501_v60 = vpop.f32.mrb[169].mxu1 }
0x1065   :  { %v4502_v36 = vadd.f32 %v5384_v14, %v4501_v60  ;;  %v6363_v7 = vpop.f32.mrb[170].mxu1  ;;  %6380 = vmatprep.mubr.msk.bf16.mxu1 %vm4595_vm1, %v4550_v42 }
0x1066   :  { %v4513_v33 = vadd.f32 %v6363_v7, %v5384_v14  ;;  %v4504_v41 = vpop.f32.mrb[171].mxu1  ;;  %6381 = vmatmul.mubr.msk.bf16.gmra.mrb[180].mxu1 %vm4595_vm1, %v4551_v29  ;;  %v4542_v21 = vmax.f32 %v4510_v44, 0.0 }
0x1067   :  { %v4505_v16 = vadd.f32 %v5384_v14, %v4504_v41  ;;  %v4540_v24 = vmax.f32 %v4502_v36, 0.0 }
0x1068   :  { %v4543_v28 = vmax.f32 %v4513_v33, 0.0 }
0x1069   :  { %v4541_v30 = vmax.f32 %v4505_v16, 0.0 }
0x106a   :  { %v4553_v50 = vpack.c.bf16 %v4543_v28, %v4542_v21 }
0x106b   :  { %v4552_v3 = vpack.c.bf16 %v4541_v30, %v4540_v24  ;;  %v6366_v40 = vpop.f32.mrb[172].mxu1 }
0x106c   :  { %v4526_v0 = vadd.f32 %v6366_v40, %v5384_v14  ;;  %v4517_v39 = vpop.f32.mrb[173].mxu1 }
0x106d   :  { %v4518_v63 = vadd.f32 %v5384_v14, %v4517_v39  ;;  %v6367_v54 = vpop.f32.mrb[174].mxu1  ;;  %6384 = vmatprep.mubr.msk.bf16.mxu1 %vm4595_vm1, %v4552_v3 }
0x106e   :  { %v4529_v61 = vadd.f32 %v6367_v54, %v5384_v14  ;;  %v4520_v32 = vpop.f32.mrb[175].mxu1  ;;  %6385 = vmatmul.mubr.msk.bf16.gmra.mrb[184].mxu1 %vm4595_vm1, %v4553_v50  ;;  %v4546_v43 = vmax.f32 %v4526_v0, 0.0 }
0x106f   :  { %v4521_v53 = vadd.f32 %v5384_v14, %v4520_v32  ;;  %v4544_v58 = vmax.f32 %v4518_v63, 0.0 }
0x1070   :  { %v4547_v25 = vmax.f32 %v4529_v61, 0.0 }
0x1071   :  { %v4545_v5 = vmax.f32 %v4521_v53, 0.0 }
0x1072   :  { %v4555_v49 = vpack.c.bf16 %v4547_v25, %v4546_v43 }
0x1073   :  { %v4554_v34 = vpack.c.bf16 %v4545_v5, %v4544_v58 }
0x1075   :  { %6388 = vmatprep.mubr.msk.bf16.mxu1 %vm4595_vm1, %v4554_v34 }
0x1076   :  { %6389 = vmatmul.mubr.msk.bf16.gmra.mrb[188].mxu1 %vm4595_vm1, %v4555_v49 }
0x1131   :  { %v6378_v1 = vpop.f32.mrb[176].mxu1 }
0x1132   :  { %v4663_v22 = vadd.f32 %v6378_v1, %v8976_v31  ;;  %v4654_v52 = vpop.f32.mrb[177].mxu1 }
0x1133   :  { %v4655_v14 = vadd.f32 %v8976_v31, %v4654_v52  ;;  %v6379_v46 = vpop.f32.mrb[178].mxu1  ;;  %v9080_v52 = vpop.permute.xlu1 %5010 }
0x1134   :  { %v8981_v13 = vadd.f32 %v4663_v22, %v8833_v57  ;;  %v4666_v17 = vadd.f32 %v6379_v46, %v8976_v31  ;;  %v4657_v59 = vpop.f32.mrb[179].mxu1 }
0x1135   :  { %v4658_v47 = vadd.f32 %v8976_v31, %v4657_v59  ;;  %v8986_v4 = vadd.f32 %v4655_v14, %v8822_v8 }
0x1136   :  { %v8989_v19 = vadd.f32 %v4666_v17, %v8829_v35  ;;  %v4741_v23 = vsel %vm104_vm0, %v8981_v13, 0.0 }
0x1137   :  { %4742 = vadd.xlane.f32.xlu0 %v4741_v23  ;;  %v8994_v38 = vadd.f32 %v4658_v47, %v8818_v11  ;;  %v4735_v8 = vsel %vm104_vm0, %v8986_v4, 0.0  ;;  %v9082_v14 = vpop.permute.xlu1 %5015  ;;  %v9092_v23 = vpop.permute.xlu0 %5005 }
0x1138   :  { %v4744_v57 = vsel %vm104_vm0, %v8989_v19, 0.0 }
0x1139   :  { %4745 = vadd.xlane.f32.xlu1 %v4744_v57  ;;  %v6382_v45 = vpop.f32.mrb[180].mxu1  ;;  %v4738_v51 = vsel %vm104_vm0, %v8994_v38, 0.0 }
0x113a   :  { %v4679_v26 = vadd.f32 %v6382_v45, %v8976_v31  ;;  %v4670_v10 = vpop.f32.mrb[181].mxu1 }
0x113b   :  { %v4671_v35 = vadd.f32 %v8976_v31, %v4670_v10  ;;  %v6383_v48 = vpop.f32.mrb[182].mxu1  ;;  %4736 = vadd.xlane.f32.xlu0 %v4735_v8  ;;  %v9084_v46 = vpop.permute.xlu1 %5020 }
0x113c   :  { %v9003_v29 = vadd.f32 %v4679_v26, %v8868_v12  ;;  %v4682_v11 = vadd.f32 %v6383_v48, %v8976_v31  ;;  %v4673_v42 = vpop.f32.mrb[183].mxu1  ;;  %v9096_v45 = vpop.permute.xlu0 %5050 }
0x113d   :  { %v4674_v44 = vadd.f32 %v8976_v31, %v4673_v42  ;;  %4739 = vadd.xlane.f32.xlu1 %v4738_v51  ;;  %v9010_v60 = vadd.f32 %v4671_v35, %v8851_v62 }
0x113e   :  { %v9013_v36 = vadd.f32 %v4682_v11, %v8863_v15  ;;  %v4753_v7 = vsel %vm104_vm0, %v9003_v29, 0.0 }
0x113f   :  { %4754 = vadd.xlane.f32.xlu0 %v4753_v7  ;;  %v9018_v12 = vadd.f32 %v4674_v44, %v8846_v55  ;;  %v4747_v62 = vsel %vm104_vm0, %v9010_v60, 0.0  ;;  %v9086_v17 = vpop.permute.xlu1 %5025 }
0x1140   :  { %v4756_v33 = vsel %vm104_vm0, %v9013_v36, 0.0  ;;  %v9100_v10 = vpop.permute.xlu0 %5060 }
0x1141   :  { %v6386_v41 = vpop.f32.mrb[184].mxu1  ;;  %4757 = vadd.xlane.f32.xlu1 %v4756_v33  ;;  %v4750_v50 = vsel %vm104_vm0, %v9018_v12, 0.0 }
0x1142   :  { %v4695_v16 = vadd.f32 %v6386_v41, %v8976_v31  ;;  %v4686_v21 = vpop.f32.mrb[185].mxu1 }
0x1143   :  { %v4687_v15 = vadd.f32 %v8976_v31, %v4686_v21  ;;  %v6387_v28 = vpop.f32.mrb[186].mxu1  ;;  %4748 = vadd.xlane.f32.xlu0 %v4747_v62  ;;  %v9088_v59 = vpop.permute.xlu1 %5030 }
0x1144   :  { %v9027_v24 = vadd.f32 %v4695_v16, %v8894_v9  ;;  %v4698_v55 = vadd.f32 %v6387_v28, %v8976_v31  ;;  %v4689_v30 = vpop.f32.mrb[187].mxu1 }
0x1145   :  { %v4690_v3 = vadd.f32 %v8976_v31, %v4689_v30  ;;  %4751 = vadd.xlane.f32.xlu1 %v4750_v50  ;;  %v9034_v40 = vadd.f32 %v4687_v15, %v8881_v20 }
0x1146   :  { %v9037_v0 = vadd.f32 %v4698_v55, %v8889_v27  ;;  %v4765_v39 = vsel %vm104_vm0, %v9027_v24, 0.0 }
0x1147   :  { %4766 = vadd.xlane.f32.xlu0 %v4765_v39  ;;  %v9042_v9 = vadd.f32 %v4690_v3, %v8876_v6  ;;  %v4759_v20 = vsel %vm104_vm0, %v9034_v40, 0.0  ;;  %v9090_v47 = vpop.permute.xlu1 %5035 }
0x1148   :  { %v4768_v63 = vsel %vm104_vm0, %v9037_v0, 0.0 }
0x1149   :  { %4769 = vadd.xlane.f32.xlu1 %v4768_v63  ;;  %v6390_v54 = vpop.f32.mrb[188].mxu1  ;;  %v4762_v58 = vsel %vm104_vm0, %v9042_v9, 0.0 }
0x114a   :  { %v4711_v61 = vadd.f32 %v6390_v54, %v8976_v31  ;;  %v4702_v32 = vpop.f32.mrb[189].mxu1 }
0x114b   :  { %v4703_v27 = vadd.f32 %v8976_v31, %v4702_v32  ;;  %4760 = vadd.xlane.f32.xlu0 %v4759_v20  ;;  %v6391_v53 = vpop.f32.mrb[190].mxu1  ;;  %v9094_v57 = vpop.permute.xlu1 %5040 }
0x114c   :  { %v9051_v43 = vadd.f32 %v4711_v61, %v8918_v18  ;;  %v4714_v6 = vadd.f32 %v6391_v53, %v8976_v31  ;;  %v4705_v25 = vpop.f32.mrb[191].mxu1 }
0x114d   :  { %v4706_v5 = vadd.f32 %v8976_v31, %v4705_v25  ;;  %4763 = vadd.xlane.f32.xlu1 %v4762_v58  ;;  %v9058_v49 = vadd.f32 %v4703_v27, %v8907_v56 }
0x114e   :  { %v9061_v34 = vadd.f32 %v4714_v6, %v8914_v37  ;;  %v4777_v1 = vsel %vm104_vm0, %v9051_v43, 0.0  ;;  %v4999_v37 = vld [vmem:[%s9356_s2 + $0x60] sm:$0xff] }
0x114f   :  { %4778 = vadd.xlane.f32.xlu0 %v4777_v1  ;;  %v9066_v18 = vadd.f32 %v4706_v5, %v8902_v2  ;;  %v4771_v31 = vsel %vm104_vm0, %v9058_v49, 0.0  ;;  %v5000_v2 = vld [vmem:[%s9356_s2 + $0x68] sm:$0xff]  ;;  %v9098_v26 = vpop.permute.xlu1 %5045 }
0x1150   :  { %v4780_v22 = vsel %vm104_vm0, %v9061_v34, 0.0 }
0x1151   :  { %4781 = vadd.xlane.f32.xlu1 %v4780_v22  ;;  %v4774_v56 = vsel %vm104_vm0, %v9066_v18, 0.0 }
0x1153   :  { %4772 = vadd.xlane.f32.xlu0 %v4771_v31  ;;  %v9102_v8 = vpop.permute.xlu1 %5055 }
0x1155   :  { %4775 = vadd.xlane.f32.xlu1 %v4774_v56 }
0x1166   :  { %5065 = vperm.xlu1 %6474, %v4999_v37  }
0x1169   :  { %5070 = vperm.xlu0 %6473, %v5000_v2  }
0x11c4   :  { %v4743_v35 = vpop.xlane.xlu0 %4742 }
0x11c5   :  { %v4785_v48 = vmul.f32 0.03125, %v4743_v35 }
0x11c6   :  { %v4746_v11 = vpop.xlane.xlu1 %4745 }
0x11c7   :  { %v9105_v42 = vsub.f32 %v8981_v13, %v4785_v48  ;;  %v4786_v51 = vmul.f32 0.03125, %v4746_v11 }
0x11c8   :  { %v4737_v44 = vpop.xlane.xlu0 %4736 }
0x11c9   :  { %v9108_v7 = vsub.f32 %v8989_v19, %v4786_v51  ;;  %v4783_v33 = vmul.f32 0.03125, %v4737_v44  ;;  %v4817_v41 = vmul.f32 %v9105_v42, %v9105_v42 }
0x11ca   :  { %v4740_v16 = vpop.xlane.xlu1 %4739 }
0x11cb   :  { %v9113_v21 = vsub.f32 %v8986_v4, %v4783_v33  ;;  %v4784_v62 = vmul.f32 0.03125, %v4740_v16  ;;  %v4837_v15 = vsel %vm104_vm0, %v4817_v41, 0.0  ;;  %v4818_v13 = vmul.f32 %v9108_v7, %v9108_v7 }
0x11cc   :  { %v4755_v28 = vpop.xlane.xlu0 %4754  ;;  %4838 = vadd.xlane.f32.xlu0 %v4837_v15 }
0x11cd   :  { %v9119_v55 = vsub.f32 %v8994_v38, %v4784_v62  ;;  %v4789_v19 = vmul.f32 0.03125, %v4755_v28  ;;  %v4840_v30 = vsel %vm104_vm0, %v4818_v13, 0.0  ;;  %v4815_v50 = vmul.f32 %v9113_v21, %v9113_v21 }
0x11ce   :  { %4841 = vadd.xlane.f32.xlu1 %v4840_v30  ;;  %v4758_v4 = vpop.xlane.xlu1 %4757 }
0x11cf   :  { %v9125_v3 = vsub.f32 %v9003_v29, %v4789_v19  ;;  %v4790_v39 = vmul.f32 0.03125, %v4758_v4  ;;  %v4831_v63 = vsel %vm104_vm0, %v4815_v50, 0.0  ;;  %v4816_v54 = vmul.f32 %v9119_v55, %v9119_v55 }
0x11d0   :  { %v4749_v61 = vpop.xlane.xlu0 %4748  ;;  %4832 = vadd.xlane.f32.xlu0 %v4831_v63 }
0x11d1   :  { %v9131_v38 = vsub.f32 %v9013_v36, %v4790_v39  ;;  %v4787_v32 = vmul.f32 0.03125, %v4749_v61  ;;  %v4834_v20 = vsel %vm104_vm0, %v4816_v54, 0.0  ;;  %v4821_v27 = vmul.f32 %v9125_v3, %v9125_v3 }
0x11d2   :  { %4835 = vadd.xlane.f32.xlu1 %v4834_v20  ;;  %v4752_v29 = vpop.xlane.xlu1 %4751 }
0x11d3   :  { %v9137_v53 = vsub.f32 %v9010_v60, %v4787_v32  ;;  %v4788_v6 = vmul.f32 0.03125, %v4752_v29  ;;  %v4849_v25 = vsel %vm104_vm0, %v4821_v27, 0.0  ;;  %v4822_v58 = vmul.f32 %v9131_v38, %v9131_v38 }
0x11d4   :  { %v4767_v5 = vpop.xlane.xlu0 %4766  ;;  %4850 = vadd.xlane.f32.xlu0 %v4849_v25 }
0x11d5   :  { %v9143_v36 = vsub.f32 %v9018_v12, %v4788_v6  ;;  %v4793_v1 = vmul.f32 0.03125, %v4767_v5  ;;  %v4852_v22 = vsel %vm104_vm0, %v4822_v58, 0.0  ;;  %v4819_v31 = vmul.f32 %v9137_v53, %v9137_v53 }
0x11d6   :  { %4853 = vadd.xlane.f32.xlu1 %v4852_v22  ;;  %v4770_v60 = vpop.xlane.xlu1 %4769  ;;  %v5002_v22 = vld [vmem:[%s9356_s2 + $0x78] sm:$0xff] }
0x11d7   :  { %v9149_v56 = vsub.f32 %v9027_v24, %v4793_v1  ;;  %v4794_v37 = vmul.f32 0.03125, %v4770_v60  ;;  %v4843_v2 = vsel %vm104_vm0, %v4819_v31, 0.0  ;;  %v4820_v35 = vmul.f32 %v9143_v36, %v9143_v36 }
0x11d8   :  { %v4761_v48 = vpop.xlane.xlu0 %4760  ;;  %4844 = vadd.xlane.f32.xlu0 %v4843_v2 }
0x11d9   :  { %v9155_v12 = vsub.f32 %v9037_v0, %v4794_v37  ;;  %v4791_v11 = vmul.f32 0.03125, %v4761_v48  ;;  %v4846_v51 = vsel %vm104_vm0, %v4820_v35, 0.0  ;;  %v4825_v44 = vmul.f32 %v9149_v56, %v9149_v56 }
0x11da   :  { %4847 = vadd.xlane.f32.xlu1 %v4846_v51  ;;  %v4764_v24 = vpop.xlane.xlu1 %4763 }
0x11db   :  { %v9161_v33 = vsub.f32 %v9034_v40, %v4791_v11  ;;  %v4792_v41 = vmul.f32 0.03125, %v4764_v24  ;;  %v4861_v16 = vsel %vm104_vm0, %v4825_v44, 0.0  ;;  %v4826_v62 = vmul.f32 %v9155_v12, %v9155_v12 }
0x11dc   :  { %v4779_v15 = vpop.xlane.xlu0 %4778  ;;  %4862 = vadd.xlane.f32.xlu0 %v4861_v16 }
0x11dd   :  { %v9167_v0 = vsub.f32 %v9042_v9, %v4792_v41  ;;  %v4797_v13 = vmul.f32 0.03125, %v4779_v15  ;;  %v4864_v28 = vsel %vm104_vm0, %v4826_v62, 0.0  ;;  %v4823_v19 = vmul.f32 %v9161_v33, %v9161_v33 }
0x11de   :  { %4865 = vadd.xlane.f32.xlu1 %v4864_v28  ;;  %v4782_v40 = vpop.xlane.xlu1 %4781 }
0x11df   :  { %v9173_v30 = vsub.f32 %v9051_v43, %v4797_v13  ;;  %v4798_v50 = vmul.f32 0.03125, %v4782_v40  ;;  %v4855_v4 = vsel %vm104_vm0, %v4823_v19, 0.0  ;;  %v4824_v39 = vmul.f32 %v9167_v0, %v9167_v0 }
0x11e0   :  { %4856 = vadd.xlane.f32.xlu0 %v4855_v4  ;;  %v4773_v9 = vpop.xlane.xlu0 %4772 }
0x11e1   :  { %v9179_v63 = vsub.f32 %v9061_v34, %v4798_v50  ;;  %v4795_v54 = vmul.f32 0.03125, %v4773_v9  ;;  %v4858_v61 = vsel %vm104_vm0, %v4824_v39, 0.0  ;;  %v4829_v32 = vmul.f32 %v9173_v30, %v9173_v30 }
0x11e2   :  { %4859 = vadd.xlane.f32.xlu1 %v4858_v61  ;;  %v4776_v43 = vpop.xlane.xlu1 %4775 }
0x11e3   :  { %v9185_v20 = vsub.f32 %v9058_v49, %v4795_v54  ;;  %v4796_v27 = vmul.f32 0.03125, %v4776_v43  ;;  %v4873_v29 = vsel %vm104_vm0, %v4829_v32, 0.0  ;;  %v4830_v6 = vmul.f32 %v9179_v63, %v9179_v63  ;;  %v9213_v32 = vld [vmem:[%s9359_s13] ss:$0 sm:$0xff] }
0x11e4   :  { %4874 = vadd.xlane.f32.xlu0 %v4873_v29 }
0x11e5   :  { %v9191_v34 = vsub.f32 %v9066_v18, %v4796_v27  ;;  %v4876_v25 = vsel %vm104_vm0, %v4830_v6, 0.0  ;;  %v4827_v58 = vmul.f32 %v9185_v20, %v9185_v20  ;;  %v5001_v18 = vld [vmem:[%s9356_s2 + $0x70] sm:$0xff] }
0x11e6   :  { %4877 = vadd.xlane.f32.xlu1 %v4876_v25  ;;  %v9208_v60 = vpop.permute.xlu1 %5065 }
0x11e7   :  { %v4867_v5 = vsel %vm104_vm0, %v4827_v58, 0.0  ;;  %v4828_v49 = vmul.f32 %v9191_v34, %v9191_v34  ;;  %v9219_v58 = vld [vmem:[%s9360_s14] ss:$0 sm:$0xff] }
0x11e8   :  { %4868 = vadd.xlane.f32.xlu0 %v4867_v5  ;;  %v9206_v31 = vpop.permute.xlu0 %5070 }
0x11e9   :  { %v4870_v1 = vsel %vm104_vm0, %v4828_v49, 0.0 }
0x11ea   :  { %4871 = vadd.xlane.f32.xlu1 %v4870_v1 }
0x11fb   :  { %5075 = vperm.xlu1 %6474, %v5001_v18  }
0x11fe   :  { %5080 = vperm.xlu0 %6473, %v5002_v22  }
0x1259   :  { %v4839_v37 = vpop.xlane.xlu0 %4838 }
0x125a   :  { %v4881_v2 = vmul.f32 0.03125, %v4839_v37 }
0x125b   :  { %v4842_v35 = vpop.xlane.xlu1 %4841 }
0x125c   :  { %v4897_v48 = vadd.f32 1e-05, %v4881_v2  ;;  %v4882_v11 = vmul.f32 0.03125, %v4842_v35 }
0x125d   :  { %v4833_v51 = vpop.xlane.xlu0 %4832 }
0x125e   :  { %6769 = vrsqrt.f32 %v4897_v48  ;;  %v4898_v44 = vadd.f32 1e-05, %v4882_v11  ;;  %v4879_v24 = vmul.f32 0.03125, %v4833_v51 }
0x125f   :  { %v4836_v41 = vpop.xlane.xlu1 %4835 }
0x1260   :  { %6771 = vrsqrt.f32 %v4898_v44  ;;  %v4895_v16 = vadd.f32 1e-05, %v4879_v24  ;;  %v4880_v62 = vmul.f32 0.03125, %v4836_v41 }
0x1261   :  { %v4851_v15 = vpop.xlane.xlu0 %4850 }
0x1262   :  { %6773 = vrsqrt.f32 %v4895_v16  ;;  %v4896_v13 = vadd.f32 1e-05, %v4880_v62  ;;  %v4885_v28 = vmul.f32 0.03125, %v4851_v15 }
0x1263   :  { %v4854_v19 = vpop.xlane.xlu1 %4853 }
0x1264   :  { %6775 = vrsqrt.f32 %v4896_v13  ;;  %v4901_v40 = vadd.f32 1e-05, %v4885_v28  ;;  %v4886_v50 = vmul.f32 0.03125, %v4854_v19 }
0x1265   :  { %v4845_v4 = vpop.xlane.xlu0 %4844 }
0x1266   :  { %6777 = vrsqrt.f32 %v4901_v40  ;;  %v4902_v39 = vadd.f32 1e-05, %v4886_v50  ;;  %v4883_v9 = vmul.f32 0.03125, %v4845_v4 }
0x1267   :  { %v4848_v54 = vpop.xlane.xlu1 %4847 }
0x1268   :  { %v6770_v61 = vpop.eup %6769  ;;  %6779 = vrsqrt.f32 %v4902_v39  ;;  %v4899_v43 = vadd.f32 1e-05, %v4883_v9  ;;  %v4884_v27 = vmul.f32 0.03125, %v4848_v54 }
0x1269   :  { %v4929_v29 = vmul.f32 %v6770_v61, %v9105_v42  ;;  %v4863_v6 = vpop.xlane.xlu0 %4862 }
0x126a   :  { %v6772_v25 = vpop.eup %6771  ;;  %6781 = vrsqrt.f32 %v4899_v43  ;;  %v4900_v5 = vadd.f32 1e-05, %v4884_v27  ;;  %v4889_v49 = vmul.f32 0.03125, %v4863_v6 }
0x126b   :  { %v4951_v1 = vmul.f32 %v9213_v32, %v4929_v29  ;;  %v4930_v18 = vmul.f32 %v6772_v25, %v9108_v7  ;;  %v4866_v22 = vpop.xlane.xlu1 %4865 }
0x126c   :  { %v6774_v37 = vpop.eup %6773  ;;  %6783 = vrsqrt.f32 %v4900_v5  ;;  %v4905_v2 = vadd.f32 1e-05, %v4889_v49  ;;  %v4890_v35 = vmul.f32 0.03125, %v4866_v22 }
0x126d   :  { %v4973_v42 = vadd.f32 %v9219_v58, %v4951_v1  ;;  %v4952_v48 = vmul.f32 %v9213_v32, %v4930_v18  ;;  %v4927_v11 = vmul.f32 %v6774_v37, %v9113_v21  ;;  %v4857_v51 = vpop.xlane.xlu0 %4856 }
0x126e   :  { %v6776_v44 = vpop.eup %6775  ;;  %6785 = vrsqrt.f32 %v4905_v2  ;;  %v4906_v24 = vadd.f32 1e-05, %v4890_v35  ;;  %v4887_v41 = vmul.f32 0.03125, %v4857_v51 }
0x126f   :  { %v5085_v16 = vmul.f32 %v9082_v14, %v4973_v42  ;;  %v4974_v7 = vadd.f32 %v9219_v58, %v4952_v48  ;;  %v4949_v62 = vmul.f32 %v9213_v32, %v4927_v11  ;;  %v4928_v15 = vmul.f32 %v6776_v44, %v9119_v55  ;;  %v4860_v13 = vpop.xlane.xlu1 %4859 }
0x1270   :  { %v6778_v28 = vpop.eup %6777  ;;  %6787 = vrsqrt.f32 %v4906_v24  ;;  %v4903_v19 = vadd.f32 1e-05, %v4887_v41  ;;  %v4888_v40 = vmul.f32 0.03125, %v4860_v13 }
0x1271   :  { %5101 = vst.msk [vmem:[%s9361_s15 + $0x10] sm:$0xff] %vm104_vm0, %v5085_v16  ;;  %v5086_v21 = vmul.f32 %v9084_v46, %v4974_v7  ;;  %v4971_v14 = vadd.f32 %v9219_v58, %v4949_v62  ;;  %v4950_v50 = vmul.f32 %v9213_v32, %v4928_v15  ;;  %v4933_v4 = vmul.f32 %v6778_v28, %v9125_v3  ;;  %v4875_v39 = vpop.xlane.xlu0 %4874 }
0x1272   :  { %v6780_v55 = vpop.eup %6779  ;;  %6789 = vrsqrt.f32 %v4903_v19  ;;  %v4904_v9 = vadd.f32 1e-05, %v4888_v40  ;;  %v4893_v54 = vmul.f32 0.03125, %v4875_v39 }
0x1273   :  { %5102 = vst.msk [vmem:[%s9361_s15 + $0x18] sm:$0xff] %vm104_vm0, %v5086_v21  ;;  %v5083_v61 = vmul.f32 %v9092_v23, %v4971_v14  ;;  %v4972_v46 = vadd.f32 %v9219_v58, %v4950_v50  ;;  %v4955_v43 = vmul.f32 %v9213_v32, %v4933_v4  ;;  %v4934_v27 = vmul.f32 %v6780_v55, %v9131_v38  ;;  %v4878_v29 = vpop.xlane.xlu1 %4877 }
0x1274   :  { %v6782_v3 = vpop.eup %6781  ;;  %6791 = vrsqrt.f32 %v4904_v9  ;;  %v4909_v6 = vadd.f32 1e-05, %v4893_v54  ;;  %v4894_v25 = vmul.f32 0.03125, %v4878_v29 }
0x1275   :  { %5099 = vst.msk [vmem:[%s9361_s15] sm:$0xff] %vm104_vm0, %v5083_v61  ;;  %v5084_v5 = vmul.f32 %v9080_v52, %v4972_v46  ;;  %v4977_v23 = vadd.f32 %v9219_v58, %v4955_v43  ;;  %v4956_v49 = vmul.f32 %v9213_v32, %v4934_v27  ;;  %v4931_v1 = vmul.f32 %v6782_v3, %v9137_v53  ;;  %v4869_v18 = vpop.xlane.xlu0 %4868 }
0x1276   :  { %v6784_v38 = vpop.eup %6783  ;;  %6793 = vrsqrt.f32 %v4909_v6  ;;  %v4910_v22 = vadd.f32 1e-05, %v4894_v25  ;;  %v4891_v37 = vmul.f32 0.03125, %v4869_v18 }
0x1277   :  { %5100 = vst.msk [vmem:[%s9361_s15 + $0x8] sm:$0xff] %vm104_vm0, %v5084_v5  ;;  %v5089_v2 = vmul.f32 %v9090_v47, %v4977_v23  ;;  %v4978_v52 = vadd.f32 %v9219_v58, %v4956_v49  ;;  %v4953_v35 = vmul.f32 %v9213_v32, %v4931_v1  ;;  %v4932_v42 = vmul.f32 %v6784_v38, %v9143_v36  ;;  %v4872_v48 = vpop.xlane.xlu1 %4871 }
0x1278   :  { %v6786_v53 = vpop.eup %6785  ;;  %6795 = vrsqrt.f32 %v4910_v22  ;;  %v4907_v11 = vadd.f32 1e-05, %v4891_v37  ;;  %v4892_v51 = vmul.f32 0.03125, %v4872_v48 }
0x1279   :  { %5105 = vst.msk [vmem:[%s9361_s15 + $0x30] sm:$0xff] %vm104_vm0, %v5089_v2  ;;  %v5090_v44 = vmul.f32 %v9094_v57, %v4978_v52  ;;  %v4975_v47 = vadd.f32 %v9219_v58, %v4953_v35  ;;  %v4954_v24 = vmul.f32 %v9213_v32, %v4932_v42  ;;  %v4937_v41 = vmul.f32 %v6786_v53, %v9149_v56 }
0x127a   :  { %v6788_v16 = vpop.eup %6787  ;;  %6797 = vrsqrt.f32 %v4907_v11  ;;  %v4908_v36 = vadd.f32 1e-05, %v4892_v51 }
0x127b   :  { %5106 = vst.msk [vmem:[%s9361_s15 + $0x38] sm:$0xff] %vm104_vm0, %v5090_v44  ;;  %v5087_v7 = vmul.f32 %v9086_v17, %v4975_v47  ;;  %v4976_v62 = vadd.f32 %v9219_v58, %v4954_v24  ;;  %v4959_v57 = vmul.f32 %v9213_v32, %v4937_v41  ;;  %v4938_v15 = vmul.f32 %v6788_v16, %v9155_v12  ;;  %v5076_v29 = vpop.permute.xlu1 %5075 }
0x127c   :  { %v6790_v13 = vpop.eup %6789  ;;  %6799 = vrsqrt.f32 %v4908_v36 }
0x127d   :  { %5103 = vst.msk [vmem:[%s9361_s15 + $0x20] sm:$0xff] %vm104_vm0, %v5087_v7  ;;  %v5088_v56 = vmul.f32 %v9088_v59, %v4976_v62  ;;  %v4981_v28 = vadd.f32 %v9219_v58, %v4959_v57  ;;  %v4960_v19 = vmul.f32 %v9213_v32, %v4938_v15  ;;  %v4935_v17 = vmul.f32 %v6790_v13, %v9161_v33  ;;  %v5081_v25 = vpop.permute.xlu0 %5080 }
0x127e   :  { %v6792_v40 = vpop.eup %6791 }
0x127f   :  { %5104 = vst.msk [vmem:[%s9361_s15 + $0x28] sm:$0xff] %vm104_vm0, %v5088_v56  ;;  %v5093_v12 = vmul.f32 %v9102_v8, %v4981_v28  ;;  %v4982_v21 = vadd.f32 %v9219_v58, %v4960_v19  ;;  %v4957_v14 = vmul.f32 %v9213_v32, %v4935_v17  ;;  %v4936_v59 = vmul.f32 %v6792_v40, %v9167_v0 }
0x1280   :  { %v6794_v50 = vpop.eup %6793 }
0x1281   :  { %5109 = vst.msk [vmem:[%s9361_s15 + $0x50] sm:$0xff] %vm104_vm0, %v5093_v12  ;;  %v5094_v33 = vmul.f32 %v9100_v10, %v4982_v21  ;;  %v4979_v4 = vadd.f32 %v9219_v58, %v4957_v14  ;;  %v4958_v39 = vmul.f32 %v9213_v32, %v4936_v59  ;;  %v4941_v8 = vmul.f32 %v6794_v50, %v9173_v30 }
0x1282   :  { %v6796_v55 = vpop.eup %6795 }
0x1283   :  { %5110 = vst.msk [vmem:[%s9361_s15 + $0x58] sm:$0xff] %vm104_vm0, %v5094_v33  ;;  %v5091_v0 = vmul.f32 %v9098_v26, %v4979_v4  ;;  %v4980_v9 = vadd.f32 %v9219_v58, %v4958_v39  ;;  %v4963_v54 = vmul.f32 %v9213_v32, %v4941_v8  ;;  %v4942_v10 = vmul.f32 %v6796_v55, %v9179_v63 }
0x1284   :  { %v6798_v61 = vpop.eup %6797 }
0x1285   :  { %5107 = vst.msk [vmem:[%s9361_s15 + $0x40] sm:$0xff] %vm104_vm0, %v5091_v0  ;;  %v5092_v30 = vmul.f32 %v9096_v45, %v4980_v9  ;;  %v4939_v46 = vmul.f32 %v6798_v61, %v9185_v20  ;;  %v4985_v43 = vadd.f32 %v9219_v58, %v4963_v54  ;;  %v4964_v26 = vmul.f32 %v9213_v32, %v4942_v10 }
0x1286   :  { %v6800_v27 = vpop.eup %6799 }
0x1287   :  { %5108 = vst.msk [vmem:[%s9361_s15 + $0x48] sm:$0xff] %vm104_vm0, %v5092_v30  ;;  %v4961_v63 = vmul.f32 %v9213_v32, %v4939_v46  ;;  %v4940_v3 = vmul.f32 %v6800_v27, %v9191_v34  ;;  %v5097_v6 = vmul.f32 %v5076_v29, %v4985_v43  ;;  %v4986_v45 = vadd.f32 %v9219_v58, %v4964_v26 }
0x1289   :  { %v4983_v20 = vadd.f32 %v9219_v58, %v4961_v63  ;;  %v4962_v5 = vmul.f32 %v9213_v32, %v4940_v3  ;;  %5113 = vst.msk [vmem:[%s9361_s15 + $0x70] sm:$0xff] %vm104_vm0, %v5097_v6  ;;  %v5098_v23 = vmul.f32 %v5081_v25, %v4986_v45 }
0x128b   :  { %v5095_v49 = vmul.f32 %v9208_v60, %v4983_v20  ;;  %v4984_v1 = vadd.f32 %v9219_v58, %v4962_v5  ;;  %5114 = vst.msk [vmem:[%s9361_s15 + $0x78] sm:$0xff] %vm104_vm0, %v5098_v23 }
0x128d   :  { %5111 = vst.msk [vmem:[%s9361_s15 + $0x60] sm:$0xff] %vm104_vm0, %v5095_v49  ;;  %v5096_v34 = vmul.f32 %v9206_v31, %v4984_v1 }
0x128f   :  { %5112 = vst.msk [vmem:[%s9361_s15 + $0x68] sm:$0xff] %vm104_vm0, %v5096_v34 }

</bundles_post_ra>
